<compile_context>
chip_gen: v7x
topology: tpu7x:2x2x1
jax: 0.10.0
libtpu: 0.0.40
codegen_flags: <defaults>
</compile_context>

<pallas_src>
import functools

import jax
import jax.numpy as jnp
from jax.experimental import pallas as pl
from jax.experimental.pallas import tpu as pltpu

EPS = 1e-5                      # PyTorch LayerNorm default
Q_BLOCK = 256                   # Lq tile for the attention kernel


def _detect_vmem_capacity():
    cap = 128 * 1024 * 1024
    try:
        info = pltpu.get_tpu_info()
        cap = int(getattr(info, "vmem_capacity_bytes", cap)) or cap
    except Exception:
        pass
    return cap


_VMEM_CAP = _detect_vmem_capacity()
if _VMEM_CAP <= 64 * 1024 * 1024:            # v7x: 64 MiB per TensorCore
    VMEM_LIMIT = 40 * 1024 * 1024
    BLOCK_M = 512
else:                                        # v5e / v6e: 128 MiB
    VMEM_LIMIT = 96 * 1024 * 1024
    BLOCK_M = 1024


def _cp(n_grid):
    return pltpu.CompilerParams(
        dimension_semantics=("parallel",) * n_grid,
        vmem_limit_bytes=VMEM_LIMIT)


def _layernorm(z, g, b):
    mu = jnp.mean(z, axis=-1, keepdims=True)
    var = jnp.mean(jnp.square(z - mu), axis=-1, keepdims=True)
    return (z - mu) * jax.lax.rsqrt(var + EPS) * g + b


# ----------------------------- row-tiled matmul-family kernels -----------------------------

def _linear_kernel(x_ref, w_ref, b_ref, o_ref):
    y = jnp.dot(x_ref[...], w_ref[...], preferred_element_type=jnp.float32) + b_ref[...]
    o_ref[...] = y.astype(o_ref.dtype)


def _enc_qkv_kernel(x_ref, pos_ref, wqk_ref, bqk_ref, wv_ref, bv_ref, q_ref, kv_ref):
    """q,k from (x+pos)@[Wq|Wk]; v from x@Wv.  Outputs q:[bm,D], kv:[bm,2D] bf16."""
    D = q_ref.shape[1]
    x = x_ref[...]
    xp = (x.astype(jnp.float32) + pos_ref[...].astype(jnp.float32)).astype(jnp.bfloat16)
    qk = jnp.dot(xp, wqk_ref[...], preferred_element_type=jnp.float32) + bqk_ref[...]
    v = jnp.dot(x, wv_ref[...], preferred_element_type=jnp.float32) + bv_ref[...]
    q_ref[...] = qk[:, :D].astype(q_ref.dtype)
    kv_ref[...] = jnp.concatenate([qk[:, D:], v], axis=-1).astype(kv_ref.dtype)


def _split_qkv_kernel(x_ref, w_ref, b_ref, q_ref, kv_ref):
    """x@[Wq|Wk|Wv] -> q:[bm,D], kv:[bm,2D] bf16 (decoder self-attention)."""
    D = q_ref.shape[1]
    y = jnp.dot(x_ref[...], w_ref[...], preferred_element_type=jnp.float32) + b_ref[...]
    q_ref[...] = y[:, :D].astype(q_ref.dtype)
    kv_ref[...] = y[:, D:].astype(kv_ref.dtype)


def _mem_kv_kernel(mem_ref, pos_ref, wk_ref, bk_ref, wv_ref, bv_ref, kv_ref):
    """k from (mem+pos)@Wk; v from mem@Wv.  Output kv:[bm,2D] bf16 (decoder cross-attn)."""
    mem = mem_ref[...]
    mp = (mem.astype(jnp.float32) + pos_ref[...].astype(jnp.float32)).astype(jnp.bfloat16)
    k = jnp.dot(mp, wk_ref[...], preferred_element_type=jnp.float32) + bk_ref[...]
    v = jnp.dot(mem, wv_ref[...], preferred_element_type=jnp.float32) + bv_ref[...]
    kv_ref[...] = jnp.concatenate([k, v], axis=-1).astype(kv_ref.dtype)


def _ffn_res_ln_kernel(x_ref, w1_ref, b1_ref, w2_ref, b2_ref, g_ref, bb_ref, o_ref):
    x = x_ref[...]
    h = jnp.dot(x, w1_ref[...], preferred_element_type=jnp.float32) + b1_ref[...]
    h = jnp.maximum(h, 0.0)                                   # relu
    y = jnp.dot(h.astype(jnp.bfloat16), w2_ref[...],
                preferred_element_type=jnp.float32) + b2_ref[...]
    o_ref[...] = _layernorm(x.astype(jnp.float32) + y,
                            g_ref[...], bb_ref[...]).astype(o_ref.dtype)


def _ln_linear_kernel(x_ref, g_ref, bb_ref, w_ref, b_ref, o_ref):
    z = _layernorm(x_ref[...].astype(jnp.float32), g_ref[...], bb_ref[...])
    o_ref[...] = (jnp.dot(z.astype(jnp.bfloat16), w_ref[...],
                          preferred_element_type=jnp.float32) + b_ref[...]).astype(o_ref.dtype)


def _pick_bm(M):
    """Row tile: <= BLOCK_M, multiple of 8, and >=2 grid steps when possible (v7x 2 TCs)."""
    if M <= 8:
        return M
    return min(BLOCK_M, ((M + 1) // 2 + 7) // 8 * 8)


def _row_call(kernel, M, arrs, row_widths, out_widths, out_dtypes):
    """Tile over M. row_widths[i] is not None => arrs[i] is row-tiled with that width,
    otherwise it is a resident weight/bias (constant index_map)."""
    bm = _pick_bm(M)
    grid = (pl.cdiv(M, bm),)
    in_specs = []
    for a, rw in zip(arrs, row_widths):
        if rw is not None:
            in_specs.append(pl.BlockSpec((bm, rw), lambda i: (i, 0)))
        else:
            in_specs.append(pl.BlockSpec(a.shape, lambda i: (0, 0)))
    out_shape = tuple(jax.ShapeDtypeStruct((M, w), dt)
                      for w, dt in zip(out_widths, out_dtypes))
    out_specs = tuple(pl.BlockSpec((bm, w), lambda i: (i, 0)) for w in out_widths)
    if len(out_widths) == 1:
        out_shape, out_specs = out_shape[0], out_specs[0]
    return pl.pallas_call(
        kernel,
        out_shape=out_shape,
        grid=grid,
        in_specs=in_specs,
        out_specs=out_specs,
        compiler_params=_cp(1),
    )(*arrs)


# ----------------------------- fused attention kernel -----------------------------

def _attn_res_ln_kernel(q_ref, kv_ref, bias_ref, res_ref, wo_ref, bo_ref, g_ref, gb_ref,
                        o_ref, *, nhead, causal, q_block):
    """softmax(q k^T + bias) v  -> out-proj -> +residual -> LayerNorm, one store.
    q_ref/res_ref: [1,TQ,D] bf16; kv_ref: [1,Lk,2D] bf16 (k|v); bias_ref: [1,1,Lk] f32."""
    TQ, D = q_ref.shape[1], q_ref.shape[2]
    Lk = kv_ref.shape[1]
    Dh = D // nhead
    q = q_ref[0]
    kv = kv_ref[0]

    s_bias = bias_ref[0]                                      # [1, Lk] key-padding bias
    if causal:
        q0 = pl.program_id(1) * q_block                       # global q-row offset
        rows = q0 + jax.lax.broadcasted_iota(jnp.int32, (TQ, Lk), 0)
        cols = jax.lax.broadcasted_iota(jnp.int32, (TQ, Lk), 1)
        s_bias = s_bias + jnp.where(cols > rows, -1e9, 0.0).astype(jnp.float32)

    heads = []
    for h in range(nhead):                                    # static unroll over heads
        qh = q[:, h * Dh:(h + 1) * Dh]
        kh = kv[:, h * Dh:(h + 1) * Dh]
        vh = kv[:, D + h * Dh:D + (h + 1) * Dh]
        s = jnp.einsum('qd,kd->qk', qh, kh,
                       preferred_element_type=jnp.float32) + s_bias
        m = jnp.max(s, axis=-1, keepdims=True)
        p = jnp.exp(s - m)
        denom = jnp.sum(p, axis=-1, keepdims=True)
        oh = jnp.einsum('qk,kd->qd', p.astype(jnp.bfloat16), vh,
                        preferred_element_type=jnp.float32)
        heads.append(oh * pl.reciprocal(denom, approx=True))  # EUP recip on O(TQ*Dh)

    attn = jnp.concatenate(heads, axis=-1).astype(jnp.bfloat16)          # [TQ, D]
    y = jnp.dot(attn, wo_ref[...], preferred_element_type=jnp.float32) + bo_ref[...]
    z = res_ref[0].astype(jnp.float32) + y
    o_ref[0] = _layernorm(z, g_ref[...], gb_ref[...]).astype(o_ref.dtype)


def attn_res_ln(q, kv, bias, res, wo, bo, g, gb, nhead, causal):
    B, Lq, D = q.shape
    Lk = kv.shape[1]
    tq = Lq if Lq <= Q_BLOCK else Q_BLOCK
    grid = (B, pl.cdiv(Lq, tq))
    kern = functools.partial(_attn_res_ln_kernel, nhead=nhead, causal=causal, q_block=tq)
    return pl.pallas_call(
        kern,
        out_shape=jax.ShapeDtypeStruct((B, Lq, D), jnp.bfloat16),
        grid=grid,
        in_specs=[
            pl.BlockSpec((1, tq, D), lambda b, i: (b, i, 0)),      # q (Lq-tiled)
            pl.BlockSpec((1, Lk, 2 * D), lambda b, i: (b, 0, 0)),  # kv (full K/V resident)
            pl.BlockSpec((1, 1, Lk), lambda b, i: (b, 0, 0)),      # key-padding bias
            pl.BlockSpec((1, tq, D), lambda b, i: (b, i, 0)),      # residual
            pl.BlockSpec((D, D), lambda b, i: (0, 0)),             # W_o (resident)
            pl.BlockSpec((1, D), lambda b, i: (0, 0)),             # b_o
            pl.BlockSpec((1, D), lambda b, i: (0, 0)),             # LN gamma
            pl.BlockSpec((1, D), lambda b, i: (0, 0)),             # LN beta
        ],
        out_specs=pl.BlockSpec((1, tq, D), lambda b, i: (b, i, 0)),
        compiler_params=_cp(2),
    )(q, kv, bias, res, wo, bo, g, gb)


# --------------------------- Transformer blocks ---------------------------

def encoder_layer_fwd(x, pos, pad_bias, p, nhead):
    B, L, D = x.shape
    M = B * L
    x2d = x.reshape(M, D)
    sa = p['sa']
    q2d, kv2d = _row_call(
        _enc_qkv_kernel, M,
        [x2d, pos.reshape(M, D), sa['w_qk'], sa['b_qk'], sa['w_v'], sa['b_v']],
        [D, D, None, None, None, None],
        [D, 2 * D], [jnp.bfloat16, jnp.bfloat16])
    x = attn_res_ln(q2d.reshape(B, L, D), kv2d.reshape(B, L, 2 * D), pad_bias, x,
                    sa['w_o'], sa['b_o'], p['n1g'], p['n1b'], nhead, causal=False)
    y2d = _row_call(
        _ffn_res_ln_kernel, M,
        [x.reshape(M, D), p['w1'], p['b1'], p['w2'], p['b2'], p['n2g'], p['n2b']],
        [D, None, None, None, None, None, None],
        [D], [jnp.bfloat16])
    return y2d.reshape(B, L, D)


def decoder_layer_fwd(t, memory, pos, mem_bias, zero_bias, p, nhead):
    # pix2seq's custom `Attention` (self-attn with kv-cache) reduces to standard
    # multihead self-attention with a causal mask when pre_kv is empty (training).
    B, S, D = t.shape
    L = memory.shape[1]
    Ms, Ml = B * S, B * L
    sa, ca = p['sa'], p['ca']

    q2d, kv2d = _row_call(
        _split_qkv_kernel, Ms,
        [t.reshape(Ms, D), sa['w_qkv'], sa['b_qkv']],
        [D, None, None],
        [D, 2 * D], [jnp.bfloat16, jnp.bfloat16])
    t = attn_res_ln(q2d.reshape(B, S, D), kv2d.reshape(B, S, 2 * D), zero_bias, t,
                    sa['w_o'], sa['b_o'], p['n1g'], p['n1b'], nhead, causal=True)

    q2d = _row_call(
        _linear_kernel, Ms,
        [t.reshape(Ms, D), ca['w_q'], ca['b_q']],
        [D, None, None],
        [D], [jnp.bfloat16])
    mkv2d = _row_call(
        _mem_kv_kernel, Ml,
        [memory.reshape(Ml, D), pos.reshape(Ml, D),
         ca['w_k'], ca['b_k'], ca['w_v'], ca['b_v']],
        [D, D, None, None, None, None],
        [2 * D], [jnp.bfloat16])
    t = attn_res_ln(q2d.reshape(B, S, D), mkv2d.reshape(B, L, 2 * D), mem_bias, t,
                    ca['w_o'], ca['b_o'], p['n2g'], p['n2b'], nhead, causal=False)

    t2d = _row_call(
        _ffn_res_ln_kernel, Ms,
        [t.reshape(Ms, D), p['w1'], p['b1'], p['w2'], p['b2'], p['n3g'], p['n3b']],
        [D, None, None, None, None, None, None],
        [D], [jnp.bfloat16])
    return t2d.reshape(B, S, D)


def transformer_forward(params, src, input_seq, mask, pos_embed, cfg):
    """Training-mode forward: returns pred_seq_logits [B, 1+T, num_vocal]."""
    B, C, H, W = src.shape
    L = H * W
    D, nhead, V = cfg['d_model'], cfg['nhead'], cfg['num_vocal']

    # [B,C,H,W] -> [B,L,D] batch-first layout (math identical to PyTorch seq-first)
    x = src.reshape(B, C, L).transpose(0, 2, 1).astype(jnp.bfloat16)
    pos = pos_embed.reshape(B, C, L).transpose(0, 2, 1).astype(jnp.bfloat16)
    maskf = mask.reshape(B, L)
    mem_bias = jnp.where(maskf, -1e9, 0.0).astype(jnp.float32)[:, None, :]   # [B,1,L]

    for lp in params['encoder_layers']:
        x = encoder_layer_fwd(x, pos, mem_bias, lp, nhead)
    memory = x                                                                # bf16 [B,L,D]

    # decoder input embeddings
    # TODO(synk): torch only clamps the upper bound; we clip both ends so negative
    # ids cannot silently gather out of bounds on TPU.
    seq = jnp.clip(input_seq, 0, V - 3)
    tok = params['vocal_embed'][seq]                                          # [B,T,D]
    det = jnp.broadcast_to(params['det_embed'][None, :, :], (B, 1, D))        # [B,1,D]
    tgt = jnp.concatenate([det, tok], axis=1).astype(jnp.bfloat16)            # [B,S,D]
    S = tgt.shape[1]
    zero_bias = jnp.zeros((B, 1, S), jnp.float32)

    for lp in params['decoder_layers']:
        tgt = decoder_layer_fwd(tgt, memory, pos, mem_bias, zero_bias, lp, nhead)

    # final decoder LayerNorm fused with the (lane-dense padded) classifier
    Vpad = params['cls_b'].shape[1]
    logits_pad = _row_call(
        _ln_linear_kernel, B * S,
        [tgt.reshape(B * S, D), params['dec_norm_g'], params['dec_norm_b'],
         params['cls_w'], params['cls_b']],
        [D, None, None, None, None],
        [Vpad], [jnp.float32])
    return logits_pad[:, :V].reshape(B, S, V)


# ------------------------------ Param init --------------------------------

def _xavier(key, shape):
    fan_in, fan_out = shape
    bound = (6.0 / (fan_in + fan_out)) ** 0.5
    return jax.random.uniform(key, shape, jnp.float32, -bound, bound)


def init_params(key, cfg):
    d, f, v = cfg['d_model'], cfg['dim_feedforward'], cfg['num_vocal']
    nhead = cfg['nhead']
    scale = float(d // nhead) ** -0.5            # folded into Q projection weights
    vpad = ((v + 127) // 128) * 128              # lane-dense classifier output
    keys = iter(jax.random.split(key, 1024))
    nxt = lambda: next(keys)
    zeros = lambda n: jnp.zeros((1, n), jnp.float32)
    ones = lambda n: jnp.ones((1, n), jnp.float32)

    def mha_enc():       # encoder self-attn: q,k share input -> fused [d,2d]
        wq, wk = _xavier(nxt(), (d, d)) * scale, _xavier(nxt(), (d, d))
        return dict(
            w_qk=jnp.concatenate([wq, wk], axis=1).astype(jnp.bfloat16), b_qk=zeros(2 * d),
            w_v=_xavier(nxt(), (d, d)).astype(jnp.bfloat16), b_v=zeros(d),
            w_o=_xavier(nxt(), (d, d)).astype(jnp.bfloat16), b_o=zeros(d))

    def mha_dec_self():  # decoder self-attn: q=k=v -> fused [d,3d]
        wq = _xavier(nxt(), (d, d)) * scale
        wk, wv = _xavier(nxt(), (d, d)), _xavier(nxt(), (d, d))
        return dict(
            w_qkv=jnp.concatenate([wq, wk, wv], axis=1).astype(jnp.bfloat16),
            b_qkv=zeros(3 * d),
            w_o=_xavier(nxt(), (d, d)).astype(jnp.bfloat16), b_o=zeros(d))

    def mha_cross():     # decoder cross-attn: q(tgt) / k(mem+pos) / v(mem)
        return dict(
            w_q=(_xavier(nxt(), (d, d)) * scale).astype(jnp.bfloat16), b_q=zeros(d),
            w_k=_xavier(nxt(), (d, d)).astype(jnp.bfloat16), b_k=zeros(d),
            w_v=_xavier(nxt(), (d, d)).astype(jnp.bfloat16), b_v=zeros(d),
            w_o=_xavier(nxt(), (d, d)).astype(jnp.bfloat16), b_o=zeros(d))

    def ffn_ln(n_norms):
        p = dict(w1=_xavier(nxt(), (d, f)).astype(jnp.bfloat16), b1=zeros(f),
                 w2=_xavier(nxt(), (f, d)).astype(jnp.bfloat16), b2=zeros(d))
        for i in range(1, n_norms + 1):
            p[f'n{i}g'] = ones(d)
            p[f'n{i}b'] = zeros(d)
        return p

    enc = [dict(sa=mha_enc(), **ffn_ln(2)) for _ in range(cfg['num_encoder_layers'])]
    dec = [dict(sa=mha_dec_self(), ca=mha_cross(), **ffn_ln(3))
           for _ in range(cfg['num_decoder_layers'])]

    cls_w = jnp.zeros((d, vpad), jnp.float32).at[:, :v].set(_xavier(nxt(), (d, v)))
    return dict(
        encoder_layers=enc, decoder_layers=dec,
        dec_norm_g=ones(d), dec_norm_b=zeros(d),
        cls_w=cls_w.astype(jnp.bfloat16), cls_b=zeros(vpad),
        det_embed=_xavier(nxt(), (1, d)),
        vocal_embed=_xavier(nxt(), (v - 2, d)))


# --------------------------------- main ------------------------------------

if __name__ == "__main__":
    cfg = dict(d_model=32, nhead=4, num_encoder_layers=2, num_decoder_layers=2,
               dim_feedforward=64, num_vocal=20)
    # Note: this demo config (D=32, L=16, Dh=8) is far below the (8,128) tile minima;
    # it is a functional smoke test, not a perf benchmark (evaluate perf at D>=256).

    B, C, H, W = 2, cfg['d_model'], 4, 4
    T = 8  # decoder sees 1 + T positions

    root = jax.random.PRNGKey(0)
    k_p, k_src, k_pos, k_seq = jax.random.split(root, 4)

    params = init_params(k_p, cfg)

    src = jax.random.normal(k_src, (B, C, H, W), jnp.float32)
    pos_embed = jax.random.normal(k_pos, (B, C, H, W), jnp.float32)
    input_seq = jax.random.randint(k_seq, (B, T), 0, cfg['num_vocal'] - 2)
    mask = jnp.zeros((B, H, W), jnp.bool_).at[:, -1, -1].set(True)

    fwd = jax.jit(functools.partial(transformer_forward, cfg=cfg))
    logits = fwd(params, src, input_seq, mask, pos_embed)
    jax.block_until_ready(logits)

    assert logits.shape == (B, 1 + T, cfg['num_vocal'])
    assert bool(jnp.all(jnp.isfinite(logits)))
    # TODO(synk): inference branch (autoregressive loop + tokenizer output constraints
    # + kv-cache) not implemented; dropout is identity (eval semantics).
    print("KERNEL_OK")
</pallas_src>

<mosaic_0001>
module attributes {stable_mosaic.version = 11 : i64} {
  func.func @_enc_qkv_kernel(%arg0: i32, %arg1: memref<16x32xbf16, #tpu.memory_space<vmem>>, %arg2: memref<16x32xbf16, #tpu.memory_space<vmem>>, %arg3: memref<32x64xbf16, #tpu.memory_space<vmem>>, %arg4: memref<1x64xf32, #tpu.memory_space<vmem>>, %arg5: memref<32x32xbf16, #tpu.memory_space<vmem>>, %arg6: memref<1x32xf32, #tpu.memory_space<vmem>>, %arg7: memref<16x32xbf16, #tpu.memory_space<vmem>>, %arg8: memref<16x64xbf16, #tpu.memory_space<vmem>>) attributes {dimension_semantics = [#tpu.dimension_semantics<parallel>], iteration_bounds = array<i64: 2>, scalar_prefetch = 0 : i64, scratch_operands = 0 : i64, tpu.core_type = #tpu.core_type<tc>, window_params = [{transform_indices = @transform_0, window_bounds = array<i64: 16, 32>}, {transform_indices = @transform_1, window_bounds = array<i64: 16, 32>}, {pipeline_mode = #tpu.pipeline_mode<synchronous>, transform_indices = @transform_2, window_bounds = array<i64: 32, 64>}, {pipeline_mode = #tpu.pipeline_mode<synchronous>, transform_indices = @transform_3, window_bounds = array<i64: 1, 64>}, {pipeline_mode = #tpu.pipeline_mode<synchronous>, transform_indices = @transform_4, window_bounds = array<i64: 32, 32>}, {pipeline_mode = #tpu.pipeline_mode<synchronous>, transform_indices = @transform_5, window_bounds = array<i64: 1, 32>}, {transform_indices = @transform_6, window_bounds = array<i64: 16, 32>}, {transform_indices = @transform_7, window_bounds = array<i64: 16, 64>}]} {
    %c0 = arith.constant 0 : index
    %c0_0 = arith.constant 0 : index
    %0 = vector.load %arg1[%c0, %c0_0] : memref<16x32xbf16, #tpu.memory_space<vmem>>, vector<16x32xbf16>
    %1 = arith.extf %0 : vector<16x32xbf16> to vector<16x32xf32>
    %c0_1 = arith.constant 0 : index
    %c0_2 = arith.constant 0 : index
    %2 = vector.load %arg2[%c0_1, %c0_2] : memref<16x32xbf16, #tpu.memory_space<vmem>>, vector<16x32xbf16>
    %3 = arith.extf %2 : vector<16x32xbf16> to vector<16x32xf32>
    %4 = arith.addf %1, %3 : vector<16x32xf32>
    %5 = arith.truncf %4 : vector<16x32xf32> to vector<16x32xbf16>
    %c0_3 = arith.constant 0 : index
    %c0_4 = arith.constant 0 : index
    %6 = vector.load %arg3[%c0_3, %c0_4] : memref<32x64xbf16, #tpu.memory_space<vmem>>, vector<32x64xbf16>
    %cst = arith.constant dense<0.000000e+00> : vector<16x64xf32>
    %7 = tpu.matmul %5, %6, %cst {dimension_numbers = #tpu.dot_dimension_numbers<[1], [0], [0], [1], [0, 0, 1, 1], [], []>} : vector<16x32xbf16>, vector<32x64xbf16>, vector<16x64xf32> -> vector<16x64xf32>
    %c0_5 = arith.constant 0 : index
    %c0_6 = arith.constant 0 : index
    %8 = vector.load %arg4[%c0_5, %c0_6] : memref<1x64xf32, #tpu.memory_space<vmem>>, vector<1x64xf32>
    %9 = vector.broadcast %8 : vector<1x64xf32> to vector<16x64xf32>
    %10 = arith.addf %7, %9 : vector<16x64xf32>
    %c0_7 = arith.constant 0 : index
    %c0_8 = arith.constant 0 : index
    %11 = vector.load %arg5[%c0_7, %c0_8] : memref<32x32xbf16, #tpu.memory_space<vmem>>, vector<32x32xbf16>
    %cst_9 = arith.constant dense<0.000000e+00> : vector<16x32xf32>
    %12 = tpu.matmul %0, %11, %cst_9 {dimension_numbers = #tpu.dot_dimension_numbers<[1], [0], [0], [1], [0, 0, 1, 1], [], []>} : vector<16x32xbf16>, vector<32x32xbf16>, vector<16x32xf32> -> vector<16x32xf32>
    %c0_10 = arith.constant 0 : index
    %c0_11 = arith.constant 0 : index
    %13 = vector.load %arg6[%c0_10, %c0_11] : memref<1x32xf32, #tpu.memory_space<vmem>>, vector<1x32xf32>
    %14 = vector.broadcast %13 : vector<1x32xf32> to vector<16x32xf32>
    %15 = arith.addf %12, %14 : vector<16x32xf32>
    %16 = vector.extract_strided_slice %10 {offsets = [0, 0], sizes = [16, 32], strides = [1, 1]} : vector<16x64xf32> to vector<16x32xf32>
    %17 = arith.truncf %16 : vector<16x32xf32> to vector<16x32xbf16>
    %c0_12 = arith.constant 0 : index
    %c0_13 = arith.constant 0 : index
    %18 = vector.load %arg7[%c0_12, %c0_13] : memref<16x32xbf16, #tpu.memory_space<vmem>>, vector<16x32xbf16>
    tpu.vector_store %arg7[%c0_12, %c0_13], %17 {strides = array<i32>} : memref<16x32xbf16, #tpu.memory_space<vmem>>, vector<16x32xbf16>,
    %19 = vector.extract_strided_slice %10 {offsets = [0, 32], sizes = [16, 32], strides = [1, 1]} : vector<16x64xf32> to vector<16x32xf32>
    %20 = tpu.concatenate %19, %15 in 1 : vector<16x32xf32>, vector<16x32xf32> -> vector<16x64xf32>
    %21 = arith.truncf %20 : vector<16x64xf32> to vector<16x64xbf16>
    %c0_14 = arith.constant 0 : index
    %c0_15 = arith.constant 0 : index
    %22 = vector.load %arg8[%c0_14, %c0_15] : memref<16x64xbf16, #tpu.memory_space<vmem>>, vector<16x64xbf16>
    tpu.vector_store %arg8[%c0_14, %c0_15], %21 {strides = array<i32>} : memref<16x64xbf16, #tpu.memory_space<vmem>>, vector<16x64xbf16>,
    return
  }
  func.func @transform_0(%arg0: i32) -> (i32, i32) {
    %c0_i32 = arith.constant 0 : i32
    %c0_i32_0 = arith.constant 0 : i32
    return %arg0, %c0_i32 : i32, i32
  }
  func.func @transform_1(%arg0: i32) -> (i32, i32) {
    %c0_i32 = arith.constant 0 : i32
    %c0_i32_0 = arith.constant 0 : i32
    return %arg0, %c0_i32 : i32, i32
  }
  func.func @transform_2(%arg0: i32) -> (i32, i32) {
    %c0_i32 = arith.constant 0 : i32
    %c0_i32_0 = arith.constant 0 : i32
    %c0_i32_1 = arith.constant 0 : i32
    return %c0_i32, %c0_i32_0 : i32, i32
  }
  func.func @transform_3(%arg0: i32) -> (i32, i32) {
    %c0_i32 = arith.constant 0 : i32
    %c0_i32_0 = arith.constant 0 : i32
    %c0_i32_1 = arith.constant 0 : i32
    return %c0_i32, %c0_i32_0 : i32, i32
  }
  func.func @transform_4(%arg0: i32) -> (i32, i32) {
    %c0_i32 = arith.constant 0 : i32
    %c0_i32_0 = arith.constant 0 : i32
    %c0_i32_1 = arith.constant 0 : i32
    return %c0_i32, %c0_i32_0 : i32, i32
  }
  func.func @transform_5(%arg0: i32) -> (i32, i32) {
    %c0_i32 = arith.constant 0 : i32
    %c0_i32_0 = arith.constant 0 : i32
    %c0_i32_1 = arith.constant 0 : i32
    return %c0_i32, %c0_i32_0 : i32, i32
  }
  func.func @transform_6(%arg0: i32) -> (i32, i32) {
    %c0_i32 = arith.constant 0 : i32
    %c0_i32_0 = arith.constant 0 : i32
    return %arg0, %c0_i32 : i32, i32
  }
  func.func @transform_7(%arg0: i32) -> (i32, i32) {
    %c0_i32 = arith.constant 0 : i32
    %c0_i32_0 = arith.constant 0 : i32
    return %arg0, %c0_i32 : i32, i32
  }
}

module attributes {stable_mosaic.version = 11 : i64} {
  func.func @_attn_res_ln_kernel(%arg0: i32, %arg1: i32, %arg2: memref<1x16x32xbf16, #tpu.memory_space<vmem>>, %arg3: memref<1x16x64xbf16, #tpu.memory_space<vmem>>, %arg4: memref<1x1x16xf32, #tpu.memory_space<vmem>>, %arg5: memref<1x16x32xbf16, #tpu.memory_space<vmem>>, %arg6: memref<32x32xbf16, #tpu.memory_space<vmem>>, %arg7: memref<1x32xf32, #tpu.memory_space<vmem>>, %arg8: memref<1x32xf32, #tpu.memory_space<vmem>>, %arg9: memref<1x32xf32, #tpu.memory_space<vmem>>, %arg10: memref<1x16x32xbf16, #tpu.memory_space<vmem>>) attributes {dimension_semantics = [#tpu.dimension_semantics<parallel>, #tpu.dimension_semantics<parallel>], iteration_bounds = array<i64: 2, 1>, scalar_prefetch = 0 : i64, scratch_operands = 0 : i64, tpu.core_type = #tpu.core_type<tc>, window_params = [{transform_indices = @transform_0, window_bounds = array<i64: 1, 16, 32>}, {transform_indices = @transform_1, window_bounds = array<i64: 1, 16, 64>}, {transform_indices = @transform_2, window_bounds = array<i64: 1, 1, 16>}, {transform_indices = @transform_3, window_bounds = array<i64: 1, 16, 32>}, {pipeline_mode = #tpu.pipeline_mode<synchronous>, transform_indices = @transform_4, window_bounds = array<i64: 32, 32>}, {pipeline_mode = #tpu.pipeline_mode<synchronous>, transform_indices = @transform_5, window_bounds = array<i64: 1, 32>}, {pipeline_mode = #tpu.pipeline_mode<synchronous>, transform_indices = @transform_6, window_bounds = array<i64: 1, 32>}, {pipeline_mode = #tpu.pipeline_mode<synchronous>, transform_indices = @transform_7, window_bounds = array<i64: 1, 32>}, {transform_indices = @transform_8, window_bounds = array<i64: 1, 16, 32>}]} {
    %c0 = arith.constant 0 : index
    %c0_0 = arith.constant 0 : index
    %c0_1 = arith.constant 0 : index
    %0 = vector.load %arg2[%c0, %c0_0, %c0_1] : memref<1x16x32xbf16, #tpu.memory_space<vmem>>, vector<1x16x32xbf16>
    %1 = vector.shape_cast %0 : vector<1x16x32xbf16> to vector<16x32xbf16>
    %c0_2 = arith.constant 0 : index
    %c0_3 = arith.constant 0 : index
    %c0_4 = arith.constant 0 : index
    %2 = vector.load %arg3[%c0_2, %c0_3, %c0_4] : memref<1x16x64xbf16, #tpu.memory_space<vmem>>, vector<1x16x64xbf16>
    %3 = vector.shape_cast %2 : vector<1x16x64xbf16> to vector<16x64xbf16>
    %c0_5 = arith.constant 0 : index
    %c0_6 = arith.constant 0 : index
    %c0_7 = arith.constant 0 : index
    %4 = vector.load %arg4[%c0_5, %c0_6, %c0_7] : memref<1x1x16xf32, #tpu.memory_space<vmem>>, vector<1x1x16xf32>
    %5 = vector.shape_cast %4 : vector<1x1x16xf32> to vector<1x16xf32>
    %6 = vector.extract_strided_slice %1 {offsets = [0, 0], sizes = [16, 8], strides = [1, 1]} : vector<16x32xbf16> to vector<16x8xbf16>
    %7 = vector.extract_strided_slice %3 {offsets = [0, 0], sizes = [16, 8], strides = [1, 1]} : vector<16x64xbf16> to vector<16x8xbf16>
    %8 = vector.extract_strided_slice %3 {offsets = [0, 32], sizes = [16, 8], strides = [1, 1]} : vector<16x64xbf16> to vector<16x8xbf16>
    "tpu.trace_start"() <{level = 10 : i32, message = "qd,kd->qk"}> : () -> ()
    %cst = arith.constant dense<0.000000e+00> : vector<16x16xf32>
    %9 = tpu.matmul %6, %7, %cst {dimension_numbers = #tpu.dot_dimension_numbers<[1], [1], [0], [0], [0, 0, 1, 0], [], []>} : vector<16x8xbf16>, vector<16x8xbf16>, vector<16x16xf32> -> vector<16x16xf32>
    "tpu.trace_stop"() : () -> ()
    %10 = vector.broadcast %5 : vector<1x16xf32> to vector<16x16xf32>
    %11 = arith.addf %9, %10 : vector<16x16xf32>
    %cst_8 = arith.constant dense<0xFF800000> : vector<16xf32>
    %12 = vector.multi_reduction <maximumf>, %11, %cst_8 [1] : vector<16x16xf32> to vector<16xf32>
    %13 = vector.shape_cast %12 : vector<16xf32> to vector<16x1xf32>
    %14 = vector.broadcast %13 : vector<16x1xf32> to vector<16x16xf32>
    %15 = arith.subf %11, %14 : vector<16x16xf32>
    %16 = math.exp %15 : vector<16x16xf32>
    %cst_9 = arith.constant dense<0.000000e+00> : vector<16xf32>
    %17 = vector.multi_reduction <add>, %16, %cst_9 [1] : vector<16x16xf32> to vector<16xf32>
    %18 = vector.shape_cast %17 : vector<16xf32> to vector<16x1xf32>
    %19 = arith.truncf %16 : vector<16x16xf32> to vector<16x16xbf16>
    "tpu.trace_start"() <{level = 10 : i32, message = "qk,kd->qd"}> : () -> ()
    %cst_10 = arith.constant dense<0.000000e+00> : vector<16x8xf32>
    %20 = tpu.matmul %19, %8, %cst_10 {dimension_numbers = #tpu.dot_dimension_numbers<[1], [0], [0], [1], [0, 0, 1, 1], [], []>} : vector<16x16xbf16>, vector<16x8xbf16>, vector<16x8xf32> -> vector<16x8xf32>
    "tpu.trace_stop"() : () -> ()
    %21 = tpu.reciprocal %18 {approx = true} : vector<16x1xf32> -> vector<16x1xf32>
    %22 = vector.broadcast %21 : vector<16x1xf32> to vector<16x8xf32>
    %23 = arith.mulf %20, %22 : vector<16x8xf32>
    %24 = vector.extract_strided_slice %1 {offsets = [0, 8], sizes = [16, 8], strides = [1, 1]} : vector<16x32xbf16> to vector<16x8xbf16>
    %25 = vector.extract_strided_slice %3 {offsets = [0, 8], sizes = [16, 8], strides = [1, 1]} : vector<16x64xbf16> to vector<16x8xbf16>
    %26 = vector.extract_strided_slice %3 {offsets = [0, 40], sizes = [16, 8], strides = [1, 1]} : vector<16x64xbf16> to vector<16x8xbf16>
    "tpu.trace_start"() <{level = 10 : i32, message = "qd,kd->qk"}> : () -> ()
    %cst_11 = arith.constant dense<0.000000e+00> : vector<16x16xf32>
    %27 = tpu.matmul %24, %25, %cst_11 {dimension_numbers = #tpu.dot_dimension_numbers<[1], [1], [0], [0], [0, 0, 1, 0], [], []>} : vector<16x8xbf16>, vector<16x8xbf16>, vector<16x16xf32> -> vector<16x16xf32>
    "tpu.trace_stop"() : () -> ()
    %28 = vector.broadcast %5 : vector<1x16xf32> to vector<16x16xf32>
    %29 = arith.addf %27, %28 : vector<16x16xf32>
    %cst_12 = arith.constant dense<0xFF800000> : vector<16xf32>
    %30 = vector.multi_reduction <maximumf>, %29, %cst_12 [1] : vector<16x16xf32> to vector<16xf32>
    %31 = vector.shape_cast %30 : vector<16xf32> to vector<16x1xf32>
    %32 = vector.broadcast %31 : vector<16x1xf32> to vector<16x16xf32>
    %33 = arith.subf %29, %32 : vector<16x16xf32>
    %34 = math.exp %33 : vector<16x16xf32>
    %cst_13 = arith.constant dense<0.000000e+00> : vector<16xf32>
    %35 = vector.multi_reduction <add>, %34, %cst_13 [1] : vector<16x16xf32> to vector<16xf32>
    %36 = vector.shape_cast %35 : vector<16xf32> to vector<16x1xf32>
    %37 = arith.truncf %34 : vector<16x16xf32> to vector<16x16xbf16>
    "tpu.trace_start"() <{level = 10 : i32, message = "qk,kd->qd"}> : () -> ()
    %cst_14 = arith.constant dense<0.000000e+00> : vector<16x8xf32>
    %38 = tpu.matmul %37, %26, %cst_14 {dimension_numbers = #tpu.dot_dimension_numbers<[1], [0], [0], [1], [0, 0, 1, 1], [], []>} : vector<16x16xbf16>, vector<16x8xbf16>, vector<16x8xf32> -> vector<16x8xf32>
    "tpu.trace_stop"() : () -> ()
    %39 = tpu.reciprocal %36 {approx = true} : vector<16x1xf32> -> vector<16x1xf32>
    %40 = vector.broadcast %39 : vector<16x1xf32> to vector<16x8xf32>
    %41 = arith.mulf %38, %40 : vector<16x8xf32>
    %42 = vector.extract_strided_slice %1 {offsets = [0, 16], sizes = [16, 8], strides = [1, 1]} : vector<16x32xbf16> to vector<16x8xbf16>
    %43 = vector.extract_strided_slice %3 {offsets = [0, 16], sizes = [16, 8], strides = [1, 1]} : vector<16x64xbf16> to vector<16x8xbf16>
    %44 = vector.extract_strided_slice %3 {offsets = [0, 48], sizes = [16, 8], strides = [1, 1]} : vector<16x64xbf16> to vector<16x8xbf16>
    "tpu.trace_start"() <{level = 10 : i32, message = "qd,kd->qk"}> : () -> ()
    %cst_15 = arith.constant dense<0.000000e+00> : vector<16x16xf32>
    %45 = tpu.matmul %42, %43, %cst_15 {dimension_numbers = #tpu.dot_dimension_numbers<[1], [1], [0], [0], [0, 0, 1, 0], [], []>} : vector<16x8xbf16>, vector<16x8xbf16>, vector<16x16xf32> -> vector<16x16xf32>
    "tpu.trace_stop"() : () -> ()
    %46 = vector.broadcast %5 : vector<1x16xf32> to vector<16x16xf32>
    %47 = arith.addf %45, %46 : vector<16x16xf32>
    %cst_16 = arith.constant dense<0xFF800000> : vector<16xf32>
    %48 = vector.multi_reduction <maximumf>, %47, %cst_16 [1] : vector<16x16xf32> to vector<16xf32>
    %49 = vector.shape_cast %48 : vector<16xf32> to vector<16x1xf32>
    %50 = vector.broadcast %49 : vector<16x1xf32> to vector<16x16xf32>
    %51 = arith.subf %47, %50 : vector<16x16xf32>
    %52 = math.exp %51 : vector<16x16xf32>
    %cst_17 = arith.constant dense<0.000000e+00> : vector<16xf32>
    %53 = vector.multi_reduction <add>, %52, %cst_17 [1] : vector<16x16xf32> to vector<16xf32>
    %54 = vector.shape_cast %53 : vector<16xf32> to vector<16x1xf32>
    %55 = arith.truncf %52 : vector<16x16xf32> to vector<16x16xbf16>
    "tpu.trace_start"() <{level = 10 : i32, message = "qk,kd->qd"}> : () -> ()
    %cst_18 = arith.constant dense<0.000000e+00> : vector<16x8xf32>
    %56 = tpu.matmul %55, %44, %cst_18 {dimension_numbers = #tpu.dot_dimension_numbers<[1], [0], [0], [1], [0, 0, 1, 1], [], []>} : vector<16x16xbf16>, vector<16x8xbf16>, vector<16x8xf32> -> vector<16x8xf32>
    "tpu.trace_stop"() : () -> ()
    %57 = tpu.reciprocal %54 {approx = true} : vector<16x1xf32> -> vector<16x1xf32>
    %58 = vector.broadcast %57 : vector<16x1xf32> to vector<16x8xf32>
    %59 = arith.mulf %56, %58 : vector<16x8xf32>
    %60 = vector.extract_strided_slice %1 {offsets = [0, 24], sizes = [16, 8], strides = [1, 1]} : vector<16x32xbf16> to vector<16x8xbf16>
    %61 = vector.extract_strided_slice %3 {offsets = [0, 24], sizes = [16, 8], strides = [1, 1]} : vector<16x64xbf16> to vector<16x8xbf16>
    %62 = vector.extract_strided_slice %3 {offsets = [0, 56], sizes = [16, 8], strides = [1, 1]} : vector<16x64xbf16> to vector<16x8xbf16>
    "tpu.trace_start"() <{level = 10 : i32, message = "qd,kd->qk"}> : () -> ()
    %cst_19 = arith.constant dense<0.000000e+00> : vector<16x16xf32>
    %63 = tpu.matmul %60, %61, %cst_19 {dimension_numbers = #tpu.dot_dimension_numbers<[1], [1], [0], [0], [0, 0, 1, 0], [], []>} : vector<16x8xbf16>, vector<16x8xbf16>, vector<16x16xf32> -> vector<16x16xf32>
    "tpu.trace_stop"() : () -> ()
    %64 = vector.broadcast %5 : vector<1x16xf32> to vector<16x16xf32>
    %65 = arith.addf %63, %64 : vector<16x16xf32>
    %cst_20 = arith.constant dense<0xFF800000> : vector<16xf32>
    %66 = vector.multi_reduction <maximumf>, %65, %cst_20 [1] : vector<16x16xf32> to vector<16xf32>
    %67 = vector.shape_cast %66 : vector<16xf32> to vector<16x1xf32>
    %68 = vector.broadcast %67 : vector<16x1xf32> to vector<16x16xf32>
    %69 = arith.subf %65, %68 : vector<16x16xf32>
    %70 = math.exp %69 : vector<16x16xf32>
    %cst_21 = arith.constant dense<0.000000e+00> : vector<16xf32>
    %71 = vector.multi_reduction <add>, %70, %cst_21 [1] : vector<16x16xf32> to vector<16xf32>
    %72 = vector.shape_cast %71 : vector<16xf32> to vector<16x1xf32>
    %73 = arith.truncf %70 : vector<16x16xf32> to vector<16x16xbf16>
    "tpu.trace_start"() <{level = 10 : i32, message = "qk,kd->qd"}> : () -> ()
    %cst_22 = arith.constant dense<0.000000e+00> : vector<16x8xf32>
    %74 = tpu.matmul %73, %62, %cst_22 {dimension_numbers = #tpu.dot_dimension_numbers<[1], [0], [0], [1], [0, 0, 1, 1], [], []>} : vector<16x16xbf16>, vector<16x8xbf16>, vector<16x8xf32> -> vector<16x8xf32>
    "tpu.trace_stop"() : () -> ()
    %75 = tpu.reciprocal %72 {approx = true} : vector<16x1xf32> -> vector<16x1xf32>
    %76 = vector.broadcast %75 : vector<16x1xf32> to vector<16x8xf32>
    %77 = arith.mulf %74, %76 : vector<16x8xf32>
    %78 = tpu.concatenate %23, %41, %59, %77 in 1 : vector<16x8xf32>, vector<16x8xf32>, vector<16x8xf32>, vector<16x8xf32> -> vector<16x32xf32>
    %79 = arith.truncf %78 : vector<16x32xf32> to vector<16x32xbf16>
    %c0_23 = arith.constant 0 : index
    %c0_24 = arith.constant 0 : index
    %80 = vector.load %arg6[%c0_23, %c0_24] : memref<32x32xbf16, #tpu.memory_space<vmem>>, vector<32x32xbf16>
    %cst_25 = arith.constant dense<0.000000e+00> : vector<16x32xf32>
    %81 = tpu.matmul %79, %80, %cst_25 {dimension_numbers = #tpu.dot_dimension_numbers<[1], [0], [0], [1], [0, 0, 1, 1], [], []>} : vector<16x32xbf16>, vector<32x32xbf16>, vector<16x32xf32> -> vector<16x32xf32>
    %c0_26 = arith.constant 0 : index
    %c0_27 = arith.constant 0 : index
    %82 = vector.load %arg7[%c0_26, %c0_27] : memref<1x32xf32, #tpu.memory_space<vmem>>, vector<1x32xf32>
    %83 = vector.broadcast %82 : vector<1x32xf32> to vector<16x32xf32>
    %84 = arith.addf %81, %83 : vector<16x32xf32>
    %c0_28 = arith.constant 0 : index
    %c0_29 = arith.constant 0 : index
    %c0_30 = arith.constant 0 : index
    %85 = vector.load %arg5[%c0_28, %c0_29, %c0_30] : memref<1x16x32xbf16, #tpu.memory_space<vmem>>, vector<1x16x32xbf16>
    %86 = vector.shape_cast %85 : vector<1x16x32xbf16> to vector<16x32xbf16>
    %87 = arith.extf %86 : vector<16x32xbf16> to vector<16x32xf32>
    %88 = arith.addf %87, %84 : vector<16x32xf32>
    %c0_31 = arith.constant 0 : index
    %c0_32 = arith.constant 0 : index
    %89 = vector.load %arg8[%c0_31, %c0_32] : memref<1x32xf32, #tpu.memory_space<vmem>>, vector<1x32xf32>
    %c0_33 = arith.constant 0 : index
    %c0_34 = arith.constant 0 : index
    %90 = vector.load %arg9[%c0_33, %c0_34] : memref<1x32xf32, #tpu.memory_space<vmem>>, vector<1x32xf32>
    %cst_35 = arith.constant dense<0.000000e+00> : vector<16xf32>
    %91 = vector.multi_reduction <add>, %88, %cst_35 [1] : vector<16x32xf32> to vector<16xf32>
    %92 = vector.shape_cast %91 : vector<16xf32> to vector<16x1xf32>
    %cst_36 = arith.constant 3.200000e+01 : f32
    %93 = vector.broadcast %cst_36 : f32 to vector<16x1xf32>
    %94 = arith.divf %92, %93 : vector<16x1xf32>
    %95 = vector.broadcast %94 : vector<16x1xf32> to vector<16x32xf32>
    %96 = arith.subf %88, %95 : vector<16x32xf32>
    %97 = arith.mulf %96, %96 : vector<16x32xf32>
    %cst_37 = arith.constant dense<0.000000e+00> : vector<16xf32>
    %98 = vector.multi_reduction <add>, %97, %cst_37 [1] : vector<16x32xf32> to vector<16xf32>
    %99 = vector.shape_cast %98 : vector<16xf32> to vector<16x1xf32>
    %cst_38 = arith.constant 3.200000e+01 : f32
    %100 = vector.broadcast %cst_38 : f32 to vector<16x1xf32>
    %101 = arith.divf %99, %100 : vector<16x1xf32>
    %102 = vector.broadcast %94 : vector<16x1xf32> to vector<16x32xf32>
    %103 = arith.subf %88, %102 : vector<16x32xf32>
    %cst_39 = arith.constant 9.99999974E-6 : f32
    %104 = vector.broadcast %cst_39 : f32 to vector<16x1xf32>
    %105 = arith.addf %101, %104 : vector<16x1xf32>
    %106 = math.rsqrt %105 : vector<16x1xf32>
    %107 = vector.broadcast %106 : vector<16x1xf32> to vector<16x32xf32>
    %108 = arith.mulf %103, %107 : vector<16x32xf32>
    %109 = vector.broadcast %89 : vector<1x32xf32> to vector<16x32xf32>
    %110 = arith.mulf %108, %109 : vector<16x32xf32>
    %111 = vector.broadcast %90 : vector<1x32xf32> to vector<16x32xf32>
    %112 = arith.addf %110, %111 : vector<16x32xf32>
    %113 = arith.truncf %112 : vector<16x32xf32> to vector<16x32xbf16>
    %c0_40 = arith.constant 0 : index
    %c0_41 = arith.constant 0 : index
    %c0_42 = arith.constant 0 : index
    %114 = vector.load %arg10[%c0_40, %c0_41, %c0_42] : memref<1x16x32xbf16, #tpu.memory_space<vmem>>, vector<1x16x32xbf16>
    %115 = vector.shape_cast %114 : vector<1x16x32xbf16> to vector<16x32xbf16>
    %116 = vector.shape_cast %113 : vector<16x32xbf16> to vector<1x16x32xbf16>
    tpu.vector_store %arg10[%c0_40, %c0_41, %c0_42], %116 {strides = array<i32>} : memref<1x16x32xbf16, #tpu.memory_space<vmem>>, vector<1x16x32xbf16>,
    return
  }
  func.func @transform_0(%arg0: i32, %arg1: i32) -> (i32, i32, i32) {
    %c0_i32 = arith.constant 0 : i32
    %c0_i32_0 = arith.constant 0 : i32
    return %arg0, %arg1, %c0_i32 : i32, i32, i32
  }
  func.func @transform_1(%arg0: i32, %arg1: i32) -> (i32, i32, i32) {
    %c0_i32 = arith.constant 0 : i32
    %c0_i32_0 = arith.constant 0 : i32
    %c0_i32_1 = arith.constant 0 : i32
    return %arg0, %c0_i32, %c0_i32_0 : i32, i32, i32
  }
  func.func @transform_2(%arg0: i32, %arg1: i32) -> (i32, i32, i32) {
    %c0_i32 = arith.constant 0 : i32
    %c0_i32_0 = arith.constant 0 : i32
    %c0_i32_1 = arith.constant 0 : i32
    return %arg0, %c0_i32, %c0_i32_0 : i32, i32, i32
  }
  func.func @transform_3(%arg0: i32, %arg1: i32) -> (i32, i32, i32) {
    %c0_i32 = arith.constant 0 : i32
    %c0_i32_0 = arith.constant 0 : i32
    return %arg0, %arg1, %c0_i32 : i32, i32, i32
  }
  func.func @transform_4(%arg0: i32, %arg1: i32) -> (i32, i32) {
    %c0_i32 = arith.constant 0 : i32
    %c0_i32_0 = arith.constant 0 : i32
    %c0_i32_1 = arith.constant 0 : i32
    return %c0_i32, %c0_i32_0 : i32, i32
  }
  func.func @transform_5(%arg0: i32, %arg1: i32) -> (i32, i32) {
    %c0_i32 = arith.constant 0 : i32
    %c0_i32_0 = arith.constant 0 : i32
    %c0_i32_1 = arith.constant 0 : i32
    return %c0_i32, %c0_i32_0 : i32, i32
  }
  func.func @transform_6(%arg0: i32, %arg1: i32) -> (i32, i32) {
    %c0_i32 = arith.constant 0 : i32
    %c0_i32_0 = arith.constant 0 : i32
    %c0_i32_1 = arith.constant 0 : i32
    return %c0_i32, %c0_i32_0 : i32, i32
  }
  func.func @transform_7(%arg0: i32, %arg1: i32) -> (i32, i32) {
    %c0_i32 = arith.constant 0 : i32
    %c0_i32_0 = arith.constant 0 : i32
    %c0_i32_1 = arith.constant 0 : i32
    return %c0_i32, %c0_i32_0 : i32, i32
  }
  func.func @transform_8(%arg0: i32, %arg1: i32) -> (i32, i32, i32) {
    %c0_i32 = arith.constant 0 : i32
    %c0_i32_0 = arith.constant 0 : i32
    return %arg0, %arg1, %c0_i32 : i32, i32, i32
  }
}

module attributes {stable_mosaic.version = 11 : i64} {
  func.func @_ffn_res_ln_kernel(%arg0: i32, %arg1: memref<16x32xbf16, #tpu.memory_space<vmem>>, %arg2: memref<32x64xbf16, #tpu.memory_space<vmem>>, %arg3: memref<1x64xf32, #tpu.memory_space<vmem>>, %arg4: memref<64x32xbf16, #tpu.memory_space<vmem>>, %arg5: memref<1x32xf32, #tpu.memory_space<vmem>>, %arg6: memref<1x32xf32, #tpu.memory_space<vmem>>, %arg7: memref<1x32xf32, #tpu.memory_space<vmem>>, %arg8: memref<16x32xbf16, #tpu.memory_space<vmem>>) attributes {dimension_semantics = [#tpu.dimension_semantics<parallel>], iteration_bounds = array<i64: 2>, scalar_prefetch = 0 : i64, scratch_operands = 0 : i64, tpu.core_type = #tpu.core_type<tc>, window_params = [{transform_indices = @transform_0, window_bounds = array<i64: 16, 32>}, {pipeline_mode = #tpu.pipeline_mode<synchronous>, transform_indices = @transform_1, window_bounds = array<i64: 32, 64>}, {pipeline_mode = #tpu.pipeline_mode<synchronous>, transform_indices = @transform_2, window_bounds = array<i64: 1, 64>}, {pipeline_mode = #tpu.pipeline_mode<synchronous>, transform_indices = @transform_3, window_bounds = array<i64: 64, 32>}, {pipeline_mode = #tpu.pipeline_mode<synchronous>, transform_indices = @transform_4, window_bounds = array<i64: 1, 32>}, {pipeline_mode = #tpu.pipeline_mode<synchronous>, transform_indices = @transform_5, window_bounds = array<i64: 1, 32>}, {pipeline_mode = #tpu.pipeline_mode<synchronous>, transform_indices = @transform_6, window_bounds = array<i64: 1, 32>}, {transform_indices = @transform_7, window_bounds = array<i64: 16, 32>}]} {
    %c0 = arith.constant 0 : index
    %c0_0 = arith.constant 0 : index
    %0 = vector.load %arg1[%c0, %c0_0] : memref<16x32xbf16, #tpu.memory_space<vmem>>, vector<16x32xbf16>
    %c0_1 = arith.constant 0 : index
    %c0_2 = arith.constant 0 : index
    %1 = vector.load %arg2[%c0_1, %c0_2] : memref<32x64xbf16, #tpu.memory_space<vmem>>, vector<32x64xbf16>
    %cst = arith.constant dense<0.000000e+00> : vector<16x64xf32>
    %2 = tpu.matmul %0, %1, %cst {dimension_numbers = #tpu.dot_dimension_numbers<[1], [0], [0], [1], [0, 0, 1, 1], [], []>} : vector<16x32xbf16>, vector<32x64xbf16>, vector<16x64xf32> -> vector<16x64xf32>
    %c0_3 = arith.constant 0 : index
    %c0_4 = arith.constant 0 : index
    %3 = vector.load %arg3[%c0_3, %c0_4] : memref<1x64xf32, #tpu.memory_space<vmem>>, vector<1x64xf32>
    %4 = vector.broadcast %3 : vector<1x64xf32> to vector<16x64xf32>
    %5 = arith.addf %2, %4 : vector<16x64xf32>
    %cst_5 = arith.constant 0.000000e+00 : f32
    %6 = vector.broadcast %cst_5 : f32 to vector<16x64xf32>
    %7 = arith.maximumf %5, %6 : vector<16x64xf32>
    %8 = arith.truncf %7 : vector<16x64xf32> to vector<16x64xbf16>
    %c0_6 = arith.constant 0 : index
    %c0_7 = arith.constant 0 : index
    %9 = vector.load %arg4[%c0_6, %c0_7] : memref<64x32xbf16, #tpu.memory_space<vmem>>, vector<64x32xbf16>
    %cst_8 = arith.constant dense<0.000000e+00> : vector<16x32xf32>
    %10 = tpu.matmul %8, %9, %cst_8 {dimension_numbers = #tpu.dot_dimension_numbers<[1], [0], [0], [1], [0, 0, 1, 1], [], []>} : vector<16x64xbf16>, vector<64x32xbf16>, vector<16x32xf32> -> vector<16x32xf32>
    %c0_9 = arith.constant 0 : index
    %c0_10 = arith.constant 0 : index
    %11 = vector.load %arg5[%c0_9, %c0_10] : memref<1x32xf32, #tpu.memory_space<vmem>>, vector<1x32xf32>
    %12 = vector.broadcast %11 : vector<1x32xf32> to vector<16x32xf32>
    %13 = arith.addf %10, %12 : vector<16x32xf32>
    %14 = arith.extf %0 : vector<16x32xbf16> to vector<16x32xf32>
    %15 = arith.addf %14, %13 : vector<16x32xf32>
    %c0_11 = arith.constant 0 : index
    %c0_12 = arith.constant 0 : index
    %16 = vector.load %arg6[%c0_11, %c0_12] : memref<1x32xf32, #tpu.memory_space<vmem>>, vector<1x32xf32>
    %c0_13 = arith.constant 0 : index
    %c0_14 = arith.constant 0 : index
    %17 = vector.load %arg7[%c0_13, %c0_14] : memref<1x32xf32, #tpu.memory_space<vmem>>, vector<1x32xf32>
    %cst_15 = arith.constant dense<0.000000e+00> : vector<16xf32>
    %18 = vector.multi_reduction <add>, %15, %cst_15 [1] : vector<16x32xf32> to vector<16xf32>
    %19 = vector.shape_cast %18 : vector<16xf32> to vector<16x1xf32>
    %cst_16 = arith.constant 3.200000e+01 : f32
    %20 = vector.broadcast %cst_16 : f32 to vector<16x1xf32>
    %21 = arith.divf %19, %20 : vector<16x1xf32>
    %22 = vector.broadcast %21 : vector<16x1xf32> to vector<16x32xf32>
    %23 = arith.subf %15, %22 : vector<16x32xf32>
    %24 = arith.mulf %23, %23 : vector<16x32xf32>
    %cst_17 = arith.constant dense<0.000000e+00> : vector<16xf32>
    %25 = vector.multi_reduction <add>, %24, %cst_17 [1] : vector<16x32xf32> to vector<16xf32>
    %26 = vector.shape_cast %25 : vector<16xf32> to vector<16x1xf32>
    %cst_18 = arith.constant 3.200000e+01 : f32
    %27 = vector.broadcast %cst_18 : f32 to vector<16x1xf32>
    %28 = arith.divf %26, %27 : vector<16x1xf32>
    %29 = vector.broadcast %21 : vector<16x1xf32> to vector<16x32xf32>
    %30 = arith.subf %15, %29 : vector<16x32xf32>
    %cst_19 = arith.constant 9.99999974E-6 : f32
    %31 = vector.broadcast %cst_19 : f32 to vector<16x1xf32>
    %32 = arith.addf %28, %31 : vector<16x1xf32>
    %33 = math.rsqrt %32 : vector<16x1xf32>
    %34 = vector.broadcast %33 : vector<16x1xf32> to vector<16x32xf32>
    %35 = arith.mulf %30, %34 : vector<16x32xf32>
    %36 = vector.broadcast %16 : vector<1x32xf32> to vector<16x32xf32>
    %37 = arith.mulf %35, %36 : vector<16x32xf32>
    %38 = vector.broadcast %17 : vector<1x32xf32> to vector<16x32xf32>
    %39 = arith.addf %37, %38 : vector<16x32xf32>
    %40 = arith.truncf %39 : vector<16x32xf32> to vector<16x32xbf16>
    %c0_20 = arith.constant 0 : index
    %c0_21 = arith.constant 0 : index
    %41 = vector.load %arg8[%c0_20, %c0_21] : memref<16x32xbf16, #tpu.memory_space<vmem>>, vector<16x32xbf16>
    tpu.vector_store %arg8[%c0_20, %c0_21], %40 {strides = array<i32>} : memref<16x32xbf16, #tpu.memory_space<vmem>>, vector<16x32xbf16>,
    return
  }
  func.func @transform_0(%arg0: i32) -> (i32, i32) {
    %c0_i32 = arith.constant 0 : i32
    %c0_i32_0 = arith.constant 0 : i32
    return %arg0, %c0_i32 : i32, i32
  }
  func.func @transform_1(%arg0: i32) -> (i32, i32) {
    %c0_i32 = arith.constant 0 : i32
    %c0_i32_0 = arith.constant 0 : i32
    %c0_i32_1 = arith.constant 0 : i32
    return %c0_i32, %c0_i32_0 : i32, i32
  }
  func.func @transform_2(%arg0: i32) -> (i32, i32) {
    %c0_i32 = arith.constant 0 : i32
    %c0_i32_0 = arith.constant 0 : i32
    %c0_i32_1 = arith.constant 0 : i32
    return %c0_i32, %c0_i32_0 : i32, i32
  }
  func.func @transform_3(%arg0: i32) -> (i32, i32) {
    %c0_i32 = arith.constant 0 : i32
    %c0_i32_0 = arith.constant 0 : i32
    %c0_i32_1 = arith.constant 0 : i32
    return %c0_i32, %c0_i32_0 : i32, i32
  }
  func.func @transform_4(%arg0: i32) -> (i32, i32) {
    %c0_i32 = arith.constant 0 : i32
    %c0_i32_0 = arith.constant 0 : i32
    %c0_i32_1 = arith.constant 0 : i32
    return %c0_i32, %c0_i32_0 : i32, i32
  }
  func.func @transform_5(%arg0: i32) -> (i32, i32) {
    %c0_i32 = arith.constant 0 : i32
    %c0_i32_0 = arith.constant 0 : i32
    %c0_i32_1 = arith.constant 0 : i32
    return %c0_i32, %c0_i32_0 : i32, i32
  }
  func.func @transform_6(%arg0: i32) -> (i32, i32) {
    %c0_i32 = arith.constant 0 : i32
    %c0_i32_0 = arith.constant 0 : i32
    %c0_i32_1 = arith.constant 0 : i32
    return %c0_i32, %c0_i32_0 : i32, i32
  }
  func.func @transform_7(%arg0: i32) -> (i32, i32) {
    %c0_i32 = arith.constant 0 : i32
    %c0_i32_0 = arith.constant 0 : i32
    return %arg0, %c0_i32 : i32, i32
  }
}

module attributes {stable_mosaic.version = 11 : i64} {
  func.func @_mem_kv_kernel(%arg0: i32, %arg1: memref<16x32xbf16, #tpu.memory_space<vmem>>, %arg2: memref<16x32xbf16, #tpu.memory_space<vmem>>, %arg3: memref<32x32xbf16, #tpu.memory_space<vmem>>, %arg4: memref<1x32xf32, #tpu.memory_space<vmem>>, %arg5: memref<32x32xbf16, #tpu.memory_space<vmem>>, %arg6: memref<1x32xf32, #tpu.memory_space<vmem>>, %arg7: memref<16x64xbf16, #tpu.memory_space<vmem>>) attributes {dimension_semantics = [#tpu.dimension_semantics<parallel>], iteration_bounds = array<i64: 2>, scalar_prefetch = 0 : i64, scratch_operands = 0 : i64, tpu.core_type = #tpu.core_type<tc>, window_params = [{transform_indices = @transform_0, window_bounds = array<i64: 16, 32>}, {transform_indices = @transform_1, window_bounds = array<i64: 16, 32>}, {pipeline_mode = #tpu.pipeline_mode<synchronous>, transform_indices = @transform_2, window_bounds = array<i64: 32, 32>}, {pipeline_mode = #tpu.pipeline_mode<synchronous>, transform_indices = @transform_3, window_bounds = array<i64: 1, 32>}, {pipeline_mode = #tpu.pipeline_mode<synchronous>, transform_indices = @transform_4, window_bounds = array<i64: 32, 32>}, {pipeline_mode = #tpu.pipeline_mode<synchronous>, transform_indices = @transform_5, window_bounds = array<i64: 1, 32>}, {transform_indices = @transform_6, window_bounds = array<i64: 16, 64>}]} {
    %c0 = arith.constant 0 : index
    %c0_0 = arith.constant 0 : index
    %0 = vector.load %arg1[%c0, %c0_0] : memref<16x32xbf16, #tpu.memory_space<vmem>>, vector<16x32xbf16>
    %1 = arith.extf %0 : vector<16x32xbf16> to vector<16x32xf32>
    %c0_1 = arith.constant 0 : index
    %c0_2 = arith.constant 0 : index
    %2 = vector.load %arg2[%c0_1, %c0_2] : memref<16x32xbf16, #tpu.memory_space<vmem>>, vector<16x32xbf16>
    %3 = arith.extf %2 : vector<16x32xbf16> to vector<16x32xf32>
    %4 = arith.addf %1, %3 : vector<16x32xf32>
    %5 = arith.truncf %4 : vector<16x32xf32> to vector<16x32xbf16>
    %c0_3 = arith.constant 0 : index
    %c0_4 = arith.constant 0 : index
    %6 = vector.load %arg3[%c0_3, %c0_4] : memref<32x32xbf16, #tpu.memory_space<vmem>>, vector<32x32xbf16>
    %cst = arith.constant dense<0.000000e+00> : vector<16x32xf32>
    %7 = tpu.matmul %5, %6, %cst {dimension_numbers = #tpu.dot_dimension_numbers<[1], [0], [0], [1], [0, 0, 1, 1], [], []>} : vector<16x32xbf16>, vector<32x32xbf16>, vector<16x32xf32> -> vector<16x32xf32>
    %c0_5 = arith.constant 0 : index
    %c0_6 = arith.constant 0 : index
    %8 = vector.load %arg4[%c0_5, %c0_6] : memref<1x32xf32, #tpu.memory_space<vmem>>, vector<1x32xf32>
    %9 = vector.broadcast %8 : vector<1x32xf32> to vector<16x32xf32>
    %10 = arith.addf %7, %9 : vector<16x32xf32>
    %c0_7 = arith.constant 0 : index
    %c0_8 = arith.constant 0 : index
    %11 = vector.load %arg5[%c0_7, %c0_8] : memref<32x32xbf16, #tpu.memory_space<vmem>>, vector<32x32xbf16>
    %cst_9 = arith.constant dense<0.000000e+00> : vector<16x32xf32>
    %12 = tpu.matmul %0, %11, %cst_9 {dimension_numbers = #tpu.dot_dimension_numbers<[1], [0], [0], [1], [0, 0, 1, 1], [], []>} : vector<16x32xbf16>, vector<32x32xbf16>, vector<16x32xf32> -> vector<16x32xf32>
    %c0_10 = arith.constant 0 : index
    %c0_11 = arith.constant 0 : index
    %13 = vector.load %arg6[%c0_10, %c0_11] : memref<1x32xf32, #tpu.memory_space<vmem>>, vector<1x32xf32>
    %14 = vector.broadcast %13 : vector<1x32xf32> to vector<16x32xf32>
    %15 = arith.addf %12, %14 : vector<16x32xf32>
    %16 = tpu.concatenate %10, %15 in 1 : vector<16x32xf32>, vector<16x32xf32> -> vector<16x64xf32>
    %17 = arith.truncf %16 : vector<16x64xf32> to vector<16x64xbf16>
    %c0_12 = arith.constant 0 : index
    %c0_13 = arith.constant 0 : index
    %18 = vector.load %arg7[%c0_12, %c0_13] : memref<16x64xbf16, #tpu.memory_space<vmem>>, vector<16x64xbf16>
    tpu.vector_store %arg7[%c0_12, %c0_13], %17 {strides = array<i32>} : memref<16x64xbf16, #tpu.memory_space<vmem>>, vector<16x64xbf16>,
    return
  }
  func.func @transform_0(%arg0: i32) -> (i32, i32) {
    %c0_i32 = arith.constant 0 : i32
    %c0_i32_0 = arith.constant 0 : i32
    return %arg0, %c0_i32 : i32, i32
  }
  func.func @transform_1(%arg0: i32) -> (i32, i32) {
    %c0_i32 = arith.constant 0 : i32
    %c0_i32_0 = arith.constant 0 : i32
    return %arg0, %c0_i32 : i32, i32
  }
  func.func @transform_2(%arg0: i32) -> (i32, i32) {
    %c0_i32 = arith.constant 0 : i32
    %c0_i32_0 = arith.constant 0 : i32
    %c0_i32_1 = arith.constant 0 : i32
    return %c0_i32, %c0_i32_0 : i32, i32
  }
  func.func @transform_3(%arg0: i32) -> (i32, i32) {
    %c0_i32 = arith.constant 0 : i32
    %c0_i32_0 = arith.constant 0 : i32
    %c0_i32_1 = arith.constant 0 : i32
    return %c0_i32, %c0_i32_0 : i32, i32
  }
  func.func @transform_4(%arg0: i32) -> (i32, i32) {
    %c0_i32 = arith.constant 0 : i32
    %c0_i32_0 = arith.constant 0 : i32
    %c0_i32_1 = arith.constant 0 : i32
    return %c0_i32, %c0_i32_0 : i32, i32
  }
  func.func @transform_5(%arg0: i32) -> (i32, i32) {
    %c0_i32 = arith.constant 0 : i32
    %c0_i32_0 = arith.constant 0 : i32
    %c0_i32_1 = arith.constant 0 : i32
    return %c0_i32, %c0_i32_0 : i32, i32
  }
  func.func @transform_6(%arg0: i32) -> (i32, i32) {
    %c0_i32 = arith.constant 0 : i32
    %c0_i32_0 = arith.constant 0 : i32
    return %arg0, %c0_i32 : i32, i32
  }
}

module attributes {stable_mosaic.version = 11 : i64} {
  func.func @_split_qkv_kernel(%arg0: i32, %arg1: memref<16x32xbf16, #tpu.memory_space<vmem>>, %arg2: memref<32x96xbf16, #tpu.memory_space<vmem>>, %arg3: memref<1x96xf32, #tpu.memory_space<vmem>>, %arg4: memref<16x32xbf16, #tpu.memory_space<vmem>>, %arg5: memref<16x64xbf16, #tpu.memory_space<vmem>>) attributes {dimension_semantics = [#tpu.dimension_semantics<parallel>], iteration_bounds = array<i64: 2>, scalar_prefetch = 0 : i64, scratch_operands = 0 : i64, tpu.core_type = #tpu.core_type<tc>, window_params = [{transform_indices = @transform_0, window_bounds = array<i64: 16, 32>}, {pipeline_mode = #tpu.pipeline_mode<synchronous>, transform_indices = @transform_1, window_bounds = array<i64: 32, 96>}, {pipeline_mode = #tpu.pipeline_mode<synchronous>, transform_indices = @transform_2, window_bounds = array<i64: 1, 96>}, {transform_indices = @transform_3, window_bounds = array<i64: 16, 32>}, {transform_indices = @transform_4, window_bounds = array<i64: 16, 64>}]} {
    %c0 = arith.constant 0 : index
    %c0_0 = arith.constant 0 : index
    %0 = vector.load %arg1[%c0, %c0_0] : memref<16x32xbf16, #tpu.memory_space<vmem>>, vector<16x32xbf16>
    %c0_1 = arith.constant 0 : index
    %c0_2 = arith.constant 0 : index
    %1 = vector.load %arg2[%c0_1, %c0_2] : memref<32x96xbf16, #tpu.memory_space<vmem>>, vector<32x96xbf16>
    %cst = arith.constant dense<0.000000e+00> : vector<16x96xf32>
    %2 = tpu.matmul %0, %1, %cst {dimension_numbers = #tpu.dot_dimension_numbers<[1], [0], [0], [1], [0, 0, 1, 1], [], []>} : vector<16x32xbf16>, vector<32x96xbf16>, vector<16x96xf32> -> vector<16x96xf32>
    %c0_3 = arith.constant 0 : index
    %c0_4 = arith.constant 0 : index
    %3 = vector.load %arg3[%c0_3, %c0_4] : memref<1x96xf32, #tpu.memory_space<vmem>>, vector<1x96xf32>
    %4 = vector.broadcast %3 : vector<1x96xf32> to vector<16x96xf32>
    %5 = arith.addf %2, %4 : vector<16x96xf32>
    %6 = vector.extract_strided_slice %5 {offsets = [0, 0], sizes = [16, 32], strides = [1, 1]} : vector<16x96xf32> to vector<16x32xf32>
    %7 = arith.truncf %6 : vector<16x32xf32> to vector<16x32xbf16>
    %c0_5 = arith.constant 0 : index
    %c0_6 = arith.constant 0 : index
    %8 = vector.load %arg4[%c0_5, %c0_6] : memref<16x32xbf16, #tpu.memory_space<vmem>>, vector<16x32xbf16>
    tpu.vector_store %arg4[%c0_5, %c0_6], %7 {strides = array<i32>} : memref<16x32xbf16, #tpu.memory_space<vmem>>, vector<16x32xbf16>,
    %9 = vector.extract_strided_slice %5 {offsets = [0, 32], sizes = [16, 64], strides = [1, 1]} : vector<16x96xf32> to vector<16x64xf32>
    %10 = arith.truncf %9 : vector<16x64xf32> to vector<16x64xbf16>
    %c0_7 = arith.constant 0 : index
    %c0_8 = arith.constant 0 : index
    %11 = vector.load %arg5[%c0_7, %c0_8] : memref<16x64xbf16, #tpu.memory_space<vmem>>, vector<16x64xbf16>
    tpu.vector_store %arg5[%c0_7, %c0_8], %10 {strides = array<i32>} : memref<16x64xbf16, #tpu.memory_space<vmem>>, vector<16x64xbf16>,
    return
  }
  func.func @transform_0(%arg0: i32) -> (i32, i32) {
    %c0_i32 = arith.constant 0 : i32
    %c0_i32_0 = arith.constant 0 : i32
    return %arg0, %c0_i32 : i32, i32
  }
  func.func @transform_1(%arg0: i32) -> (i32, i32) {
    %c0_i32 = arith.constant 0 : i32
    %c0_i32_0 = arith.constant 0 : i32
    %c0_i32_1 = arith.constant 0 : i32
    return %c0_i32, %c0_i32_0 : i32, i32
  }
  func.func @transform_2(%arg0: i32) -> (i32, i32) {
    %c0_i32 = arith.constant 0 : i32
    %c0_i32_0 = arith.constant 0 : i32
    %c0_i32_1 = arith.constant 0 : i32
    return %c0_i32, %c0_i32_0 : i32, i32
  }
  func.func @transform_3(%arg0: i32) -> (i32, i32) {
    %c0_i32 = arith.constant 0 : i32
    %c0_i32_0 = arith.constant 0 : i32
    return %arg0, %c0_i32 : i32, i32
  }
  func.func @transform_4(%arg0: i32) -> (i32, i32) {
    %c0_i32 = arith.constant 0 : i32
    %c0_i32_0 = arith.constant 0 : i32
    return %arg0, %c0_i32 : i32, i32
  }
}

module attributes {stable_mosaic.version = 11 : i64} {
  func.func @_linear_kernel(%arg0: i32, %arg1: memref<16x32xbf16, #tpu.memory_space<vmem>>, %arg2: memref<32x32xbf16, #tpu.memory_space<vmem>>, %arg3: memref<1x32xf32, #tpu.memory_space<vmem>>, %arg4: memref<16x32xbf16, #tpu.memory_space<vmem>>) attributes {dimension_semantics = [#tpu.dimension_semantics<parallel>], iteration_bounds = array<i64: 2>, scalar_prefetch = 0 : i64, scratch_operands = 0 : i64, tpu.core_type = #tpu.core_type<tc>, window_params = [{transform_indices = @transform_0, window_bounds = array<i64: 16, 32>}, {pipeline_mode = #tpu.pipeline_mode<synchronous>, transform_indices = @transform_1, window_bounds = array<i64: 32, 32>}, {pipeline_mode = #tpu.pipeline_mode<synchronous>, transform_indices = @transform_2, window_bounds = array<i64: 1, 32>}, {transform_indices = @transform_3, window_bounds = array<i64: 16, 32>}]} {
    %c0 = arith.constant 0 : index
    %c0_0 = arith.constant 0 : index
    %0 = vector.load %arg1[%c0, %c0_0] : memref<16x32xbf16, #tpu.memory_space<vmem>>, vector<16x32xbf16>
    %c0_1 = arith.constant 0 : index
    %c0_2 = arith.constant 0 : index
    %1 = vector.load %arg2[%c0_1, %c0_2] : memref<32x32xbf16, #tpu.memory_space<vmem>>, vector<32x32xbf16>
    %cst = arith.constant dense<0.000000e+00> : vector<16x32xf32>
    %2 = tpu.matmul %0, %1, %cst {dimension_numbers = #tpu.dot_dimension_numbers<[1], [0], [0], [1], [0, 0, 1, 1], [], []>} : vector<16x32xbf16>, vector<32x32xbf16>, vector<16x32xf32> -> vector<16x32xf32>
    %c0_3 = arith.constant 0 : index
    %c0_4 = arith.constant 0 : index
    %3 = vector.load %arg3[%c0_3, %c0_4] : memref<1x32xf32, #tpu.memory_space<vmem>>, vector<1x32xf32>
    %4 = vector.broadcast %3 : vector<1x32xf32> to vector<16x32xf32>
    %5 = arith.addf %2, %4 : vector<16x32xf32>
    %6 = arith.truncf %5 : vector<16x32xf32> to vector<16x32xbf16>
    %c0_5 = arith.constant 0 : index
    %c0_6 = arith.constant 0 : index
    %7 = vector.load %arg4[%c0_5, %c0_6] : memref<16x32xbf16, #tpu.memory_space<vmem>>, vector<16x32xbf16>
    tpu.vector_store %arg4[%c0_5, %c0_6], %6 {strides = array<i32>} : memref<16x32xbf16, #tpu.memory_space<vmem>>, vector<16x32xbf16>,
    return
  }
  func.func @transform_0(%arg0: i32) -> (i32, i32) {
    %c0_i32 = arith.constant 0 : i32
    %c0_i32_0 = arith.constant 0 : i32
    return %arg0, %c0_i32 : i32, i32
  }
  func.func @transform_1(%arg0: i32) -> (i32, i32) {
    %c0_i32 = arith.constant 0 : i32
    %c0_i32_0 = arith.constant 0 : i32
    %c0_i32_1 = arith.constant 0 : i32
    return %c0_i32, %c0_i32_0 : i32, i32
  }
  func.func @transform_2(%arg0: i32) -> (i32, i32) {
    %c0_i32 = arith.constant 0 : i32
    %c0_i32_0 = arith.constant 0 : i32
    %c0_i32_1 = arith.constant 0 : i32
    return %c0_i32, %c0_i32_0 : i32, i32
  }
  func.func @transform_3(%arg0: i32) -> (i32, i32) {
    %c0_i32 = arith.constant 0 : i32
    %c0_i32_0 = arith.constant 0 : i32
    return %arg0, %c0_i32 : i32, i32
  }
}

module attributes {stable_mosaic.version = 11 : i64} {
  func.func @_attn_res_ln_kernel(%arg0: i32, %arg1: i32, %arg2: memref<1x9x32xbf16, #tpu.memory_space<vmem>>, %arg3: memref<1x16x64xbf16, #tpu.memory_space<vmem>>, %arg4: memref<1x1x16xf32, #tpu.memory_space<vmem>>, %arg5: memref<1x9x32xbf16, #tpu.memory_space<vmem>>, %arg6: memref<32x32xbf16, #tpu.memory_space<vmem>>, %arg7: memref<1x32xf32, #tpu.memory_space<vmem>>, %arg8: memref<1x32xf32, #tpu.memory_space<vmem>>, %arg9: memref<1x32xf32, #tpu.memory_space<vmem>>, %arg10: memref<1x9x32xbf16, #tpu.memory_space<vmem>>) attributes {dimension_semantics = [#tpu.dimension_semantics<parallel>, #tpu.dimension_semantics<parallel>], iteration_bounds = array<i64: 2, 1>, scalar_prefetch = 0 : i64, scratch_operands = 0 : i64, tpu.core_type = #tpu.core_type<tc>, window_params = [{transform_indices = @transform_0, window_bounds = array<i64: 1, 9, 32>}, {transform_indices = @transform_1, window_bounds = array<i64: 1, 16, 64>}, {transform_indices = @transform_2, window_bounds = array<i64: 1, 1, 16>}, {transform_indices = @transform_3, window_bounds = array<i64: 1, 9, 32>}, {pipeline_mode = #tpu.pipeline_mode<synchronous>, transform_indices = @transform_4, window_bounds = array<i64: 32, 32>}, {pipeline_mode = #tpu.pipeline_mode<synchronous>, transform_indices = @transform_5, window_bounds = array<i64: 1, 32>}, {pipeline_mode = #tpu.pipeline_mode<synchronous>, transform_indices = @transform_6, window_bounds = array<i64: 1, 32>}, {pipeline_mode = #tpu.pipeline_mode<synchronous>, transform_indices = @transform_7, window_bounds = array<i64: 1, 32>}, {transform_indices = @transform_8, window_bounds = array<i64: 1, 9, 32>}]} {
    %c0 = arith.constant 0 : index
    %c0_0 = arith.constant 0 : index
    %c0_1 = arith.constant 0 : index
    %0 = vector.load %arg2[%c0, %c0_0, %c0_1] : memref<1x9x32xbf16, #tpu.memory_space<vmem>>, vector<1x9x32xbf16>
    %1 = vector.shape_cast %0 : vector<1x9x32xbf16> to vector<9x32xbf16>
    %c0_2 = arith.constant 0 : index
    %c0_3 = arith.constant 0 : index
    %c0_4 = arith.constant 0 : index
    %2 = vector.load %arg3[%c0_2, %c0_3, %c0_4] : memref<1x16x64xbf16, #tpu.memory_space<vmem>>, vector<1x16x64xbf16>
    %3 = vector.shape_cast %2 : vector<1x16x64xbf16> to vector<16x64xbf16>
    %c0_5 = arith.constant 0 : index
    %c0_6 = arith.constant 0 : index
    %c0_7 = arith.constant 0 : index
    %4 = vector.load %arg4[%c0_5, %c0_6, %c0_7] : memref<1x1x16xf32, #tpu.memory_space<vmem>>, vector<1x1x16xf32>
    %5 = vector.shape_cast %4 : vector<1x1x16xf32> to vector<1x16xf32>
    %6 = vector.extract_strided_slice %1 {offsets = [0, 0], sizes = [9, 8], strides = [1, 1]} : vector<9x32xbf16> to vector<9x8xbf16>
    %7 = vector.extract_strided_slice %3 {offsets = [0, 0], sizes = [16, 8], strides = [1, 1]} : vector<16x64xbf16> to vector<16x8xbf16>
    %8 = vector.extract_strided_slice %3 {offsets = [0, 32], sizes = [16, 8], strides = [1, 1]} : vector<16x64xbf16> to vector<16x8xbf16>
    "tpu.trace_start"() <{level = 10 : i32, message = "qd,kd->qk"}> : () -> ()
    %cst = arith.constant dense<0.000000e+00> : vector<9x16xf32>
    %9 = tpu.matmul %6, %7, %cst {dimension_numbers = #tpu.dot_dimension_numbers<[1], [1], [0], [0], [0, 0, 1, 0], [], []>} : vector<9x8xbf16>, vector<16x8xbf16>, vector<9x16xf32> -> vector<9x16xf32>
    "tpu.trace_stop"() : () -> ()
    %10 = vector.broadcast %5 : vector<1x16xf32> to vector<9x16xf32>
    %11 = arith.addf %9, %10 : vector<9x16xf32>
    %cst_8 = arith.constant dense<0xFF800000> : vector<9xf32>
    %12 = vector.multi_reduction <maximumf>, %11, %cst_8 [1] : vector<9x16xf32> to vector<9xf32>
    %13 = vector.shape_cast %12 : vector<9xf32> to vector<9x1xf32>
    %14 = vector.broadcast %13 : vector<9x1xf32> to vector<9x16xf32>
    %15 = arith.subf %11, %14 : vector<9x16xf32>
    %16 = math.exp %15 : vector<9x16xf32>
    %cst_9 = arith.constant dense<0.000000e+00> : vector<9xf32>
    %17 = vector.multi_reduction <add>, %16, %cst_9 [1] : vector<9x16xf32> to vector<9xf32>
    %18 = vector.shape_cast %17 : vector<9xf32> to vector<9x1xf32>
    %19 = arith.truncf %16 : vector<9x16xf32> to vector<9x16xbf16>
    "tpu.trace_start"() <{level = 10 : i32, message = "qk,kd->qd"}> : () -> ()
    %cst_10 = arith.constant dense<0.000000e+00> : vector<9x8xf32>
    %20 = tpu.matmul %19, %8, %cst_10 {dimension_numbers = #tpu.dot_dimension_numbers<[1], [0], [0], [1], [0, 0, 1, 1], [], []>} : vector<9x16xbf16>, vector<16x8xbf16>, vector<9x8xf32> -> vector<9x8xf32>
    "tpu.trace_stop"() : () -> ()
    %21 = tpu.reciprocal %18 {approx = true} : vector<9x1xf32> -> vector<9x1xf32>
    %22 = vector.broadcast %21 : vector<9x1xf32> to vector<9x8xf32>
    %23 = arith.mulf %20, %22 : vector<9x8xf32>
    %24 = vector.extract_strided_slice %1 {offsets = [0, 8], sizes = [9, 8], strides = [1, 1]} : vector<9x32xbf16> to vector<9x8xbf16>
    %25 = vector.extract_strided_slice %3 {offsets = [0, 8], sizes = [16, 8], strides = [1, 1]} : vector<16x64xbf16> to vector<16x8xbf16>
    %26 = vector.extract_strided_slice %3 {offsets = [0, 40], sizes = [16, 8], strides = [1, 1]} : vector<16x64xbf16> to vector<16x8xbf16>
    "tpu.trace_start"() <{level = 10 : i32, message = "qd,kd->qk"}> : () -> ()
    %cst_11 = arith.constant dense<0.000000e+00> : vector<9x16xf32>
    %27 = tpu.matmul %24, %25, %cst_11 {dimension_numbers = #tpu.dot_dimension_numbers<[1], [1], [0], [0], [0, 0, 1, 0], [], []>} : vector<9x8xbf16>, vector<16x8xbf16>, vector<9x16xf32> -> vector<9x16xf32>
    "tpu.trace_stop"() : () -> ()
    %28 = vector.broadcast %5 : vector<1x16xf32> to vector<9x16xf32>
    %29 = arith.addf %27, %28 : vector<9x16xf32>
    %cst_12 = arith.constant dense<0xFF800000> : vector<9xf32>
    %30 = vector.multi_reduction <maximumf>, %29, %cst_12 [1] : vector<9x16xf32> to vector<9xf32>
    %31 = vector.shape_cast %30 : vector<9xf32> to vector<9x1xf32>
    %32 = vector.broadcast %31 : vector<9x1xf32> to vector<9x16xf32>
    %33 = arith.subf %29, %32 : vector<9x16xf32>
    %34 = math.exp %33 : vector<9x16xf32>
    %cst_13 = arith.constant dense<0.000000e+00> : vector<9xf32>
    %35 = vector.multi_reduction <add>, %34, %cst_13 [1] : vector<9x16xf32> to vector<9xf32>
    %36 = vector.shape_cast %35 : vector<9xf32> to vector<9x1xf32>
    %37 = arith.truncf %34 : vector<9x16xf32> to vector<9x16xbf16>
    "tpu.trace_start"() <{level = 10 : i32, message = "qk,kd->qd"}> : () -> ()
    %cst_14 = arith.constant dense<0.000000e+00> : vector<9x8xf32>
    %38 = tpu.matmul %37, %26, %cst_14 {dimension_numbers = #tpu.dot_dimension_numbers<[1], [0], [0], [1], [0, 0, 1, 1], [], []>} : vector<9x16xbf16>, vector<16x8xbf16>, vector<9x8xf32> -> vector<9x8xf32>
    "tpu.trace_stop"() : () -> ()
    %39 = tpu.reciprocal %36 {approx = true} : vector<9x1xf32> -> vector<9x1xf32>
    %40 = vector.broadcast %39 : vector<9x1xf32> to vector<9x8xf32>
    %41 = arith.mulf %38, %40 : vector<9x8xf32>
    %42 = vector.extract_strided_slice %1 {offsets = [0, 16], sizes = [9, 8], strides = [1, 1]} : vector<9x32xbf16> to vector<9x8xbf16>
    %43 = vector.extract_strided_slice %3 {offsets = [0, 16], sizes = [16, 8], strides = [1, 1]} : vector<16x64xbf16> to vector<16x8xbf16>
    %44 = vector.extract_strided_slice %3 {offsets = [0, 48], sizes = [16, 8], strides = [1, 1]} : vector<16x64xbf16> to vector<16x8xbf16>
    "tpu.trace_start"() <{level = 10 : i32, message = "qd,kd->qk"}> : () -> ()
    %cst_15 = arith.constant dense<0.000000e+00> : vector<9x16xf32>
    %45 = tpu.matmul %42, %43, %cst_15 {dimension_numbers = #tpu.dot_dimension_numbers<[1], [1], [0], [0], [0, 0, 1, 0], [], []>} : vector<9x8xbf16>, vector<16x8xbf16>, vector<9x16xf32> -> vector<9x16xf32>
    "tpu.trace_stop"() : () -> ()
    %46 = vector.broadcast %5 : vector<1x16xf32> to vector<9x16xf32>
    %47 = arith.addf %45, %46 : vector<9x16xf32>
    %cst_16 = arith.constant dense<0xFF800000> : vector<9xf32>
    %48 = vector.multi_reduction <maximumf>, %47, %cst_16 [1] : vector<9x16xf32> to vector<9xf32>
    %49 = vector.shape_cast %48 : vector<9xf32> to vector<9x1xf32>
    %50 = vector.broadcast %49 : vector<9x1xf32> to vector<9x16xf32>
    %51 = arith.subf %47, %50 : vector<9x16xf32>
    %52 = math.exp %51 : vector<9x16xf32>
    %cst_17 = arith.constant dense<0.000000e+00> : vector<9xf32>
    %53 = vector.multi_reduction <add>, %52, %cst_17 [1] : vector<9x16xf32> to vector<9xf32>
    %54 = vector.shape_cast %53 : vector<9xf32> to vector<9x1xf32>
    %55 = arith.truncf %52 : vector<9x16xf32> to vector<9x16xbf16>
    "tpu.trace_start"() <{level = 10 : i32, message = "qk,kd->qd"}> : () -> ()
    %cst_18 = arith.constant dense<0.000000e+00> : vector<9x8xf32>
    %56 = tpu.matmul %55, %44, %cst_18 {dimension_numbers = #tpu.dot_dimension_numbers<[1], [0], [0], [1], [0, 0, 1, 1], [], []>} : vector<9x16xbf16>, vector<16x8xbf16>, vector<9x8xf32> -> vector<9x8xf32>
    "tpu.trace_stop"() : () -> ()
    %57 = tpu.reciprocal %54 {approx = true} : vector<9x1xf32> -> vector<9x1xf32>
    %58 = vector.broadcast %57 : vector<9x1xf32> to vector<9x8xf32>
    %59 = arith.mulf %56, %58 : vector<9x8xf32>
    %60 = vector.extract_strided_slice %1 {offsets = [0, 24], sizes = [9, 8], strides = [1, 1]} : vector<9x32xbf16> to vector<9x8xbf16>
    %61 = vector.extract_strided_slice %3 {offsets = [0, 24], sizes = [16, 8], strides = [1, 1]} : vector<16x64xbf16> to vector<16x8xbf16>
    %62 = vector.extract_strided_slice %3 {offsets = [0, 56], sizes = [16, 8], strides = [1, 1]} : vector<16x64xbf16> to vector<16x8xbf16>
    "tpu.trace_start"() <{level = 10 : i32, message = "qd,kd->qk"}> : () -> ()
    %cst_19 = arith.constant dense<0.000000e+00> : vector<9x16xf32>
    %63 = tpu.matmul %60, %61, %cst_19 {dimension_numbers = #tpu.dot_dimension_numbers<[1], [1], [0], [0], [0, 0, 1, 0], [], []>} : vector<9x8xbf16>, vector<16x8xbf16>, vector<9x16xf32> -> vector<9x16xf32>
    "tpu.trace_stop"() : () -> ()
    %64 = vector.broadcast %5 : vector<1x16xf32> to vector<9x16xf32>
    %65 = arith.addf %63, %64 : vector<9x16xf32>
    %cst_20 = arith.constant dense<0xFF800000> : vector<9xf32>
    %66 = vector.multi_reduction <maximumf>, %65, %cst_20 [1] : vector<9x16xf32> to vector<9xf32>
    %67 = vector.shape_cast %66 : vector<9xf32> to vector<9x1xf32>
    %68 = vector.broadcast %67 : vector<9x1xf32> to vector<9x16xf32>
    %69 = arith.subf %65, %68 : vector<9x16xf32>
    %70 = math.exp %69 : vector<9x16xf32>
    %cst_21 = arith.constant dense<0.000000e+00> : vector<9xf32>
    %71 = vector.multi_reduction <add>, %70, %cst_21 [1] : vector<9x16xf32> to vector<9xf32>
    %72 = vector.shape_cast %71 : vector<9xf32> to vector<9x1xf32>
    %73 = arith.truncf %70 : vector<9x16xf32> to vector<9x16xbf16>
    "tpu.trace_start"() <{level = 10 : i32, message = "qk,kd->qd"}> : () -> ()
    %cst_22 = arith.constant dense<0.000000e+00> : vector<9x8xf32>
    %74 = tpu.matmul %73, %62, %cst_22 {dimension_numbers = #tpu.dot_dimension_numbers<[1], [0], [0], [1], [0, 0, 1, 1], [], []>} : vector<9x16xbf16>, vector<16x8xbf16>, vector<9x8xf32> -> vector<9x8xf32>
    "tpu.trace_stop"() : () -> ()
    %75 = tpu.reciprocal %72 {approx = true} : vector<9x1xf32> -> vector<9x1xf32>
    %76 = vector.broadcast %75 : vector<9x1xf32> to vector<9x8xf32>
    %77 = arith.mulf %74, %76 : vector<9x8xf32>
    %78 = tpu.concatenate %23, %41, %59, %77 in 1 : vector<9x8xf32>, vector<9x8xf32>, vector<9x8xf32>, vector<9x8xf32> -> vector<9x32xf32>
    %79 = arith.truncf %78 : vector<9x32xf32> to vector<9x32xbf16>
    %c0_23 = arith.constant 0 : index
    %c0_24 = arith.constant 0 : index
    %80 = vector.load %arg6[%c0_23, %c0_24] : memref<32x32xbf16, #tpu.memory_space<vmem>>, vector<32x32xbf16>
    %cst_25 = arith.constant dense<0.000000e+00> : vector<9x32xf32>
    %81 = tpu.matmul %79, %80, %cst_25 {dimension_numbers = #tpu.dot_dimension_numbers<[1], [0], [0], [1], [0, 0, 1, 1], [], []>} : vector<9x32xbf16>, vector<32x32xbf16>, vector<9x32xf32> -> vector<9x32xf32>
    %c0_26 = arith.constant 0 : index
    %c0_27 = arith.constant 0 : index
    %82 = vector.load %arg7[%c0_26, %c0_27] : memref<1x32xf32, #tpu.memory_space<vmem>>, vector<1x32xf32>
    %83 = vector.broadcast %82 : vector<1x32xf32> to vector<9x32xf32>
    %84 = arith.addf %81, %83 : vector<9x32xf32>
    %c0_28 = arith.constant 0 : index
    %c0_29 = arith.constant 0 : index
    %c0_30 = arith.constant 0 : index
    %85 = vector.load %arg5[%c0_28, %c0_29, %c0_30] : memref<1x9x32xbf16, #tpu.memory_space<vmem>>, vector<1x9x32xbf16>
    %86 = vector.shape_cast %85 : vector<1x9x32xbf16> to vector<9x32xbf16>
    %87 = arith.extf %86 : vector<9x32xbf16> to vector<9x32xf32>
    %88 = arith.addf %87, %84 : vector<9x32xf32>
    %c0_31 = arith.constant 0 : index
    %c0_32 = arith.constant 0 : index
    %89 = vector.load %arg8[%c0_31, %c0_32] : memref<1x32xf32, #tpu.memory_space<vmem>>, vector<1x32xf32>
    %c0_33 = arith.constant 0 : index
    %c0_34 = arith.constant 0 : index
    %90 = vector.load %arg9[%c0_33, %c0_34] : memref<1x32xf32, #tpu.memory_space<vmem>>, vector<1x32xf32>
    %cst_35 = arith.constant dense<0.000000e+00> : vector<9xf32>
    %91 = vector.multi_reduction <add>, %88, %cst_35 [1] : vector<9x32xf32> to vector<9xf32>
    %92 = vector.shape_cast %91 : vector<9xf32> to vector<9x1xf32>
    %cst_36 = arith.constant 3.200000e+01 : f32
    %93 = vector.broadcast %cst_36 : f32 to vector<9x1xf32>
    %94 = arith.divf %92, %93 : vector<9x1xf32>
    %95 = vector.broadcast %94 : vector<9x1xf32> to vector<9x32xf32>
    %96 = arith.subf %88, %95 : vector<9x32xf32>
    %97 = arith.mulf %96, %96 : vector<9x32xf32>
    %cst_37 = arith.constant dense<0.000000e+00> : vector<9xf32>
    %98 = vector.multi_reduction <add>, %97, %cst_37 [1] : vector<9x32xf32> to vector<9xf32>
    %99 = vector.shape_cast %98 : vector<9xf32> to vector<9x1xf32>
    %cst_38 = arith.constant 3.200000e+01 : f32
    %100 = vector.broadcast %cst_38 : f32 to vector<9x1xf32>
    %101 = arith.divf %99, %100 : vector<9x1xf32>
    %102 = vector.broadcast %94 : vector<9x1xf32> to vector<9x32xf32>
    %103 = arith.subf %88, %102 : vector<9x32xf32>
    %cst_39 = arith.constant 9.99999974E-6 : f32
    %104 = vector.broadcast %cst_39 : f32 to vector<9x1xf32>
    %105 = arith.addf %101, %104 : vector<9x1xf32>
    %106 = math.rsqrt %105 : vector<9x1xf32>
    %107 = vector.broadcast %106 : vector<9x1xf32> to vector<9x32xf32>
    %108 = arith.mulf %103, %107 : vector<9x32xf32>
    %109 = vector.broadcast %89 : vector<1x32xf32> to vector<9x32xf32>
    %110 = arith.mulf %108, %109 : vector<9x32xf32>
    %111 = vector.broadcast %90 : vector<1x32xf32> to vector<9x32xf32>
    %112 = arith.addf %110, %111 : vector<9x32xf32>
    %113 = arith.truncf %112 : vector<9x32xf32> to vector<9x32xbf16>
    %c0_40 = arith.constant 0 : index
    %c0_41 = arith.constant 0 : index
    %c0_42 = arith.constant 0 : index
    %114 = vector.load %arg10[%c0_40, %c0_41, %c0_42] : memref<1x9x32xbf16, #tpu.memory_space<vmem>>, vector<1x9x32xbf16>
    %115 = vector.shape_cast %114 : vector<1x9x32xbf16> to vector<9x32xbf16>
    %116 = vector.shape_cast %113 : vector<9x32xbf16> to vector<1x9x32xbf16>
    tpu.vector_store %arg10[%c0_40, %c0_41, %c0_42], %116 {strides = array<i32>} : memref<1x9x32xbf16, #tpu.memory_space<vmem>>, vector<1x9x32xbf16>,
    return
  }
  func.func @transform_0(%arg0: i32, %arg1: i32) -> (i32, i32, i32) {
    %c0_i32 = arith.constant 0 : i32
    %c0_i32_0 = arith.constant 0 : i32
    return %arg0, %arg1, %c0_i32 : i32, i32, i32
  }
  func.func @transform_1(%arg0: i32, %arg1: i32) -> (i32, i32, i32) {
    %c0_i32 = arith.constant 0 : i32
    %c0_i32_0 = arith.constant 0 : i32
    %c0_i32_1 = arith.constant 0 : i32
    return %arg0, %c0_i32, %c0_i32_0 : i32, i32, i32
  }
  func.func @transform_2(%arg0: i32, %arg1: i32) -> (i32, i32, i32) {
    %c0_i32 = arith.constant 0 : i32
    %c0_i32_0 = arith.constant 0 : i32
    %c0_i32_1 = arith.constant 0 : i32
    return %arg0, %c0_i32, %c0_i32_0 : i32, i32, i32
  }
  func.func @transform_3(%arg0: i32, %arg1: i32) -> (i32, i32, i32) {
    %c0_i32 = arith.constant 0 : i32
    %c0_i32_0 = arith.constant 0 : i32
    return %arg0, %arg1, %c0_i32 : i32, i32, i32
  }
  func.func @transform_4(%arg0: i32, %arg1: i32) -> (i32, i32) {
    %c0_i32 = arith.constant 0 : i32
    %c0_i32_0 = arith.constant 0 : i32
    %c0_i32_1 = arith.constant 0 : i32
    return %c0_i32, %c0_i32_0 : i32, i32
  }
  func.func @transform_5(%arg0: i32, %arg1: i32) -> (i32, i32) {
    %c0_i32 = arith.constant 0 : i32
    %c0_i32_0 = arith.constant 0 : i32
    %c0_i32_1 = arith.constant 0 : i32
    return %c0_i32, %c0_i32_0 : i32, i32
  }
  func.func @transform_6(%arg0: i32, %arg1: i32) -> (i32, i32) {
    %c0_i32 = arith.constant 0 : i32
    %c0_i32_0 = arith.constant 0 : i32
    %c0_i32_1 = arith.constant 0 : i32
    return %c0_i32, %c0_i32_0 : i32, i32
  }
  func.func @transform_7(%arg0: i32, %arg1: i32) -> (i32, i32) {
    %c0_i32 = arith.constant 0 : i32
    %c0_i32_0 = arith.constant 0 : i32
    %c0_i32_1 = arith.constant 0 : i32
    return %c0_i32, %c0_i32_0 : i32, i32
  }
  func.func @transform_8(%arg0: i32, %arg1: i32) -> (i32, i32, i32) {
    %c0_i32 = arith.constant 0 : i32
    %c0_i32_0 = arith.constant 0 : i32
    return %arg0, %arg1, %c0_i32 : i32, i32, i32
  }
}

module attributes {stable_mosaic.version = 11 : i64} {
  func.func @_attn_res_ln_kernel(%arg0: i32, %arg1: i32, %arg2: memref<1x9x32xbf16, #tpu.memory_space<vmem>>, %arg3: memref<1x9x64xbf16, #tpu.memory_space<vmem>>, %arg4: memref<1x1x9xf32, #tpu.memory_space<vmem>>, %arg5: memref<1x9x32xbf16, #tpu.memory_space<vmem>>, %arg6: memref<32x32xbf16, #tpu.memory_space<vmem>>, %arg7: memref<1x32xf32, #tpu.memory_space<vmem>>, %arg8: memref<1x32xf32, #tpu.memory_space<vmem>>, %arg9: memref<1x32xf32, #tpu.memory_space<vmem>>, %arg10: memref<1x9x32xbf16, #tpu.memory_space<vmem>>) attributes {dimension_semantics = [#tpu.dimension_semantics<parallel>, #tpu.dimension_semantics<parallel>], iteration_bounds = array<i64: 2, 1>, scalar_prefetch = 0 : i64, scratch_operands = 0 : i64, tpu.core_type = #tpu.core_type<tc>, window_params = [{transform_indices = @transform_0, window_bounds = array<i64: 1, 9, 32>}, {transform_indices = @transform_1, window_bounds = array<i64: 1, 9, 64>}, {transform_indices = @transform_2, window_bounds = array<i64: 1, 1, 9>}, {transform_indices = @transform_3, window_bounds = array<i64: 1, 9, 32>}, {pipeline_mode = #tpu.pipeline_mode<synchronous>, transform_indices = @transform_4, window_bounds = array<i64: 32, 32>}, {pipeline_mode = #tpu.pipeline_mode<synchronous>, transform_indices = @transform_5, window_bounds = array<i64: 1, 32>}, {pipeline_mode = #tpu.pipeline_mode<synchronous>, transform_indices = @transform_6, window_bounds = array<i64: 1, 32>}, {pipeline_mode = #tpu.pipeline_mode<synchronous>, transform_indices = @transform_7, window_bounds = array<i64: 1, 32>}, {transform_indices = @transform_8, window_bounds = array<i64: 1, 9, 32>}]} {
    %c0 = arith.constant 0 : index
    %c0_0 = arith.constant 0 : index
    %c0_1 = arith.constant 0 : index
    %0 = vector.load %arg2[%c0, %c0_0, %c0_1] : memref<1x9x32xbf16, #tpu.memory_space<vmem>>, vector<1x9x32xbf16>
    %1 = vector.shape_cast %0 : vector<1x9x32xbf16> to vector<9x32xbf16>
    %c0_2 = arith.constant 0 : index
    %c0_3 = arith.constant 0 : index
    %c0_4 = arith.constant 0 : index
    %2 = vector.load %arg3[%c0_2, %c0_3, %c0_4] : memref<1x9x64xbf16, #tpu.memory_space<vmem>>, vector<1x9x64xbf16>
    %3 = vector.shape_cast %2 : vector<1x9x64xbf16> to vector<9x64xbf16>
    %c0_5 = arith.constant 0 : index
    %c0_6 = arith.constant 0 : index
    %c0_7 = arith.constant 0 : index
    %4 = vector.load %arg4[%c0_5, %c0_6, %c0_7] : memref<1x1x9xf32, #tpu.memory_space<vmem>>, vector<1x1x9xf32>
    %5 = vector.shape_cast %4 : vector<1x1x9xf32> to vector<1x9xf32>
    %c9_i32 = arith.constant 9 : i32
    %6 = arith.muli %arg1, %c9_i32 : i32
    %7 = tpu.iota {dimensions = array<i32: 0>} : vector<9x9xi32>
    %8 = vector.broadcast %6 : i32 to vector<9x9xi32>
    %9 = arith.addi %8, %7 : vector<9x9xi32>
    %10 = tpu.iota {dimensions = array<i32: 1>} : vector<9x9xi32>
    %11 = arith.cmpi sgt, %10, %9 : vector<9x9xi32>
    %cst = arith.constant -1.000000e+09 : f32
    %cst_8 = arith.constant 0.000000e+00 : f32
    %12 = vector.broadcast %cst : f32 to vector<9x9xf32>
    %13 = vector.broadcast %cst_8 : f32 to vector<9x9xf32>
    %14 = arith.select %11, %12, %13 : vector<9x9xi1>, vector<9x9xf32>
    %15 = vector.broadcast %5 : vector<1x9xf32> to vector<9x9xf32>
    %16 = arith.addf %15, %14 : vector<9x9xf32>
    %17 = vector.extract_strided_slice %1 {offsets = [0, 0], sizes = [9, 8], strides = [1, 1]} : vector<9x32xbf16> to vector<9x8xbf16>
    %18 = vector.extract_strided_slice %3 {offsets = [0, 0], sizes = [9, 8], strides = [1, 1]} : vector<9x64xbf16> to vector<9x8xbf16>
    %19 = vector.extract_strided_slice %3 {offsets = [0, 32], sizes = [9, 8], strides = [1, 1]} : vector<9x64xbf16> to vector<9x8xbf16>
    "tpu.trace_start"() <{level = 10 : i32, message = "qd,kd->qk"}> : () -> ()
    %cst_9 = arith.constant dense<0.000000e+00> : vector<9x9xf32>
    %20 = tpu.matmul %17, %18, %cst_9 {dimension_numbers = #tpu.dot_dimension_numbers<[1], [1], [0], [0], [0, 0, 1, 0], [], []>} : vector<9x8xbf16>, vector<9x8xbf16>, vector<9x9xf32> -> vector<9x9xf32>
    "tpu.trace_stop"() : () -> ()
    %21 = arith.addf %20, %16 : vector<9x9xf32>
    %cst_10 = arith.constant dense<0xFF800000> : vector<9xf32>
    %22 = vector.multi_reduction <maximumf>, %21, %cst_10 [1] : vector<9x9xf32> to vector<9xf32>
    %23 = vector.shape_cast %22 : vector<9xf32> to vector<9x1xf32>
    %24 = vector.broadcast %23 : vector<9x1xf32> to vector<9x9xf32>
    %25 = arith.subf %21, %24 : vector<9x9xf32>
    %26 = math.exp %25 : vector<9x9xf32>
    %cst_11 = arith.constant dense<0.000000e+00> : vector<9xf32>
    %27 = vector.multi_reduction <add>, %26, %cst_11 [1] : vector<9x9xf32> to vector<9xf32>
    %28 = vector.shape_cast %27 : vector<9xf32> to vector<9x1xf32>
    %29 = arith.truncf %26 : vector<9x9xf32> to vector<9x9xbf16>
    "tpu.trace_start"() <{level = 10 : i32, message = "qk,kd->qd"}> : () -> ()
    %cst_12 = arith.constant dense<0.000000e+00> : vector<9x8xf32>
    %30 = tpu.matmul %29, %19, %cst_12 {dimension_numbers = #tpu.dot_dimension_numbers<[1], [0], [0], [1], [0, 0, 1, 1], [], []>} : vector<9x9xbf16>, vector<9x8xbf16>, vector<9x8xf32> -> vector<9x8xf32>
    "tpu.trace_stop"() : () -> ()
    %31 = tpu.reciprocal %28 {approx = true} : vector<9x1xf32> -> vector<9x1xf32>
    %32 = vector.broadcast %31 : vector<9x1xf32> to vector<9x8xf32>
    %33 = arith.mulf %30, %32 : vector<9x8xf32>
    %34 = vector.extract_strided_slice %1 {offsets = [0, 8], sizes = [9, 8], strides = [1, 1]} : vector<9x32xbf16> to vector<9x8xbf16>
    %35 = vector.extract_strided_slice %3 {offsets = [0, 8], sizes = [9, 8], strides = [1, 1]} : vector<9x64xbf16> to vector<9x8xbf16>
    %36 = vector.extract_strided_slice %3 {offsets = [0, 40], sizes = [9, 8], strides = [1, 1]} : vector<9x64xbf16> to vector<9x8xbf16>
    "tpu.trace_start"() <{level = 10 : i32, message = "qd,kd->qk"}> : () -> ()
    %cst_13 = arith.constant dense<0.000000e+00> : vector<9x9xf32>
    %37 = tpu.matmul %34, %35, %cst_13 {dimension_numbers = #tpu.dot_dimension_numbers<[1], [1], [0], [0], [0, 0, 1, 0], [], []>} : vector<9x8xbf16>, vector<9x8xbf16>, vector<9x9xf32> -> vector<9x9xf32>
    "tpu.trace_stop"() : () -> ()
    %38 = arith.addf %37, %16 : vector<9x9xf32>
    %cst_14 = arith.constant dense<0xFF800000> : vector<9xf32>
    %39 = vector.multi_reduction <maximumf>, %38, %cst_14 [1] : vector<9x9xf32> to vector<9xf32>
    %40 = vector.shape_cast %39 : vector<9xf32> to vector<9x1xf32>
    %41 = vector.broadcast %40 : vector<9x1xf32> to vector<9x9xf32>
    %42 = arith.subf %38, %41 : vector<9x9xf32>
    %43 = math.exp %42 : vector<9x9xf32>
    %cst_15 = arith.constant dense<0.000000e+00> : vector<9xf32>
    %44 = vector.multi_reduction <add>, %43, %cst_15 [1] : vector<9x9xf32> to vector<9xf32>
    %45 = vector.shape_cast %44 : vector<9xf32> to vector<9x1xf32>
    %46 = arith.truncf %43 : vector<9x9xf32> to vector<9x9xbf16>
    "tpu.trace_start"() <{level = 10 : i32, message = "qk,kd->qd"}> : () -> ()
    %cst_16 = arith.constant dense<0.000000e+00> : vector<9x8xf32>
    %47 = tpu.matmul %46, %36, %cst_16 {dimension_numbers = #tpu.dot_dimension_numbers<[1], [0], [0], [1], [0, 0, 1, 1], [], []>} : vector<9x9xbf16>, vector<9x8xbf16>, vector<9x8xf32> -> vector<9x8xf32>
    "tpu.trace_stop"() : () -> ()
    %48 = tpu.reciprocal %45 {approx = true} : vector<9x1xf32> -> vector<9x1xf32>
    %49 = vector.broadcast %48 : vector<9x1xf32> to vector<9x8xf32>
    %50 = arith.mulf %47, %49 : vector<9x8xf32>
    %51 = vector.extract_strided_slice %1 {offsets = [0, 16], sizes = [9, 8], strides = [1, 1]} : vector<9x32xbf16> to vector<9x8xbf16>
    %52 = vector.extract_strided_slice %3 {offsets = [0, 16], sizes = [9, 8], strides = [1, 1]} : vector<9x64xbf16> to vector<9x8xbf16>
    %53 = vector.extract_strided_slice %3 {offsets = [0, 48], sizes = [9, 8], strides = [1, 1]} : vector<9x64xbf16> to vector<9x8xbf16>
    "tpu.trace_start"() <{level = 10 : i32, message = "qd,kd->qk"}> : () -> ()
    %cst_17 = arith.constant dense<0.000000e+00> : vector<9x9xf32>
    %54 = tpu.matmul %51, %52, %cst_17 {dimension_numbers = #tpu.dot_dimension_numbers<[1], [1], [0], [0], [0, 0, 1, 0], [], []>} : vector<9x8xbf16>, vector<9x8xbf16>, vector<9x9xf32> -> vector<9x9xf32>
    "tpu.trace_stop"() : () -> ()
    %55 = arith.addf %54, %16 : vector<9x9xf32>
    %cst_18 = arith.constant dense<0xFF800000> : vector<9xf32>
    %56 = vector.multi_reduction <maximumf>, %55, %cst_18 [1] : vector<9x9xf32> to vector<9xf32>
    %57 = vector.shape_cast %56 : vector<9xf32> to vector<9x1xf32>
    %58 = vector.broadcast %57 : vector<9x1xf32> to vector<9x9xf32>
    %59 = arith.subf %55, %58 : vector<9x9xf32>
    %60 = math.exp %59 : vector<9x9xf32>
    %cst_19 = arith.constant dense<0.000000e+00> : vector<9xf32>
    %61 = vector.multi_reduction <add>, %60, %cst_19 [1] : vector<9x9xf32> to vector<9xf32>
    %62 = vector.shape_cast %61 : vector<9xf32> to vector<9x1xf32>
    %63 = arith.truncf %60 : vector<9x9xf32> to vector<9x9xbf16>
    "tpu.trace_start"() <{level = 10 : i32, message = "qk,kd->qd"}> : () -> ()
    %cst_20 = arith.constant dense<0.000000e+00> : vector<9x8xf32>
    %64 = tpu.matmul %63, %53, %cst_20 {dimension_numbers = #tpu.dot_dimension_numbers<[1], [0], [0], [1], [0, 0, 1, 1], [], []>} : vector<9x9xbf16>, vector<9x8xbf16>, vector<9x8xf32> -> vector<9x8xf32>
    "tpu.trace_stop"() : () -> ()
    %65 = tpu.reciprocal %62 {approx = true} : vector<9x1xf32> -> vector<9x1xf32>
    %66 = vector.broadcast %65 : vector<9x1xf32> to vector<9x8xf32>
    %67 = arith.mulf %64, %66 : vector<9x8xf32>
    %68 = vector.extract_strided_slice %1 {offsets = [0, 24], sizes = [9, 8], strides = [1, 1]} : vector<9x32xbf16> to vector<9x8xbf16>
    %69 = vector.extract_strided_slice %3 {offsets = [0, 24], sizes = [9, 8], strides = [1, 1]} : vector<9x64xbf16> to vector<9x8xbf16>
    %70 = vector.extract_strided_slice %3 {offsets = [0, 56], sizes = [9, 8], strides = [1, 1]} : vector<9x64xbf16> to vector<9x8xbf16>
    "tpu.trace_start"() <{level = 10 : i32, message = "qd,kd->qk"}> : () -> ()
    %cst_21 = arith.constant dense<0.000000e+00> : vector<9x9xf32>
    %71 = tpu.matmul %68, %69, %cst_21 {dimension_numbers = #tpu.dot_dimension_numbers<[1], [1], [0], [0], [0, 0, 1, 0], [], []>} : vector<9x8xbf16>, vector<9x8xbf16>, vector<9x9xf32> -> vector<9x9xf32>
    "tpu.trace_stop"() : () -> ()
    %72 = arith.addf %71, %16 : vector<9x9xf32>
    %cst_22 = arith.constant dense<0xFF800000> : vector<9xf32>
    %73 = vector.multi_reduction <maximumf>, %72, %cst_22 [1] : vector<9x9xf32> to vector<9xf32>
    %74 = vector.shape_cast %73 : vector<9xf32> to vector<9x1xf32>
    %75 = vector.broadcast %74 : vector<9x1xf32> to vector<9x9xf32>
    %76 = arith.subf %72, %75 : vector<9x9xf32>
    %77 = math.exp %76 : vector<9x9xf32>
    %cst_23 = arith.constant dense<0.000000e+00> : vector<9xf32>
    %78 = vector.multi_reduction <add>, %77, %cst_23 [1] : vector<9x9xf32> to vector<9xf32>
    %79 = vector.shape_cast %78 : vector<9xf32> to vector<9x1xf32>
    %80 = arith.truncf %77 : vector<9x9xf32> to vector<9x9xbf16>
    "tpu.trace_start"() <{level = 10 : i32, message = "qk,kd->qd"}> : () -> ()
    %cst_24 = arith.constant dense<0.000000e+00> : vector<9x8xf32>
    %81 = tpu.matmul %80, %70, %cst_24 {dimension_numbers = #tpu.dot_dimension_numbers<[1], [0], [0], [1], [0, 0, 1, 1], [], []>} : vector<9x9xbf16>, vector<9x8xbf16>, vector<9x8xf32> -> vector<9x8xf32>
    "tpu.trace_stop"() : () -> ()
    %82 = tpu.reciprocal %79 {approx = true} : vector<9x1xf32> -> vector<9x1xf32>
    %83 = vector.broadcast %82 : vector<9x1xf32> to vector<9x8xf32>
    %84 = arith.mulf %81, %83 : vector<9x8xf32>
    %85 = tpu.concatenate %33, %50, %67, %84 in 1 : vector<9x8xf32>, vector<9x8xf32>, vector<9x8xf32>, vector<9x8xf32> -> vector<9x32xf32>
    %86 = arith.truncf %85 : vector<9x32xf32> to vector<9x32xbf16>
    %c0_25 = arith.constant 0 : index
    %c0_26 = arith.constant 0 : index
    %87 = vector.load %arg6[%c0_25, %c0_26] : memref<32x32xbf16, #tpu.memory_space<vmem>>, vector<32x32xbf16>
    %cst_27 = arith.constant dense<0.000000e+00> : vector<9x32xf32>
    %88 = tpu.matmul %86, %87, %cst_27 {dimension_numbers = #tpu.dot_dimension_numbers<[1], [0], [0], [1], [0, 0, 1, 1], [], []>} : vector<9x32xbf16>, vector<32x32xbf16>, vector<9x32xf32> -> vector<9x32xf32>
    %c0_28 = arith.constant 0 : index
    %c0_29 = arith.constant 0 : index
    %89 = vector.load %arg7[%c0_28, %c0_29] : memref<1x32xf32, #tpu.memory_space<vmem>>, vector<1x32xf32>
    %90 = vector.broadcast %89 : vector<1x32xf32> to vector<9x32xf32>
    %91 = arith.addf %88, %90 : vector<9x32xf32>
    %c0_30 = arith.constant 0 : index
    %c0_31 = arith.constant 0 : index
    %c0_32 = arith.constant 0 : index
    %92 = vector.load %arg5[%c0_30, %c0_31, %c0_32] : memref<1x9x32xbf16, #tpu.memory_space<vmem>>, vector<1x9x32xbf16>
    %93 = vector.shape_cast %92 : vector<1x9x32xbf16> to vector<9x32xbf16>
    %94 = arith.extf %93 : vector<9x32xbf16> to vector<9x32xf32>
    %95 = arith.addf %94, %91 : vector<9x32xf32>
    %c0_33 = arith.constant 0 : index
    %c0_34 = arith.constant 0 : index
    %96 = vector.load %arg8[%c0_33, %c0_34] : memref<1x32xf32, #tpu.memory_space<vmem>>, vector<1x32xf32>
    %c0_35 = arith.constant 0 : index
    %c0_36 = arith.constant 0 : index
    %97 = vector.load %arg9[%c0_35, %c0_36] : memref<1x32xf32, #tpu.memory_space<vmem>>, vector<1x32xf32>
    %cst_37 = arith.constant dense<0.000000e+00> : vector<9xf32>
    %98 = vector.multi_reduction <add>, %95, %cst_37 [1] : vector<9x32xf32> to vector<9xf32>
    %99 = vector.shape_cast %98 : vector<9xf32> to vector<9x1xf32>
    %cst_38 = arith.constant 3.200000e+01 : f32
    %100 = vector.broadcast %cst_38 : f32 to vector<9x1xf32>
    %101 = arith.divf %99, %100 : vector<9x1xf32>
    %102 = vector.broadcast %101 : vector<9x1xf32> to vector<9x32xf32>
    %103 = arith.subf %95, %102 : vector<9x32xf32>
    %104 = arith.mulf %103, %103 : vector<9x32xf32>
    %cst_39 = arith.constant dense<0.000000e+00> : vector<9xf32>
    %105 = vector.multi_reduction <add>, %104, %cst_39 [1] : vector<9x32xf32> to vector<9xf32>
    %106 = vector.shape_cast %105 : vector<9xf32> to vector<9x1xf32>
    %cst_40 = arith.constant 3.200000e+01 : f32
    %107 = vector.broadcast %cst_40 : f32 to vector<9x1xf32>
    %108 = arith.divf %106, %107 : vector<9x1xf32>
    %109 = vector.broadcast %101 : vector<9x1xf32> to vector<9x32xf32>
    %110 = arith.subf %95, %109 : vector<9x32xf32>
    %cst_41 = arith.constant 9.99999974E-6 : f32
    %111 = vector.broadcast %cst_41 : f32 to vector<9x1xf32>
    %112 = arith.addf %108, %111 : vector<9x1xf32>
    %113 = math.rsqrt %112 : vector<9x1xf32>
    %114 = vector.broadcast %113 : vector<9x1xf32> to vector<9x32xf32>
    %115 = arith.mulf %110, %114 : vector<9x32xf32>
    %116 = vector.broadcast %96 : vector<1x32xf32> to vector<9x32xf32>
    %117 = arith.mulf %115, %116 : vector<9x32xf32>
    %118 = vector.broadcast %97 : vector<1x32xf32> to vector<9x32xf32>
    %119 = arith.addf %117, %118 : vector<9x32xf32>
    %120 = arith.truncf %119 : vector<9x32xf32> to vector<9x32xbf16>
    %c0_42 = arith.constant 0 : index
    %c0_43 = arith.constant 0 : index
    %c0_44 = arith.constant 0 : index
    %121 = vector.load %arg10[%c0_42, %c0_43, %c0_44] : memref<1x9x32xbf16, #tpu.memory_space<vmem>>, vector<1x9x32xbf16>
    %122 = vector.shape_cast %121 : vector<1x9x32xbf16> to vector<9x32xbf16>
    %123 = vector.shape_cast %120 : vector<9x32xbf16> to vector<1x9x32xbf16>
    tpu.vector_store %arg10[%c0_42, %c0_43, %c0_44], %123 {strides = array<i32>} : memref<1x9x32xbf16, #tpu.memory_space<vmem>>, vector<1x9x32xbf16>,
    return
  }
  func.func @transform_0(%arg0: i32, %arg1: i32) -> (i32, i32, i32) {
    %c0_i32 = arith.constant 0 : i32
    %c0_i32_0 = arith.constant 0 : i32
    return %arg0, %arg1, %c0_i32 : i32, i32, i32
  }
  func.func @transform_1(%arg0: i32, %arg1: i32) -> (i32, i32, i32) {
    %c0_i32 = arith.constant 0 : i32
    %c0_i32_0 = arith.constant 0 : i32
    %c0_i32_1 = arith.constant 0 : i32
    return %arg0, %c0_i32, %c0_i32_0 : i32, i32, i32
  }
  func.func @transform_2(%arg0: i32, %arg1: i32) -> (i32, i32, i32) {
    %c0_i32 = arith.constant 0 : i32
    %c0_i32_0 = arith.constant 0 : i32
    %c0_i32_1 = arith.constant 0 : i32
    return %arg0, %c0_i32, %c0_i32_0 : i32, i32, i32
  }
  func.func @transform_3(%arg0: i32, %arg1: i32) -> (i32, i32, i32) {
    %c0_i32 = arith.constant 0 : i32
    %c0_i32_0 = arith.constant 0 : i32
    return %arg0, %arg1, %c0_i32 : i32, i32, i32
  }
  func.func @transform_4(%arg0: i32, %arg1: i32) -> (i32, i32) {
    %c0_i32 = arith.constant 0 : i32
    %c0_i32_0 = arith.constant 0 : i32
    %c0_i32_1 = arith.constant 0 : i32
    return %c0_i32, %c0_i32_0 : i32, i32
  }
  func.func @transform_5(%arg0: i32, %arg1: i32) -> (i32, i32) {
    %c0_i32 = arith.constant 0 : i32
    %c0_i32_0 = arith.constant 0 : i32
    %c0_i32_1 = arith.constant 0 : i32
    return %c0_i32, %c0_i32_0 : i32, i32
  }
  func.func @transform_6(%arg0: i32, %arg1: i32) -> (i32, i32) {
    %c0_i32 = arith.constant 0 : i32
    %c0_i32_0 = arith.constant 0 : i32
    %c0_i32_1 = arith.constant 0 : i32
    return %c0_i32, %c0_i32_0 : i32, i32
  }
  func.func @transform_7(%arg0: i32, %arg1: i32) -> (i32, i32) {
    %c0_i32 = arith.constant 0 : i32
    %c0_i32_0 = arith.constant 0 : i32
    %c0_i32_1 = arith.constant 0 : i32
    return %c0_i32, %c0_i32_0 : i32, i32
  }
  func.func @transform_8(%arg0: i32, %arg1: i32) -> (i32, i32, i32) {
    %c0_i32 = arith.constant 0 : i32
    %c0_i32_0 = arith.constant 0 : i32
    return %arg0, %arg1, %c0_i32 : i32, i32, i32
  }
}

module attributes {stable_mosaic.version = 11 : i64} {
  func.func @_ffn_res_ln_kernel(%arg0: i32, %arg1: memref<16x32xbf16, #tpu.memory_space<vmem>>, %arg2: memref<32x64xbf16, #tpu.memory_space<vmem>>, %arg3: memref<1x64xf32, #tpu.memory_space<vmem>>, %arg4: memref<64x32xbf16, #tpu.memory_space<vmem>>, %arg5: memref<1x32xf32, #tpu.memory_space<vmem>>, %arg6: memref<1x32xf32, #tpu.memory_space<vmem>>, %arg7: memref<1x32xf32, #tpu.memory_space<vmem>>, %arg8: memref<16x32xbf16, #tpu.memory_space<vmem>>) attributes {dimension_semantics = [#tpu.dimension_semantics<parallel>], iteration_bounds = array<i64: 2>, scalar_prefetch = 0 : i64, scratch_operands = 0 : i64, tpu.core_type = #tpu.core_type<tc>, window_params = [{transform_indices = @transform_0, window_bounds = array<i64: 16, 32>}, {pipeline_mode = #tpu.pipeline_mode<synchronous>, transform_indices = @transform_1, window_bounds = array<i64: 32, 64>}, {pipeline_mode = #tpu.pipeline_mode<synchronous>, transform_indices = @transform_2, window_bounds = array<i64: 1, 64>}, {pipeline_mode = #tpu.pipeline_mode<synchronous>, transform_indices = @transform_3, window_bounds = array<i64: 64, 32>}, {pipeline_mode = #tpu.pipeline_mode<synchronous>, transform_indices = @transform_4, window_bounds = array<i64: 1, 32>}, {pipeline_mode = #tpu.pipeline_mode<synchronous>, transform_indices = @transform_5, window_bounds = array<i64: 1, 32>}, {pipeline_mode = #tpu.pipeline_mode<synchronous>, transform_indices = @transform_6, window_bounds = array<i64: 1, 32>}, {transform_indices = @transform_7, window_bounds = array<i64: 16, 32>}]} {
    %c0 = arith.constant 0 : index
    %c0_0 = arith.constant 0 : index
    %0 = vector.load %arg1[%c0, %c0_0] : memref<16x32xbf16, #tpu.memory_space<vmem>>, vector<16x32xbf16>
    %c0_1 = arith.constant 0 : index
    %c0_2 = arith.constant 0 : index
    %1 = vector.load %arg2[%c0_1, %c0_2] : memref<32x64xbf16, #tpu.memory_space<vmem>>, vector<32x64xbf16>
    %cst = arith.constant dense<0.000000e+00> : vector<16x64xf32>
    %2 = tpu.matmul %0, %1, %cst {dimension_numbers = #tpu.dot_dimension_numbers<[1], [0], [0], [1], [0, 0, 1, 1], [], []>} : vector<16x32xbf16>, vector<32x64xbf16>, vector<16x64xf32> -> vector<16x64xf32>
    %c0_3 = arith.constant 0 : index
    %c0_4 = arith.constant 0 : index
    %3 = vector.load %arg3[%c0_3, %c0_4] : memref<1x64xf32, #tpu.memory_space<vmem>>, vector<1x64xf32>
    %4 = vector.broadcast %3 : vector<1x64xf32> to vector<16x64xf32>
    %5 = arith.addf %2, %4 : vector<16x64xf32>
    %cst_5 = arith.constant 0.000000e+00 : f32
    %6 = vector.broadcast %cst_5 : f32 to vector<16x64xf32>
    %7 = arith.maximumf %5, %6 : vector<16x64xf32>
    %8 = arith.truncf %7 : vector<16x64xf32> to vector<16x64xbf16>
    %c0_6 = arith.constant 0 : index
    %c0_7 = arith.constant 0 : index
    %9 = vector.load %arg4[%c0_6, %c0_7] : memref<64x32xbf16, #tpu.memory_space<vmem>>, vector<64x32xbf16>
    %cst_8 = arith.constant dense<0.000000e+00> : vector<16x32xf32>
    %10 = tpu.matmul %8, %9, %cst_8 {dimension_numbers = #tpu.dot_dimension_numbers<[1], [0], [0], [1], [0, 0, 1, 1], [], []>} : vector<16x64xbf16>, vector<64x32xbf16>, vector<16x32xf32> -> vector<16x32xf32>
    %c0_9 = arith.constant 0 : index
    %c0_10 = arith.constant 0 : index
    %11 = vector.load %arg5[%c0_9, %c0_10] : memref<1x32xf32, #tpu.memory_space<vmem>>, vector<1x32xf32>
    %12 = vector.broadcast %11 : vector<1x32xf32> to vector<16x32xf32>
    %13 = arith.addf %10, %12 : vector<16x32xf32>
    %14 = arith.extf %0 : vector<16x32xbf16> to vector<16x32xf32>
    %15 = arith.addf %14, %13 : vector<16x32xf32>
    %c0_11 = arith.constant 0 : index
    %c0_12 = arith.constant 0 : index
    %16 = vector.load %arg6[%c0_11, %c0_12] : memref<1x32xf32, #tpu.memory_space<vmem>>, vector<1x32xf32>
    %c0_13 = arith.constant 0 : index
    %c0_14 = arith.constant 0 : index
    %17 = vector.load %arg7[%c0_13, %c0_14] : memref<1x32xf32, #tpu.memory_space<vmem>>, vector<1x32xf32>
    %cst_15 = arith.constant dense<0.000000e+00> : vector<16xf32>
    %18 = vector.multi_reduction <add>, %15, %cst_15 [1] : vector<16x32xf32> to vector<16xf32>
    %19 = vector.shape_cast %18 : vector<16xf32> to vector<16x1xf32>
    %cst_16 = arith.constant 3.200000e+01 : f32
    %20 = vector.broadcast %cst_16 : f32 to vector<16x1xf32>
    %21 = arith.divf %19, %20 : vector<16x1xf32>
    %22 = vector.broadcast %21 : vector<16x1xf32> to vector<16x32xf32>
    %23 = arith.subf %15, %22 : vector<16x32xf32>
    %24 = arith.mulf %23, %23 : vector<16x32xf32>
    %cst_17 = arith.constant dense<0.000000e+00> : vector<16xf32>
    %25 = vector.multi_reduction <add>, %24, %cst_17 [1] : vector<16x32xf32> to vector<16xf32>
    %26 = vector.shape_cast %25 : vector<16xf32> to vector<16x1xf32>
    %cst_18 = arith.constant 3.200000e+01 : f32
    %27 = vector.broadcast %cst_18 : f32 to vector<16x1xf32>
    %28 = arith.divf %26, %27 : vector<16x1xf32>
    %29 = vector.broadcast %21 : vector<16x1xf32> to vector<16x32xf32>
    %30 = arith.subf %15, %29 : vector<16x32xf32>
    %cst_19 = arith.constant 9.99999974E-6 : f32
    %31 = vector.broadcast %cst_19 : f32 to vector<16x1xf32>
    %32 = arith.addf %28, %31 : vector<16x1xf32>
    %33 = math.rsqrt %32 : vector<16x1xf32>
    %34 = vector.broadcast %33 : vector<16x1xf32> to vector<16x32xf32>
    %35 = arith.mulf %30, %34 : vector<16x32xf32>
    %36 = vector.broadcast %16 : vector<1x32xf32> to vector<16x32xf32>
    %37 = arith.mulf %35, %36 : vector<16x32xf32>
    %38 = vector.broadcast %17 : vector<1x32xf32> to vector<16x32xf32>
    %39 = arith.addf %37, %38 : vector<16x32xf32>
    %40 = arith.truncf %39 : vector<16x32xf32> to vector<16x32xbf16>
    %c0_20 = arith.constant 0 : index
    %c0_21 = arith.constant 0 : index
    %41 = vector.load %arg8[%c0_20, %c0_21] : memref<16x32xbf16, #tpu.memory_space<vmem>>, vector<16x32xbf16>
    tpu.vector_store %arg8[%c0_20, %c0_21], %40 {strides = array<i32>} : memref<16x32xbf16, #tpu.memory_space<vmem>>, vector<16x32xbf16>,
    return
  }
  func.func @transform_0(%arg0: i32) -> (i32, i32) {
    %c0_i32 = arith.constant 0 : i32
    %c0_i32_0 = arith.constant 0 : i32
    return %arg0, %c0_i32 : i32, i32
  }
  func.func @transform_1(%arg0: i32) -> (i32, i32) {
    %c0_i32 = arith.constant 0 : i32
    %c0_i32_0 = arith.constant 0 : i32
    %c0_i32_1 = arith.constant 0 : i32
    return %c0_i32, %c0_i32_0 : i32, i32
  }
  func.func @transform_2(%arg0: i32) -> (i32, i32) {
    %c0_i32 = arith.constant 0 : i32
    %c0_i32_0 = arith.constant 0 : i32
    %c0_i32_1 = arith.constant 0 : i32
    return %c0_i32, %c0_i32_0 : i32, i32
  }
  func.func @transform_3(%arg0: i32) -> (i32, i32) {
    %c0_i32 = arith.constant 0 : i32
    %c0_i32_0 = arith.constant 0 : i32
    %c0_i32_1 = arith.constant 0 : i32
    return %c0_i32, %c0_i32_0 : i32, i32
  }
  func.func @transform_4(%arg0: i32) -> (i32, i32) {
    %c0_i32 = arith.constant 0 : i32
    %c0_i32_0 = arith.constant 0 : i32
    %c0_i32_1 = arith.constant 0 : i32
    return %c0_i32, %c0_i32_0 : i32, i32
  }
  func.func @transform_5(%arg0: i32) -> (i32, i32) {
    %c0_i32 = arith.constant 0 : i32
    %c0_i32_0 = arith.constant 0 : i32
    %c0_i32_1 = arith.constant 0 : i32
    return %c0_i32, %c0_i32_0 : i32, i32
  }
  func.func @transform_6(%arg0: i32) -> (i32, i32) {
    %c0_i32 = arith.constant 0 : i32
    %c0_i32_0 = arith.constant 0 : i32
    %c0_i32_1 = arith.constant 0 : i32
    return %c0_i32, %c0_i32_0 : i32, i32
  }
  func.func @transform_7(%arg0: i32) -> (i32, i32) {
    %c0_i32 = arith.constant 0 : i32
    %c0_i32_0 = arith.constant 0 : i32
    return %arg0, %c0_i32 : i32, i32
  }
}

module attributes {stable_mosaic.version = 11 : i64} {
  func.func @_ln_linear_kernel(%arg0: i32, %arg1: memref<16x32xbf16, #tpu.memory_space<vmem>>, %arg2: memref<1x32xf32, #tpu.memory_space<vmem>>, %arg3: memref<1x32xf32, #tpu.memory_space<vmem>>, %arg4: memref<32x128xbf16, #tpu.memory_space<vmem>>, %arg5: memref<1x128xf32, #tpu.memory_space<vmem>>, %arg6: memref<16x128xf32, #tpu.memory_space<vmem>>) attributes {dimension_semantics = [#tpu.dimension_semantics<parallel>], iteration_bounds = array<i64: 2>, scalar_prefetch = 0 : i64, scratch_operands = 0 : i64, tpu.core_type = #tpu.core_type<tc>, window_params = [{transform_indices = @transform_0, window_bounds = array<i64: 16, 32>}, {pipeline_mode = #tpu.pipeline_mode<synchronous>, transform_indices = @transform_1, window_bounds = array<i64: 1, 32>}, {pipeline_mode = #tpu.pipeline_mode<synchronous>, transform_indices = @transform_2, window_bounds = array<i64: 1, 32>}, {pipeline_mode = #tpu.pipeline_mode<synchronous>, transform_indices = @transform_3, window_bounds = array<i64: 32, 128>}, {pipeline_mode = #tpu.pipeline_mode<synchronous>, transform_indices = @transform_4, window_bounds = array<i64: 1, 128>}, {transform_indices = @transform_5, window_bounds = array<i64: 16, 128>}]} {
    %c0 = arith.constant 0 : index
    %c0_0 = arith.constant 0 : index
    %0 = vector.load %arg1[%c0, %c0_0] : memref<16x32xbf16, #tpu.memory_space<vmem>>, vector<16x32xbf16>
    %1 = arith.extf %0 : vector<16x32xbf16> to vector<16x32xf32>
    %c0_1 = arith.constant 0 : index
    %c0_2 = arith.constant 0 : index
    %2 = vector.load %arg2[%c0_1, %c0_2] : memref<1x32xf32, #tpu.memory_space<vmem>>, vector<1x32xf32>
    %c0_3 = arith.constant 0 : index
    %c0_4 = arith.constant 0 : index
    %3 = vector.load %arg3[%c0_3, %c0_4] : memref<1x32xf32, #tpu.memory_space<vmem>>, vector<1x32xf32>
    %cst = arith.constant dense<0.000000e+00> : vector<16xf32>
    %4 = vector.multi_reduction <add>, %1, %cst [1] : vector<16x32xf32> to vector<16xf32>
    %5 = vector.shape_cast %4 : vector<16xf32> to vector<16x1xf32>
    %cst_5 = arith.constant 3.200000e+01 : f32
    %6 = vector.broadcast %cst_5 : f32 to vector<16x1xf32>
    %7 = arith.divf %5, %6 : vector<16x1xf32>
    %8 = vector.broadcast %7 : vector<16x1xf32> to vector<16x32xf32>
    %9 = arith.subf %1, %8 : vector<16x32xf32>
    %10 = arith.mulf %9, %9 : vector<16x32xf32>
    %cst_6 = arith.constant dense<0.000000e+00> : vector<16xf32>
    %11 = vector.multi_reduction <add>, %10, %cst_6 [1] : vector<16x32xf32> to vector<16xf32>
    %12 = vector.shape_cast %11 : vector<16xf32> to vector<16x1xf32>
    %cst_7 = arith.constant 3.200000e+01 : f32
    %13 = vector.broadcast %cst_7 : f32 to vector<16x1xf32>
    %14 = arith.divf %12, %13 : vector<16x1xf32>
    %15 = vector.broadcast %7 : vector<16x1xf32> to vector<16x32xf32>
    %16 = arith.subf %1, %15 : vector<16x32xf32>
    %cst_8 = arith.constant 9.99999974E-6 : f32
    %17 = vector.broadcast %cst_8 : f32 to vector<16x1xf32>
    %18 = arith.addf %14, %17 : vector<16x1xf32>
    %19 = math.rsqrt %18 : vector<16x1xf32>
    %20 = vector.broadcast %19 : vector<16x1xf32> to vector<16x32xf32>
    %21 = arith.mulf %16, %20 : vector<16x32xf32>
    %22 = vector.broadcast %2 : vector<1x32xf32> to vector<16x32xf32>
    %23 = arith.mulf %21, %22 : vector<16x32xf32>
    %24 = vector.broadcast %3 : vector<1x32xf32> to vector<16x32xf32>
    %25 = arith.addf %23, %24 : vector<16x32xf32>
    %26 = arith.truncf %25 : vector<16x32xf32> to vector<16x32xbf16>
    %c0_9 = arith.constant 0 : index
    %c0_10 = arith.constant 0 : index
    %27 = vector.load %arg4[%c0_9, %c0_10] : memref<32x128xbf16, #tpu.memory_space<vmem>>, vector<32x128xbf16>
    %cst_11 = arith.constant dense<0.000000e+00> : vector<16x128xf32>
    %28 = tpu.matmul %26, %27, %cst_11 {dimension_numbers = #tpu.dot_dimension_numbers<[1], [0], [0], [1], [0, 0, 1, 1], [], []>} : vector<16x32xbf16>, vector<32x128xbf16>, vector<16x128xf32> -> vector<16x128xf32>
    %c0_12 = arith.constant 0 : index
    %c0_13 = arith.constant 0 : index
    %29 = vector.load %arg5[%c0_12, %c0_13] : memref<1x128xf32, #tpu.memory_space<vmem>>, vector<1x128xf32>
    %30 = vector.broadcast %29 : vector<1x128xf32> to vector<16x128xf32>
    %31 = arith.addf %28, %30 : vector<16x128xf32>
    %c0_14 = arith.constant 0 : index
    %c0_15 = arith.constant 0 : index
    %32 = vector.load %arg6[%c0_14, %c0_15] : memref<16x128xf32, #tpu.memory_space<vmem>>, vector<16x128xf32>
    tpu.vector_store %arg6[%c0_14, %c0_15], %31 {strides = array<i32>} : memref<16x128xf32, #tpu.memory_space<vmem>>, vector<16x128xf32>,
    return
  }
  func.func @transform_0(%arg0: i32) -> (i32, i32) {
    %c0_i32 = arith.constant 0 : i32
    %c0_i32_0 = arith.constant 0 : i32
    return %arg0, %c0_i32 : i32, i32
  }
  func.func @transform_1(%arg0: i32) -> (i32, i32) {
    %c0_i32 = arith.constant 0 : i32
    %c0_i32_0 = arith.constant 0 : i32
    %c0_i32_1 = arith.constant 0 : i32
    return %c0_i32, %c0_i32_0 : i32, i32
  }
  func.func @transform_2(%arg0: i32) -> (i32, i32) {
    %c0_i32 = arith.constant 0 : i32
    %c0_i32_0 = arith.constant 0 : i32
    %c0_i32_1 = arith.constant 0 : i32
    return %c0_i32, %c0_i32_0 : i32, i32
  }
  func.func @transform_3(%arg0: i32) -> (i32, i32) {
    %c0_i32 = arith.constant 0 : i32
    %c0_i32_0 = arith.constant 0 : i32
    %c0_i32_1 = arith.constant 0 : i32
    return %c0_i32, %c0_i32_0 : i32, i32
  }
  func.func @transform_4(%arg0: i32) -> (i32, i32) {
    %c0_i32 = arith.constant 0 : i32
    %c0_i32_0 = arith.constant 0 : i32
    %c0_i32_1 = arith.constant 0 : i32
    return %c0_i32, %c0_i32_0 : i32, i32
  }
  func.func @transform_5(%arg0: i32) -> (i32, i32) {
    %c0_i32 = arith.constant 0 : i32
    %c0_i32_0 = arith.constant 0 : i32
    return %arg0, %c0_i32 : i32, i32
  }
}

</mosaic_0001>

<bundles_post_ra>
// kernel: transformer_forward.19
= control target key start
LH: loop header
LB: loop body
LE: loop exit
PB: predicated region body
PF: predicated region fallthrough
CT: control target
= control target key end

     0   :  { %s1730_s0 = inlined_call_operand.hbm [shape: bf16[32,32], index: 0, kind: input, shape index: {}]   ;;  %s1731_s1 = inlined_call_operand.hbm [shape: bf16[32,32], index: 1, kind: input, shape index: {}]   ;;  %s1732_s2 = inlined_call_operand.hbm [shape: bf16[32,64], index: 2, kind: input, shape index: {}]   ;;  %s1733_s3 = inlined_call_operand.hbm [shape: f32[1,64], index: 3, kind: input, shape index: {}]   ;;  %s1734_s4 = inlined_call_operand.hbm [shape: bf16[32,32], index: 4, kind: input, shape index: {}]   ;;  %s1735_s5 = inlined_call_operand.hbm [shape: f32[1,32], index: 5, kind: input, shape index: {}]   ;;  %s1736_s6 = inlined_call_operand.hbm [shape: bf16[32,32], index: 6, kind: output, shape index: {0}]   ;;  %s1737_s7 = inlined_call_operand.hbm [shape: bf16[32,64], index: 7, kind: output, shape index: {1}]  }
   0x1   :  { %1746 = sst [smem:[#allocation24_spill]] %s1730_s0 }
   0x2   :  { %1747 = sst [smem:[#allocation25_spill]] %s1732_s2 }
   0x3   :  { %1748 = sst [smem:[#allocation26_spill]] %s1733_s3 }
   0x4   :  { %13 = vsyncpa [#allocation3], 0 }
   0x5   :  { %15 = vsyncpa [#allocation3 + $0x1], 0 }
   0x6   :  { %16 = vsyncpa [#allocation6], 0 }
   0x7   :  { %18 = vsyncpa [#allocation6 + $0x1], 0 }
   0x8   :  { %19 = vsyncpa [#allocation9], 0 }
   0x9   :  { %20 = vsyncpa [#allocation12], 0 }
   0xa   :  { %21 = vsyncpa [#allocation4], 0 }
   0xb   :  { %23 = vsyncpa [#allocation4 + $0x1], 0 }
   0xc   :  { %24 = vsyncpa [#allocation15], 0 }
   0xd   :  { %26 = vsyncpa [#allocation15 + $0x1], 0  ;;  %s1341_s24 = smov 0   ;;  %s1343_s25 = smov 0  }
   0xe   :  { %s1345_s26 = smov 0   ;;  %s1347_s27 = smov 0  }
   0xf LB: > { %s1362_s28 = sadd.s32 4294967295, %s1283_s27   ;;  %s799_s29 = sadd.s32 4294967294, %s1283_s27   ;;  %s1283_s27 = sphi %s1347_s27, %s1777_s27   ;;  %s1279_s26 = sphi %s1345_s26, %s1776_s26   ;;  %s1275_s25 = sphi %s1343_s25, %s1775_s25   ;;  %s1271_s24 = sphi %s1341_s24, %s1774_s24  }
  0x10   : > { %p52_p0 = scmp.ne.s32.totalorder %s1275_s25, %s1271_s24  ;;  %p1738_p1 = scmp.eq.s32.totalorder %s1362_s28, 0 }
  0x11   : > { %p192_p3 = scmp.eq.s32.totalorder %s799_s29, 1  ;;  %p800_p5 = scmp.ge.s32.totalorder %s1283_s27, 1 }
  0x12   : > { %p1371_p4 = por %p1738_p1, %p52_p0  ;;  %p225_p7 = scmp.lt.s32.totalorder %s1283_s27, 3 }
  0x13   : > { %p1376_p6 = por %p192_p3, %p52_p0  ;;  %s1285_s10 = smov [#allocation7]  }
  0x14   : > { %s1749_s30 = scalar_select %p1371_p4, 1, 0 }
  0x15   : > { %s1750_s8 = scalar_select %p1376_p6, 1, 0 }
  0x16   : > { %p1381_p8 = pnand %p800_p5, %p225_p7  ;;  %s237_s11 = sshll.u32 %s1285_s10, 4  ;;  %s1385_s11 = int_to_ptr.vmem [resolvable:$true] %s237_s11 }
  0x17   : > { %1751 = sst [smem:[#allocation23_spill]] %s1750_s8  ;;  %s1286_s13 = smov [#allocation8]  }
  0x18   : > { %s1752_s9 = scalar_select %p1381_p8, 1, 0 }
  0x19   : > { %p900_p9 = pneg %p1381_p8  ;;  %s251_s14 = sshll.u32 %s1286_s13, 4  ;;  %s1396_s14 = int_to_ptr.vmem [resolvable:$true] %s251_s14 }
  0x1a   : > { %s1287_s15 = smov [#allocation10]   ;;  %s1754_s2 = sld [smem:[#allocation25_spill]] }
  0x1b   : > { %p1392_p11 = pnand %p900_p9, %p1738_p1  ;;  %s1398_s16 = sshll.u32 %s1287_s15, 4  ;;  %s262_s16 = int_to_ptr.vmem [resolvable:$true] %s1398_s16 }
  0x1d   : > { %p1408_p13 = pneg %p1392_p11 }
  0x20   : > { %s997_s19 = scalar_lea.hbm %s1754_s2, 256 }
  0x21   : > { %p998_p12 = scmp.ne.s32.totalorder %s1754_s2, %s997_s19  ;;  %p1004_p5 = scmp.lt.u32.totalorder %s997_s19, %s1754_s2 }
  0x23   : > { %p1000_p0 = pnand %p1408_p13, %p998_p12 }
  0x25   : > { %p1001_p3 = pneg %p1000_p0 }
  0x27   : > { %p1006_p7 = pnand %p1004_p5, %p1001_p3 }
  0x29   : > { %1009 = shalt.err (!%p1006_p7)
}
  0x2a   : > { %s1010_s10 = scalar_lea.vmem %s1385_s11, 256  ;;  %p1018_p2 = scmp.lt.s32.totalorder %s1385_s11, %s1385_s11 }
  0x2b   : > { %p1011_p9 = scmp.ne.s32.totalorder %s1385_s11, %s1010_s10  ;;  %p1019_p6 = scmp.lt.s32.totalorder %s1010_s10, %s1010_s10 }
  0x2d   : > { %p1013_p10 = pnand %p1011_p9, %p1408_p13  ;;  %p1020_p12 = por %p1019_p6, %p1018_p2 }
  0x2f   : > { %p1014_p1 = pneg %p1013_p10 }
  0x31   : > { %p1021_p0 = pnand %p1020_p12, %p1014_p1 }
  0x33   : > { %1024 = shalt.err (!%p1021_p0)
}
  0x34   : > { %s1742_s13 = smov 64   ;;  %s1744_s15 = smov 4  }
  0x35   : > { %903 = dma.hbm_to_vmem [thread:$0]  (!%p1392_p11), %s1754_s2, 256, %s1385_s11, [#allocation6], %s1742_s13, %s1742_s13, %s1744_s15  }
  0x36   : > { %s1756_s3 = sld [smem:[#allocation26_spill]] }
  0x3c   : > { %s1025_s21 = scalar_lea.hbm %s1756_s3, 16 }
  0x3d   : > { %p1026_p1 = scmp.ne.s32.totalorder %s1756_s3, %s1025_s21  ;;  %p1032_p10 = scmp.lt.u32.totalorder %s1025_s21, %s1756_s3 }
  0x3f   : > { %p1028_p2 = pnand %p1026_p1, %p1408_p13 }
  0x41   : > { %p1029_p6 = pneg %p1028_p2 }
  0x43   : > { %p1034_p3 = pnand %p1032_p10, %p1029_p6 }
  0x45   : > { %1037 = shalt.err (!%p1034_p3)
}
  0x46   : > { %s1038_s11 = scalar_lea.vmem %s1396_s14, 16  ;;  %s1045_s17 = scalar_lea.vmem %s1396_s14, 32 }
  0x47   : > { %p1039_p5 = scmp.ne.s32.totalorder %s1396_s14, %s1038_s11  ;;  %p1046_p12 = scmp.lt.s32.totalorder %s1396_s14, %s1396_s14 }
  0x48   : > { %p1047_p0 = scmp.lt.s32.totalorder %s1045_s17, %s1038_s11 }
  0x49   : > { %p1041_p7 = pnand %p1039_p5, %p1408_p13 }
  0x4a   : > { %p1048_p1 = por %p1047_p0, %p1046_p12 }
  0x4b   : > { %p1042_p9 = pneg %p1041_p7 }
  0x4d   : > { %p1049_p2 = pnand %p1048_p1, %p1042_p9 }
  0x4f   : > { %1052 = shalt.err (!%p1049_p2)
}
  0x50   : > { %906 = dma.hbm_to_vmem [thread:$0]  (!%p1392_p11), %s1756_s3, 16, %s1396_s14, [#allocation9]  }
  0x51   : > { %s1053_s21 = scalar_lea.hbm %s1734_s4, 256 }
  0x52   : > { %p1054_p6 = scmp.ne.s32.totalorder %s1734_s4, %s1053_s21  ;;  %p1060_p5 = scmp.lt.u32.totalorder %s1053_s21, %s1734_s4 }
  0x54   : > { %p1056_p10 = pnand %p1054_p6, %p1408_p13 }
  0x56   : > { %p1057_p3 = pneg %p1056_p10 }
  0x58   : > { %p1062_p7 = pnand %p1060_p5, %p1057_p3 }
  0x5a   : > { %1065 = shalt.err (!%p1062_p7)
}
  0x5b   : > { %s1066_s17 = scalar_lea.vmem %s262_s16, 256  ;;  %p1074_p1 = scmp.lt.s32.totalorder %s262_s16, %s262_s16 }
  0x5c   : > { %p1067_p9 = scmp.ne.s32.totalorder %s262_s16, %s1066_s17  ;;  %p1075_p2 = scmp.lt.s32.totalorder %s1066_s17, %s1066_s17 }
  0x5e   : > { %p1069_p12 = pnand %p1067_p9, %p1408_p13  ;;  %p1076_p4 = por %p1075_p2, %p1074_p1 }
  0x60   : > { %p1070_p0 = pneg %p1069_p12 }
  0x62   : > { %p1077_p8 = pnand %p1076_p4, %p1070_p0 }
  0x64   : > { %1080 = shalt.err (!%p1077_p8)
}
  0x65   : > { %909 = dma.hbm_to_vmem [thread:$0]  (!%p1392_p11), %s1734_s4, 256, %s262_s16, [#allocation9], %s1742_s13, %s1742_s13, %s1744_s15  }
  0x66   : > { %s1290_s18 = smov [#allocation11]   ;;  %s1081_s23 = scalar_lea.hbm %s1735_s5, 16 }
  0x67   : > { %s275_s19 = sshll.u32 %s1290_s18, 4  ;;  %p1082_p4 = scmp.ne.s32.totalorder %s1735_s5, %s1081_s23  ;;  %s276_s19 = int_to_ptr.vmem [resolvable:$true] %s275_s19 }
  0x68   : > { %p1088_p10 = scmp.lt.u32.totalorder %s1081_s23, %s1735_s5 }
  0x69   : > { %p1084_p8 = pnand %p1082_p4, %p1408_p13 }
  0x6b   : > { %p1085_p6 = pneg %p1084_p8 }
  0x6d   : > { %p1090_p3 = pnand %p1088_p10, %p1085_p6 }
  0x6f   : > { %1093 = shalt.err (!%p1090_p3)
}
  0x70   : > { %s1094_s16 = scalar_lea.vmem %s276_s19, 16  ;;  %s1101_s14 = scalar_lea.vmem %s276_s19, 32 }
  0x71   : > { %p1095_p5 = scmp.ne.s32.totalorder %s276_s19, %s1094_s16  ;;  %p1102_p12 = scmp.lt.s32.totalorder %s276_s19, %s276_s19 }
  0x72   : > { %p1103_p0 = scmp.lt.s32.totalorder %s1101_s14, %s1094_s16 }
  0x73   : > { %p1097_p7 = pnand %p1095_p5, %p1408_p13 }
  0x74   : > { %p1104_p1 = por %p1103_p0, %p1102_p12 }
  0x75   : > { %p1098_p9 = pneg %p1097_p7 }
  0x77   : > { %p1105_p2 = pnand %p1104_p1, %p1098_p9 }
  0x79   : > { %1108 = shalt.err (!%p1105_p2)
}
  0x7a   : > { %912 = dma.hbm_to_vmem [thread:$0]  (!%p1392_p11), %s1735_s5, 16, %s276_s19, [#allocation12]  }
  0x7b   : > { %s1497_s22 = sadd.s32 1, %s1283_s27   ;;  %s39_s20 = sadd.s32 1, %s1279_s26 }
  0x7c   : > { %s36_s12 = ssub.s32 %s1283_s27, %s1497_s22  ;;  %p46_p13 = scmp.ne.s32.totalorder %s1279_s26, %s1275_s25 }
  0x7d   : > { %p37_p4 = scmp.eq.s32.totalorder %s36_s12, 0  ;;  %p47_p8 = scmp.eq.s32.totalorder %s1283_s27, 0 }
  0x7e   : > { %p1757_p6 = scmp.eq.s32.totalorder %s1362_s28, 1  ;;  %p931_p3 = scmp.lt.s32.totalorder %s1283_s27, 2 }
  0x7f   : > { %s1513_s23 = scalar_select %p37_p4, %s1279_s26, %s39_s20  }
  0x80   : > { %p1507_p10 = por %p1757_p6, %p46_p13  ;;  %p48_p5 = por %p47_p8, %p46_p13 }
  0x81   : > { %s286_s29 = sand.u32 1, %s1279_s26   ;;  %s842_s19 = sshll.u32 %s1283_s27, 7 }
  0x82   : > { %s806_s10 = sshll.u32 %s286_s29, 3  ;;  %s1759_s0 = sld [smem:[#allocation24_spill]] }
  0x83   : > { %s290_s14 = scalar_lea.vmem [#allocation2], %s806_s10  ;;  %p1524_p11 = pnand %p931_p3, %p48_p5 }
  0x84   : > { %s297_s8 = sshll.u32 %s290_s14, 4  ;;  %s1531_s11 = scalar_lea.hbm %s1731_s1, %s842_s19  ;;  %s1522_s8 = int_to_ptr.vmem [resolvable:$true] %s297_s8 }
  0x85   : > { %s311_s17 = scalar_lea.vmem [#allocation5], %s806_s10  ;;  %s1535_s15 = scalar_lea.sflag [#allocation3], %s286_s29 }
  0x86   : > { %s1533_s13 = sshll.u32 %s311_s17, 4  ;;  %p1111_p9 = pneg %p1524_p11  ;;  %s1567_s13 = int_to_ptr.vmem [resolvable:$true] %s1533_s13 }
  0x88   : > { %s1520_s16 = scalar_lea.hbm %s1759_s0, %s842_s19  ;;  %s1114_s20 = scalar_lea.hbm %s1759_s0, 256 }
  0x89   : > { %s1109_s14 = scalar_lea.hbm %s1520_s16, 128  ;;  %p1115_p1 = scmp.lt.u32.totalorder %s1520_s16, %s1759_s0 }
  0x8a   : > { %p1110_p7 = scmp.ne.s32.totalorder %s1520_s16, %s1109_s14  ;;  %p1116_p2 = scmp.lt.u32.totalorder %s1114_s20, %s1109_s14 }
  0x8b   : > { %p1118_p4 = scmp.lt.u32.totalorder %s1109_s14, %s1520_s16 }
  0x8c   : > { %p1112_p12 = pnand %p1111_p9, %p1110_p7  ;;  %p1117_p13 = por %p1116_p2, %p1115_p1 }
  0x8e   : > { %p1113_p0 = pneg %p1112_p12  ;;  %p1119_p8 = por %p1118_p4, %p1117_p13 }
  0x90   : > { %p1120_p6 = pnand %p1119_p8, %p1113_p0 }
  0x92   : > { %1123 = shalt.err (!%p1120_p6)
}
  0x93   : > { %s1124_s29 = scalar_lea.vmem %s1522_s8, 128  ;;  %s1291_s2 = smov [#allocation2]  }
  0x94   : > { %p1125_p3 = scmp.ne.s32.totalorder %s1522_s8, %s1124_s29  ;;  %s1129_s3 = sshll.u32 %s1291_s2, 4  ;;  %s1130_s3 = int_to_ptr.vmem [resolvable:$false] %s1129_s3 }
  0x95   : > { %s1131_s10 = scalar_lea.vmem %s1130_s3, 256  ;;  %p1132_p12 = scmp.lt.s32.totalorder %s1522_s8, %s1130_s3 }
  0x96   : > { %p1127_p5 = pnand %p1125_p3, %p1111_p9  ;;  %p1133_p1 = scmp.lt.s32.totalorder %s1131_s10, %s1124_s29 }
  0x98   : > { %p1128_p7 = pneg %p1127_p5  ;;  %p1134_p2 = por %p1133_p1, %p1132_p12 }
  0x9a   : > { %p1135_p13 = pnand %p1134_p2, %p1128_p7 }
  0x9c   : > { %1138 = shalt.err (!%p1135_p13)
}
  0x9d   : > { %s1761_s17 = smov 4   ;;  %s1762_s14 = smov 64  }
  0x9e   : > { %916 = dma.hbm_to_vmem [thread:$0]  (!%p1524_p11), %s1520_s16, 128, %s1522_s8, %s1535_s15, %s1762_s14, %s1762_s14, %s1761_s17  }
  0x9f   : > { %s307_s20 = sand.u32 1, %s1283_s27   ;;  %s1139_s19 = scalar_lea.hbm %s1531_s11, 128 }
  0xa0   : > { %s1570_s12 = scalar_lea.sflag [#allocation6], %s307_s20  ;;  %p1140_p0 = scmp.ne.s32.totalorder %s1531_s11, %s1139_s19 }
  0xa1   : > { %s1144_s3 = scalar_lea.hbm %s1731_s1, 256  ;;  %p1145_p6 = scmp.lt.u32.totalorder %s1531_s11, %s1731_s1 }
  0xa2   : > { %p1142_p4 = pnand %p1140_p0, %p1111_p9  ;;  %p1146_p3 = scmp.lt.u32.totalorder %s1144_s3, %s1139_s19 }
  0xa3   : > { %p1148_p7 = scmp.lt.u32.totalorder %s1139_s19, %s1531_s11 }
  0xa4   : > { %p1143_p8 = pneg %p1142_p4  ;;  %p1147_p5 = por %p1146_p3, %p1145_p6 }
  0xa6   : > { %p1149_p12 = por %p1148_p7, %p1147_p5 }
  0xa8   : > { %p1150_p1 = pnand %p1149_p12, %p1143_p8 }
  0xaa   : > { %1153 = shalt.err (!%p1150_p1)
}
  0xab   : > { %s1154_s15 = scalar_lea.vmem %s1567_s13, 128  ;;  %s1292_s16 = smov [#allocation5]  }
  0xac   : > { %p1155_p2 = scmp.ne.s32.totalorder %s1567_s13, %s1154_s15  ;;  %s1159_s8 = sshll.u32 %s1292_s16, 4  ;;  %s1160_s8 = int_to_ptr.vmem [resolvable:$false] %s1159_s8 }
  0xad   : > { %s1161_s0 = scalar_lea.vmem %s1160_s8, 256  ;;  %p1162_p4 = scmp.lt.s32.totalorder %s1567_s13, %s1160_s8 }
  0xae   : > { %p1157_p13 = pnand %p1155_p2, %p1111_p9  ;;  %p1163_p6 = scmp.lt.s32.totalorder %s1161_s0, %s1154_s15 }
  0xb0   : > { %p1158_p0 = pneg %p1157_p13  ;;  %p1164_p3 = por %p1163_p6, %p1162_p4 }
  0xb2   : > { %p1165_p5 = pnand %p1164_p3, %p1158_p0 }
  0xb4   : > { %1168 = shalt.err (!%p1165_p5)
}
  0xb5   : > { %919 = dma.hbm_to_vmem [thread:$0]  (!%p1524_p11), %s1531_s11, 128, %s1567_s13, %s1570_s12, %s1762_s14, %s1762_s14, %s1761_s17  }
  0xb6   : > { %p1763_p9 = scmp.ne.s32.totalorder %s1752_s9, 0 }
  0xb7   : > { %s1602_s20 = sand.u32 (!%p1763_p9), 1, %s1275_s25   ;;  %p1764_p8 = scmp.ne.s32.totalorder (!%p1763_p9), %s1749_s30, 0 }
  0xb8   : > { %330 = sbr.rel (%p1763_p9) target bundleno = 583 (0x247), region = 44  ;;  %s1605_s19 = sshll.u32 (!%p1763_p9), %s1602_s20, 3 }
  0xb9   : > { %s333_s18 = scalar_lea.sflag (!%p1763_p9), [#allocation3], %s1602_s20  ;;  %s336_s29 = scalar_lea.vmem (!%p1763_p9), [#allocation2], %s1605_s19 }
  0xbf   : > { %1242 = dma.done.wait (%p1764_p8), %s333_s18, 128  }
  0xc0   : > { %1244 = vsyncadd (%p1764_p8), %s333_s18, 4294967168  ;;  %s341_s9 = sand.u32 1, %s1362_s28   ;;  %s345_s11 = scalar_lea.vmem [#allocation5], %s1605_s19 }
  0xc1   : > { %s342_s13 = scalar_lea.sflag [#allocation6], %s341_s9 }
  0xc2   : > { %1246 = dma.done.wait (%p1764_p8), %s342_s13, 128  }
  0xc3   : > { %1248 = vsyncadd (%p1764_p8), %s342_s13, 4294967168  ;;  %p1765_p11 = scmp.eq.s32.totalorder %s1362_s28, 0 }
  0xc5   : > { %1250 = dma.done.wait (%p1765_p11), [#allocation6], 256   ;;  %p1766_p7 = pmov %p1765_p11 }
  0xc7   : > { %1252 = vsyncadd (%p1766_p7), [#allocation6], 4294967040  ;;  %p1767_p12 = pmov %p1766_p7 }
  0xc8   : > { %p1768_p1 = pmov %p1766_p7 }
  0xc9   : > { %1254 = dma.done.wait (%p1767_p12), [#allocation9], 272  }
  0xca   : > { %1256 = vsyncadd (%p1768_p1), [#allocation9], 4294967024  ;;  %p1769_p2 = pmov %p1768_p1 }
  0xcb   : > { %p1770_p13 = pmov %p1768_p1 }
  0xcc   : > { %1258 = dma.done.wait (%p1769_p2), [#allocation12], 16  }
  0xcd   : > { %1260 = vsyncadd (%p1770_p13), [#allocation12], 4294967280  ;;  %v1293_v0 = vmov 0.0   ;;  %vm1294_vm0 = vmmov 0   ;;  %v991_v1 = vld [vmem:[#allocation7] sm:$0xff]   ;;  %v992_v2 = vld [vmem:[#allocation10] sm:$0xff]  }
  0xce   : > { %860 = vmatprep.subr.bf16.mxu0 %v1293_v0  ;;  %868 = vmatprep.subr.bf16.mxu1 %v1293_v0  ;;  %v993_v3 = vld [vmem:[#allocation7 + $0x8] sm:$0xff]   ;;  %v994_v4 = vld [vmem:[#allocation10 + $0x8] sm:$0xff]   ;;  %vm441_vm1 = vcmask 261120   ;;  %v825_v14 = vld [vmem:[#allocation11] ss:$0 sm:$0xff]  ;;  %vm566_vm2 = vcmask 257024  }
  0xcf   : > { %864 = vmatprep.mubr.msk.bf16.mxu0 %vm1294_vm0, %v1293_v0  ;;  %872 = vmatprep.mubr.msk.bf16.mxu1 %vm1294_vm0, %v1293_v0  ;;  %v407_v5 = vld [vmem:[%s336_s29] sm:$0xff]   ;;  %v851_v6 = vld [vmem:[%s345_s11] sm:$0xff]   ;;  %s848_s30 = sshll.u32 %s1362_s28, 7  ;;  %s394_s17 = scalar_lea.vmem [#allocation13], %s1605_s19 }
  0xd0   : > { %861 = vmatpush3.bf16.msra.mxu0 %v991_v1  ;;  %869 = vmatpush3.bf16.msra.mxu1 %v992_v2  ;;  %v409_v7 = vunpack.c.l.bf16 %v407_v5  ;;  %v410_v8 = vunpack.c.h.bf16 %v407_v5  ;;  %v852_v9 = vunpack.c.l.bf16 %v851_v6  ;;  %v853_v10 = vunpack.c.h.bf16 %v851_v6  ;;  %v821_v15 = vld [vmem:[#allocation8] ss:$0 sm:$0xff]  ;;  %s617_s14 = sshll.u32 %s394_s17, 4  ;;  %s1640_s3 = scalar_lea.hbm %s1736_s6, %s848_s30  ;;  %s1642_s14 = int_to_ptr.vmem [resolvable:$true] %s617_s14 }
  0xd1   : > { %862 = vmatprep.subr.bf16.mxu0 %v1293_v0  ;;  %870 = vmatprep.subr.bf16.mxu1 %v1293_v0  ;;  %s1295_s10 = smov 96   ;;  %s599_s15 = scalar_lea.sflag [#allocation4], %s1602_s20 }
  0xd2   : > { %v415_v11 = vadd.f32 %v852_v9, %v409_v7  ;;  %v416_v12 = vadd.f32 %v853_v10, %v410_v8  ;;  %s1169_s16 = scalar_lea.vmem %s1642_s14, 128  ;;  %s1296_s8 = smov [#allocation13]  }
  0xd3   : > { %p1170_p0 = scmp.ne.s32.totalorder %s1642_s14, %s1169_s16  ;;  %s1173_s0 = sshll.u32 %s1296_s8, 4  ;;  %s1174_s0 = int_to_ptr.vmem [resolvable:$false] %s1173_s0 }
  0xd4   : > { %863 = vmatpush3.bf16.msra.mxu0 %v993_v3  ;;  %871 = vmatpush3.bf16.msra.mxu1 %v994_v4  ;;  %v417_v13 = vpack.c.bf16 %v416_v12, %v415_v11  ;;  %s1175_s18 = scalar_lea.vmem %s1174_s0, 256  ;;  %p1176_p3 = scmp.lt.s32.totalorder %s1642_s14, %s1174_s0 }
  0xd5   : > { %p1171_p4 = pnand %p1170_p0, %p1507_p10  ;;  %p1177_p5 = scmp.lt.s32.totalorder %s1175_s18, %s1169_s16 }
  0xd7   : > { %873 = vmatmul.mubr.msk.bf16.vlgmr.msra.gmra.mrb[0].mxu1 %vm441_vm1, %v407_v5  ;;  %865 = vmatmul.mubr.msk.bf16.vlgmr.msra.gmra.mrb[0].mxu0 %vm441_vm1, %v417_v13  ;;  %p1172_p6 = pneg %p1171_p4  ;;  %p1178_p9 = por %p1177_p5, %p1176_p3 }
  0xd9   : > { %p1179_p8 = pnand %p1178_p9, %p1172_p6 }
 0x1aa   : > { %v551_v16 = vpop.f32.mrb[0].mxu1  ;;  %v479_v17 = vpop.f32.mrb[0].mxu0 }
 0x1ab   : > { %v552_v18 = vadd.f32 %v825_v14, %v551_v16  ;;  %v874_v19 = vpop.f32.mrb[1].mxu1  ;;  %v480_v20 = vadd.f32 %v821_v15, %v479_v17  ;;  %v866_v21 = vpop.f32.mrb[1].mxu0 }
 0x1ac   : > { %v554_v22 = vpop.f32.mrb[2].mxu1  ;;  %v482_v23 = vpop.f32.mrb[2].mxu0 }
 0x1ad   : > { %v555_v24 = vadd.f32 %v825_v14, %v554_v22  ;;  %v875_v25 = vpop.f32.mrb[3].mxu1  ;;  %v844_v26 = vpack.c.bf16 %v480_v20, %v480_v20  ;;  %v483_v27 = vadd.f32 %v821_v15, %v482_v23  ;;  %v867_v28 = vpop.f32.mrb[3].mxu0 }
 0x1af   : > { %v986_v29 = vpack.i.bf16 %v555_v24, %v552_v18  ;;  %567 = vst.msk [vmem:[%s394_s17] sm:$0xf] %vm566_vm2, %v844_v26  ;;  %v845_v30 = vpack.c.bf16 %v483_v27, %v483_v27  ;;  %v981_v31 = vpack.i.bf16 %v483_v27, %v480_v20 }
 0x1b1   : > { %568 = vst.msk [vmem:[%s394_s17 + $0x4] sm:$0xf] %vm566_vm2, %v845_v30  ;;  %982 = vrot.lane.b32.xlu0 %v981_v31, %s1295_s10 }
 0x1b2   : > { %1182 = shalt.err (!%p1179_p8)
}
 0x1b3   : > { %s1183_s29 = scalar_lea.hbm %s1640_s3, 128  ;;  %s1187_s11 = scalar_lea.hbm %s1736_s6, 256 }
 0x1b4   : > { %p1184_p11 = scmp.ne.s32.totalorder %s1640_s3, %s1183_s29  ;;  %p1188_p1 = scmp.lt.u32.totalorder %s1640_s3, %s1736_s6 }
 0x1b5   : > { %p1189_p2 = scmp.lt.u32.totalorder %s1187_s11, %s1183_s29  ;;  %p1191_p0 = scmp.lt.u32.totalorder %s1183_s29, %s1640_s3 }
 0x1b6   : > { %p1185_p7 = pnand %p1184_p11, %p1507_p10 }
 0x1b7   : > { %p1190_p13 = por %p1189_p2, %p1188_p1 }
 0x1b8   : > { %p1186_p12 = pneg %p1185_p7 }
 0x1b9   : > { %p1192_p4 = por %p1191_p0, %p1190_p13 }
 0x1bb   : > { %p1193_p6 = pnand %p1192_p4, %p1186_p12 }
 0x1bd   : > { %1196 = shalt.err (!%p1193_p6)
}
 0x1be   : > { %s1297_s2 = smov 64   ;;  %s1298_s10 = smov 4   ;;  %vm595_vm3 = vcmask 519168  }
 0x1bf   : > { %896 = dma.vmem_to_hbm [thread:$0]  (%p1507_p10), %s1642_s14, 128, %s1640_s3, %s599_s15, %s1297_s2, %s1297_s2, %s1298_s10  }
 0x1c0   : > { %s1299_s16 = smov 32   ;;  %s401_s8 = scalar_lea.vmem [#allocation14], %s1605_s19 }
 0x1c1   : > { %987 = vrot.lane.b32.xlu0 %v986_v29, %s1299_s16  ;;  %s633_s0 = sshll.u32 %s401_s8, 4  ;;  %s1681_s15 = scalar_lea.hbm %s1737_s7, %s848_s30  ;;  %s1683_s0 = int_to_ptr.vmem [resolvable:$true] %s633_s0 }
 0x1c2   : > { %s604_s19 = scalar_lea.sflag [#allocation15], %s1602_s20  ;;  %s1197_s18 = scalar_lea.vmem %s1683_s0, 128 }
 0x1c3   : > { %p1198_p3 = scmp.ne.s32.totalorder %s1683_s0, %s1197_s18  ;;  %s1300_s29 = smov [#allocation14]  }
 0x1c4   : > { %s1201_s28 = sshll.u32 %s1300_s29, 4  ;;  %s1202_s28 = int_to_ptr.vmem [resolvable:$false] %s1201_s28 }
 0x1c5   : > { %p1199_p5 = pnand %p1198_p3, %p1507_p10  ;;  %s1203_s9 = scalar_lea.vmem %s1202_s28, 256 }
 0x1c6   : > { %p1204_p8 = scmp.lt.s32.totalorder %s1683_s0, %s1202_s28  ;;  %p1205_p11 = scmp.lt.s32.totalorder %s1203_s9, %s1197_s18 }
 0x1c7   : > { %p1200_p9 = pneg %p1199_p5 }
 0x1c8   : > { %p1206_p7 = por %p1205_p11, %p1204_p8 }
 0x1ca   : > { %p1207_p12 = pnand %p1206_p7, %p1200_p9 }
 0x223   : > { %v983_v32 = vpop.permute.xlu0 %982 }
 0x224   : > { %v985_v34 = vunpack.i.h.bf16 %v983_v32  ;;  %v984_v35 = vunpack.i.l.bf16 %v983_v32 }
 0x233   : > { %v988_v33 = vpop.permute.xlu0 %987 }
 0x234   : > { %v990_v36 = vunpack.i.h.bf16 %v988_v33  ;;  %v989_v37 = vunpack.i.l.bf16 %v988_v33 }
 0x236   : > { %v585_v38 = vsel %vm441_vm1, %v984_v35, %v989_v37  ;;  %v586_v39 = vsel %vm441_vm1, %v985_v34, %v990_v36 }
 0x237   : > { %v846_v40 = vpack.c.bf16 %v585_v38, %v585_v38  ;;  %v847_v41 = vpack.c.bf16 %v586_v39, %v586_v39 }
 0x239   : > { %596 = vst.msk [vmem:[%s401_s8] sm:$0xf] %vm595_vm3, %v846_v40  ;;  %597 = vst.msk [vmem:[%s401_s8 + $0x4] sm:$0xf] %vm595_vm3, %v847_v41 }
 0x23a   : > { %1210 = shalt.err (!%p1207_p12)
}
 0x23b   : > { %s1211_s30 = scalar_lea.hbm %s1681_s15, 128  ;;  %s1215_s17 = scalar_lea.hbm %s1737_s7, 256 }
 0x23c   : > { %p1212_p1 = scmp.ne.s32.totalorder %s1681_s15, %s1211_s30  ;;  %p1216_p0 = scmp.lt.u32.totalorder %s1681_s15, %s1737_s7 }
 0x23d   : > { %p1217_p4 = scmp.lt.u32.totalorder %s1215_s17, %s1211_s30  ;;  %p1219_p3 = scmp.lt.u32.totalorder %s1211_s30, %s1681_s15 }
 0x23e   : > { %p1213_p2 = pnand %p1212_p1, %p1507_p10 }
 0x23f   : > { %p1218_p6 = por %p1217_p4, %p1216_p0 }
 0x240   : > { %p1214_p13 = pneg %p1213_p2 }
 0x241   : > { %p1220_p5 = por %p1219_p3, %p1218_p6 }
 0x243   : > { %p1221_p9 = pnand %p1220_p5, %p1214_p13 }
 0x245   : > { %1224 = shalt.err (!%p1221_p9)
}
 0x246   : > { %897 = dma.vmem_to_hbm [thread:$0]  (%p1507_p10), %s1683_s0, 128, %s1681_s15, %s604_s19, %s1297_s2, %s1297_s2, %s1298_s10  }
 0x247 PF: > { %s1771_s8 = sld [smem:[#allocation23_spill]]  ;;  %s648_s14 = sand.u32 1, %s1271_s24  }
 0x248   : > { %p1773_p11 = scmp.ge.s32.totalorder %s1283_s27, 2  ;;  %s649_s3 = scalar_lea.sflag [#allocation4], %s648_s14 }
 0x24d   : > { %p1772_p8 = scmp.ne.s32.totalorder %s1771_s8, 0 }
 0x24f   : > { %p921_p7 = pnand %p1773_p11, %p1772_p8 }
 0x251   : > { %1262 = dma.done.wait (!%p921_p7), %s649_s3, 128  }
 0x252   : > { %1264 = vsyncadd (!%p921_p7), %s649_s3, 4294967168  ;;  %s658_s21 = scalar_lea.sflag [#allocation15], %s648_s14 }
 0x253   : > { %1266 = dma.done.wait (!%p921_p7), %s658_s21, 128  }
 0x254   : > { %1268 = vsyncadd (!%p921_p7), %s658_s21, 4294967168  ;;  %p29_p10 = scmp.ge.s32.totalorder %s1497_s22, 4   ;;  %s1774_s24 = smov %s1275_s25 }
 0x255   : > { %s1775_s25 = smov %s1279_s26  ;;  %s1776_s26 = smov %s1513_s23 }
 0x256   : > { %s1777_s27 = smov %s1497_s22  ;;  %31 = sbr.rel (!%p29_p10) target bundleno = 15 (0xf), region = 135 }
 0x25d   :  { %663 = vsyncpa [#allocation3], 1 }
 0x25e   :  { %665 = vsyncpa [#allocation3 + $0x1], 1 }
 0x25f   :  { %666 = vsyncpa [#allocation6], 1 }
 0x260   :  { %668 = vsyncpa [#allocation6 + $0x1], 1 }
 0x261   :  { %669 = vsyncpa [#allocation9], 1 }
 0x262   :  { %670 = vsyncpa [#allocation12], 1 }
 0x263   :  { %671 = vsyncpa [#allocation4], 1 }
 0x264   :  { %673 = vsyncpa [#allocation4 + $0x1], 1 }
 0x265   :  { %674 = vsyncpa [#allocation15], 1 }
 0x266   :  { %676 = vsyncpa [#allocation15 + $0x1], 1 }

// kernel: transformer_forward.28
= control target key start
LH: loop header
LB: loop body
LE: loop exit
PB: predicated region body
PF: predicated region fallthrough
CT: control target
= control target key end

     0   :  { %s1516_s0 = inlined_call_operand.hbm [shape: bf16[32,32], index: 0, kind: input, shape index: {}]   ;;  %s1517_s1 = inlined_call_operand.hbm [shape: bf16[32,32], index: 1, kind: input, shape index: {}]   ;;  %s1518_s2 = inlined_call_operand.hbm [shape: bf16[32,32], index: 2, kind: input, shape index: {}]   ;;  %s1519_s3 = inlined_call_operand.hbm [shape: f32[1,32], index: 3, kind: input, shape index: {}]   ;;  %s1520_s4 = inlined_call_operand.hbm [shape: bf16[32,32], index: 4, kind: input, shape index: {}]   ;;  %s1521_s5 = inlined_call_operand.hbm [shape: f32[1,32], index: 5, kind: input, shape index: {}]   ;;  %s1522_s6 = inlined_call_operand.hbm [shape: bf16[32,64], index: 6, kind: output, shape index: {}]  }
   0x1   :  { %1530 = sst [smem:[#allocation20_spill]] %s1516_s0 }
   0x2   :  { %1531 = sst [smem:[#allocation21_spill]] %s1518_s2 }
   0x3   :  { %1532 = sst [smem:[#allocation22_spill]] %s1519_s3 }
   0x4   :  { %11 = vsyncpa [#allocation3], 0 }
   0x5   :  { %13 = vsyncpa [#allocation3 + $0x1], 0 }
   0x6   :  { %14 = vsyncpa [#allocation6], 0 }
   0x7   :  { %16 = vsyncpa [#allocation6 + $0x1], 0 }
   0x8   :  { %17 = vsyncpa [#allocation9], 0 }
   0x9   :  { %18 = vsyncpa [#allocation12], 0 }
   0xa   :  { %19 = vsyncpa [#allocation4], 0 }
   0xb   :  { %21 = vsyncpa [#allocation4 + $0x1], 0  ;;  %s1171_s21 = smov 0   ;;  %s1173_s22 = smov 0  }
   0xc   :  { %s1175_s23 = smov 0   ;;  %s1177_s24 = smov 0  }
   0xd LB: > { %s1192_s25 = sadd.s32 4294967295, %s1120_s24   ;;  %s688_s26 = sadd.s32 4294967294, %s1120_s24   ;;  %s1120_s24 = sphi %s1177_s24, %s1559_s24   ;;  %s1116_s23 = sphi %s1175_s23, %s1558_s23   ;;  %s1112_s22 = sphi %s1173_s22, %s1557_s22   ;;  %s1108_s21 = sphi %s1171_s21, %s1556_s21  }
   0xe   : > { %p47_p0 = scmp.ne.s32.totalorder %s1112_s22, %s1108_s21  ;;  %p1523_p1 = scmp.eq.s32.totalorder %s1192_s25, 0 }
   0xf   : > { %p187_p3 = scmp.eq.s32.totalorder %s688_s26, 1  ;;  %p689_p5 = scmp.ge.s32.totalorder %s1120_s24, 1 }
  0x10   : > { %p1201_p4 = por %p1523_p1, %p47_p0  ;;  %p194_p7 = scmp.lt.s32.totalorder %s1120_s24, 3 }
  0x11   : > { %p1206_p6 = por %p187_p3, %p47_p0  ;;  %s1122_s30 = smov [#allocation7]  }
  0x12   : > { %s1533_s27 = scalar_select %p1201_p4, 1, 0 }
  0x13   : > { %s1534_s28 = scalar_select %p1206_p6, 1, 0 }
  0x14   : > { %p1211_p8 = pnand %p689_p5, %p194_p7  ;;  %s206_s7 = sshll.u32 %s1122_s30, 4  ;;  %s1215_s7 = int_to_ptr.vmem [resolvable:$true] %s206_s7 }
  0x15   : > { %s1123_s9 = smov [#allocation8]   ;;  %s1124_s11 = smov [#allocation10]  }
  0x16   : > { %s1535_s29 = scalar_select %p1211_p8, 1, 0 }
  0x17   : > { %p778_p9 = pneg %p1211_p8  ;;  %s220_s10 = sshll.u32 %s1123_s9, 4  ;;  %s1226_s10 = int_to_ptr.vmem [resolvable:$true] %s220_s10 }
  0x18   : > { %s1228_s12 = sshll.u32 %s1124_s11, 4  ;;  %s1537_s2 = sld [smem:[#allocation21_spill]]  ;;  %s231_s12 = int_to_ptr.vmem [resolvable:$true] %s1228_s12 }
  0x19   : > { %p1222_p11 = pnand %p778_p9, %p1523_p1 }
  0x1b   : > { %p1238_p13 = pneg %p1222_p11 }
  0x1e   : > { %s866_s15 = scalar_lea.hbm %s1537_s2, 256 }
  0x1f   : > { %p867_p12 = scmp.ne.s32.totalorder %s1537_s2, %s866_s15  ;;  %p873_p5 = scmp.lt.u32.totalorder %s866_s15, %s1537_s2 }
  0x21   : > { %p869_p0 = pnand %p1238_p13, %p867_p12 }
  0x23   : > { %p870_p3 = pneg %p869_p0 }
  0x25   : > { %p875_p7 = pnand %p873_p5, %p870_p3 }
  0x27   : > { %878 = shalt.err (!%p875_p7)
}
  0x28   : > { %s879_s26 = scalar_lea.vmem %s1215_s7, 256  ;;  %p887_p2 = scmp.lt.s32.totalorder %s1215_s7, %s1215_s7 }
  0x29   : > { %p880_p9 = scmp.ne.s32.totalorder %s1215_s7, %s879_s26  ;;  %p888_p6 = scmp.lt.s32.totalorder %s879_s26, %s879_s26 }
  0x2b   : > { %p882_p10 = pnand %p880_p9, %p1238_p13  ;;  %p889_p12 = por %p888_p6, %p887_p2 }
  0x2d   : > { %p883_p1 = pneg %p882_p10 }
  0x2f   : > { %p890_p0 = pnand %p889_p12, %p883_p1 }
  0x31   : > { %893 = shalt.err (!%p890_p0)
}
  0x32   : > { %s1526_s30 = smov 64   ;;  %s1528_s9 = smov 4  }
  0x33   : > { %781 = dma.hbm_to_vmem [thread:$0]  (!%p1222_p11), %s1537_s2, 256, %s1215_s7, [#allocation6], %s1526_s30, %s1526_s30, %s1528_s9  }
  0x34   : > { %s1539_s3 = sld [smem:[#allocation22_spill]] }
  0x3a   : > { %s894_s16 = scalar_lea.hbm %s1539_s3, 16 }
  0x3b   : > { %p895_p1 = scmp.ne.s32.totalorder %s1539_s3, %s894_s16  ;;  %p901_p10 = scmp.lt.u32.totalorder %s894_s16, %s1539_s3 }
  0x3d   : > { %p897_p2 = pnand %p895_p1, %p1238_p13 }
  0x3f   : > { %p898_p6 = pneg %p897_p2 }
  0x41   : > { %p903_p3 = pnand %p901_p10, %p898_p6 }
  0x43   : > { %906 = shalt.err (!%p903_p3)
}
  0x44   : > { %s907_s7 = scalar_lea.vmem %s1226_s10, 16  ;;  %s914_s11 = scalar_lea.vmem %s1226_s10, 32 }
  0x45   : > { %p908_p5 = scmp.ne.s32.totalorder %s1226_s10, %s907_s7  ;;  %p915_p12 = scmp.lt.s32.totalorder %s1226_s10, %s1226_s10 }
  0x46   : > { %p916_p0 = scmp.lt.s32.totalorder %s914_s11, %s907_s7 }
  0x47   : > { %p910_p7 = pnand %p908_p5, %p1238_p13 }
  0x48   : > { %p917_p1 = por %p916_p0, %p915_p12 }
  0x49   : > { %p911_p9 = pneg %p910_p7 }
  0x4b   : > { %p918_p2 = pnand %p917_p1, %p911_p9 }
  0x4d   : > { %921 = shalt.err (!%p918_p2)
}
  0x4e   : > { %784 = dma.hbm_to_vmem [thread:$0]  (!%p1222_p11), %s1539_s3, 16, %s1226_s10, [#allocation9]  }
  0x4f   : > { %s922_s17 = scalar_lea.hbm %s1520_s4, 256 }
  0x50   : > { %p923_p6 = scmp.ne.s32.totalorder %s1520_s4, %s922_s17  ;;  %p929_p5 = scmp.lt.u32.totalorder %s922_s17, %s1520_s4 }
  0x52   : > { %p925_p10 = pnand %p923_p6, %p1238_p13 }
  0x54   : > { %p926_p3 = pneg %p925_p10 }
  0x56   : > { %p931_p7 = pnand %p929_p5, %p926_p3 }
  0x58   : > { %934 = shalt.err (!%p931_p7)
}
  0x59   : > { %s935_s11 = scalar_lea.vmem %s231_s12, 256  ;;  %p943_p1 = scmp.lt.s32.totalorder %s231_s12, %s231_s12 }
  0x5a   : > { %p936_p9 = scmp.ne.s32.totalorder %s231_s12, %s935_s11  ;;  %p944_p2 = scmp.lt.s32.totalorder %s935_s11, %s935_s11 }
  0x5c   : > { %p938_p12 = pnand %p936_p9, %p1238_p13  ;;  %p945_p4 = por %p944_p2, %p943_p1 }
  0x5e   : > { %p939_p0 = pneg %p938_p12 }
  0x60   : > { %p946_p8 = pnand %p945_p4, %p939_p0 }
  0x62   : > { %949 = shalt.err (!%p946_p8)
}
  0x63   : > { %787 = dma.hbm_to_vmem [thread:$0]  (!%p1222_p11), %s1520_s4, 256, %s231_s12, [#allocation9], %s1526_s30, %s1526_s30, %s1528_s9  }
  0x64   : > { %s1127_s14 = smov [#allocation11]   ;;  %s950_s19 = scalar_lea.hbm %s1521_s5, 16 }
  0x65   : > { %s244_s15 = sshll.u32 %s1127_s14, 4  ;;  %p951_p4 = scmp.ne.s32.totalorder %s1521_s5, %s950_s19  ;;  %s245_s15 = int_to_ptr.vmem [resolvable:$true] %s244_s15 }
  0x66   : > { %p957_p10 = scmp.lt.u32.totalorder %s950_s19, %s1521_s5 }
  0x67   : > { %p953_p8 = pnand %p951_p4, %p1238_p13 }
  0x69   : > { %p954_p6 = pneg %p953_p8 }
  0x6b   : > { %p959_p3 = pnand %p957_p10, %p954_p6 }
  0x6d   : > { %962 = shalt.err (!%p959_p3)
}
  0x6e   : > { %s963_s12 = scalar_lea.vmem %s245_s15, 16  ;;  %s970_s10 = scalar_lea.vmem %s245_s15, 32 }
  0x6f   : > { %p964_p5 = scmp.ne.s32.totalorder %s245_s15, %s963_s12  ;;  %p971_p12 = scmp.lt.s32.totalorder %s245_s15, %s245_s15 }
  0x70   : > { %p972_p0 = scmp.lt.s32.totalorder %s970_s10, %s963_s12 }
  0x71   : > { %p966_p7 = pnand %p964_p5, %p1238_p13 }
  0x72   : > { %p973_p1 = por %p972_p0, %p971_p12 }
  0x73   : > { %p967_p9 = pneg %p966_p7 }
  0x75   : > { %p974_p2 = pnand %p973_p1, %p967_p9 }
  0x77   : > { %977 = shalt.err (!%p974_p2)
}
  0x78   : > { %790 = dma.hbm_to_vmem [thread:$0]  (!%p1222_p11), %s1521_s5, 16, %s245_s15, [#allocation12]  }
  0x79   : > { %s1327_s18 = sadd.s32 1, %s1120_s24   ;;  %s34_s16 = sadd.s32 1, %s1116_s23 }
  0x7a   : > { %s31_s8 = ssub.s32 %s1120_s24, %s1327_s18  ;;  %p41_p13 = scmp.ne.s32.totalorder %s1116_s23, %s1112_s22 }
  0x7b   : > { %p32_p4 = scmp.eq.s32.totalorder %s31_s8, 0  ;;  %p42_p8 = scmp.eq.s32.totalorder %s1120_s24, 0 }
  0x7c   : > { %p1540_p6 = scmp.eq.s32.totalorder %s1192_s25, 1  ;;  %p806_p3 = scmp.lt.s32.totalorder %s1120_s24, 2 }
  0x7d   : > { %s1343_s19 = scalar_select %p32_p4, %s1116_s23, %s34_s16  }
  0x7e   : > { %p1337_p10 = por %p1540_p6, %p41_p13  ;;  %p43_p5 = por %p42_p8, %p41_p13 }
  0x7f   : > { %s255_s20 = sand.u32 1, %s1116_s23   ;;  %s725_s15 = sshll.u32 %s1120_s24, 7 }
  0x80   : > { %s695_s26 = sshll.u32 %s255_s20, 3  ;;  %s1542_s0 = sld [smem:[#allocation20_spill]] }
  0x81   : > { %s259_s10 = scalar_lea.vmem [#allocation2], %s695_s26  ;;  %p1354_p11 = pnand %p806_p3, %p43_p5 }
  0x82   : > { %s266_s13 = sshll.u32 %s259_s10, 4  ;;  %s1361_s7 = scalar_lea.hbm %s1517_s1, %s725_s15  ;;  %s1352_s13 = int_to_ptr.vmem [resolvable:$true] %s266_s13 }
  0x83   : > { %s280_s11 = scalar_lea.vmem [#allocation5], %s695_s26  ;;  %s1365_s9 = scalar_lea.sflag [#allocation3], %s255_s20 }
  0x84   : > { %s1363_s30 = sshll.u32 %s280_s11, 4  ;;  %p980_p9 = pneg %p1354_p11  ;;  %s1397_s30 = int_to_ptr.vmem [resolvable:$true] %s1363_s30 }
  0x86   : > { %s1350_s12 = scalar_lea.hbm %s1542_s0, %s725_s15  ;;  %s983_s16 = scalar_lea.hbm %s1542_s0, 256 }
  0x87   : > { %s978_s10 = scalar_lea.hbm %s1350_s12, 128  ;;  %p984_p1 = scmp.lt.u32.totalorder %s1350_s12, %s1542_s0 }
  0x88   : > { %p979_p7 = scmp.ne.s32.totalorder %s1350_s12, %s978_s10  ;;  %p985_p2 = scmp.lt.u32.totalorder %s983_s16, %s978_s10 }
  0x89   : > { %p987_p4 = scmp.lt.u32.totalorder %s978_s10, %s1350_s12 }
  0x8a   : > { %p981_p12 = pnand %p980_p9, %p979_p7  ;;  %p986_p13 = por %p985_p2, %p984_p1 }
  0x8c   : > { %p982_p0 = pneg %p981_p12  ;;  %p988_p8 = por %p987_p4, %p986_p13 }
  0x8e   : > { %p989_p6 = pnand %p988_p8, %p982_p0 }
  0x90   : > { %992 = shalt.err (!%p989_p6)
}
  0x91   : > { %s993_s20 = scalar_lea.vmem %s1352_s13, 128  ;;  %s1128_s2 = smov [#allocation2]  }
  0x92   : > { %p994_p3 = scmp.ne.s32.totalorder %s1352_s13, %s993_s20  ;;  %s998_s3 = sshll.u32 %s1128_s2, 4  ;;  %s999_s3 = int_to_ptr.vmem [resolvable:$false] %s998_s3 }
  0x93   : > { %s1000_s26 = scalar_lea.vmem %s999_s3, 256  ;;  %p1001_p12 = scmp.lt.s32.totalorder %s1352_s13, %s999_s3 }
  0x94   : > { %p996_p5 = pnand %p994_p3, %p980_p9  ;;  %p1002_p1 = scmp.lt.s32.totalorder %s1000_s26, %s993_s20 }
  0x96   : > { %p997_p7 = pneg %p996_p5  ;;  %p1003_p2 = por %p1002_p1, %p1001_p12 }
  0x98   : > { %p1004_p13 = pnand %p1003_p2, %p997_p7 }
  0x9a   : > { %1007 = shalt.err (!%p1004_p13)
}
  0x9b   : > { %s1544_s11 = smov 4   ;;  %s1545_s10 = smov 64  }
  0x9c   : > { %794 = dma.hbm_to_vmem [thread:$0]  (!%p1354_p11), %s1350_s12, 128, %s1352_s13, %s1365_s9, %s1545_s10, %s1545_s10, %s1544_s11  }
  0x9d   : > { %s276_s16 = sand.u32 1, %s1120_s24   ;;  %s1008_s15 = scalar_lea.hbm %s1361_s7, 128 }
  0x9e   : > { %s1400_s8 = scalar_lea.sflag [#allocation6], %s276_s16  ;;  %p1009_p0 = scmp.ne.s32.totalorder %s1361_s7, %s1008_s15 }
  0x9f   : > { %s1013_s3 = scalar_lea.hbm %s1517_s1, 256  ;;  %p1014_p6 = scmp.lt.u32.totalorder %s1361_s7, %s1517_s1 }
  0xa0   : > { %p1011_p4 = pnand %p1009_p0, %p980_p9  ;;  %p1015_p3 = scmp.lt.u32.totalorder %s1013_s3, %s1008_s15 }
  0xa1   : > { %p1017_p7 = scmp.lt.u32.totalorder %s1008_s15, %s1361_s7 }
  0xa2   : > { %p1012_p8 = pneg %p1011_p4  ;;  %p1016_p5 = por %p1015_p3, %p1014_p6 }
  0xa4   : > { %p1018_p12 = por %p1017_p7, %p1016_p5 }
  0xa6   : > { %p1019_p1 = pnand %p1018_p12, %p1012_p8 }
  0xa8   : > { %1022 = shalt.err (!%p1019_p1)
}
  0xa9   : > { %s1023_s9 = scalar_lea.vmem %s1397_s30, 128  ;;  %s1129_s12 = smov [#allocation5]  }
  0xaa   : > { %p1024_p2 = scmp.ne.s32.totalorder %s1397_s30, %s1023_s9  ;;  %s1028_s13 = sshll.u32 %s1129_s12, 4  ;;  %s1029_s13 = int_to_ptr.vmem [resolvable:$false] %s1028_s13 }
  0xab   : > { %s1030_s0 = scalar_lea.vmem %s1029_s13, 256  ;;  %p1031_p4 = scmp.lt.s32.totalorder %s1397_s30, %s1029_s13 }
  0xac   : > { %p1026_p13 = pnand %p1024_p2, %p980_p9  ;;  %p1032_p6 = scmp.lt.s32.totalorder %s1030_s0, %s1023_s9 }
  0xae   : > { %p1027_p0 = pneg %p1026_p13  ;;  %p1033_p3 = por %p1032_p6, %p1031_p4 }
  0xb0   : > { %p1034_p5 = pnand %p1033_p3, %p1027_p0 }
  0xb2   : > { %1037 = shalt.err (!%p1034_p5)
}
  0xb3   : > { %797 = dma.hbm_to_vmem [thread:$0]  (!%p1354_p11), %s1361_s7, 128, %s1397_s30, %s1400_s8, %s1545_s10, %s1545_s10, %s1544_s11  }
  0xb4   : > { %p1546_p9 = scmp.ne.s32.totalorder %s1535_s29, 0 }
  0xb5   : > { %s1432_s16 = sand.u32 (!%p1546_p9), 1, %s1112_s22   ;;  %p1547_p8 = scmp.ne.s32.totalorder (!%p1546_p9), %s1533_s27, 0 }
  0xb6   : > { %299 = sbr.rel (%p1546_p9) target bundleno = 566 (0x236), region = 44  ;;  %s1435_s15 = sshll.u32 (!%p1546_p9), %s1432_s16, 3 }
  0xb7   : > { %s302_s14 = scalar_lea.sflag (!%p1546_p9), [#allocation3], %s1432_s16  ;;  %s305_s20 = scalar_lea.vmem (!%p1546_p9), [#allocation2], %s1435_s15 }
  0xbd   : > { %1083 = dma.done.wait (%p1547_p8), %s302_s14, 128  }
  0xbe   : > { %1085 = vsyncadd (%p1547_p8), %s302_s14, 4294967168  ;;  %s310_s29 = sand.u32 1, %s1192_s25   ;;  %s314_s7 = scalar_lea.vmem [#allocation5], %s1435_s15 }
  0xbf   : > { %s311_s30 = scalar_lea.sflag [#allocation6], %s310_s29 }
  0xc0   : > { %1087 = dma.done.wait (%p1547_p8), %s311_s30, 128  }
  0xc1   : > { %1089 = vsyncadd (%p1547_p8), %s311_s30, 4294967168  ;;  %p1548_p11 = scmp.eq.s32.totalorder %s1192_s25, 0 }
  0xc3   : > { %1091 = dma.done.wait (%p1548_p11), [#allocation6], 256   ;;  %p1549_p7 = pmov %p1548_p11 }
  0xc5   : > { %1093 = vsyncadd (%p1549_p7), [#allocation6], 4294967040  ;;  %p1550_p12 = pmov %p1549_p7 }
  0xc6   : > { %p1551_p1 = pmov %p1549_p7 }
  0xc7   : > { %1095 = dma.done.wait (%p1550_p12), [#allocation9], 272  }
  0xc8   : > { %1097 = vsyncadd (%p1551_p1), [#allocation9], 4294967024  ;;  %p1552_p2 = pmov %p1551_p1 }
  0xc9   : > { %p1553_p13 = pmov %p1551_p1 }
  0xca   : > { %1099 = dma.done.wait (%p1552_p2), [#allocation12], 16  }
  0xcb   : > { %1101 = vsyncadd (%p1553_p13), [#allocation12], 4294967280  ;;  %v1130_v0 = vmov 0.0   ;;  %vm1131_vm0 = vmmov 0   ;;  %v860_v1 = vld [vmem:[#allocation10] sm:$0xff]   ;;  %v861_v2 = vld [vmem:[#allocation10 + $0x8] sm:$0xff]  }
  0xcc   : > { %748 = vmatprep.subr.bf16.mxu1 %v1130_v0  ;;  %752 = vmatprep.mubr.msk.bf16.mxu1 %vm1131_vm0, %v1130_v0  ;;  %v368_v3 = vld [vmem:[%s305_s20] sm:$0xff]   ;;  %v731_v7 = vld [vmem:[%s314_s7] sm:$0xff]   ;;  %vm402_vm1 = vcmask 261120   ;;  %s1132_s27 = smov 32   ;;  %s729_s11 = sshll.u32 %s1192_s25, 7  ;;  %vm537_vm2 = vcmask 519168  }
  0xcd   : > { %740 = vmatprep.subr.bf16.mxu0 %v1130_v0  ;;  %744 = vmatprep.mubr.msk.bf16.mxu0 %vm1131_vm0, %v1130_v0  ;;  %v370_v4 = vunpack.c.l.bf16 %v368_v3  ;;  %v371_v5 = vunpack.c.h.bf16 %v368_v3  ;;  %v863_v6 = vld [vmem:[#allocation7] sm:$0xff]   ;;  %v864_v8 = vld [vmem:[#allocation7 + $0x8] sm:$0xff]   ;;  %v732_v9 = vunpack.c.l.bf16 %v731_v7  ;;  %v733_v10 = vunpack.c.h.bf16 %v731_v7  ;;  %v709_v26 = vld [vmem:[#allocation8] ss:$0 sm:$0xff]  ;;  %s363_s10 = scalar_lea.vmem [#allocation13], %s1435_s15  ;;  %s1470_s26 = scalar_lea.hbm %s1522_s6, %s729_s11 }
  0xce   : > { %749 = vmatpush3.bf16.msra.mxu1 %v860_v1  ;;  %741 = vmatpush3.bf16.msra.mxu0 %v863_v6  ;;  %v713_v14 = vld [vmem:[#allocation11] ss:$0 sm:$0xff]  ;;  %s554_s8 = sshll.u32 %s363_s10, 4  ;;  %s541_s25 = scalar_lea.sflag [#allocation4], %s1432_s16  ;;  %s1472_s8 = int_to_ptr.vmem [resolvable:$true] %s554_s8 }
  0xcf   : > { %750 = vmatprep.subr.bf16.mxu1 %v1130_v0  ;;  %742 = vmatprep.subr.bf16.mxu0 %v1130_v0  ;;  %v376_v11 = vadd.f32 %v732_v9, %v370_v4  ;;  %v377_v12 = vadd.f32 %v733_v10, %v371_v5  ;;  %s1038_s9 = scalar_lea.vmem %s1472_s8, 128  ;;  %s1133_s12 = smov [#allocation13]  }
  0xd0   : > { %p1039_p0 = scmp.ne.s32.totalorder %s1472_s8, %s1038_s9  ;;  %s1042_s13 = sshll.u32 %s1133_s12, 4  ;;  %s1043_s13 = int_to_ptr.vmem [resolvable:$false] %s1042_s13 }
  0xd1   : > { %v378_v13 = vpack.c.bf16 %v377_v12, %v376_v11  ;;  %s1044_s0 = scalar_lea.vmem %s1043_s13, 256  ;;  %p1045_p3 = scmp.lt.s32.totalorder %s1472_s8, %s1043_s13 }
  0xd2   : > { %751 = vmatpush3.bf16.msra.mxu1 %v861_v2  ;;  %743 = vmatpush3.bf16.msra.mxu0 %v864_v8  ;;  %p1040_p4 = pnand %p1039_p0, %p1337_p10  ;;  %p1046_p5 = scmp.lt.s32.totalorder %s1044_s0, %s1038_s9 }
  0xd4   : > { %p1041_p6 = pneg %p1040_p4  ;;  %p1047_p9 = por %p1046_p5, %p1045_p3 }
  0xd5   : > { %753 = vmatmul.mubr.msk.bf16.vlgmr.msra.gmra.mrb[0].mxu1 %vm402_vm1, %v368_v3  ;;  %745 = vmatmul.mubr.msk.bf16.vlgmr.msra.gmra.mrb[0].mxu0 %vm402_vm1, %v378_v13 }
  0xd6   : > { %p1048_p8 = pnand %p1047_p9, %p1041_p6 }
 0x1a8   : > { %v512_v15 = vpop.f32.mrb[0].mxu1  ;;  %v440_v21 = vpop.f32.mrb[0].mxu0 }
 0x1a9   : > { %v754_v16 = vpop.f32.mrb[1].mxu1  ;;  %v513_v18 = vadd.f32 %v713_v14, %v512_v15  ;;  %v746_v22 = vpop.f32.mrb[1].mxu0  ;;  %v441_v28 = vadd.f32 %v709_v26, %v440_v21 }
 0x1aa   : > { %v515_v17 = vpop.f32.mrb[2].mxu1  ;;  %v443_v24 = vpop.f32.mrb[2].mxu0 }
 0x1ab   : > { %v516_v19 = vadd.f32 %v713_v14, %v515_v17  ;;  %v755_v20 = vpop.f32.mrb[3].mxu1  ;;  %v747_v25 = vpop.f32.mrb[3].mxu0  ;;  %v444_v29 = vadd.f32 %v709_v26, %v443_v24 }
 0x1ad   : > { %v855_v23 = vpack.i.bf16 %v516_v19, %v513_v18 }
 0x1af   : > { %856 = vrot.lane.b32.xlu0 %v855_v23, %s1132_s27 }
 0x221   : > { %v857_v27 = vpop.permute.xlu0 %856 }
 0x222   : > { %v859_v30 = vunpack.i.h.bf16 %v857_v27  ;;  %v858_v31 = vunpack.i.l.bf16 %v857_v27 }
 0x224   : > { %v527_v32 = vsel %vm402_vm1, %v441_v28, %v858_v31  ;;  %v528_v33 = vsel %vm402_vm1, %v444_v29, %v859_v30 }
 0x225   : > { %v727_v34 = vpack.c.bf16 %v527_v32, %v527_v32  ;;  %v728_v35 = vpack.c.bf16 %v528_v33, %v528_v33 }
 0x227   : > { %538 = vst.msk [vmem:[%s363_s10] sm:$0xf] %vm537_vm2, %v727_v34  ;;  %539 = vst.msk [vmem:[%s363_s10 + $0x4] sm:$0xf] %vm537_vm2, %v728_v35 }
 0x228   : > { %1051 = shalt.err (!%p1048_p8)
}
 0x229   : > { %s1052_s15 = scalar_lea.hbm %s1470_s26, 128  ;;  %s1056_s29 = scalar_lea.hbm %s1522_s6, 256 }
 0x22a   : > { %p1053_p11 = scmp.ne.s32.totalorder %s1470_s26, %s1052_s15  ;;  %p1057_p1 = scmp.lt.u32.totalorder %s1470_s26, %s1522_s6 }
 0x22b   : > { %p1058_p2 = scmp.lt.u32.totalorder %s1056_s29, %s1052_s15  ;;  %p1060_p0 = scmp.lt.u32.totalorder %s1052_s15, %s1470_s26 }
 0x22c   : > { %p1054_p7 = pnand %p1053_p11, %p1337_p10 }
 0x22d   : > { %p1059_p13 = por %p1058_p2, %p1057_p1 }
 0x22e   : > { %p1055_p12 = pneg %p1054_p7 }
 0x22f   : > { %p1061_p4 = por %p1060_p0, %p1059_p13 }
 0x231   : > { %p1062_p6 = pnand %p1061_p4, %p1055_p12 }
 0x233   : > { %1065 = shalt.err (!%p1062_p6)
}
 0x234   : > { %s1134_s27 = smov 64   ;;  %s1135_s11 = smov 4  }
 0x235   : > { %776 = dma.vmem_to_hbm [thread:$0]  (%p1337_p10), %s1472_s8, 128, %s1470_s26, %s541_s25, %s1134_s27, %s1134_s27, %s1135_s11  }
 0x236 PF: > { %s569_s10 = sand.u32 1, %s1108_s21   ;;  %p1554_p3 = scmp.ne.s32.totalorder %s1534_s28, 0 }
 0x237   : > { %p1555_p5 = scmp.ge.s32.totalorder %s1120_s24, 2  ;;  %s570_s2 = scalar_lea.sflag [#allocation4], %s569_s10 }
 0x239   : > { %p799_p9 = pnand %p1555_p5, %p1554_p3 }
 0x23b   : > { %1103 = dma.done.wait (!%p799_p9), %s570_s2, 128  }
 0x23c   : > { %1105 = vsyncadd (!%p799_p9), %s570_s2, 4294967168  ;;  %p24_p8 = scmp.ge.s32.totalorder %s1327_s18, 4   ;;  %s1556_s21 = smov %s1112_s22 }
 0x23d   : > { %s1557_s22 = smov %s1116_s23  ;;  %s1558_s23 = smov %s1343_s19 }
 0x23e   : > { %s1559_s24 = smov %s1327_s18  ;;  %26 = sbr.rel (!%p24_p8) target bundleno = 13 (0xd), region = 118 }
 0x245   :  { %575 = vsyncpa [#allocation3], 1 }
 0x246   :  { %577 = vsyncpa [#allocation3 + $0x1], 1 }
 0x247   :  { %578 = vsyncpa [#allocation6], 1 }
 0x248   :  { %580 = vsyncpa [#allocation6 + $0x1], 1 }
 0x249   :  { %581 = vsyncpa [#allocation9], 1 }
 0x24a   :  { %582 = vsyncpa [#allocation12], 1 }
 0x24b   :  { %583 = vsyncpa [#allocation4], 1 }
 0x24c   :  { %585 = vsyncpa [#allocation4 + $0x1], 1 }

// kernel: transformer_forward.21
= control target key start
LH: loop header
LB: loop body
LE: loop exit
PB: predicated region body
PF: predicated region fallthrough
CT: control target
= control target key end

     0   :  { %12 = vsyncpa [#allocation3], 0  ;;  %s1619_s0 = inlined_call_operand.hbm [shape: bf16[32,32], index: 0, kind: input, shape index: {}]   ;;  %s1620_s1 = inlined_call_operand.hbm [shape: bf16[32,64], index: 1, kind: input, shape index: {}]   ;;  %s1621_s2 = inlined_call_operand.hbm [shape: f32[1,64], index: 2, kind: input, shape index: {}]   ;;  %s1622_s3 = inlined_call_operand.hbm [shape: bf16[64,32], index: 3, kind: input, shape index: {}]   ;;  %s1623_s4 = inlined_call_operand.hbm [shape: f32[1,32], index: 4, kind: input, shape index: {}]   ;;  %s1624_s5 = inlined_call_operand.hbm [shape: f32[1,32], index: 5, kind: input, shape index: {}]   ;;  %s1625_s6 = inlined_call_operand.hbm [shape: f32[1,32], index: 6, kind: input, shape index: {}]   ;;  %s1626_s7 = inlined_call_operand.hbm [shape: bf16[32,32], index: 7, kind: output, shape index: {}]  }
   0x1   :  { %14 = vsyncpa [#allocation3 + $0x1], 0 }
   0x2   :  { %15 = vsyncpa [#allocation6], 0 }
   0x3   :  { %16 = vsyncpa [#allocation9], 0 }
   0x4   :  { %17 = vsyncpa [#allocation12], 0 }
   0x5   :  { %18 = vsyncpa [#allocation4], 0 }
   0x6   :  { %20 = vsyncpa [#allocation4 + $0x1], 0  ;;  %s1275_s24 = smov 0   ;;  %s1277_s25 = smov 0  }
   0x7   :  { %s1279_s26 = smov 0   ;;  %s1281_s27 = smov 0  }
   0x8 LB: > { %s1221_s28 = smov [#allocation5]   ;;  %s1296_s30 = sadd.s32 4294967295, %s1219_s27   ;;  %s1219_s27 = sphi %s1281_s27, %s1654_s27   ;;  %s1215_s26 = sphi %s1279_s26, %s1653_s26   ;;  %s1211_s25 = sphi %s1277_s25, %s1652_s25   ;;  %s1207_s24 = sphi %s1275_s24, %s1651_s24  }
   0x9   : > { %s221_s29 = sshll.u32 %s1221_s28, 4  ;;  %p746_p0 = scmp.ge.s32.totalorder %s1219_s27, 1  ;;  %s1301_s29 = int_to_ptr.vmem [resolvable:$true] %s221_s29 }
   0xa   : > { %p1627_p1 = scmp.eq.s32.totalorder %s1296_s30, 0  ;;  %p209_p2 = scmp.lt.s32.totalorder %s1219_s27, 3 }
   0xb   : > { %s1222_s9 = smov [#allocation8]   ;;  %s1223_s12 = smov [#allocation11]  }
   0xc   : > { %p1303_p3 = pnand %p746_p0, %p209_p2  ;;  %s245_s10 = sshll.u32 %s1222_s9, 4  ;;  %s1316_s10 = int_to_ptr.vmem [resolvable:$true] %s245_s10 }
   0xd   : > { %s270_s13 = sshll.u32 %s1223_s12, 4  ;;  %s943_s16 = scalar_lea.hbm %s1620_s1, 256  ;;  %s1318_s13 = int_to_ptr.vmem [resolvable:$true] %s270_s13 }
   0xe   : > { %s1631_s8 = scalar_select %p1303_p3, 1, 0 }
   0xf   : > { %p846_p5 = pneg %p1303_p3  ;;  %p944_p7 = scmp.ne.s32.totalorder %s1620_s1, %s943_s16 }
  0x10   : > { %p950_p11 = scmp.lt.u32.totalorder %s943_s16, %s1620_s1 }
  0x11   : > { %p1312_p6 = pnand %p846_p5, %p1627_p1 }
  0x13   : > { %p1328_p8 = pneg %p1312_p6 }
  0x15   : > { %p946_p9 = pnand %p1328_p8, %p944_p7 }
  0x17   : > { %p947_p10 = pneg %p946_p9 }
  0x19   : > { %p952_p12 = pnand %p950_p11, %p947_p10 }
  0x1b   : > { %955 = shalt.err (!%p952_p12)
}
  0x1c   : > { %s956_s22 = scalar_lea.vmem %s1301_s29, 256  ;;  %p964_p5 = scmp.lt.s32.totalorder %s1301_s29, %s1301_s29 }
  0x1d   : > { %p957_p13 = scmp.ne.s32.totalorder %s1301_s29, %s956_s22  ;;  %p965_p4 = scmp.lt.s32.totalorder %s956_s22, %s956_s22 }
  0x1f   : > { %p959_p0 = pnand %p957_p13, %p1328_p8  ;;  %p966_p7 = por %p965_p4, %p964_p5 }
  0x21   : > { %p960_p2 = pneg %p959_p0 }
  0x23   : > { %p967_p9 = pnand %p966_p7, %p960_p2 }
  0x25   : > { %970 = shalt.err (!%p967_p9)
}
  0x26   : > { %s1629_s23 = smov 64   ;;  %s1225_s28 = smov 4  }
  0x27   : > { %849 = dma.hbm_to_vmem [thread:$0]  (!%p1312_p6), %s1620_s1, 256, %s1301_s29, [#allocation6], %s1629_s23, %s1629_s23, %s1225_s28  }
  0x28   : > { %s971_s16 = scalar_lea.hbm %s1622_s3, 512 }
  0x29   : > { %p972_p4 = scmp.ne.s32.totalorder %s1622_s3, %s971_s16  ;;  %p978_p12 = scmp.lt.u32.totalorder %s971_s16, %s1622_s3 }
  0x2b   : > { %p974_p10 = pnand %p972_p4, %p1328_p8 }
  0x2d   : > { %p975_p11 = pneg %p974_p10 }
  0x2f   : > { %p980_p13 = pnand %p978_p12, %p975_p11 }
  0x31   : > { %983 = shalt.err (!%p980_p13)
}
  0x32   : > { %s984_s29 = scalar_lea.vmem %s1316_s10, 512  ;;  %p992_p7 = scmp.lt.s32.totalorder %s1316_s10, %s1316_s10 }
  0x33   : > { %p985_p0 = scmp.ne.s32.totalorder %s1316_s10, %s984_s29  ;;  %p993_p9 = scmp.lt.s32.totalorder %s984_s29, %s984_s29 }
  0x35   : > { %p987_p2 = pnand %p985_p0, %p1328_p8  ;;  %p994_p4 = por %p993_p9, %p992_p7 }
  0x37   : > { %p988_p5 = pneg %p987_p2 }
  0x39   : > { %p995_p10 = pnand %p994_p4, %p988_p5 }
  0x3b   : > { %998 = shalt.err (!%p995_p10)
}
  0x3c   : > { %855 = dma.hbm_to_vmem [thread:$0]  (!%p1312_p6), %s1622_s3, 512, %s1316_s10, [#allocation9], %s1629_s23, %s1629_s23, %s1225_s28  }
  0x3d   : > { %s999_s15 = scalar_lea.hbm %s1624_s5, 16 }
  0x3e   : > { %p1000_p11 = scmp.ne.s32.totalorder %s1624_s5, %s999_s15  ;;  %p1006_p0 = scmp.lt.u32.totalorder %s999_s15, %s1624_s5 }
  0x40   : > { %p1002_p12 = pnand %p1000_p11, %p1328_p8 }
  0x42   : > { %p1003_p13 = pneg %p1002_p12 }
  0x44   : > { %p1008_p2 = pnand %p1006_p0, %p1003_p13 }
  0x46   : > { %1011 = shalt.err (!%p1008_p2)
}
  0x47   : > { %s1012_s10 = scalar_lea.vmem %s1318_s13, 16  ;;  %s1019_s21 = scalar_lea.vmem %s1318_s13, 32 }
  0x48   : > { %p1013_p5 = scmp.ne.s32.totalorder %s1318_s13, %s1012_s10  ;;  %p1020_p4 = scmp.lt.s32.totalorder %s1318_s13, %s1318_s13 }
  0x49   : > { %p1021_p10 = scmp.lt.s32.totalorder %s1019_s21, %s1012_s10 }
  0x4a   : > { %p1015_p7 = pnand %p1013_p5, %p1328_p8 }
  0x4b   : > { %p1022_p11 = por %p1021_p10, %p1020_p4 }
  0x4c   : > { %p1016_p9 = pneg %p1015_p7 }
  0x4e   : > { %p1023_p12 = pnand %p1022_p11, %p1016_p9 }
  0x50   : > { %1026 = shalt.err (!%p1023_p12)
}
  0x51   : > { %861 = dma.hbm_to_vmem [thread:$0]  (!%p1312_p6), %s1624_s5, 16, %s1318_s13, [#allocation12]  }
  0x52   : > { %s1226_s9 = smov [#allocation7]   ;;  %s1227_s14 = smov [#allocation10]  }
  0x53   : > { %s235_s12 = sshll.u32 %s1226_s9, 4  ;;  %s259_s15 = sshll.u32 %s1227_s14, 4  ;;  %s236_s12 = int_to_ptr.vmem [resolvable:$true] %s235_s12  ;;  %s260_s15 = int_to_ptr.vmem [resolvable:$true] %s259_s15 }
  0x54   : > { %s1027_s18 = scalar_lea.hbm %s1621_s2, 16 }
  0x55   : > { %p1028_p13 = scmp.ne.s32.totalorder %s1621_s2, %s1027_s18  ;;  %p1034_p5 = scmp.lt.u32.totalorder %s1027_s18, %s1621_s2 }
  0x57   : > { %p1030_p0 = pnand %p1028_p13, %p1328_p8 }
  0x59   : > { %p1031_p2 = pneg %p1030_p0 }
  0x5b   : > { %p1036_p7 = pnand %p1034_p5, %p1031_p2 }
  0x5d   : > { %1039 = shalt.err (!%p1036_p7)
}
  0x5e   : > { %s1040_s13 = scalar_lea.vmem %s236_s12, 16  ;;  %s1047_s22 = scalar_lea.vmem %s236_s12, 32 }
  0x5f   : > { %p1041_p9 = scmp.ne.s32.totalorder %s236_s12, %s1040_s13  ;;  %p1048_p11 = scmp.lt.s32.totalorder %s236_s12, %s236_s12 }
  0x60   : > { %p1049_p12 = scmp.lt.s32.totalorder %s1047_s22, %s1040_s13 }
  0x61   : > { %p1043_p4 = pnand %p1041_p9, %p1328_p8 }
  0x62   : > { %p1050_p1 = por %p1049_p12, %p1048_p11 }
  0x63   : > { %p1044_p10 = pneg %p1043_p4 }
  0x65   : > { %p1051_p3 = pnand %p1050_p1, %p1044_p10 }
  0x67   : > { %1054 = shalt.err (!%p1051_p3)
}
  0x68   : > { %852 = dma.hbm_to_vmem [thread:$0]  (!%p1312_p6), %s1621_s2, 16, %s236_s12, [#allocation6]  }
  0x69   : > { %s1055_s18 = scalar_lea.hbm %s1623_s4, 16 }
  0x6a   : > { %p1056_p13 = scmp.ne.s32.totalorder %s1623_s4, %s1055_s18  ;;  %p1062_p3 = scmp.lt.u32.totalorder %s1055_s18, %s1623_s4 }
  0x6c   : > { %p1058_p0 = pnand %p1056_p13, %p1328_p8 }
  0x6e   : > { %p1059_p1 = pneg %p1058_p0 }
  0x70   : > { %p1064_p2 = pnand %p1062_p3, %p1059_p1 }
  0x72   : > { %1067 = shalt.err (!%p1064_p2)
}
  0x73   : > { %s1068_s13 = scalar_lea.vmem %s260_s15, 16  ;;  %s1075_s12 = scalar_lea.vmem %s260_s15, 32 }
  0x74   : > { %p1069_p5 = scmp.ne.s32.totalorder %s260_s15, %s1068_s13  ;;  %p1076_p4 = scmp.lt.s32.totalorder %s260_s15, %s260_s15 }
  0x75   : > { %p1077_p10 = scmp.lt.s32.totalorder %s1075_s12, %s1068_s13 }
  0x76   : > { %p1071_p7 = pnand %p1069_p5, %p1328_p8 }
  0x77   : > { %p1078_p11 = por %p1077_p10, %p1076_p4 }
  0x78   : > { %p1072_p9 = pneg %p1071_p7 }
  0x7a   : > { %p1079_p12 = pnand %p1078_p11, %p1072_p9 }
  0x7c   : > { %1082 = shalt.err (!%p1079_p12)
}
  0x7d   : > { %858 = dma.hbm_to_vmem [thread:$0]  (!%p1312_p6), %s1623_s4, 16, %s260_s15, [#allocation9]  }
  0x7e   : > { %s1228_s14 = smov [#allocation13]   ;;  %s1083_s20 = scalar_lea.hbm %s1625_s6, 16 }
  0x7f   : > { %s281_s16 = sshll.u32 %s1228_s14, 4  ;;  %p1084_p13 = scmp.ne.s32.totalorder %s1625_s6, %s1083_s20  ;;  %s282_s16 = int_to_ptr.vmem [resolvable:$true] %s281_s16 }
  0x80   : > { %p1090_p3 = scmp.lt.u32.totalorder %s1083_s20, %s1625_s6 }
  0x81   : > { %p1086_p0 = pnand %p1084_p13, %p1328_p8 }
  0x83   : > { %p1087_p1 = pneg %p1086_p0 }
  0x85   : > { %p1092_p2 = pnand %p1090_p3, %p1087_p1 }
  0x87   : > { %1095 = shalt.err (!%p1092_p2)
}
  0x88   : > { %s1096_s15 = scalar_lea.vmem %s282_s16, 16  ;;  %s1103_s12 = scalar_lea.vmem %s282_s16, 32 }
  0x89   : > { %p1097_p5 = scmp.ne.s32.totalorder %s282_s16, %s1096_s15  ;;  %p1104_p4 = scmp.lt.s32.totalorder %s282_s16, %s282_s16 }
  0x8a   : > { %p1105_p10 = scmp.lt.s32.totalorder %s1103_s12, %s1096_s15 }
  0x8b   : > { %p1099_p7 = pnand %p1097_p5, %p1328_p8 }
  0x8c   : > { %p1106_p11 = por %p1105_p10, %p1104_p4 }
  0x8d   : > { %p1100_p9 = pneg %p1099_p7 }
  0x8f   : > { %p1107_p12 = pnand %p1106_p11, %p1100_p9 }
  0x91   : > { %1110 = shalt.err (!%p1107_p12)
}
  0x92   : > { %864 = dma.hbm_to_vmem [thread:$0]  (!%p1312_p6), %s1625_s6, 16, %s282_s16, [#allocation12]  }
  0x93   : > { %s745_s19 = sadd.s32 4294967294, %s1219_s27   ;;  %s1458_s11 = sadd.s32 1, %s1219_s27  }
  0x94   : > { %s30_s14 = ssub.s32 %s1219_s27, %s1458_s11  ;;  %s33_s17 = sadd.s32 1, %s1215_s26 }
  0x95   : > { %p31_p8 = scmp.eq.s32.totalorder %s30_s14, 0  ;;  %p40_p13 = scmp.ne.s32.totalorder %s1215_s26, %s1211_s25 }
  0x96   : > { %p41_p0 = scmp.eq.s32.totalorder %s1219_s27, 0  ;;  %p46_p1 = scmp.ne.s32.totalorder %s1211_s25, %s1207_s24 }
  0x97   : > { %s1469_s18 = scalar_select %p31_p8, %s1215_s26, %s33_s17  }
  0x98   : > { %p1471_p3 = por %p41_p0, %p40_p13  ;;  %p1635_p2 = scmp.eq.s32.totalorder %s1296_s30, 0 }
  0x99   : > { %p196_p5 = scmp.eq.s32.totalorder %s1296_s30, 1  ;;  %p202_p7 = scmp.eq.s32.totalorder %s745_s19, 1 }
  0x9a   : > { %p1477_p6 = por %p1635_p2, %p46_p1  ;;  %p879_p9 = scmp.lt.s32.totalorder %s1219_s27, 2 }
  0x9b   : > { %s292_s10 = sand.u32 1, %s1215_s26   ;;  %p1484_p4 = por %p196_p5, %p40_p13 }
  0x9c   : > { %p1488_p10 = por %p202_p7, %p46_p1  ;;  %s754_s13 = sshll.u32 %s292_s10, 3 }
  0x9d   : > { %s1637_s21 = scalar_select %p1484_p4, 1, 0 }
  0x9e   : > { %s1638_s29 = scalar_select %p1488_p10, 1, 0 }
  0x9f   : > { %s786_s15 = sshll.u32 %s1219_s27, 7  ;;  %s296_s19 = scalar_lea.vmem [#allocation2], %s754_s13 }
  0xa0   : > { %s1496_s9 = scalar_lea.hbm %s1619_s0, %s786_s15  ;;  %s303_s14 = sshll.u32 %s296_s19, 4  ;;  %s1498_s14 = int_to_ptr.vmem [resolvable:$true] %s303_s14 }
  0xa1   : > { %p1502_p11 = pnand %p879_p9, %p1471_p3  ;;  %s1506_s23 = scalar_lea.sflag [#allocation3], %s292_s10 }
  0xa2   : > { %s1111_s12 = scalar_lea.hbm %s1496_s9, 128  ;;  %s1116_s20 = scalar_lea.hbm %s1619_s0, 256 }
  0xa3   : > { %p1112_p12 = scmp.ne.s32.totalorder %s1496_s9, %s1111_s12  ;;  %p1113_p8 = pneg %p1502_p11 }
  0xa4   : > { %p1117_p1 = scmp.lt.u32.totalorder %s1496_s9, %s1619_s0  ;;  %p1118_p3 = scmp.lt.u32.totalorder %s1116_s20, %s1111_s12 }
  0xa5   : > { %p1114_p13 = pnand %p1113_p8, %p1112_p12  ;;  %p1120_p5 = scmp.lt.u32.totalorder %s1111_s12, %s1496_s9 }
  0xa6   : > { %p1119_p2 = por %p1118_p3, %p1117_p1 }
  0xa7   : > { %p1115_p0 = pneg %p1114_p13 }
  0xa8   : > { %p1121_p7 = por %p1120_p5, %p1119_p2 }
  0xaa   : > { %p1122_p9 = pnand %p1121_p7, %p1115_p0 }
  0xac   : > { %1125 = shalt.err (!%p1122_p9)
}
  0xad   : > { %s1126_s10 = scalar_lea.vmem %s1498_s14, 128  ;;  %s1229_s13 = smov [#allocation2]  }
  0xae   : > { %p1127_p12 = scmp.ne.s32.totalorder %s1498_s14, %s1126_s10  ;;  %s1131_s15 = sshll.u32 %s1229_s13, 4  ;;  %s1132_s15 = int_to_ptr.vmem [resolvable:$false] %s1131_s15 }
  0xaf   : > { %s1133_s22 = scalar_lea.vmem %s1132_s15, 256  ;;  %p1134_p4 = scmp.lt.s32.totalorder %s1498_s14, %s1132_s15 }
  0xb0   : > { %p1129_p13 = pnand %p1127_p12, %p1113_p8  ;;  %p1135_p1 = scmp.lt.s32.totalorder %s1133_s22, %s1126_s10 }
  0xb2   : > { %p1130_p10 = pneg %p1129_p13  ;;  %p1136_p3 = por %p1135_p1, %p1134_p4 }
  0xb4   : > { %p1137_p2 = pnand %p1136_p3, %p1130_p10 }
  0xb6   : > { %1140 = shalt.err (!%p1137_p2)
}
  0xb7   : > { %s1640_s12 = smov 64   ;;  %p1641_p8 = scmp.ne.s32.totalorder %s1631_s8, 0 }
  0xb8   : > { %868 = dma.hbm_to_vmem [thread:$0]  (!%p1502_p11), %s1496_s9, 128, %s1498_s14, %s1506_s23, %s1640_s12, %s1640_s12, %s1225_s28  }
  0xb9   : > { %315 = sbr.rel (%p1641_p8) target bundleno = 983 (0x3d7), region = 48  ;;  %s1540_s20 = sand.u32 (!%p1641_p8), 1, %s1211_s25  }
  0xba   : > { %s758_s19 = sshll.u32 (!%p1641_p8), %s1540_s20, 3  ;;  %s318_s10 = scalar_lea.sflag (!%p1641_p8), [#allocation3], %s1540_s20 }
  0xbb   : > { %s321_s17 = scalar_lea.vmem (!%p1641_p8), [#allocation2], %s758_s19 }
  0xc0   : > { %1186 = dma.done.wait (%p1477_p6), %s318_s10, 128  }
  0xc1   : > { %1188 = vsyncadd (%p1477_p6), %s318_s10, 4294967168  ;;  %p1642_p4 = scmp.eq.s32.totalorder %s1296_s30, 0 }
  0xc3   : > { %1190 = dma.done.wait (%p1642_p4), [#allocation6], 272   ;;  %p1643_p10 = pmov %p1642_p4 }
  0xc4   : > { %p1644_p11 = pmov %p1642_p4 }
  0xc5   : > { %1192 = vsyncadd (%p1643_p10), [#allocation6], 4294967024 }
  0xc6   : > { %1194 = dma.done.wait (%p1644_p11), [#allocation9], 528   ;;  %p1645_p0 = pmov %p1642_p4 }
  0xc8   : > { %1196 = vsyncadd (%p1645_p0), [#allocation9], 4294966768  ;;  %p1646_p5 = pmov %p1645_p0 }
  0xc9   : > { %p1647_p7 = pmov %p1645_p0 }
  0xca   : > { %1198 = dma.done.wait (%p1646_p5), [#allocation12], 32  }
  0xcb   : > { %1200 = vsyncadd (%p1647_p7), [#allocation12], 4294967264  ;;  %v1230_v0 = vmov 0.0   ;;  %vm1231_vm0 = vmmov 0   ;;  %v931_v1 = vld [vmem:[#allocation5] sm:$0xff]   ;;  %v932_v2 = vld [vmem:[#allocation5 + $0x8] sm:$0xff]  }
  0xcc   : > { %798 = vmatprep.subr.bf16.mxu0 %v1230_v0  ;;  %802 = vmatprep.mubr.msk.bf16.mxu0 %vm1231_vm0, %v1230_v0  ;;  %v379_v3 = vld [vmem:[%s321_s17] sm:$0xff]   ;;  %vm409_vm1 = vcmask 261120   ;;  %v936_v6 = vld [vmem:[#allocation8 + $0x10] sm:$0xff]   ;;  %vm496_vm2 = vcmask 523264   ;;  %vm598_vm3 = vcmask 257024   ;;  %s789_s8 = sshll.u32 %s1296_s30, 7 }
  0xcd   : > { %806 = vmatprep.subr.bf16.mxu1 %v1230_v0  ;;  %814 = vmatprep.mubr.msk.bf16.mxu1 %vm1231_vm0, %v1230_v0  ;;  %v934_v4 = vld [vmem:[#allocation8] sm:$0xff]   ;;  %v935_v5 = vld [vmem:[#allocation8 + $0x8] sm:$0xff]   ;;  %v937_v7 = vld [vmem:[#allocation8 + $0x18] sm:$0xff]   ;;  %v541_v19 = vunpack.c.l.bf16 %v379_v3  ;;  %v542_v23 = vunpack.c.h.bf16 %v379_v3  ;;  %s375_s23 = scalar_lea.vmem [#allocation14], %s758_s19  ;;  %s1573_s14 = scalar_lea.hbm %s1626_s7, %s789_s8 }
  0xce   : > { %799 = vmatpush3.bf16.msra.mxu0 %v931_v1  ;;  %807 = vmatpush3.bf16.msra.mxu1 %v934_v4  ;;  %v766_v8 = vld [vmem:[#allocation7] ss:$0 sm:$0xff]  ;;  %v771_v18 = vld [vmem:[#allocation10] ss:$0 sm:$0xff]  ;;  %v777_v48 = vld [vmem:[#allocation11] ss:$0 sm:$0xff] }
  0xcf   : > { %800 = vmatprep.subr.bf16.mxu0 %v1230_v0  ;;  %808 = vmatprep.subr.bf16.mxu1 %v1230_v0  ;;  %v778_v50 = vld [vmem:[#allocation13] ss:$0 sm:$0xff]  ;;  %s615_s28 = sshll.u32 %s375_s23, 4  ;;  %s602_s13 = scalar_lea.sflag [#allocation4], %s1540_s20  ;;  %s1575_s28 = int_to_ptr.vmem [resolvable:$true] %s615_s28 }
  0xd0   : > { %s1141_s15 = scalar_lea.vmem %s1575_s28, 128  ;;  %p1648_p9 = scmp.ne.s32.totalorder %s1637_s21, 0 }
  0xd1   : > { %p1142_p6 = scmp.ne.s32.totalorder %s1575_s28, %s1141_s15  ;;  %s1232_s30 = smov [#allocation14]  }
  0xd2   : > { %801 = vmatpush3.bf16.msra.mxu0 %v932_v2  ;;  %809 = vmatpush3.bf16.msra.mxu1 %v935_v5  ;;  %s1145_s22 = sshll.u32 %s1232_s30, 4  ;;  %s1146_s22 = int_to_ptr.vmem [resolvable:$false] %s1145_s22 }
  0xd3   : > { %810 = vmatprep.subr.bf16.mxu1 %v1230_v0  ;;  %p1143_p12 = pnand %p1142_p6, %p1648_p9  ;;  %s1147_s12 = scalar_lea.vmem %s1146_s22, 256 }
  0xd4   : > { %p1148_p1 = scmp.lt.s32.totalorder %s1575_s28, %s1146_s22  ;;  %p1149_p3 = scmp.lt.s32.totalorder %s1147_s12, %s1141_s15 }
  0xd5   : > { %803 = vmatmul.mubr.msk.bf16.vlgmr.msra.gmra.mrb[0].mxu0 %vm409_vm1, %v379_v3  ;;  %p1144_p13 = pneg %p1143_p12 }
  0xd6   : > { %811 = vmatpush3.bf16.msra.mxu1 %v936_v6  ;;  %p1150_p2 = por %p1149_p3, %p1148_p1 }
  0xd7   : > { %812 = vmatprep.subr.bf16.mxu1 %v1230_v0 }
  0xd8   : > { %p1151_p8 = pnand %p1150_p2, %p1144_p13 }
  0xda   : > { %813 = vmatpush3.bf16.msra.mxu1 %v937_v7 }
 0x1a8   : > { %v447_v9 = vpop.f32.mrb[0].mxu0 }
 0x1a9   : > { %v448_v10 = vadd.f32 %v766_v8, %v447_v9  ;;  %v804_v11 = vpop.f32.mrb[1].mxu0 }
 0x1aa   : > { %v450_v12 = vpop.f32.mrb[2].mxu0 }
 0x1ab   : > { %v451_v13 = vadd.f32 %v766_v8, %v450_v12  ;;  %v805_v14 = vpop.f32.mrb[3].mxu0  ;;  %v454_v15 = vmax.f32 %v448_v10, 0.0 }
 0x1ad   : > { %v455_v16 = vmax.f32 %v451_v13, 0.0 }
 0x1af   : > { %v456_v17 = vpack.c.bf16 %v455_v16, %v454_v15 }
 0x1b1   : > { %815 = vmatmul.mubr.msk.bf16.vlgmr.msra.gmra.mrb[0].mxu1 %vm496_vm2, %v456_v17 }
 0x284   : > { %v534_v20 = vpop.f32.mrb[0].mxu1 }
 0x285   : > { %v535_v21 = vadd.f32 %v771_v18, %v534_v20  ;;  %v816_v22 = vpop.f32.mrb[1].mxu1 }
 0x286   : > { %v537_v24 = vpop.f32.mrb[2].mxu1 }
 0x287   : > { %v538_v25 = vadd.f32 %v771_v18, %v537_v24  ;;  %v817_v26 = vpop.f32.mrb[3].mxu1  ;;  %v543_v27 = vadd.f32 %v541_v19, %v535_v21 }
 0x289   : > { %v547_v28 = vsel %vm409_vm1, %v543_v27, 0.0  ;;  %v544_v29 = vadd.f32 %v542_v23, %v538_v25 }
 0x28a   : > { %548 = vadd.xlane.f32.xlu0 %v547_v28 }
 0x28b   : > { %v550_v30 = vsel %vm409_vm1, %v544_v29, 0.0 }
 0x28e   : > { %551 = vadd.xlane.f32.xlu0 %v550_v30 }
 0x317   : > { %v549_v31 = vpop.xlane.xlu0 %548 }
 0x318   : > { %v554_v32 = vmul.f32 0.03125, %v549_v31 }
 0x31a   : > { %v556_v33 = vsub.f32 %v543_v27, %v554_v32 }
 0x31b   : > { %v552_v34 = vpop.xlane.xlu0 %551 }
 0x31c   : > { %v555_v35 = vmul.f32 0.03125, %v552_v34  ;;  %v558_v36 = vmul.f32 %v556_v33, %v556_v33 }
 0x31e   : > { %v557_v37 = vsub.f32 %v544_v29, %v555_v35  ;;  %v560_v38 = vsel %vm409_vm1, %v558_v36, 0.0 }
 0x31f   : > { %561 = vadd.xlane.f32.xlu1 %v560_v38 }
 0x320   : > { %v559_v39 = vmul.f32 %v557_v37, %v557_v37 }
 0x322   : > { %v563_v40 = vsel %vm409_vm1, %v559_v39, 0.0 }
 0x323   : > { %564 = vadd.xlane.f32.xlu1 %v563_v40 }
 0x3ac   : > { %v562_v41 = vpop.xlane.xlu1 %561 }
 0x3ad   : > { %v566_v42 = vmul.f32 0.03125, %v562_v41 }
 0x3af   : > { %v568_v43 = vadd.f32 1e-05, %v566_v42 }
 0x3b0   : > { %v565_v44 = vpop.xlane.xlu1 %564 }
 0x3b1   : > { %939 = vrsqrt.f32 %v568_v43  ;;  %v567_v45 = vmul.f32 0.03125, %v565_v44 }
 0x3b3   : > { %v569_v46 = vadd.f32 1e-05, %v567_v45 }
 0x3b5   : > { %941 = vrsqrt.f32 %v569_v46 }
 0x3bb   : > { %v940_v47 = vpop.eup %939 }
 0x3bc   : > { %v572_v49 = vmul.f32 %v940_v47, %v556_v33 }
 0x3be   : > { %v580_v51 = vmul.f32 %v777_v48, %v572_v49 }
 0x3bf   : > { %v942_v52 = vpop.eup %941 }
 0x3c0   : > { %v588_v53 = vadd.f32 %v778_v50, %v580_v51  ;;  %v573_v54 = vmul.f32 %v942_v52, %v557_v37 }
 0x3c2   : > { %v787_v55 = vpack.c.bf16 %v588_v53, %v588_v53  ;;  %v581_v56 = vmul.f32 %v777_v48, %v573_v54 }
 0x3c4   : > { %v589_v57 = vadd.f32 %v778_v50, %v581_v56  ;;  %599 = vst.msk [vmem:[%s375_s23] sm:$0xf] %vm598_vm3, %v787_v55 }
 0x3c6   : > { %v788_v58 = vpack.c.bf16 %v589_v57, %v589_v57 }
 0x3c8   : > { %600 = vst.msk [vmem:[%s375_s23 + $0x4] sm:$0xf] %vm598_vm3, %v788_v58 }
 0x3c9   : > { %1154 = shalt.err (!%p1151_p8)
}
 0x3ca   : > { %s1155_s19 = scalar_lea.hbm %s1573_s14, 128  ;;  %s1159_s8 = scalar_lea.hbm %s1626_s7, 256 }
 0x3cb   : > { %p1156_p4 = scmp.ne.s32.totalorder %s1573_s14, %s1155_s19  ;;  %p1160_p0 = scmp.lt.u32.totalorder %s1573_s14, %s1626_s7 }
 0x3cc   : > { %p1161_p5 = scmp.lt.u32.totalorder %s1159_s8, %s1155_s19  ;;  %p1163_p6 = scmp.lt.u32.totalorder %s1155_s19, %s1573_s14 }
 0x3cd   : > { %p1157_p10 = pnand %p1156_p4, %p1648_p9 }
 0x3ce   : > { %p1162_p7 = por %p1161_p5, %p1160_p0 }
 0x3cf   : > { %p1158_p11 = pneg %p1157_p10 }
 0x3d0   : > { %p1164_p12 = por %p1163_p6, %p1162_p7 }
 0x3d2   : > { %p1165_p13 = pnand %p1164_p12, %p1158_p11 }
 0x3d4   : > { %1168 = shalt.err (!%p1165_p13)
}
 0x3d5   : > { %s1233_s9 = smov 64   ;;  %s1234_s15 = smov 4  }
 0x3d6   : > { %844 = dma.vmem_to_hbm [thread:$0]  (%p1648_p9), %s1575_s28, 128, %s1573_s14, %s602_s13, %s1233_s9, %s1233_s9, %s1234_s15  }
 0x3d7 PF: > { %s630_s30 = sand.u32 1, %s1207_s24   ;;  %p1649_p1 = scmp.ne.s32.totalorder %s1638_s29, 0 }
 0x3d8   : > { %p1650_p3 = scmp.ge.s32.totalorder %s1219_s27, 2  ;;  %s631_s22 = scalar_lea.sflag [#allocation4], %s630_s30 }
 0x3da   : > { %p870_p2 = pnand %p1650_p3, %p1649_p1 }
 0x3dc   : > { %1202 = dma.done.wait (!%p870_p2), %s631_s22, 128  }
 0x3dd   : > { %1204 = vsyncadd (!%p870_p2), %s631_s22, 4294967168  ;;  %p23_p8 = scmp.ge.s32.totalorder %s1458_s11, 4   ;;  %s1651_s24 = smov %s1211_s25 }
 0x3de   : > { %s1652_s25 = smov %s1215_s26  ;;  %s1653_s26 = smov %s1469_s18 }
 0x3df   : > { %s1654_s27 = smov %s1458_s11  ;;  %25 = sbr.rel (!%p23_p8) target bundleno = 8 (0x8), region = 117 }
 0x3e6   :  { %636 = vsyncpa [#allocation3], 1 }
 0x3e7   :  { %638 = vsyncpa [#allocation3 + $0x1], 1 }
 0x3e8   :  { %639 = vsyncpa [#allocation6], 1 }
 0x3e9   :  { %640 = vsyncpa [#allocation9], 1 }
 0x3ea   :  { %641 = vsyncpa [#allocation12], 1 }
 0x3eb   :  { %642 = vsyncpa [#allocation4], 1 }
 0x3ec   :  { %644 = vsyncpa [#allocation4 + $0x1], 1 }

// kernel: transformer_forward.20
= control target key start
LH: loop header
LB: loop body
LE: loop exit
PB: predicated region body
PF: predicated region fallthrough
CT: control target
= control target key end

     0   :  { %s2649_s0 = inlined_call_operand.hbm [shape: bf16[2,16,32], index: 0, kind: input, shape index: {}]   ;;  %s2650_s1 = inlined_call_operand.hbm [shape: bf16[2,16,64], index: 1, kind: input, shape index: {}]   ;;  %s2651_s2 = inlined_call_operand.hbm [shape: f32[2,1,16], index: 2, kind: input, shape index: {}]   ;;  %s2652_s3 = inlined_call_operand.hbm [shape: bf16[2,16,32], index: 3, kind: input, shape index: {}]   ;;  %s2653_s4 = inlined_call_operand.hbm [shape: bf16[32,32], index: 4, kind: input, shape index: {}]   ;;  %s2654_s5 = inlined_call_operand.hbm [shape: f32[1,32], index: 5, kind: input, shape index: {}]   ;;  %s2655_s6 = inlined_call_operand.hbm [shape: f32[1,32], index: 6, kind: input, shape index: {}]   ;;  %s2656_s7 = inlined_call_operand.hbm [shape: f32[1,32], index: 7, kind: input, shape index: {}]   ;;  %s2657_s8 = inlined_call_operand.hbm [shape: bf16[2,16,32], index: 8, kind: output, shape index: {}]  }
   0x1   :  { %2684 = sst [smem:[#allocation33_spill]] %s2649_s0 }
   0x2   :  { %2685 = sst [smem:[#allocation34_spill]] %s2650_s1 }
   0x3   :  { %2686 = sst [smem:[#allocation35_spill]] %s2653_s4 }
   0x4   :  { %2687 = sst [smem:[#allocation36_spill]] %s2654_s5 }
   0x5   :  { %2688 = sst [smem:[#allocation37_spill]] %s2657_s8 }
   0x6   :  { %13 = vsyncpa [#allocation3], 0 }
   0x7   :  { %15 = vsyncpa [#allocation3 + $0x1], 0 }
   0x8   :  { %16 = vsyncpa [#allocation6], 0 }
   0x9   :  { %18 = vsyncpa [#allocation6 + $0x1], 0 }
   0xa   :  { %19 = vsyncpa [#allocation9], 0 }
   0xb   :  { %21 = vsyncpa [#allocation9 + $0x1], 0 }
   0xc   :  { %22 = vsyncpa [#allocation12], 0 }
   0xd   :  { %23 = vsyncpa [#allocation15], 0 }
   0xe   :  { %24 = vsyncpa [#allocation4], 0 }
   0xf   :  { %26 = vsyncpa [#allocation4 + $0x1], 0  ;;  %s2116_s27 = smov 0   ;;  %s2118_s28 = smov 0  }
  0x10   :  { %s2120_s29 = smov 0   ;;  %s2122_s30 = smov 0  }
  0x11   :  { %s2124_s9 = smov 0   ;;  %s2126_s10 = smov 0  }
  0x12 LB: > { %2689 = sst [smem:[#allocation24_spill]] %s2024_s27  ;;  %s2147_s11 = sadd.s32 4294967295, %s2044_s10   ;;  %s2044_s10 = sphi %s2126_s10, %s32_s10   ;;  %s2040_s9 = sphi %s2124_s9, %s2742_s9   ;;  %s2036_s30 = sphi %s2122_s30, %s2741_s30   ;;  %s2032_s29 = sphi %s2120_s29, %s2737_s29   ;;  %s2028_s28 = sphi %s2118_s28, %s2740_s28   ;;  %s2024_s27 = sphi %s2116_s27, %s2739_s27  }
  0x13   : > { %2690 = sst [smem:[#allocation25_spill]] %s2032_s29  ;;  %s1386_s12 = sadd.s32 4294967294, %s2044_s10  }
  0x14   : > { %2691 = sst [smem:[#allocation26_spill]] %s2036_s30  ;;  %p66_p0 = scmp.ne.s32.totalorder %s2028_s28, %s2024_s27 }
  0x15   : > { %2692 = sst [smem:[#allocation27_spill]] %s2147_s11  ;;  %p2658_p1 = scmp.eq.s32.totalorder %s2147_s11, 0 }
  0x16   : > { %p262_p3 = scmp.eq.s32.totalorder %s1386_s12, 1  ;;  %p1387_p5 = scmp.ge.s32.totalorder %s2044_s10, 1 }
  0x17   : > { %p2156_p4 = por %p2658_p1, %p66_p0  ;;  %p269_p7 = scmp.lt.s32.totalorder %s2044_s10, 3 }
  0x18   : > { %p2161_p6 = por %p262_p3, %p66_p0  ;;  %s2046_s16 = smov [#allocation10]  }
  0x19   : > { %s2693_s13 = scalar_select %p2156_p4, 1, 0 }
  0x1a   : > { %s2695_s14 = scalar_select %p2161_p6, 1, 0 }
  0x1b   : > { %2694 = sst [smem:[#allocation28_spill]] %s2693_s13  ;;  %p2166_p8 = pnand %p1387_p5, %p269_p7 }
  0x1c   : > { %2696 = sst [smem:[#allocation29_spill]] %s2695_s14  ;;  %s281_s17 = sshll.u32 %s2046_s16, 4  ;;  %s2170_s17 = int_to_ptr.vmem [resolvable:$true] %s281_s17 }
  0x1d   : > { %s2697_s15 = scalar_select %p2166_p8, 1, 0 }
  0x1e   : > { %p1547_p9 = pneg %p2166_p8  ;;  %s2047_s19 = smov [#allocation11]  }
  0x1f   : > { %s295_s20 = sshll.u32 %s2047_s19, 4  ;;  %s2699_s4 = sld [smem:[#allocation35_spill]]  ;;  %s2181_s20 = int_to_ptr.vmem [resolvable:$true] %s295_s20 }
  0x20   : > { %p2177_p11 = pnand %p1547_p9, %p2658_p1 }
  0x22   : > { %s2698_s18 = scalar_select %p2177_p11, 1, 0 }
  0x23   : > { %p2191_p13 = pneg %p2177_p11 }
  0x25   : > { %s1710_s23 = scalar_lea.hbm %s2699_s4, 256 }
  0x26   : > { %p1711_p12 = scmp.ne.s32.totalorder %s2699_s4, %s1710_s23  ;;  %p1717_p5 = scmp.lt.u32.totalorder %s1710_s23, %s2699_s4 }
  0x27   : > { %s2700_s26 = scalar_select %p2191_p13, 1, 0 }
  0x28   : > { %p1713_p0 = pnand %p2191_p13, %p1711_p12 }
  0x2a   : > { %p1714_p3 = pneg %p1713_p0 }
  0x2c   : > { %p1719_p7 = pnand %p1717_p5, %p1714_p3 }
  0x2e   : > { %1722 = shalt.err (!%p1719_p7)
}
  0x2f   : > { %s1723_s19 = scalar_lea.vmem %s2170_s17, 256  ;;  %p1731_p2 = scmp.lt.s32.totalorder %s2170_s17, %s2170_s17 }
  0x30   : > { %p1724_p9 = scmp.ne.s32.totalorder %s2170_s17, %s1723_s19  ;;  %p1732_p6 = scmp.lt.s32.totalorder %s1723_s19, %s1723_s19 }
  0x32   : > { %p1726_p10 = pnand %p1724_p9, %p2191_p13  ;;  %p1733_p12 = por %p1732_p6, %p1731_p2 }
  0x34   : > { %p1727_p1 = pneg %p1726_p10 }
  0x36   : > { %p1734_p0 = pnand %p1733_p12, %p1727_p1 }
  0x38   : > { %1737 = shalt.err (!%p1734_p0)
}
  0x39   : > { %s2662_s21 = smov 64   ;;  %s2664_s22 = smov 4  }
  0x3a   : > { %1550 = dma.hbm_to_vmem [thread:$0]  (!%p2177_p11), %s2699_s4, 256, %s2170_s17, [#allocation9], %s2662_s21, %s2662_s21, %s2664_s22  }
  0x3b   : > { %s2701_s5 = sld [smem:[#allocation36_spill]] }
  0x41   : > { %s1738_s16 = scalar_lea.hbm %s2701_s5, 16 }
  0x42   : > { %p1739_p1 = scmp.ne.s32.totalorder %s2701_s5, %s1738_s16  ;;  %p1745_p10 = scmp.lt.u32.totalorder %s1738_s16, %s2701_s5 }
  0x44   : > { %p1741_p2 = pnand %p1739_p1, %p2191_p13 }
  0x46   : > { %p1742_p6 = pneg %p1741_p2 }
  0x48   : > { %p1747_p3 = pnand %p1745_p10, %p1742_p6 }
  0x4a   : > { %1750 = shalt.err (!%p1747_p3)
}
  0x4b   : > { %s1751_s17 = scalar_lea.vmem %s2181_s20, 16  ;;  %s1758_s14 = scalar_lea.vmem %s2181_s20, 32 }
  0x4c   : > { %p1752_p5 = scmp.ne.s32.totalorder %s2181_s20, %s1751_s17  ;;  %p1759_p12 = scmp.lt.s32.totalorder %s2181_s20, %s2181_s20 }
  0x4d   : > { %p1760_p0 = scmp.lt.s32.totalorder %s1758_s14, %s1751_s17 }
  0x4e   : > { %p1754_p7 = pnand %p1752_p5, %p2191_p13 }
  0x4f   : > { %p1761_p1 = por %p1760_p0, %p1759_p12 }
  0x50   : > { %p1755_p9 = pneg %p1754_p7 }
  0x52   : > { %p1762_p2 = pnand %p1761_p1, %p1755_p9 }
  0x54   : > { %1765 = shalt.err (!%p1762_p2)
}
  0x55   : > { %1553 = dma.hbm_to_vmem [thread:$0]  (!%p2177_p11), %s2701_s5, 16, %s2181_s20, [#allocation12]  }
  0x56   : > { %s44_s23 = sadd.s32 1, %s2040_s9  ;;  %s53_s24 = sadd.s32 1, %s2032_s29 }
  0x57   : > { %p46_p6 = scmp.ge.s32.totalorder %s44_s23, 2  ;;  %p60_p10 = scmp.ne.s32.totalorder %s2032_s29, %s2028_s28 }
  0x58   : > { %p61_p3 = scmp.eq.s32.totalorder %s2044_s10, 0  ;;  %p1581_p5 = scmp.lt.s32.totalorder %s2044_s10, 2 }
  0x59   : > { %s2744_s23 = smov (%p46_p6, %s44_s23), 0  ;;  %p2703_p9 = scmp.eq.s32.totalorder %s2147_s11, 1 }
  0x5a   : > { %2702 = sst [smem:[#allocation30_spill]] %s2744_s23  ;;  %p62_p7 = por %p61_p3, %p60_p10 }
  0x5b   : > { %p2249_p12 = por %p2703_p9, %p60_p10  ;;  %s48_s12 = ssub.s32 %s2040_s9, %s2744_s23 }
  0x5c   : > { %s2256_s20 = sand.u32 1, %s2032_s29   ;;  %p51_p0 = scmp.eq.s32.totalorder %s48_s12, 0 }
  0x5d   : > { %s2704_s25 = scalar_select %p2249_p12, 1, 0 }
  0x5e   : > { %s2259_s16 = sshll.u32 %s2256_s20, 3  ;;  %s2262_s19 = sshll.u32 %s2040_s9, 7 }
  0x5f   : > { %2705 = sst [smem:[#allocation31_spill]] %s2704_s25  ;;  %p2264_p1 = pnand %p1581_p5, %p62_p7 }
  0x60   : > { %s2269_s14 = scalar_select %p51_p0, %s2032_s29, %s53_s24  }
  0x61   : > { %s2706_s17 = scalar_select %p2264_p1, 1, 0 }
  0x62   : > { %2707 = sst [smem:[#allocation32_spill]] %s2269_s14  ;;  %s2670_s8 = sand.u32 1, %s2044_s10  }
  0x63   : > { %s2708_s1 = sld [smem:[#allocation34_spill]]  ;;  %s355_s12 = scalar_lea.vmem [#allocation5], %s2259_s16 }
  0x64   : > { %s362_s4 = sshll.u32 %s355_s12, 4  ;;  %s2283_s5 = scalar_lea.sflag [#allocation6], %s2670_s8  ;;  %s2279_s4 = int_to_ptr.vmem [resolvable:$true] %s362_s4 }
  0x65   : > { %p2289_p6 = pneg %p2264_p1 }
  0x69   : > { %s2276_s22 = scalar_lea.hbm %s2708_s1, %s2262_s19  ;;  %s1771_s12 = scalar_lea.hbm %s2708_s1, 256 }
  0x6a   : > { %s1766_s23 = scalar_lea.hbm %s2276_s22, 128  ;;  %p1772_p5 = scmp.lt.u32.totalorder %s2276_s22, %s2708_s1 }
  0x6b   : > { %p1767_p2 = scmp.ne.s32.totalorder %s2276_s22, %s1766_s23  ;;  %p1773_p7 = scmp.lt.u32.totalorder %s1771_s12, %s1766_s23 }
  0x6c   : > { %p1775_p0 = scmp.lt.u32.totalorder %s1766_s23, %s2276_s22 }
  0x6d   : > { %p1769_p10 = pnand %p2289_p6, %p1767_p2  ;;  %p1774_p9 = por %p1773_p7, %p1772_p5 }
  0x6f   : > { %p1770_p3 = pneg %p1769_p10  ;;  %p1776_p12 = por %p1775_p0, %p1774_p9 }
  0x71   : > { %p1777_p4 = pnand %p1776_p12, %p1770_p3 }
  0x73   : > { %1780 = shalt.err (!%p1777_p4)
}
  0x74   : > { %s1781_s8 = scalar_lea.vmem %s2279_s4, 128  ;;  %s2050_s21 = smov [#allocation5]  }
  0x75   : > { %p1782_p2 = scmp.ne.s32.totalorder %s2279_s4, %s1781_s8  ;;  %s1786_s27 = sshll.u32 %s2050_s21, 4  ;;  %s1787_s27 = int_to_ptr.vmem [resolvable:$false] %s1786_s27 }
  0x76   : > { %s1788_s29 = scalar_lea.vmem %s1787_s27, 256  ;;  %p1789_p11 = scmp.lt.s32.totalorder %s2279_s4, %s1787_s27 }
  0x77   : > { %p1784_p10 = pnand %p1782_p2, %p2289_p6  ;;  %p1790_p13 = scmp.lt.s32.totalorder %s1788_s29, %s1781_s8 }
  0x79   : > { %p1785_p8 = pneg %p1784_p10  ;;  %p1791_p5 = por %p1790_p13, %p1789_p11 }
  0x7b   : > { %p1792_p7 = pnand %p1791_p5, %p1785_p8 }
  0x7d   : > { %1795 = shalt.err (!%p1792_p7)
}
  0x7e   : > { %s2710_s23 = smov 4   ;;  %s2711_s14 = smov 64  }
  0x7f   : > { %1566 = dma.hbm_to_vmem [thread:$0]  (!%p2264_p1), %s2276_s22, 128, %s2279_s4, %s2283_s5, %s2711_s14, %s2711_s14, %s2710_s23  }
  0x80   : > { %s2051_s12 = smov [#allocation13]   ;;  %s2052_s21 = smov [#allocation14]  }
  0x81   : > { %s306_s1 = sshll.u32 %s2051_s12, 4  ;;  %s317_s25 = sshll.u32 %s2052_s21, 4  ;;  %s307_s1 = int_to_ptr.vmem [resolvable:$true] %s306_s1  ;;  %s2316_s25 = int_to_ptr.vmem [resolvable:$true] %s317_s25 }
  0x82   : > { %s1796_s29 = scalar_lea.hbm %s2655_s6, 16  ;;  %p2712_p8 = scmp.ne.s32.totalorder %s2700_s26, 0 }
  0x83   : > { %p1797_p4 = scmp.ne.s32.totalorder %s2655_s6, %s1796_s29  ;;  %p1803_p12 = scmp.lt.u32.totalorder %s1796_s29, %s2655_s6 }
  0x85   : > { %p1799_p11 = pnand %p1797_p4, %p2712_p8 }
  0x87   : > { %p1800_p13 = pneg %p1799_p11 }
  0x89   : > { %p1805_p3 = pnand %p1803_p12, %p1800_p13 }
  0x8b   : > { %1808 = shalt.err (!%p1805_p3)
}
  0x8c   : > { %s1809_s22 = scalar_lea.vmem %s307_s1, 16  ;;  %s1816_s12 = scalar_lea.vmem %s307_s1, 32 }
  0x8d   : > { %p1810_p9 = scmp.ne.s32.totalorder %s307_s1, %s1809_s22  ;;  %p1817_p10 = scmp.lt.s32.totalorder %s307_s1, %s307_s1 }
  0x8e   : > { %p1818_p5 = scmp.lt.s32.totalorder %s1816_s12, %s1809_s22 }
  0x8f   : > { %p1812_p0 = pnand %p1810_p9, %p2712_p8 }
  0x90   : > { %p1819_p7 = por %p1818_p5, %p1817_p10 }
  0x91   : > { %p1813_p2 = pneg %p1812_p0 }
  0x93   : > { %p1820_p1 = pnand %p1819_p7, %p1813_p2 }
  0x95   : > { %1823 = shalt.err (!%p1820_p1)
}
  0x96   : > { %p2713_p4 = scmp.ne.s32.totalorder %s2698_s18, 0  ;;  %s1824_s8 = scalar_lea.hbm %s2656_s7, 16 }
  0x97   : > { %p1825_p11 = scmp.ne.s32.totalorder %s2656_s7, %s1824_s8  ;;  %p1831_p1 = scmp.lt.u32.totalorder %s1824_s8, %s2656_s7 }
  0x98   : > { %1556 = dma.hbm_to_vmem [thread:$0]  (!%p2713_p4), %s2655_s6, 16, %s307_s1, [#allocation12]  }
  0x99   : > { %p1827_p13 = pnand %p1825_p11, %p2712_p8 }
  0x9b   : > { %p1828_p12 = pneg %p1827_p13 }
  0x9d   : > { %p1833_p3 = pnand %p1831_p1, %p1828_p12 }
  0x9f   : > { %1836 = shalt.err (!%p1833_p3)
}
  0xa0   : > { %s1837_s1 = scalar_lea.vmem %s2316_s25, 16  ;;  %s1844_s12 = scalar_lea.vmem %s2316_s25, 32 }
  0xa1   : > { %p1838_p9 = scmp.ne.s32.totalorder %s2316_s25, %s1837_s1  ;;  %p1845_p10 = scmp.lt.s32.totalorder %s2316_s25, %s2316_s25 }
  0xa2   : > { %p1846_p5 = scmp.lt.s32.totalorder %s1844_s12, %s1837_s1 }
  0xa3   : > { %p1840_p0 = pnand %p1838_p9, %p2712_p8 }
  0xa4   : > { %p1847_p7 = por %p1846_p5, %p1845_p10 }
  0xa5   : > { %p1841_p2 = pneg %p1840_p0 }
  0xa7   : > { %p1848_p11 = pnand %p1847_p7, %p1841_p2 }
  0xa9   : > { %1851 = shalt.err (!%p1848_p11)
}
  0xaa   : > { %1559 = dma.hbm_to_vmem [thread:$0]  (!%p2713_p4), %s2656_s7, 16, %s2316_s25, [#allocation15]  }
  0xab   : > { %s2714_s0 = sld [smem:[#allocation33_spill]]  ;;  %s332_s8 = scalar_lea.vmem [#allocation2], %s2259_s16 }
  0xac   : > { %s341_s18 = sshll.u32 %s332_s8, 4  ;;  %s329_s27 = scalar_lea.sflag [#allocation3], %s2256_s20  ;;  %s2367_s18 = int_to_ptr.vmem [resolvable:$true] %s341_s18 }
  0xb1   : > { %s2364_s21 = scalar_lea.hbm %s2714_s0, %s2262_s19  ;;  %s1857_s22 = scalar_lea.hbm %s2714_s0, 256 }
  0xb2   : > { %s1852_s29 = scalar_lea.hbm %s2364_s21, 128  ;;  %p1858_p4 = scmp.lt.u32.totalorder %s2364_s21, %s2714_s0 }
  0xb3   : > { %p1853_p8 = scmp.ne.s32.totalorder %s2364_s21, %s1852_s29  ;;  %p1859_p1 = scmp.lt.u32.totalorder %s1857_s22, %s1852_s29 }
  0xb4   : > { %p1861_p9 = scmp.lt.u32.totalorder %s1852_s29, %s2364_s21 }
  0xb5   : > { %p1855_p13 = pnand %p1853_p8, %p2289_p6  ;;  %p1860_p3 = por %p1859_p1, %p1858_p4 }
  0xb7   : > { %p1856_p12 = pneg %p1855_p13  ;;  %p1862_p0 = por %p1861_p9, %p1860_p3 }
  0xb9   : > { %p1863_p2 = pnand %p1862_p0, %p1856_p12 }
  0xbb   : > { %1866 = shalt.err (!%p1863_p2)
}
  0xbc   : > { %s1867_s30 = scalar_lea.vmem %s2367_s18, 128  ;;  %s2053_s11 = smov [#allocation2]  }
  0xbd   : > { %p1868_p10 = scmp.ne.s32.totalorder %s2367_s18, %s1867_s30  ;;  %s1872_s26 = sshll.u32 %s2053_s11, 4  ;;  %s1873_s26 = int_to_ptr.vmem [resolvable:$false] %s1872_s26 }
  0xbe   : > { %s1874_s13 = scalar_lea.vmem %s1873_s26, 256  ;;  %p1875_p11 = scmp.lt.s32.totalorder %s2367_s18, %s1873_s26 }
  0xbf   : > { %p1870_p5 = pnand %p1868_p10, %p2289_p6  ;;  %p1876_p8 = scmp.lt.s32.totalorder %s1874_s13, %s1867_s30 }
  0xc1   : > { %p1871_p7 = pneg %p1870_p5  ;;  %p1877_p13 = por %p1876_p8, %p1875_p11 }
  0xc3   : > { %p1878_p4 = pnand %p1877_p13, %p1871_p7 }
  0xc5   : > { %1881 = shalt.err (!%p1878_p4)
}
  0xc6   : > { %p2715_p12 = scmp.ne.s32.totalorder %s2706_s17, 0  ;;  %s1399_s8 = sshll.u32 %s2040_s9, 4 }
  0xc7   : > { %s375_s29 = scalar_lea.vmem [#allocation7], %s2256_s20  ;;  %s380_s1 = scalar_lea.hbm %s2651_s2, %s1399_s8 }
  0xc8   : > { %1563 = dma.hbm_to_vmem [thread:$0]  (!%p2715_p12), %s2364_s21, 128, %s2367_s18, %s329_s27, %s2711_s14, %s2711_s14, %s2710_s23  }
  0xc9   : > { %s382_s25 = sshll.u32 %s375_s29, 4  ;;  %s1882_s12 = scalar_lea.hbm %s380_s1, 16  ;;  %s383_s25 = int_to_ptr.vmem [resolvable:$true] %s382_s25 }
  0xca   : > { %p1883_p1 = scmp.ne.s32.totalorder %s380_s1, %s1882_s12  ;;  %s1887_s26 = scalar_lea.hbm %s2651_s2, 32 }
  0xcb   : > { %p1888_p0 = scmp.lt.u32.totalorder %s380_s1, %s2651_s2  ;;  %p1889_p2 = scmp.lt.u32.totalorder %s1887_s26, %s1882_s12 }
  0xcc   : > { %p1885_p3 = pnand %p1883_p1, %p2289_p6  ;;  %p1891_p5 = scmp.lt.u32.totalorder %s1882_s12, %s380_s1 }
  0xcd   : > { %p1890_p10 = por %p1889_p2, %p1888_p0 }
  0xce   : > { %p1886_p9 = pneg %p1885_p3 }
  0xcf   : > { %p1892_p7 = por %p1891_p5, %p1890_p10 }
  0xd1   : > { %p1893_p11 = pnand %p1892_p7, %p1886_p9 }
  0xd3   : > { %1896 = shalt.err (!%p1893_p11)
}
  0xd4   : > { %s1897_s20 = scalar_lea.vmem %s383_s25, 16  ;;  %s2054_s21 = smov [#allocation7]  }
  0xd5   : > { %p1898_p8 = scmp.ne.s32.totalorder %s383_s25, %s1897_s20  ;;  %s1902_s18 = sshll.u32 %s2054_s21, 4  ;;  %s1903_s18 = int_to_ptr.vmem [resolvable:$false] %s1902_s18 }
  0xd6   : > { %s1904_s27 = scalar_lea.vmem %s1903_s18, 32  ;;  %p1905_p1 = scmp.lt.s32.totalorder %s383_s25, %s1903_s18 }
  0xd7   : > { %p1900_p13 = pnand %p1898_p8, %p2289_p6  ;;  %p1906_p3 = scmp.lt.s32.totalorder %s1904_s27, %s1897_s20 }
  0xd9   : > { %p1901_p4 = pneg %p1900_p13  ;;  %p1907_p12 = por %p1906_p3, %p1905_p1 }
  0xdb   : > { %p1908_p0 = pnand %p1907_p12, %p1901_p4 }
  0xdd   : > { %1911 = shalt.err (!%p1908_p0)
}
  0xde   : > { %p2716_p2 = scmp.ne.s32.totalorder %s2706_s17, 0  ;;  %s2418_s29 = scalar_lea.hbm %s2652_s3, %s2262_s19 }
  0xdf   : > { %s393_s4 = scalar_lea.vmem [#allocation8], %s2259_s16  ;;  %s2717_s12 = sand.u32 1, %s2044_s10  }
  0xe0   : > { %1569 = dma.hbm_to_vmem [thread:$0]  (!%p2716_p2), %s380_s1, 16, %s383_s25, %s2283_s5  }
  0xe1   : > { %s402_s22 = sshll.u32 %s393_s4, 4  ;;  %s2425_s30 = scalar_lea.sflag [#allocation9], %s2717_s12  ;;  %s2421_s22 = int_to_ptr.vmem [resolvable:$true] %s402_s22 }
  0xe2   : > { %s1912_s11 = scalar_lea.hbm %s2418_s29, 128  ;;  %s1917_s19 = scalar_lea.hbm %s2652_s3, 256 }
  0xe3   : > { %p1913_p12 = scmp.ne.s32.totalorder %s2418_s29, %s1912_s11  ;;  %p1918_p5 = scmp.lt.u32.totalorder %s2418_s29, %s2652_s3 }
  0xe4   : > { %p1919_p7 = scmp.lt.u32.totalorder %s1917_s19, %s1912_s11  ;;  %p1921_p8 = scmp.lt.u32.totalorder %s1912_s11, %s2418_s29 }
  0xe5   : > { %p1915_p9 = pnand %p1913_p12, %p2289_p6 }
  0xe6   : > { %p1920_p11 = por %p1919_p7, %p1918_p5 }
  0xe7   : > { %p1916_p10 = pneg %p1915_p9 }
  0xe8   : > { %p1922_p13 = por %p1921_p8, %p1920_p11 }
  0xea   : > { %p1923_p4 = pnand %p1922_p13, %p1916_p10 }
  0xec   : > { %1926 = shalt.err (!%p1923_p4)
}
  0xed   : > { %s1927_s16 = scalar_lea.vmem %s2421_s22, 128  ;;  %s2055_s13 = smov [#allocation8]  }
  0xee   : > { %p1928_p1 = scmp.ne.s32.totalorder %s2421_s22, %s1927_s16  ;;  %s1932_s20 = sshll.u32 %s2055_s13, 4  ;;  %s1933_s20 = int_to_ptr.vmem [resolvable:$false] %s1932_s20 }
  0xef   : > { %s1934_s21 = scalar_lea.vmem %s1933_s20, 256  ;;  %p1935_p12 = scmp.lt.s32.totalorder %s2421_s22, %s1933_s20 }
  0xf0   : > { %p1930_p3 = pnand %p1928_p1, %p2289_p6  ;;  %p1936_p9 = scmp.lt.s32.totalorder %s1934_s21, %s1927_s16 }
  0xf2   : > { %p1931_p0 = pneg %p1930_p3  ;;  %p1937_p5 = por %p1936_p9, %p1935_p12 }
  0xf4   : > { %p1938_p7 = pnand %p1937_p5, %p1931_p0 }
  0xf6   : > { %1941 = shalt.err (!%p1938_p7)
}
  0xf7   : > { %1572 = dma.hbm_to_vmem [thread:$0]  (!%p2716_p2), %s2418_s29, 128, %s2421_s22, %s2425_s30, %s2711_s14, %s2711_s14, %s2710_s23  }
  0xf8   : > { %p2718_p6 = scmp.ne.s32.totalorder %s2697_s15, 0 }
  0xf9   : > { %s2719_s24 = sld [smem:[#allocation28_spill]] (!%p2718_p6)  ;;  %s2455_s18 = sand.u32 (!%p2718_p6), 1, %s2028_s28  }
  0xfa   : > { %414 = sbr.rel (%p2718_p6) target bundleno = 1955 (0x7a3), region = 52  ;;  %s2458_s27 = sshll.u32 (!%p2718_p6), %s2455_s18, 3 }
  0xfb   : > { %s417_s17 = scalar_lea.sflag (!%p2718_p6), [#allocation3], %s2455_s18  ;;  %s420_s0 = scalar_lea.vmem (!%p2718_p6), [#allocation2], %s2458_s27 }
  0xff   : > { %p2720_p10 = scmp.ne.s32.totalorder (!%p2718_p6), %s2719_s24, 0 }
 0x101   : > { %1995 = dma.done.wait (%p2720_p10), %s417_s17, 128  }
 0x102   : > { %1997 = vsyncadd (%p2720_p10), %s417_s17, 4294967168  ;;  %s2721_s23 = sld [smem:[#allocation27_spill]]  ;;  %s429_s8 = scalar_lea.vmem [#allocation5], %s2458_s27 }
 0x108   : > { %s425_s15 = sand.u32 1, %s2721_s23  }
 0x109   : > { %s426_s14 = scalar_lea.sflag [#allocation6], %s425_s15 }
 0x10a   : > { %1999 = dma.done.wait (%p2720_p10), %s426_s14, 144  }
 0x10b   : > { %2001 = vsyncadd (%p2720_p10), %s426_s14, 4294967152  ;;  %s437_s29 = scalar_lea.vmem [#allocation7], %s2455_s18  ;;  %s443_s4 = scalar_lea.sflag [#allocation9], %s425_s15 }
 0x10c   : > { %s446_s22 = scalar_lea.vmem [#allocation8], %s2458_s27 }
 0x10d   : > { %2003 = dma.done.wait (%p2720_p10), %s443_s4, 128  }
 0x10e   : > { %2005 = vsyncadd (%p2720_p10), %s443_s4, 4294967168  ;;  %p2722_p2 = scmp.eq.s32.totalorder %s2721_s23, 0 }
 0x110   : > { %2007 = dma.done.wait (%p2722_p2), [#allocation9], 256   ;;  %p2723_p11 = pmov %p2722_p2 }
 0x111   : > { %p2724_p8 = pmov %p2722_p2 }
 0x112   : > { %2009 = vsyncadd (%p2723_p11), [#allocation9], 4294967040 }
 0x113   : > { %2011 = dma.done.wait (%p2724_p8), [#allocation12], 32   ;;  %p2725_p13 = pmov %p2722_p2 }
 0x114   : > { %p2726_p4 = pmov %p2722_p2 }
 0x115   : > { %2013 = vsyncadd (%p2725_p13), [#allocation12], 4294967264 }
 0x116   : > { %2015 = dma.done.wait (%p2726_p4), [#allocation15], 16   ;;  %p2727_p1 = pmov %p2722_p2 }
 0x117   : > { %v2056_v0 = vmov 0.0   ;;  %vm2057_vm0 = vmmov 0   ;;  %vm534_vm1 = vcmask 64512   ;;  %v2496_v1 = vld [vmem:[%s429_s8] sm:$0xff]   ;;  %v1671_v3 = vld [vmem:[%s420_s0] sm:$0xff]   ;;  %s2058_s12 = smov 96  }
 0x118   : > { %2017 = vsyncadd (%p2727_p1), [#allocation15], 4294967280  ;;  %1465 = vmatprep.subr.bf16.mxu0 %v2056_v0  ;;  %1467 = vmatprep.mubr.msk.bf16.mxu0 %vm2057_vm0, %v2056_v0  ;;  %v539_v2 = vsel %vm534_vm1, %v2496_v1, 0  ;;  %s2059_s30 = smov 120   ;;  %s2060_s11 = smov 112   ;;  %vm582_vm2 = vcmask 130048  }
 0x119   : > { %1471 = vmatprep.subr.bf16.mxu1 %v2056_v0  ;;  %1473 = vmatprep.mubr.msk.bf16.mxu1 %vm2057_vm0, %v2056_v0  ;;  %s2061_s5 = smov 104   ;;  %v2510_v4 = vld [vmem:[%s437_s29] ss:$0 sm:$0xff]  ;;  %s2062_s25 = smov 88   ;;  %vm1044_vm3 = vcmask 195584   ;;  %vm1071_vm4 = vcmask 261120  }
 0x11a   : > { %1466 = vmatpush3.bf16.xpose.msra.mxu0 %v539_v2  ;;  %602 = vrot.lane.b32.xlu1 %v2496_v1, %s2058_s12  ;;  %s2063_s19 = smov 72   ;;  %s2064_s1 = smov 80   ;;  %vm1175_vm5 = vcmask 257024  }
 0x11b   : > { %1483 = vmatprep.subr.bf16.mxu0 %v2056_v0  ;;  %s2065_s26 = smov 8   ;;  %s2066_s16 = smov 16  }
 0x11c   : > { %s2067_s13 = smov 24   ;;  %s2728_s20 = sld [smem:[#allocation26_spill]] }
 0x11d   : > { %s2729_s21 = sld [smem:[#allocation31_spill]]  ;;  %s508_s17 = scalar_lea.vmem [#allocation16], %s2458_s27 }
 0x11e   : > { %655 = vrot.lane.b32.xlu1 %v2496_v1, %s2059_s30  ;;  %s1194_s0 = sshll.u32 %s508_s17, 4  ;;  %s2730_s14 = sld [smem:[#allocation37_spill]]  ;;  %s2600_s0 = int_to_ptr.vmem [resolvable:$true] %s1194_s0 }
 0x11f   : > { %s1179_s29 = scalar_lea.sflag [#allocation4], %s2455_s18  ;;  %s1942_s4 = scalar_lea.vmem %s2600_s0, 128 }
 0x120   : > { %p1943_p3 = scmp.ne.s32.totalorder %s2600_s0, %s1942_s4  ;;  %s2068_s27 = smov [#allocation16]  }
 0x121   : > { %1468 = vmatmul.mubr.msk.bf16.vlgmr.msra.gmra.mrb[0].mxu0 %vm534_vm1, %v1671_v3 }
 0x122   : > { %1485 = vmatprep.mubr.msk.bf16.mxu0 %vm2057_vm0, %v2056_v0  ;;  %776 = vrot.lane.b32.xlu1 %v2496_v1, %s2060_s11  ;;  %s1441_s24 = sshll.u32 %s2728_s20, 7 }
 0x123   : > { %p2731_p0 = scmp.ne.s32.totalorder %s2729_s21, 0 }
 0x124   : > { %s2598_s8 = scalar_lea.hbm %s2730_s14, %s1441_s24 }
 0x125   : > { %p1944_p12 = pnand %p1943_p3, %p2731_p0 }
 0x126   : > { %774 = vrot.lane.b32.xlu1 %v1671_v3, %s2060_s11 }
 0x127   : > { %p1945_p9 = pneg %p1944_p12 }
 0x12a   : > { %897 = vrot.lane.b32.xlu1 %v2496_v1, %s2061_s5 }
 0x12e   : > { %895 = vrot.lane.b32.xlu1 %v1671_v3, %s2061_s5 }
 0x132   : > { %723 = vrot.lane.b32.xlu1 %v2496_v1, %s2062_s25 }
 0x18c   : > { %v603_v13 = vpop.permute.xlu1 %602 }
 0x18d   : > { %1472 = vmatpush3.bf16.msra.mxu1 %v603_v13 }
 0x18e   : > { %1477 = vmatprep.subr.bf16.mxu1 %v2056_v0 }
 0x190   : > { %v656_v20 = vpop.permute.xlu1 %655 }
 0x191   : > { %v661_v23 = vsel %vm534_vm1, %v656_v20, 0 }
 0x194   : > { %v777_v25 = vpop.permute.xlu1 %776 }
 0x195   : > { %v782_v28 = vsel %vm534_vm1, %v777_v25, 0 }
 0x198   : > { %v775_v27 = vpop.permute.xlu1 %774 }
 0x19c   : > { %v898_v29 = vpop.permute.xlu1 %897 }
 0x19d   : > { %v903_v30 = vsel %vm534_vm1, %v898_v29, 0 }
 0x1a0   : > { %v896_v31 = vpop.permute.xlu1 %895 }
 0x1a4   : > { %v724_v32 = vpop.permute.xlu1 %723 }
 0x1a5   : > { %1484 = vmatpush3.bf16.msra.mxu0 %v724_v32 }
 0x1a6   : > { %1495 = vmatprep.subr.bf16.mxu0 %v2056_v0 }
 0x1f4   : > { %v575_v5 = vpop.f32.mrb[0].mxu0 }
 0x1f5   : > { %v576_v6 = vadd.f32 %v2510_v4, %v575_v5  ;;  %v1469_v7 = vpop.f32.mrb[1].mxu0 }
 0x1f6   : > { %v578_v8 = vpop.f32.mrb[2].mxu0 }
 0x1f7   : > { %v579_v9 = vadd.f32 %v2510_v4, %v578_v8  ;;  %v1470_v10 = vpop.f32.mrb[3].mxu0  ;;  %v583_v11 = vsel %vm582_vm2, %v576_v6, -inf }
 0x1f8   : > { %584 = vmax.xlane.f32.xlu0 %v583_v11 }
 0x1f9   : > { %v586_v12 = vsel %vm582_vm2, %v579_v9, -inf }
 0x1fc   : > { %587 = vmax.xlane.f32.xlu0 %v586_v12 }
 0x212   : > { %653 = vrot.lane.b32.xlu0 %v1671_v3, %s2059_s30 }
 0x285   : > { %v585_v14 = vpop.xlane.xlu0 %584 }
 0x286   : > { %v589_v15 = vsub.f32 %v576_v6, %v585_v14 }
 0x288   : > { %v591_v16 = vmul.f32 1.442695, %v589_v15 }
 0x289   : > { %v588_v17 = vpop.xlane.xlu0 %587 }
 0x28a   : > { %v590_v18 = vsub.f32 %v579_v9, %v588_v17  ;;  %1674 = vpow2.f32 %v591_v16 }
 0x28c   : > { %v593_v19 = vmul.f32 1.442695, %v590_v18 }
 0x28d   : > { %v654_v26 = vpop.permute.xlu0 %653 }
 0x28e   : > { %1676 = vpow2.f32 %v593_v19 }
 0x294   : > { %v2518_v21 = vpop.eup %1674 }
 0x298   : > { %v2520_v22 = vpop.eup %1676 }
 0x299   : > { %v601_v24 = vpack.c.bf16 %v2520_v22, %v2518_v21 }
 0x29b   : > { %1474 = vmatmul.mubr.msk.bf16.vlgmr.msra.gmra.mrb[0].mxu1 %vm582_vm2, %v601_v24 }
 0x29c   : > { %1478 = vmatpush3.bf16.xpose.msra.mxu1 %v661_v23  ;;  %1479 = vmatprep.mubr.msk.bf16.mxu1 %vm2057_vm0, %v2056_v0 }
 0x29d   : > { %1489 = vmatprep.subr.bf16.mxu1 %v2056_v0 }
 0x2a3   : > { %1480 = vmatmul.mubr.msk.bf16.vlgmr.msra.gmra.mrb[4].mxu1 %vm534_vm1, %v654_v26 }
 0x2a4   : > { %1490 = vmatpush3.bf16.xpose.msra.mxu1 %v782_v28  ;;  %1491 = vmatprep.mubr.msk.bf16.mxu1 %vm2057_vm0, %v2056_v0 }
 0x2a5   : > { %1501 = vmatprep.subr.bf16.mxu1 %v2056_v0 }
 0x2ab   : > { %1492 = vmatmul.mubr.msk.bf16.vlgmr.msra.gmra.mrb[8].mxu1 %vm534_vm1, %v775_v27 }
 0x2ac   : > { %1502 = vmatpush3.bf16.xpose.msra.mxu1 %v903_v30  ;;  %1503 = vmatprep.mubr.msk.bf16.mxu1 %vm2057_vm0, %v2056_v0 }
 0x2ad   : > { %1513 = vmatprep.subr.bf16.mxu1 %v2056_v0 }
 0x2b3   : > { %1504 = vmatmul.mubr.msk.bf16.vlgmr.msra.gmra.mrb[12].mxu1 %vm534_vm1, %v896_v31 }
 0x2b4   : > { %1517 = vmatprep.mubr.msk.bf16.mxu1 %vm2057_vm0, %v2056_v0 }
 0x36e   : > { %v2543_v33 = vpop.f32.mrb[0].mxu1 }
 0x36f   : > { %v1475_v34 = vpop.f32.mrb[1].mxu1 }
 0x370   : > { %v2545_v35 = vpop.f32.mrb[2].mxu1 }
 0x371   : > { %v1476_v36 = vpop.f32.mrb[3].mxu1 }
 0x376   : > { %v697_v37 = vpop.f32.mrb[4].mxu1 }
 0x377   : > { %v698_v38 = vadd.f32 %v2510_v4, %v697_v37  ;;  %v1481_v39 = vpop.f32.mrb[5].mxu1  ;;  %v595_v37 = vsel %vm582_vm2, %v2518_v21, 0.0 }
 0x378   : > { %v700_v40 = vpop.f32.mrb[6].mxu1 }
 0x379   : > { %v701_v41 = vadd.f32 %v2510_v4, %v700_v40  ;;  %v1482_v42 = vpop.f32.mrb[7].mxu1  ;;  %v704_v43 = vsel %vm582_vm2, %v698_v38, -inf }
 0x37a   : > { %705 = vmax.xlane.f32.xlu1 %v704_v43 }
 0x37b   : > { %v707_v44 = vsel %vm582_vm2, %v701_v41, -inf }
 0x37c   : > { %708 = vmax.xlane.f32.xlu0 %v707_v44 }
 0x37e   : > { %v818_v45 = vpop.f32.mrb[8].mxu1 }
 0x37f   : > { %v819_v46 = vadd.f32 %v2510_v4, %v818_v45  ;;  %v1493_v47 = vpop.f32.mrb[9].mxu1 }
 0x380   : > { %v821_v48 = vpop.f32.mrb[10].mxu1 }
 0x381   : > { %v822_v49 = vadd.f32 %v2510_v4, %v821_v48  ;;  %v1494_v50 = vpop.f32.mrb[11].mxu1  ;;  %v825_v51 = vsel %vm582_vm2, %v819_v46, -inf }
 0x382   : > { %826 = vmax.xlane.f32.xlu1 %v825_v51  ;;  %v1672_v51 = vld [vmem:[#allocation10] sm:$0xff]  }
 0x383   : > { %v828_v52 = vsel %vm582_vm2, %v822_v49, -inf  ;;  %1514 = vmatpush3.bf16.msra.mxu1 %v1672_v51 }
 0x384   : > { %829 = vmax.xlane.f32.xlu0 %v828_v52  ;;  %1515 = vmatprep.subr.bf16.mxu1 %v2056_v0 }
 0x386   : > { %v939_v53 = vpop.f32.mrb[12].mxu1 }
 0x387   : > { %v940_v54 = vadd.f32 %v2510_v4, %v939_v53  ;;  %v1505_v55 = vpop.f32.mrb[13].mxu1 }
 0x388   : > { %v942_v56 = vpop.f32.mrb[14].mxu1 }
 0x389   : > { %v943_v57 = vadd.f32 %v2510_v4, %v942_v56  ;;  %v1506_v58 = vpop.f32.mrb[15].mxu1  ;;  %v946_v59 = vsel %vm582_vm2, %v940_v54, -inf }
 0x38a   : > { %947 = vmax.xlane.f32.xlu1 %v946_v59  ;;  %v1673_v58 = vld [vmem:[#allocation10 + $0x8] sm:$0xff]  }
 0x38b   : > { %v949_v60 = vsel %vm582_vm2, %v943_v57, -inf  ;;  %1516 = vmatpush3.bf16.msra.mxu1 %v1673_v58 }
 0x38c   : > { %950 = vmax.xlane.f32.xlu0 %v949_v60 }
 0x39b   : > { %965 = vrot.lane.b32.xlu1 %v2496_v1, %s2063_s19 }
 0x3a2   : > { %844 = vrot.lane.b32.xlu0 %v2496_v1, %s2064_s1 }
 0x407   : > { %v706_v61 = vpop.xlane.xlu1 %705 }
 0x408   : > { %v710_v62 = vsub.f32 %v698_v38, %v706_v61  ;;  %v598_v38 = vsel %vm582_vm2, %v2520_v22, 0.0 }
 0x409   : > { %v709_v63 = vpop.xlane.xlu0 %708 }
 0x40a   : > { %v712_v2 = vmul.f32 1.442695, %v710_v62  ;;  %v711_v3 = vsub.f32 %v701_v41, %v709_v63 }
 0x40c   : > { %1678 = vpow2.f32 %v712_v2  ;;  %v714_v4 = vmul.f32 1.442695, %v711_v3 }
 0x40e   : > { %1680 = vpow2.f32 %v714_v4 }
 0x40f   : > { %v827_v5 = vpop.xlane.xlu1 %826 }
 0x410   : > { %v831_v6 = vsub.f32 %v819_v46, %v827_v5 }
 0x411   : > { %v830_v7 = vpop.xlane.xlu0 %829 }
 0x412   : > { %v833_v8 = vmul.f32 1.442695, %v831_v6  ;;  %v832_v9 = vsub.f32 %v822_v49, %v830_v7 }
 0x414   : > { %1682 = vpow2.f32 %v833_v8  ;;  %v835_v10 = vmul.f32 1.442695, %v832_v9 }
 0x416   : > { %v1679_v11 = vpop.eup %1678  ;;  %1684 = vpow2.f32 %v835_v10 }
 0x417   : > { %v948_v12 = vpop.xlane.xlu1 %947  ;;  %v716_v1 = vsel %vm582_vm2, %v1679_v11, 0.0 }
 0x418   : > { %v1681_v13 = vpop.eup %1680  ;;  %v952_v14 = vsub.f32 %v940_v54, %v948_v12  ;;  %717 = vadd.xlane.f32.xlu1 %v716_v1 }
 0x419   : > { %v951_v15 = vpop.xlane.xlu0 %950  ;;  %v719_v16 = vsel %vm582_vm2, %v1681_v13, 0.0  ;;  %v722_v17 = vpack.c.bf16 %v1681_v13, %v1679_v11 }
 0x41a   : > { %v954_v18 = vmul.f32 1.442695, %v952_v14  ;;  %v953_v19 = vsub.f32 %v943_v57, %v951_v15  ;;  %720 = vadd.xlane.f32.xlu0 %v719_v16 }
 0x41b   : > { %1486 = vmatmul.mubr.msk.bf16.vlgmr.msra.gmra.mrb[4].mxu0 %vm582_vm2, %v722_v17  ;;  %v966_v29 = vpop.permute.xlu1 %965 }
 0x41c   : > { %1686 = vpow2.f32 %v954_v18  ;;  %v956_v20 = vmul.f32 1.442695, %v953_v19  ;;  %1497 = vmatprep.mubr.msk.bf16.mxu0 %vm2057_vm0, %v2056_v0 }
 0x41d   : > { %v845_v23 = vpop.permute.xlu0 %844 }
 0x41e   : > { %v1683_v24 = vpop.eup %1682  ;;  %1688 = vpow2.f32 %v956_v20  ;;  %1496 = vmatpush3.bf16.msra.mxu0 %v845_v23 }
 0x41f   : > { %v837_v25 = vsel %vm582_vm2, %v1683_v24, 0.0  ;;  %1507 = vmatprep.subr.bf16.mxu0 %v2056_v0 }
 0x420   : > { %v1685_v26 = vpop.eup %1684  ;;  %838 = vadd.xlane.f32.xlu0 %v837_v25 }
 0x421   : > { %v840_v27 = vsel %vm582_vm2, %v1685_v26, 0.0  ;;  %v843_v28 = vpack.c.bf16 %v1685_v26, %v1683_v24 }
 0x422   : > { %841 = vadd.xlane.f32.xlu1 %v840_v27 }
 0x423   : > { %1498 = vmatmul.mubr.msk.bf16.vlgmr.msra.gmra.mrb[8].mxu0 %vm582_vm2, %v843_v28 }
 0x424   : > { %1508 = vmatpush3.bf16.msra.mxu0 %v966_v29  ;;  %1509 = vmatprep.mubr.msk.bf16.mxu0 %vm2057_vm0, %v2056_v0 }
 0x426   : > { %v1687_v30 = vpop.eup %1686 }
 0x427   : > { %v958_v31 = vsel %vm582_vm2, %v1687_v30, 0.0 }
 0x428   : > { %v1689_v32 = vpop.eup %1688  ;;  %959 = vadd.xlane.f32.xlu0 %v958_v31 }
 0x429   : > { %v961_v34 = vsel %vm582_vm2, %v1689_v32, 0.0  ;;  %v964_v36 = vpack.c.bf16 %v1689_v32, %v1687_v30 }
 0x42a   : > { %962 = vadd.xlane.f32.xlu1 %v961_v34 }
 0x42b   : > { %1510 = vmatmul.mubr.msk.bf16.vlgmr.msra.gmra.mrb[12].mxu0 %vm582_vm2, %v964_v36 }
 0x42c   : > { %596 = vadd.xlane.f32.xlu0 %v595_v37 }
 0x42e   : > { %599 = vadd.xlane.f32.xlu1 %v598_v38 }
 0x4a5   : > { %v718_v39 = vpop.xlane.xlu1 %717 }
 0x4a6   : > { %1690 = vrcp.f32 %v718_v39 }
 0x4a7   : > { %v721_v40 = vpop.xlane.xlu0 %720 }
 0x4a8   : > { %1692 = vrcp.f32 %v721_v40 }
 0x4ad   : > { %v839_v41 = vpop.xlane.xlu0 %838 }
 0x4ae   : > { %1694 = vrcp.f32 %v839_v41 }
 0x4af   : > { %v842_v42 = vpop.xlane.xlu1 %841 }
 0x4b0   : > { %1696 = vrcp.f32 %v842_v42  ;;  %v1691_v44 = vpop.eup %1690 }
 0x4b2   : > { %v1693_v46 = vpop.eup %1692 }
 0x4b5   : > { %v960_v50 = vpop.xlane.xlu0 %959 }
 0x4b6   : > { %1698 = vrcp.f32 %v960_v50 }
 0x4b7   : > { %v963_v22 = vpop.xlane.xlu1 %962 }
 0x4b8   : > { %1700 = vrcp.f32 %v963_v22  ;;  %v1695_v54 = vpop.eup %1694 }
 0x4b9   : > { %v597_v9 = vpop.xlane.xlu0 %596 }
 0x4ba   : > { %v1697_v56 = vpop.eup %1696  ;;  %1702 = vrcp.f32 %v597_v9 }
 0x4bb   : > { %v600_v10 = vpop.xlane.xlu1 %599 }
 0x4bc   : > { %1704 = vrcp.f32 %v600_v10 }
 0x4c0   : > { %v1699_v2 = vpop.eup %1698 }
 0x4c2   : > { %v1701_v4 = vpop.eup %1700 }
 0x4c4   : > { %v1703_v12 = vpop.eup %1702 }
 0x4c5   : > { %v651_v18 = vmul.f32 %v1703_v12, %v2543_v33  ;;  %v1443_v33 = vld [vmem:[%s446_s22] sm:$0xff]   ;;  %s1946_s22 = sshll.u32 %s2068_s27, 4  ;;  %s1947_s22 = int_to_ptr.vmem [resolvable:$false] %s1946_s22 }
 0x4c6   : > { %v1705_v13 = vpop.eup %1704  ;;  %v1444_v32 = vunpack.c.l.bf16 %v1443_v33  ;;  %v1445_v38 = vunpack.c.h.bf16 %v1443_v33  ;;  %s1948_s12 = scalar_lea.vmem %s1947_s22, 256  ;;  %p1949_p5 = scmp.lt.s32.totalorder %s2600_s0, %s1947_s22 }
 0x4c7   : > { %v652_v19 = vmul.f32 %v1705_v13, %v2545_v35  ;;  %v1423_v35 = vld [vmem:[#allocation11] ss:$0 sm:$0xff]  ;;  %p1950_p7 = scmp.lt.s32.totalorder %s1948_s12, %s1942_s4 }
 0x4c9   : > { %p1951_p6 = por %p1950_p7, %p1949_p5 }
 0x4cb   : > { %p1952_p10 = pnand %p1951_p6, %p1945_p9 }
 0x4ee   : > { %v763_v43 = vpop.f32.mrb[4].mxu0 }
 0x4ef   : > { %v1487_v45 = vpop.f32.mrb[5].mxu0  ;;  %v772_v48 = vmul.f32 %v1691_v44, %v763_v43 }
 0x4f0   : > { %v766_v47 = vpop.f32.mrb[6].mxu0 }
 0x4f1   : > { %v773_v21 = vmul.f32 %v1693_v46, %v766_v47  ;;  %v1488_v49 = vpop.f32.mrb[7].mxu0 }
 0x4f3   : > { %v1655_v52 = vpack.i.bf16 %v773_v21, %v772_v48 }
 0x4f5   : > { %1656 = vrot.lane.b32.xlu0 %v1655_v52, %s2065_s26 }
 0x4f6   : > { %v884_v53 = vpop.f32.mrb[8].mxu0 }
 0x4f7   : > { %v1499_v55 = vpop.f32.mrb[9].mxu0  ;;  %v893_v59 = vmul.f32 %v1695_v54, %v884_v53 }
 0x4f8   : > { %v887_v57 = vpop.f32.mrb[10].mxu0 }
 0x4f9   : > { %v894_v60 = vmul.f32 %v1697_v56, %v887_v57  ;;  %v1500_v61 = vpop.f32.mrb[11].mxu0 }
 0x4fa   : > { %v1427_v61 = vld [vmem:[#allocation13] ss:$0 sm:$0xff] }
 0x4fb   : > { %v1660_v62 = vpack.i.bf16 %v894_v60, %v893_v59 }
 0x4fd   : > { %1661 = vrot.lane.b32.xlu1 %v1660_v62, %s2066_s16 }
 0x4fe   : > { %v1005_v63 = vpop.f32.mrb[12].mxu0 }
 0x4ff   : > { %v1511_v3 = vpop.f32.mrb[13].mxu0  ;;  %v1014_v0 = vmul.f32 %v1699_v2, %v1005_v63  ;;  %v1428_v63 = vld [vmem:[#allocation14] ss:$0 sm:$0xff] }
 0x500   : > { %v1008_v5 = vpop.f32.mrb[14].mxu0 }
 0x501   : > { %v1015_v6 = vmul.f32 %v1701_v4, %v1008_v5  ;;  %v1512_v7 = vpop.f32.mrb[15].mxu0 }
 0x503   : > { %v1665_v8 = vpack.i.bf16 %v1015_v6, %v1014_v0 }
 0x505   : > { %1666 = vrot.lane.b32.xlu1 %v1665_v8, %s2067_s13 }
 0x567   : > { %v1657_v11 = vpop.permute.xlu0 %1656 }
 0x568   : > { %v1659_v14 = vunpack.i.h.bf16 %v1657_v11  ;;  %v1658_v15 = vunpack.i.l.bf16 %v1657_v11 }
 0x56a   : > { %v1041_v23 = vsel %vm534_vm1, %v652_v19, %v1659_v14  ;;  %v1040_v24 = vsel %vm534_vm1, %v651_v18, %v1658_v15 }
 0x56f   : > { %v1662_v1 = vpop.permute.xlu1 %1661 }
 0x570   : > { %v1664_v16 = vunpack.i.h.bf16 %v1662_v1  ;;  %v1663_v17 = vunpack.i.l.bf16 %v1662_v1 }
 0x572   : > { %v1043_v27 = vsel %vm582_vm2, %v1041_v23, %v1664_v16  ;;  %v1042_v28 = vsel %vm582_vm2, %v1040_v24, %v1663_v17 }
 0x577   : > { %v1667_v20 = vpop.permute.xlu1 %1666 }
 0x578   : > { %v1669_v25 = vunpack.i.h.bf16 %v1667_v20  ;;  %v1668_v26 = vunpack.i.l.bf16 %v1667_v20 }
 0x57a   : > { %v1046_v29 = vsel %vm1044_vm3, %v1043_v27, %v1669_v25  ;;  %v1045_v30 = vsel %vm1044_vm3, %v1042_v28, %v1668_v26 }
 0x57b   : > { %v1047_v31 = vpack.c.bf16 %v1046_v29, %v1045_v30 }
 0x57d   : > { %1518 = vmatmul.mubr.msk.bf16.vlgmr.msra.gmra.mrb[16].mxu1 %vm1071_vm4, %v1047_v31 }
 0x650   : > { %v1109_v34 = vpop.f32.mrb[16].mxu1 }
 0x651   : > { %v1110_v36 = vadd.f32 %v1423_v35, %v1109_v34  ;;  %v1519_v37 = vpop.f32.mrb[17].mxu1 }
 0x652   : > { %v1112_v39 = vpop.f32.mrb[18].mxu1 }
 0x653   : > { %v1113_v40 = vadd.f32 %v1423_v35, %v1112_v39  ;;  %v1520_v41 = vpop.f32.mrb[19].mxu1  ;;  %v1120_v42 = vadd.f32 %v1444_v32, %v1110_v36 }
 0x655   : > { %v1124_v43 = vsel %vm1071_vm4, %v1120_v42, 0.0  ;;  %v1121_v44 = vadd.f32 %v1445_v38, %v1113_v40 }
 0x656   : > { %1125 = vadd.xlane.f32.xlu0 %v1124_v43 }
 0x657   : > { %v1127_v45 = vsel %vm1071_vm4, %v1121_v44, 0.0 }
 0x658   : > { %1128 = vadd.xlane.f32.xlu1 %v1127_v45 }
 0x6e3   : > { %v1126_v46 = vpop.xlane.xlu0 %1125 }
 0x6e4   : > { %v1131_v47 = vmul.f32 0.03125, %v1126_v46 }
 0x6e5   : > { %v1129_v48 = vpop.xlane.xlu1 %1128 }
 0x6e6   : > { %v1133_v21 = vsub.f32 %v1120_v42, %v1131_v47  ;;  %v1132_v49 = vmul.f32 0.03125, %v1129_v48 }
 0x6e8   : > { %v1134_v50 = vsub.f32 %v1121_v44, %v1132_v49  ;;  %v1135_v51 = vmul.f32 %v1133_v21, %v1133_v21 }
 0x6ea   : > { %v1137_v22 = vsel %vm1071_vm4, %v1135_v51, 0.0  ;;  %v1136_v52 = vmul.f32 %v1134_v50, %v1134_v50 }
 0x6eb   : > { %1138 = vadd.xlane.f32.xlu0 %v1137_v22 }
 0x6ec   : > { %v1140_v53 = vsel %vm1071_vm4, %v1136_v52, 0.0 }
 0x6ef   : > { %1141 = vadd.xlane.f32.xlu0 %v1140_v53 }
 0x778   : > { %v1139_v54 = vpop.xlane.xlu0 %1138 }
 0x779   : > { %v1143_v55 = vmul.f32 0.03125, %v1139_v54 }
 0x77b   : > { %v1145_v56 = vadd.f32 1e-05, %v1143_v55 }
 0x77c   : > { %v1142_v57 = vpop.xlane.xlu0 %1141 }
 0x77d   : > { %1706 = vrsqrt.f32 %v1145_v56  ;;  %v1144_v58 = vmul.f32 0.03125, %v1142_v57 }
 0x77f   : > { %v1146_v59 = vadd.f32 1e-05, %v1144_v58 }
 0x781   : > { %1708 = vrsqrt.f32 %v1146_v59 }
 0x787   : > { %v1707_v60 = vpop.eup %1706 }
 0x788   : > { %v1149_v62 = vmul.f32 %v1707_v60, %v1133_v21 }
 0x78a   : > { %v1157_v2 = vmul.f32 %v1427_v61, %v1149_v62 }
 0x78b   : > { %v1709_v3 = vpop.eup %1708 }
 0x78c   : > { %v1165_v4 = vadd.f32 %v1428_v63, %v1157_v2  ;;  %v1150_v5 = vmul.f32 %v1709_v3, %v1134_v50 }
 0x78e   : > { %v1439_v0 = vpack.c.bf16 %v1165_v4, %v1165_v4  ;;  %v1158_v6 = vmul.f32 %v1427_v61, %v1150_v5 }
 0x790   : > { %v1166_v7 = vadd.f32 %v1428_v63, %v1158_v6  ;;  %1176 = vst.msk [vmem:[%s508_s17] sm:$0xf] %vm1175_vm5, %v1439_v0 }
 0x792   : > { %v1440_v8 = vpack.c.bf16 %v1166_v7, %v1166_v7 }
 0x794   : > { %1177 = vst.msk [vmem:[%s508_s17 + $0x4] sm:$0xf] %vm1175_vm5, %v1440_v8 }
 0x795   : > { %1955 = shalt.err (!%p1952_p10)
}
 0x796   : > { %s1956_s30 = scalar_lea.hbm %s2598_s8, 128  ;;  %s1960_s25 = scalar_lea.hbm %s2730_s14, 256 }
 0x797   : > { %p1957_p2 = scmp.ne.s32.totalorder %s2598_s8, %s1956_s30  ;;  %p1961_p13 = scmp.lt.u32.totalorder %s2598_s8, %s2730_s14 }
 0x798   : > { %p1962_p4 = scmp.lt.u32.totalorder %s1960_s25, %s1956_s30  ;;  %p1964_p3 = scmp.lt.u32.totalorder %s1956_s30, %s2598_s8 }
 0x799   : > { %p1958_p11 = pnand %p1957_p2, %p2731_p0 }
 0x79a   : > { %p1963_p1 = por %p1962_p4, %p1961_p13 }
 0x79b   : > { %p1959_p8 = pneg %p1958_p11 }
 0x79c   : > { %p1965_p12 = por %p1964_p3, %p1963_p1 }
 0x79e   : > { %p1966_p9 = pnand %p1965_p12, %p1959_p8 }
 0x7a0   : > { %1969 = shalt.err (!%p1966_p9)
}
 0x7a1   : > { %s2069_s26 = smov 64   ;;  %s2070_s16 = smov 4  }
 0x7a2   : > { %1545 = dma.vmem_to_hbm [thread:$0]  (%p2731_p0), %s2600_s0, 128, %s2598_s8, %s1179_s29, %s2069_s26, %s2069_s26, %s2070_s16  }
 0x7a3 PF: > { %s2732_s13 = sld [smem:[#allocation24_spill]]  ;;  %s2733_s20 = sld [smem:[#allocation29_spill]] }
 0x7a4   : > { %p2735_p7 = scmp.ge.s32.totalorder %s2044_s10, 2 }
 0x7a9   : > { %s1209_s24 = sand.u32 1, %s2732_s13   ;;  %p2734_p5 = scmp.ne.s32.totalorder %s2733_s20, 0 }
 0x7aa   : > { %s1210_s17 = scalar_lea.sflag [#allocation4], %s1209_s24 }
 0x7ab   : > { %p1574_p6 = pnand %p2735_p7, %p2734_p5 }
 0x7ad   : > { %2019 = dma.done.wait (!%p1574_p6), %s1210_s17, 128  }
 0x7ae   : > { %2021 = vsyncadd (!%p1574_p6), %s1210_s17, 4294967168  ;;  %s32_s10 = sadd.s32 1, %s2044_s10   ;;  %s2736_s23 = sld [smem:[#allocation25_spill]] }
 0x7af   : > { %p29_p10 = scmp.ge.s32.totalorder %s32_s10, 4   ;;  %s2737_s29 = sld [smem:[#allocation32_spill]] }
 0x7b0   : > { %s2738_s18 = sld [smem:[#allocation30_spill]]  ;;  %s2739_s27 = smov %s2028_s28 }
 0x7b1   : > { %s2741_s30 = smov %s2040_s9  ;;  %31 = sbr.rel (!%p29_p10) target bundleno = 18 (0x12), region = 150 }
 0x7b4   : > { %s2740_s28 = smov %s2736_s23 }
 0x7b6   : > { %s2742_s9 = smov %s2738_s18 }
 0x7b8   :  { %1215 = vsyncpa [#allocation3], 1 }
 0x7b9   :  { %1217 = vsyncpa [#allocation3 + $0x1], 1 }
 0x7ba   :  { %1218 = vsyncpa [#allocation6], 1 }
 0x7bb   :  { %1220 = vsyncpa [#allocation6 + $0x1], 1 }
 0x7bc   :  { %1221 = vsyncpa [#allocation9], 1 }
 0x7bd   :  { %1223 = vsyncpa [#allocation9 + $0x1], 1 }
 0x7be   :  { %1224 = vsyncpa [#allocation12], 1 }
 0x7bf   :  { %1225 = vsyncpa [#allocation15], 1 }
 0x7c0   :  { %1226 = vsyncpa [#allocation4], 1 }
 0x7c1   :  { %1228 = vsyncpa [#allocation4 + $0x1], 1 }

// kernel: transformer_forward.25
= control target key start
LH: loop header
LB: loop body
LE: loop exit
PB: predicated region body
PF: predicated region fallthrough
CT: control target
= control target key end

     0   :  { %10 = vsyncpa [#allocation3], 0  ;;  %s1206_s0 = inlined_call_operand.hbm [shape: bf16[18,32], index: 0, kind: input, shape index: {}]   ;;  %s1207_s1 = inlined_call_operand.hbm [shape: bf16[32,96], index: 1, kind: input, shape index: {}]   ;;  %s1208_s2 = inlined_call_operand.hbm [shape: f32[1,96], index: 2, kind: input, shape index: {}]   ;;  %s1209_s3 = inlined_call_operand.hbm [shape: bf16[18,32], index: 3, kind: output, shape index: {0}]   ;;  %s1210_s4 = inlined_call_operand.hbm [shape: bf16[18,64], index: 4, kind: output, shape index: {1}]  }
   0x1   :  { %12 = vsyncpa [#allocation3 + $0x1], 0 }
   0x2   :  { %13 = vsyncpa [#allocation6], 0 }
   0x3   :  { %14 = vsyncpa [#allocation4], 0 }
   0x4   :  { %16 = vsyncpa [#allocation4 + $0x1], 0 }
   0x5   :  { %17 = vsyncpa [#allocation10], 0 }
   0x6   :  { %19 = vsyncpa [#allocation10 + $0x1], 0  ;;  %s906_s15 = smov 0   ;;  %s908_s16 = smov 0  }
   0x7   :  { %s910_s17 = smov 0   ;;  %s912_s18 = smov 0  }
   0x8 LB: > { %s927_s19 = sadd.s32 4294967295, %s863_s18   ;;  %s542_s20 = sadd.s32 4294967294, %s863_s18   ;;  %s863_s18 = sphi %s912_s18, %s1231_s18   ;;  %s859_s17 = sphi %s910_s17, %s1230_s17   ;;  %s855_s16 = sphi %s908_s16, %s1229_s16   ;;  %s851_s15 = sphi %s906_s15, %s1228_s15  }
   0x9   : > { %s931_s21 = sadd.s32 1, %s863_s18   ;;  %s32_s22 = sadd.s32 1, %s859_s17 }
   0xa   : > { %s29_s23 = ssub.s32 %s863_s18, %s931_s21  ;;  %p39_p0 = scmp.ne.s32.totalorder %s859_s17, %s855_s16 }
   0xb   : > { %p30_p1 = scmp.eq.s32.totalorder %s29_s23, 0  ;;  %p40_p2 = scmp.eq.s32.totalorder %s863_s18, 0 }
   0xc   : > { %p45_p3 = scmp.ne.s32.totalorder %s855_s16, %s851_s15  ;;  %p1211_p4 = scmp.eq.s32.totalorder %s927_s19, 0 }
   0xd   : > { %s943_s24 = scalar_select %p30_p1, %s859_s17, %s32_s22  }
   0xe   : > { %p945_p5 = por %p40_p2, %p39_p0  ;;  %p951_p6 = por %p1211_p4, %p45_p3 }
   0xf   : > { %p111_p7 = scmp.eq.s32.totalorder %s927_s19, 1  ;;  %p117_p8 = scmp.eq.s32.totalorder %s542_s20, 1 }
  0x10   : > { %s1214_s25 = scalar_select %p945_p5, 1, 0 }
  0x11   : > { %s1215_s26 = scalar_select %p951_p6, 1, 0 }
  0x12   : > { %p543_p9 = scmp.ge.s32.totalorder %s863_s18, 1  ;;  %p150_p10 = scmp.lt.s32.totalorder %s863_s18, 3 }
  0x13   : > { %p958_p11 = por %p111_p7, %p39_p0  ;;  %p962_p12 = por %p117_p8, %p45_p3 }
  0x14   : > { %p966_p13 = pnand %p543_p9, %p150_p10  ;;  %s865_s30 = smov [#allocation5]  }
  0x15   : > { %s1216_s27 = scalar_select %p958_p11, 1, 0 }
  0x16   : > { %s1217_s28 = scalar_select %p962_p12, 1, 0 }
  0x17   : > { %s1218_s29 = scalar_select %p966_p13, 1, 0 }
  0x18   : > { %p610_p1 = pneg %p966_p13  ;;  %s162_s5 = sshll.u32 %s865_s30, 4  ;;  %s163_s5 = int_to_ptr.vmem [resolvable:$true] %s162_s5 }
  0x19   : > { %s866_s7 = smov [#allocation7]   ;;  %s677_s11 = scalar_lea.hbm %s1207_s1, 256 }
  0x1a   : > { %p974_p2 = pnand %p610_p1, %p1211_p4  ;;  %s176_s8 = sshll.u32 %s866_s7, 4  ;;  %s978_s8 = int_to_ptr.vmem [resolvable:$true] %s176_s8 }
  0x1b   : > { %p678_p0 = scmp.ne.s32.totalorder %s1207_s1, %s677_s11  ;;  %p684_p9 = scmp.lt.u32.totalorder %s677_s11, %s1207_s1 }
  0x1c   : > { %p679_p3 = pneg %p974_p2 }
  0x1e   : > { %p680_p7 = pnand %p679_p3, %p678_p0 }
  0x20   : > { %p681_p8 = pneg %p680_p7 }
  0x22   : > { %p686_p10 = pnand %p684_p9, %p681_p8 }
  0x24   : > { %689 = shalt.err (!%p686_p10)
}
  0x25   : > { %s690_s22 = scalar_lea.vmem %s163_s5, 256  ;;  %p698_p11 = scmp.lt.s32.totalorder %s163_s5, %s163_s5 }
  0x26   : > { %p691_p1 = scmp.ne.s32.totalorder %s163_s5, %s690_s22  ;;  %p699_p6 = scmp.lt.s32.totalorder %s690_s22, %s690_s22 }
  0x28   : > { %p693_p4 = pnand %p691_p1, %p679_p3  ;;  %p700_p13 = por %p699_p6, %p698_p11 }
  0x2a   : > { %p694_p12 = pneg %p693_p4 }
  0x2c   : > { %p701_p5 = pnand %p700_p13, %p694_p12 }
  0x2e   : > { %704 = shalt.err (!%p701_p5)
}
  0x2f   : > { %s867_s23 = smov 64   ;;  %s868_s30 = smov 4  }
  0x30   : > { %613 = dma.hbm_to_vmem [thread:$0]  (!%p974_p2), %s1207_s1, 256, %s163_s5, [#allocation6], %s867_s23, %s867_s23, %s868_s30  }
  0x31   : > { %s705_s12 = scalar_lea.hbm %s1208_s2, 16 }
  0x32   : > { %p706_p4 = scmp.ne.s32.totalorder %s1208_s2, %s705_s12  ;;  %p712_p11 = scmp.lt.u32.totalorder %s705_s12, %s1208_s2 }
  0x34   : > { %p708_p5 = pnand %p706_p4, %p679_p3 }
  0x36   : > { %p709_p6 = pneg %p708_p5 }
  0x38   : > { %p714_p12 = pnand %p712_p11, %p709_p6 }
  0x3a   : > { %717 = shalt.err (!%p714_p12)
}
  0x3b   : > { %s718_s5 = scalar_lea.vmem %s978_s8, 16  ;;  %s725_s23 = scalar_lea.vmem %s978_s8, 32 }
  0x3c   : > { %p719_p13 = scmp.ne.s32.totalorder %s978_s8, %s718_s5  ;;  %p726_p8 = scmp.lt.s32.totalorder %s978_s8, %s978_s8 }
  0x3d   : > { %p727_p9 = scmp.lt.s32.totalorder %s725_s23, %s718_s5 }
  0x3e   : > { %p721_p0 = pnand %p719_p13, %p679_p3 }
  0x3f   : > { %p728_p10 = por %p727_p9, %p726_p8 }
  0x40   : > { %p722_p7 = pneg %p721_p0 }
  0x42   : > { %p729_p1 = pnand %p728_p10, %p722_p7 }
  0x44   : > { %732 = shalt.err (!%p729_p1)
}
  0x45   : > { %616 = dma.hbm_to_vmem [thread:$0]  (!%p974_p2), %s1208_s2, 16, %s978_s8, [#allocation6]  }
  0x46   : > { %p546_p4 = scmp.ge.s32.totalorder %s863_s18, 2 }
  0x47   : > { %p1220_p3 = scmp.ne.s32.totalorder (!%p546_p4), %s1214_s25, 0 }
  0x48   : > { %183 = sbr.rel (%p546_p4) target bundleno = 114 (0x72), region = 24 }
  0x4f   : > { %186 = sbr.rel (!%p1220_p3) target bundleno = 114 (0x72), region = 28  ;;  %s187_s9 = sand.u32 (%p1220_p3), 1, %s859_s17  }
  0x50   : > { %s548_s10 = sshll.u32 (%p1220_p3), %s863_s18, 1  ;;  %s547_s11 = sshll.u32 (%p1220_p3), %s187_s9, 3 }
  0x51   : > { %s193_s12 = ssub.s32 (%p1220_p3), 3, %s548_s10  ;;  %s1038_s13 = scalar_lea.sflag (%p1220_p3), [#allocation3], %s187_s9 }
  0x52   : > { %p194_p5 = scmp.lt.s32.totalorder (%p1220_p3), %s193_s12, 2  ;;  %s191_s14 = scalar_lea.vmem (%p1220_p3), [#allocation2], %s547_s11 }
  0x56   : > { %s1233_s12 = smov (!%p194_p5, %s193_s12), 2 }
  0x57   : > { %s1035_s6 = sshll.u32 %s1233_s12, 6 }
  0x58   : > { %s198_s8 = ssub.s32 128, %s1035_s6 }
  0x59   : > { %199 = vsyncadd %s1038_s13, %s198_s8  ;;  %p550_p2 = scmp.ne.s32.totalorder %s1035_s6, 0  ;;  %s583_s25 = sshll.u32 %s863_s18, 7 }
  0x5a   : > { %s1046_s5 = scalar_lea.hbm %s1206_s0, %s583_s25  ;;  %s204_s23 = sshll.u32 %s191_s14, 4  ;;  %s1048_s23 = int_to_ptr.vmem [resolvable:$true] %s204_s23 }
  0x5b   : > { %s733_s30 = scalar_lea.hbm %s1046_s5, %s1035_s6  ;;  %s737_s10 = scalar_lea.hbm %s1206_s0, 192 }
  0x5c   : > { %p734_p6 = scmp.ne.s32.totalorder %s1046_s5, %s733_s30  ;;  %p738_p13 = scmp.lt.u32.totalorder %s1046_s5, %s1206_s0 }
  0x5d   : > { %p739_p0 = scmp.lt.u32.totalorder %s737_s10, %s733_s30  ;;  %p741_p8 = scmp.lt.u32.totalorder %s733_s30, %s1046_s5 }
  0x5e   : > { %p735_p11 = pnand %p734_p6, %p550_p2 }
  0x5f   : > { %p740_p7 = por %p739_p0, %p738_p13 }
  0x60   : > { %p736_p12 = pneg %p735_p11 }
  0x61   : > { %p742_p9 = por %p741_p8, %p740_p7 }
  0x63   : > { %p743_p10 = pnand %p742_p9, %p736_p12 }
  0x65   : > { %746 = shalt.err (!%p743_p10)
}
  0x66   : > { %s747_s8 = scalar_lea.vmem %s1048_s23, %s1035_s6  ;;  %s869_s14 = smov [#allocation2]  }
  0x67   : > { %p748_p1 = scmp.ne.s32.totalorder %s1048_s23, %s747_s8  ;;  %s751_s25 = sshll.u32 %s869_s14, 4  ;;  %s752_s25 = int_to_ptr.vmem [resolvable:$false] %s751_s25 }
  0x68   : > { %s753_s20 = scalar_lea.vmem %s752_s25, 256  ;;  %p754_p6 = scmp.lt.s32.totalorder %s1048_s23, %s752_s25 }
  0x69   : > { %p749_p3 = pnand %p748_p1, %p550_p2  ;;  %p755_p11 = scmp.lt.s32.totalorder %s753_s20, %s747_s8 }
  0x6b   : > { %p750_p5 = pneg %p749_p3  ;;  %p756_p13 = por %p755_p11, %p754_p6 }
  0x6d   : > { %p757_p0 = pnand %p756_p13, %p750_p5 }
  0x6f   : > { %760 = shalt.err (!%p757_p0)
}
  0x70   : > { %s870_s22 = smov 64   ;;  %s871_s30 = smov 4  }
  0x71   : > { %210 = dma.hbm_to_vmem [thread:$0]  (%p550_p2), %s1046_s5, %s1035_s6, %s1048_s23, %s1038_s13, %s870_s22, %s870_s22, %s871_s30  }
  0x72 PF: > { %p1221_p12 = scmp.ne.s32.totalorder %s1218_s29, 0 }
  0x73   : > { %s1078_s7 = sand.u32 (!%p1221_p12), 1, %s855_s16   ;;  %p1222_p7 = scmp.ne.s32.totalorder (!%p1221_p12), %s1215_s26, 0 }
  0x74   : > { %216 = sbr.rel (%p1221_p12) target bundleno = 537 (0x219), region = 32  ;;  %s1081_s9 = sshll.u32 (!%p1221_p12), %s1078_s7, 3 }
  0x75   : > { %s219_s10 = scalar_lea.sflag (!%p1221_p12), [#allocation3], %s1078_s7  ;;  %s222_s11 = scalar_lea.vmem (!%p1221_p12), [#allocation2], %s1081_s9 }
  0x7b   : > { %834 = dma.done.wait (%p1222_p7), %s219_s10, 128  }
  0x7c   : > { %836 = vsyncadd (%p1222_p7), %s219_s10, 4294967168  ;;  %p1223_p2 = scmp.eq.s32.totalorder %s927_s19, 0 }
  0x7e   : > { %838 = dma.done.wait (%p1223_p2), [#allocation6], 272   ;;  %p1224_p8 = pmov %p1223_p2 }
  0x7f   : > { %v872_v0 = vmov 0.0   ;;  %vm873_vm0 = vmmov 0   ;;  %v674_v1 = vld [vmem:[#allocation5] sm:$0xff]   ;;  %v675_v2 = vld [vmem:[#allocation5 + $0x8] sm:$0xff]   ;;  %v676_v3 = vld [vmem:[%s222_s11] sm:$0xff]   ;;  %vm306_vm1 = vcmask 261120  }
  0x80   : > { %840 = vsyncadd (%p1224_p8), [#allocation6], 4294967024  ;;  %591 = vmatprep.subr.bf16.mxu0 %v872_v0  ;;  %595 = vmatprep.mubr.msk.bf16.mxu0 %vm873_vm0, %v872_v0  ;;  %v560_v4 = vld [vmem:[#allocation7] ss:$0 sm:$0xff]  ;;  %vm359_vm2 = vcmask 257024   ;;  %s252_s26 = scalar_lea.vmem [#allocation8], %s1081_s9 }
  0x81   : > { %592 = vmatpush3.bf16.msra.mxu0 %v674_v1  ;;  %s874_s29 = smov 96   ;;  %vm368_vm3 = vcmask 519168   ;;  %s1095_s6 = scalar_lea.vmem [#allocation9], %s1081_s9 }
  0x82   : > { %593 = vmatprep.subr.bf16.mxu0 %v872_v0  ;;  %s372_s13 = scalar_lea.sflag [#allocation4], %s1078_s7  ;;  %s377_s5 = scalar_lea.sflag [#allocation10], %s1078_s7 }
  0x83   : > { %p1225_p9 = scmp.ne.s32.totalorder %s1216_s27, 0 }
  0x84   : > { %s569_s23 = sshll.u32 (%p1225_p9), %s927_s19, 1 }
  0x85   : > { %594 = vmatpush3.bf16.msra.mxu0 %v675_v2  ;;  %s385_s12 = ssub.s32 (%p1225_p9), 3, %s569_s23 }
  0x86   : > { %p386_p10 = scmp.lt.s32.totalorder (%p1225_p9), %s385_s12, 2 }
  0x88   : > { %596 = vmatmul.mubr.msk.bf16.vlgmr.msra.gmra.mrb[0].mxu0 %vm306_vm1, %v676_v3 }
 0x15b   : > { %v344_v5 = vpop.f32.mrb[0].mxu0 }
 0x15c   : > { %v345_v6 = vadd.f32 %v560_v4, %v344_v5  ;;  %v597_v7 = vpop.f32.mrb[1].mxu0 }
 0x15d   : > { %v347_v8 = vpop.f32.mrb[2].mxu0 }
 0x15e   : > { %v584_v9 = vpack.c.bf16 %v345_v6, %v345_v6  ;;  %v348_v10 = vadd.f32 %v560_v4, %v347_v8  ;;  %v598_v11 = vpop.f32.mrb[3].mxu0 }
 0x160   : > { %360 = vst.msk [vmem:[%s252_s26] sm:$0xf] %vm359_vm2, %v584_v9  ;;  %v585_v12 = vpack.c.bf16 %v348_v10, %v348_v10  ;;  %362 = vrot.lane.b32.xlu0 %v584_v9, %s874_s29 }
 0x162   : > { %361 = vst.msk [vmem:[%s252_s26 + $0x4] sm:$0xf] %vm359_vm2, %v585_v12 }
 0x164   : > { %364 = vrot.lane.b32.xlu0 %v585_v12, %s874_s29 }
 0x1d1   : > { %383 = sbr.rel (!%p1225_p9) target bundleno = 500 (0x1f4), region = 48 }
 0x1d2   : > { %v363_v13 = vpop.permute.xlu0 %362 }
 0x1d3   : > { %369 = vst.msk [vmem:[%s1095_s6] sm:$0xf] %vm368_vm3, %v363_v13 }
 0x1d6   : > { %v365_v14 = vpop.permute.xlu0 %364 }
 0x1d7   : > { %370 = vst.msk [vmem:[%s1095_s6 + $0x4] sm:$0xf] %vm368_vm3, %v365_v14 }
 0x1d8   : > { %s1235_s12 = smov (!%p386_p10, %s385_s12), 2 }
 0x1d9   : > { %s1104_s8 = sshll.u32 %s1235_s12, 6 }
 0x1da   : > { %s390_s14 = ssub.s32 128, %s1104_s8 }
 0x1db   : > { %391 = vsyncadd %s372_s13, %s390_s14  ;;  %p571_p1 = scmp.ne.s32.totalorder %s1104_s8, 0  ;;  %s586_s25 = sshll.u32 %s927_s19, 7 }
 0x1dc   : > { %s1114_s30 = scalar_lea.hbm %s1209_s3, %s586_s25  ;;  %s396_s9 = sshll.u32 %s252_s26, 4  ;;  %s1116_s9 = int_to_ptr.vmem [resolvable:$true] %s396_s9 }
 0x1dd   : > { %s761_s10 = scalar_lea.vmem %s1116_s9, %s1104_s8  ;;  %s875_s11 = smov [#allocation8]  }
 0x1de   : > { %p762_p3 = scmp.ne.s32.totalorder %s1116_s9, %s761_s10  ;;  %s765_s29 = sshll.u32 %s875_s11, 4  ;;  %s766_s29 = int_to_ptr.vmem [resolvable:$false] %s765_s29 }
 0x1df   : > { %s767_s23 = scalar_lea.vmem %s766_s29, 256  ;;  %p768_p11 = scmp.lt.s32.totalorder %s1116_s9, %s766_s29 }
 0x1e0   : > { %p763_p5 = pnand %p762_p3, %p571_p1  ;;  %p769_p13 = scmp.lt.s32.totalorder %s767_s23, %s761_s10 }
 0x1e2   : > { %p764_p6 = pneg %p763_p5  ;;  %p770_p0 = por %p769_p13, %p768_p11 }
 0x1e4   : > { %p771_p12 = pnand %p770_p0, %p764_p6 }
 0x1e6   : > { %774 = shalt.err (!%p771_p12)
}
 0x1e7   : > { %s775_s26 = scalar_lea.hbm %s1114_s30, %s1104_s8  ;;  %s779_s25 = scalar_lea.hbm %s1209_s3, 192 }
 0x1e8   : > { %p776_p7 = scmp.ne.s32.totalorder %s1114_s30, %s775_s26  ;;  %p780_p9 = scmp.lt.u32.totalorder %s1114_s30, %s1209_s3 }
 0x1e9   : > { %p781_p10 = scmp.lt.u32.totalorder %s779_s25, %s775_s26  ;;  %p783_p5 = scmp.lt.u32.totalorder %s775_s26, %s1114_s30 }
 0x1ea   : > { %p777_p2 = pnand %p776_p7, %p571_p1 }
 0x1eb   : > { %p782_p3 = por %p781_p10, %p780_p9 }
 0x1ec   : > { %p778_p8 = pneg %p777_p2 }
 0x1ed   : > { %p784_p6 = por %p783_p5, %p782_p3 }
 0x1ef   : > { %p785_p11 = pnand %p784_p6, %p778_p8 }
 0x1f1   : > { %788 = shalt.err (!%p785_p11)
}
 0x1f2   : > { %s876_s10 = smov 64   ;;  %s877_s11 = smov 4  }
 0x1f3   : > { %402 = dma.vmem_to_hbm [thread:$0]  (%p571_p1), %s1116_s9, %s1104_s8, %s1114_s30, %s372_s13, %s876_s10, %s876_s10, %s877_s11  }
 0x1f4 PF: > { %p1226_p13 = scmp.ne.s32.totalorder %s1216_s27, 0 }
 0x1f5   : > { %s575_s29 = sshll.u32 (%p1226_p13), %s927_s19, 1 }
 0x1f6   : > { %405 = sbr.rel (!%p1226_p13) target bundleno = 537 (0x219), region = 52  ;;  %s407_s23 = ssub.s32 (%p1226_p13), 3, %s575_s29 }
 0x1f7   : > { %p408_p0 = scmp.lt.s32.totalorder (%p1226_p13), %s407_s23, 2 }
 0x1fd   : > { %s1237_s23 = smov (!%p408_p0, %s407_s23), 2 }
 0x1fe   : > { %s1147_s26 = sshll.u32 %s1237_s23, 6 }
 0x1ff   : > { %s412_s12 = ssub.s32 128, %s1147_s26 }
 0x200   : > { %413 = vsyncadd %s377_s5, %s412_s12  ;;  %p577_p1 = scmp.ne.s32.totalorder %s1147_s26, 0  ;;  %s587_s27 = sshll.u32 %s927_s19, 7 }
 0x201   : > { %s1157_s30 = scalar_lea.hbm %s1210_s4, %s587_s27  ;;  %s418_s9 = sshll.u32 %s1095_s6, 4  ;;  %s1160_s9 = int_to_ptr.vmem [resolvable:$true] %s418_s9 }
 0x202   : > { %s789_s14 = scalar_lea.vmem %s1160_s9, %s1147_s26  ;;  %s878_s25 = smov [#allocation9]  }
 0x203   : > { %p790_p12 = scmp.ne.s32.totalorder %s1160_s9, %s789_s14  ;;  %s793_s20 = sshll.u32 %s878_s25, 4  ;;  %s794_s20 = int_to_ptr.vmem [resolvable:$false] %s793_s20 }
 0x204   : > { %s795_s19 = scalar_lea.vmem %s794_s20, 256  ;;  %p796_p8 = scmp.lt.s32.totalorder %s1160_s9, %s794_s20 }
 0x205   : > { %p791_p7 = pnand %p790_p12, %p577_p1  ;;  %p797_p9 = scmp.lt.s32.totalorder %s795_s19, %s789_s14 }
 0x207   : > { %p792_p2 = pneg %p791_p7  ;;  %p798_p10 = por %p797_p9, %p796_p8 }
 0x209   : > { %p799_p3 = pnand %p798_p10, %p792_p2 }
 0x20b   : > { %802 = shalt.err (!%p799_p3)
}
 0x20c   : > { %s803_s6 = scalar_lea.hbm %s1157_s30, %s1147_s26  ;;  %s807_s11 = scalar_lea.hbm %s1210_s4, 192 }
 0x20d   : > { %p804_p5 = scmp.ne.s32.totalorder %s1157_s30, %s803_s6  ;;  %p808_p13 = scmp.lt.u32.totalorder %s1157_s30, %s1210_s4 }
 0x20e   : > { %p809_p0 = scmp.lt.u32.totalorder %s807_s11, %s803_s6  ;;  %p811_p7 = scmp.lt.u32.totalorder %s803_s6, %s1157_s30 }
 0x20f   : > { %p805_p6 = pnand %p804_p5, %p577_p1 }
 0x210   : > { %p810_p12 = por %p809_p0, %p808_p13 }
 0x211   : > { %p806_p11 = pneg %p805_p6 }
 0x212   : > { %p812_p2 = por %p811_p7, %p810_p12 }
 0x214   : > { %p813_p8 = pnand %p812_p2, %p806_p11 }
 0x216   : > { %816 = shalt.err (!%p813_p8)
}
 0x217   : > { %s879_s12 = smov 64   ;;  %s880_s27 = smov 4  }
 0x218   : > { %424 = dma.vmem_to_hbm [thread:$0]  (%p577_p1), %s1160_s9, %s1147_s26, %s1157_s30, %s377_s5, %s879_s12, %s879_s12, %s880_s27  }
 0x219 PF: > { %s433_s13 = sand.u32 1, %s851_s15   ;;  %p1227_p9 = scmp.ne.s32.totalorder %s1217_s28, 0 }
 0x21a   : > { %s434_s8 = scalar_lea.sflag [#allocation4], %s433_s13 }
 0x21b   : > { %p618_p10 = pnand %p546_p4, %p1227_p9 }
 0x21d   : > { %842 = dma.done.wait (!%p618_p10), %s434_s8, 128  }
 0x21e   : > { %844 = vsyncadd (!%p618_p10), %s434_s8, 4294967168  ;;  %s443_s14 = scalar_lea.sflag [#allocation10], %s433_s13 }
 0x21f   : > { %846 = dma.done.wait (!%p618_p10), %s443_s14, 128  }
 0x220   : > { %848 = vsyncadd (!%p618_p10), %s443_s14, 4294967168  ;;  %p22_p1 = scmp.ge.s32.totalorder %s931_s21, 4   ;;  %s1228_s15 = smov %s855_s16 }
 0x221   : > { %s1229_s16 = smov %s859_s17  ;;  %s1230_s17 = smov %s943_s24 }
 0x222   : > { %s1231_s18 = smov %s931_s21  ;;  %24 = sbr.rel (!%p22_p1) target bundleno = 8 (0x8), region = 102 }
 0x229   :  { %448 = vsyncpa [#allocation3], 1 }
 0x22a   :  { %450 = vsyncpa [#allocation3 + $0x1], 1 }
 0x22b   :  { %451 = vsyncpa [#allocation6], 1 }
 0x22c   :  { %452 = vsyncpa [#allocation4], 1 }
 0x22d   :  { %454 = vsyncpa [#allocation4 + $0x1], 1 }
 0x22e   :  { %455 = vsyncpa [#allocation10], 1 }
 0x22f   :  { %457 = vsyncpa [#allocation10 + $0x1], 1 }

// kernel: transformer_forward.27
= control target key start
LH: loop header
LB: loop body
LE: loop exit
PB: predicated region body
PF: predicated region fallthrough
CT: control target
= control target key end

     0   :  { %8 = vsyncpa [#allocation3], 0  ;;  %s984_s0 = inlined_call_operand.hbm [shape: bf16[18,32], index: 0, kind: input, shape index: {}]   ;;  %s985_s1 = inlined_call_operand.hbm [shape: bf16[32,32], index: 1, kind: input, shape index: {}]   ;;  %s986_s2 = inlined_call_operand.hbm [shape: f32[1,32], index: 2, kind: input, shape index: {}]   ;;  %s987_s3 = inlined_call_operand.hbm [shape: bf16[18,32], index: 3, kind: output, shape index: {}]  }
   0x1   :  { %10 = vsyncpa [#allocation3 + $0x1], 0 }
   0x2   :  { %11 = vsyncpa [#allocation6], 0 }
   0x3   :  { %12 = vsyncpa [#allocation4], 0 }
   0x4   :  { %14 = vsyncpa [#allocation4 + $0x1], 0  ;;  %s738_s12 = smov 0   ;;  %s740_s13 = smov 0  }
   0x5   :  { %s742_s14 = smov 0   ;;  %s744_s15 = smov 0  }
   0x6 LB: > { %s759_s16 = sadd.s32 4294967295, %s704_s15   ;;  %s431_s17 = sadd.s32 4294967294, %s704_s15   ;;  %s704_s15 = sphi %s744_s15, %s1007_s15   ;;  %s700_s14 = sphi %s742_s14, %s1006_s14   ;;  %s696_s13 = sphi %s740_s13, %s1005_s13   ;;  %s692_s12 = sphi %s738_s12, %s1004_s12  }
   0x7   : > { %s763_s18 = sadd.s32 1, %s704_s15   ;;  %s27_s19 = sadd.s32 1, %s700_s14 }
   0x8   : > { %s24_s20 = ssub.s32 %s704_s15, %s763_s18  ;;  %p34_p0 = scmp.ne.s32.totalorder %s700_s14, %s696_s13 }
   0x9   : > { %p25_p1 = scmp.eq.s32.totalorder %s24_s20, 0  ;;  %p35_p2 = scmp.eq.s32.totalorder %s704_s15, 0 }
   0xa   : > { %p40_p3 = scmp.ne.s32.totalorder %s696_s13, %s692_s12  ;;  %p988_p4 = scmp.eq.s32.totalorder %s759_s16, 0 }
   0xb   : > { %s775_s21 = scalar_select %p25_p1, %s700_s14, %s27_s19  }
   0xc   : > { %p777_p5 = por %p35_p2, %p34_p0  ;;  %p783_p6 = por %p988_p4, %p40_p3 }
   0xd   : > { %p106_p7 = scmp.eq.s32.totalorder %s759_s16, 1  ;;  %p112_p8 = scmp.eq.s32.totalorder %s431_s17, 1 }
   0xe   : > { %s991_s22 = scalar_select %p777_p5, 1, 0 }
   0xf   : > { %s992_s23 = scalar_select %p783_p6, 1, 0 }
  0x10   : > { %p432_p9 = scmp.ge.s32.totalorder %s704_s15, 1  ;;  %p119_p10 = scmp.lt.s32.totalorder %s704_s15, 3 }
  0x11   : > { %p790_p11 = por %p106_p7, %p34_p0  ;;  %p794_p12 = por %p112_p8, %p40_p3 }
  0x12   : > { %p798_p13 = pnand %p432_p9, %p119_p10  ;;  %s706_s27 = smov [#allocation5]  }
  0x13   : > { %s993_s24 = scalar_select %p790_p11, 1, 0 }
  0x14   : > { %s994_s25 = scalar_select %p794_p12, 1, 0 }
  0x15   : > { %s995_s26 = scalar_select %p798_p13, 1, 0 }
  0x16   : > { %p489_p1 = pneg %p798_p13  ;;  %s131_s28 = sshll.u32 %s706_s27, 4  ;;  %s132_s28 = int_to_ptr.vmem [resolvable:$true] %s131_s28 }
  0x17   : > { %s707_s30 = smov [#allocation7]   ;;  %s550_s7 = scalar_lea.hbm %s985_s1, 256 }
  0x18   : > { %p806_p2 = pnand %p489_p1, %p988_p4  ;;  %s145_s4 = sshll.u32 %s707_s30, 4  ;;  %s810_s4 = int_to_ptr.vmem [resolvable:$true] %s145_s4 }
  0x19   : > { %p551_p0 = scmp.ne.s32.totalorder %s985_s1, %s550_s7  ;;  %p557_p9 = scmp.lt.u32.totalorder %s550_s7, %s985_s1 }
  0x1a   : > { %p552_p3 = pneg %p806_p2 }
  0x1c   : > { %p553_p7 = pnand %p552_p3, %p551_p0 }
  0x1e   : > { %p554_p8 = pneg %p553_p7 }
  0x20   : > { %p559_p10 = pnand %p557_p9, %p554_p8 }
  0x22   : > { %562 = shalt.err (!%p559_p10)
}
  0x23   : > { %s563_s17 = scalar_lea.vmem %s132_s28, 256  ;;  %p571_p11 = scmp.lt.s32.totalorder %s132_s28, %s132_s28 }
  0x24   : > { %p564_p1 = scmp.ne.s32.totalorder %s132_s28, %s563_s17  ;;  %p572_p6 = scmp.lt.s32.totalorder %s563_s17, %s563_s17 }
  0x26   : > { %p566_p4 = pnand %p564_p1, %p552_p3  ;;  %p573_p13 = por %p572_p6, %p571_p11 }
  0x28   : > { %p567_p12 = pneg %p566_p4 }
  0x2a   : > { %p574_p5 = pnand %p573_p13, %p567_p12 }
  0x2c   : > { %577 = shalt.err (!%p574_p5)
}
  0x2d   : > { %s708_s19 = smov 64   ;;  %s709_s20 = smov 4  }
  0x2e   : > { %492 = dma.hbm_to_vmem [thread:$0]  (!%p806_p2), %s985_s1, 256, %s132_s28, [#allocation6], %s708_s19, %s708_s19, %s709_s20  }
  0x2f   : > { %s578_s7 = scalar_lea.hbm %s986_s2, 16 }
  0x30   : > { %p579_p4 = scmp.ne.s32.totalorder %s986_s2, %s578_s7  ;;  %p585_p11 = scmp.lt.u32.totalorder %s578_s7, %s986_s2 }
  0x32   : > { %p581_p5 = pnand %p579_p4, %p552_p3 }
  0x34   : > { %p582_p6 = pneg %p581_p5 }
  0x36   : > { %p587_p12 = pnand %p585_p11, %p582_p6 }
  0x38   : > { %590 = shalt.err (!%p587_p12)
}
  0x39   : > { %s591_s28 = scalar_lea.vmem %s810_s4, 16  ;;  %s598_s17 = scalar_lea.vmem %s810_s4, 32 }
  0x3a   : > { %p592_p13 = scmp.ne.s32.totalorder %s810_s4, %s591_s28  ;;  %p599_p8 = scmp.lt.s32.totalorder %s810_s4, %s810_s4 }
  0x3b   : > { %p600_p9 = scmp.lt.s32.totalorder %s598_s17, %s591_s28 }
  0x3c   : > { %p594_p0 = pnand %p592_p13, %p552_p3 }
  0x3d   : > { %p601_p10 = por %p600_p9, %p599_p8 }
  0x3e   : > { %p595_p7 = pneg %p594_p0 }
  0x40   : > { %p602_p1 = pnand %p601_p10, %p595_p7 }
  0x42   : > { %605 = shalt.err (!%p602_p1)
}
  0x43   : > { %495 = dma.hbm_to_vmem [thread:$0]  (!%p806_p2), %s986_s2, 16, %s810_s4, [#allocation6]  }
  0x44   : > { %p435_p4 = scmp.ge.s32.totalorder %s704_s15, 2 }
  0x45   : > { %p997_p3 = scmp.ne.s32.totalorder (!%p435_p4), %s991_s22, 0 }
  0x46   : > { %152 = sbr.rel (%p435_p4) target bundleno = 112 (0x70), region = 24 }
  0x4d   : > { %155 = sbr.rel (!%p997_p3) target bundleno = 112 (0x70), region = 28  ;;  %s156_s27 = sand.u32 (%p997_p3), 1, %s700_s14  }
  0x4e   : > { %s437_s30 = sshll.u32 (%p997_p3), %s704_s15, 1  ;;  %s436_s5 = sshll.u32 (%p997_p3), %s156_s27, 3 }
  0x4f   : > { %s162_s6 = ssub.s32 (%p997_p3), 3, %s437_s30  ;;  %s870_s7 = scalar_lea.sflag (%p997_p3), [#allocation3], %s156_s27 }
  0x50   : > { %p163_p5 = scmp.lt.s32.totalorder (%p997_p3), %s162_s6, 2  ;;  %s160_s8 = scalar_lea.vmem (%p997_p3), [#allocation2], %s436_s5 }
  0x54   : > { %s1009_s6 = smov (!%p163_p5, %s162_s6), 2 }
  0x55   : > { %s867_s29 = sshll.u32 %s1009_s6, 6 }
  0x56   : > { %s167_s4 = ssub.s32 128, %s867_s29 }
  0x57   : > { %168 = vsyncadd %s870_s7, %s167_s4  ;;  %p439_p2 = scmp.ne.s32.totalorder %s867_s29, 0  ;;  %s464_s22 = sshll.u32 %s704_s15, 7 }
  0x58   : > { %s878_s11 = scalar_lea.hbm %s984_s0, %s464_s22  ;;  %s173_s28 = sshll.u32 %s160_s8, 4  ;;  %s880_s28 = int_to_ptr.vmem [resolvable:$true] %s173_s28 }
  0x59   : > { %s606_s17 = scalar_lea.hbm %s878_s11, %s867_s29  ;;  %s610_s27 = scalar_lea.hbm %s984_s0, 192 }
  0x5a   : > { %p607_p6 = scmp.ne.s32.totalorder %s878_s11, %s606_s17  ;;  %p611_p13 = scmp.lt.u32.totalorder %s878_s11, %s984_s0 }
  0x5b   : > { %p612_p0 = scmp.lt.u32.totalorder %s610_s27, %s606_s17  ;;  %p614_p8 = scmp.lt.u32.totalorder %s606_s17, %s878_s11 }
  0x5c   : > { %p608_p11 = pnand %p607_p6, %p439_p2 }
  0x5d   : > { %p613_p7 = por %p612_p0, %p611_p13 }
  0x5e   : > { %p609_p12 = pneg %p608_p11 }
  0x5f   : > { %p615_p9 = por %p614_p8, %p613_p7 }
  0x61   : > { %p616_p10 = pnand %p615_p9, %p609_p12 }
  0x63   : > { %619 = shalt.err (!%p616_p10)
}
  0x64   : > { %s620_s6 = scalar_lea.vmem %s880_s28, %s867_s29  ;;  %s710_s4 = smov [#allocation2]  }
  0x65   : > { %p621_p1 = scmp.ne.s32.totalorder %s880_s28, %s620_s6  ;;  %s624_s8 = sshll.u32 %s710_s4, 4  ;;  %s625_s8 = int_to_ptr.vmem [resolvable:$false] %s624_s8 }
  0x66   : > { %s626_s22 = scalar_lea.vmem %s625_s8, 256  ;;  %p627_p6 = scmp.lt.s32.totalorder %s880_s28, %s625_s8 }
  0x67   : > { %p622_p3 = pnand %p621_p1, %p439_p2  ;;  %p628_p11 = scmp.lt.s32.totalorder %s626_s22, %s620_s6 }
  0x69   : > { %p623_p5 = pneg %p622_p3  ;;  %p629_p13 = por %p628_p11, %p627_p6 }
  0x6b   : > { %p630_p0 = pnand %p629_p13, %p623_p5 }
  0x6d   : > { %633 = shalt.err (!%p630_p0)
}
  0x6e   : > { %s711_s9 = smov 64   ;;  %s712_s10 = smov 4  }
  0x6f   : > { %179 = dma.hbm_to_vmem [thread:$0]  (%p439_p2), %s878_s11, %s867_s29, %s880_s28, %s870_s7, %s711_s9, %s711_s9, %s712_s10  }
  0x70 PF: > { %p998_p12 = scmp.ne.s32.totalorder %s995_s26, 0 }
  0x71   : > { %s910_s17 = sand.u32 (!%p998_p12), 1, %s696_s13   ;;  %p999_p7 = scmp.ne.s32.totalorder (!%p998_p12), %s992_s23, 0 }
  0x72   : > { %185 = sbr.rel (%p998_p12) target bundleno = 381 (0x17d), region = 32  ;;  %s444_s19 = sshll.u32 (!%p998_p12), %s910_s17, 3 }
  0x73   : > { %s188_s20 = scalar_lea.sflag (!%p998_p12), [#allocation3], %s910_s17  ;;  %s191_s27 = scalar_lea.vmem (!%p998_p12), [#allocation2], %s444_s19 }
  0x79   : > { %679 = dma.done.wait (%p999_p7), %s188_s20, 128  }
  0x7a   : > { %681 = vsyncadd (%p999_p7), %s188_s20, 4294967168  ;;  %p1000_p2 = scmp.eq.s32.totalorder %s759_s16, 0 }
  0x7c   : > { %683 = dma.done.wait (%p1000_p2), [#allocation6], 272   ;;  %p1001_p8 = pmov %p1000_p2 }
  0x7d   : > { %v713_v0 = vmov 0.0   ;;  %vm714_vm0 = vmmov 0   ;;  %v547_v1 = vld [vmem:[#allocation5] sm:$0xff]   ;;  %v548_v2 = vld [vmem:[#allocation5 + $0x8] sm:$0xff]   ;;  %v549_v3 = vld [vmem:[%s191_s27] sm:$0xff]   ;;  %vm263_vm1 = vcmask 261120  }
  0x7e   : > { %685 = vsyncadd (%p1001_p8), [#allocation6], 4294967024  ;;  %471 = vmatprep.subr.bf16.mxu0 %v713_v0  ;;  %475 = vmatprep.mubr.msk.bf16.mxu0 %vm714_vm0, %v713_v0  ;;  %v448_v4 = vld [vmem:[#allocation7] ss:$0 sm:$0xff]  ;;  %vm316_vm2 = vcmask 257024   ;;  %s221_s23 = scalar_lea.vmem [#allocation8], %s444_s19 }
  0x7f   : > { %472 = vmatpush3.bf16.msra.mxu0 %v547_v1  ;;  %s320_s26 = scalar_lea.sflag [#allocation4], %s910_s17  ;;  %p1002_p9 = scmp.ne.s32.totalorder %s993_s24, 0 }
  0x80   : > { %473 = vmatprep.subr.bf16.mxu0 %v713_v0  ;;  %s456_s29 = sshll.u32 (%p1002_p9), %s759_s16, 1 }
  0x81   : > { %s328_s7 = ssub.s32 (%p1002_p9), 3, %s456_s29 }
  0x82   : > { %p329_p10 = scmp.lt.s32.totalorder (%p1002_p9), %s328_s7, 2 }
  0x83   : > { %474 = vmatpush3.bf16.msra.mxu0 %v548_v2 }
  0x86   : > { %476 = vmatmul.mubr.msk.bf16.vlgmr.msra.gmra.mrb[0].mxu0 %vm263_vm1, %v549_v3 }
 0x159   : > { %v301_v5 = vpop.f32.mrb[0].mxu0 }
 0x15a   : > { %v302_v6 = vadd.f32 %v448_v4, %v301_v5  ;;  %v477_v7 = vpop.f32.mrb[1].mxu0  ;;  %326 = sbr.rel (!%p1002_p9) target bundleno = 381 (0x17d), region = 48 }
 0x15b   : > { %v304_v8 = vpop.f32.mrb[2].mxu0 }
 0x15c   : > { %v465_v9 = vpack.c.bf16 %v302_v6, %v302_v6  ;;  %v305_v10 = vadd.f32 %v448_v4, %v304_v8  ;;  %v478_v11 = vpop.f32.mrb[3].mxu0 }
 0x15e   : > { %317 = vst.msk [vmem:[%s221_s23] sm:$0xf] %vm316_vm2, %v465_v9  ;;  %v466_v12 = vpack.c.bf16 %v305_v10, %v305_v10 }
 0x160   : > { %318 = vst.msk [vmem:[%s221_s23 + $0x4] sm:$0xf] %vm316_vm2, %v466_v12 }
 0x161   : > { %s1011_s7 = smov (!%p329_p10, %s328_s7), 2 }
 0x162   : > { %s926_s11 = sshll.u32 %s1011_s7, 6 }
 0x163   : > { %s333_s28 = ssub.s32 128, %s926_s11 }
 0x164   : > { %334 = vsyncadd %s320_s26, %s333_s28  ;;  %p458_p1 = scmp.ne.s32.totalorder %s926_s11, 0  ;;  %s467_s30 = sshll.u32 %s759_s16, 7 }
 0x165   : > { %s936_s6 = scalar_lea.hbm %s987_s3, %s467_s30  ;;  %s339_s4 = sshll.u32 %s221_s23, 4  ;;  %s938_s4 = int_to_ptr.vmem [resolvable:$true] %s339_s4 }
 0x166   : > { %s634_s8 = scalar_lea.vmem %s938_s4, %s926_s11  ;;  %s715_s22 = smov [#allocation8]  }
 0x167   : > { %p635_p3 = scmp.ne.s32.totalorder %s938_s4, %s634_s8  ;;  %s638_s9 = sshll.u32 %s715_s22, 4  ;;  %s639_s9 = int_to_ptr.vmem [resolvable:$false] %s638_s9 }
 0x168   : > { %s640_s16 = scalar_lea.vmem %s639_s9, 256  ;;  %p641_p11 = scmp.lt.s32.totalorder %s938_s4, %s639_s9 }
 0x169   : > { %p636_p5 = pnand %p635_p3, %p458_p1  ;;  %p642_p13 = scmp.lt.s32.totalorder %s640_s16, %s634_s8 }
 0x16b   : > { %p637_p6 = pneg %p636_p5  ;;  %p643_p0 = por %p642_p13, %p641_p11 }
 0x16d   : > { %p644_p12 = pnand %p643_p0, %p637_p6 }
 0x16f   : > { %647 = shalt.err (!%p644_p12)
}
 0x170   : > { %s648_s10 = scalar_lea.hbm %s936_s6, %s926_s11  ;;  %s652_s27 = scalar_lea.hbm %s987_s3, 192 }
 0x171   : > { %p649_p7 = scmp.ne.s32.totalorder %s936_s6, %s648_s10  ;;  %p653_p9 = scmp.lt.u32.totalorder %s936_s6, %s987_s3 }
 0x172   : > { %p654_p10 = scmp.lt.u32.totalorder %s652_s27, %s648_s10  ;;  %p656_p5 = scmp.lt.u32.totalorder %s648_s10, %s936_s6 }
 0x173   : > { %p650_p2 = pnand %p649_p7, %p458_p1 }
 0x174   : > { %p655_p3 = por %p654_p10, %p653_p9 }
 0x175   : > { %p651_p8 = pneg %p650_p2 }
 0x176   : > { %p657_p6 = por %p656_p5, %p655_p3 }
 0x178   : > { %p658_p11 = pnand %p657_p6, %p651_p8 }
 0x17a   : > { %661 = shalt.err (!%p658_p11)
}
 0x17b   : > { %s716_s7 = smov 64   ;;  %s717_s28 = smov 4  }
 0x17c   : > { %345 = dma.vmem_to_hbm [thread:$0]  (%p458_p1), %s938_s4, %s926_s11, %s936_s6, %s320_s26, %s716_s7, %s716_s7, %s717_s28  }
 0x17d PF: > { %s354_s30 = sand.u32 1, %s692_s12   ;;  %p1003_p13 = scmp.ne.s32.totalorder %s994_s25, 0 }
 0x17e   : > { %s355_s24 = scalar_lea.sflag [#allocation4], %s354_s30 }
 0x17f   : > { %p497_p0 = pnand %p435_p4, %p1003_p13 }
 0x181   : > { %687 = dma.done.wait (!%p497_p0), %s355_s24, 128  }
 0x182   : > { %689 = vsyncadd (!%p497_p0), %s355_s24, 4294967168  ;;  %p17_p12 = scmp.ge.s32.totalorder %s763_s18, 4   ;;  %s1004_s12 = smov %s696_s13 }
 0x183   : > { %s1005_s13 = smov %s700_s14  ;;  %s1006_s14 = smov %s775_s21 }
 0x184   : > { %s1007_s15 = smov %s763_s18  ;;  %19 = sbr.rel (!%p17_p12) target bundleno = 6 (0x6), region = 85 }
 0x18b   :  { %360 = vsyncpa [#allocation3], 1 }
 0x18c   :  { %362 = vsyncpa [#allocation3 + $0x1], 1 }
 0x18d   :  { %363 = vsyncpa [#allocation6], 1 }
 0x18e   :  { %364 = vsyncpa [#allocation4], 1 }
 0x18f   :  { %366 = vsyncpa [#allocation4 + $0x1], 1 }

// kernel: transformer_forward.29
= control target key start
LH: loop header
LB: loop body
LE: loop exit
PB: predicated region body
PF: predicated region fallthrough
CT: control target
= control target key end

     0   :  { %s2655_s0 = inlined_call_operand.hbm [shape: bf16[2,9,32], index: 0, kind: input, shape index: {}]   ;;  %s2656_s1 = inlined_call_operand.hbm [shape: bf16[2,16,64], index: 1, kind: input, shape index: {}]   ;;  %s2657_s2 = inlined_call_operand.hbm [shape: f32[2,1,16], index: 2, kind: input, shape index: {}]   ;;  %s2658_s3 = inlined_call_operand.hbm [shape: bf16[2,9,32], index: 3, kind: input, shape index: {}]   ;;  %s2659_s4 = inlined_call_operand.hbm [shape: bf16[32,32], index: 4, kind: input, shape index: {}]   ;;  %s2660_s5 = inlined_call_operand.hbm [shape: f32[1,32], index: 5, kind: input, shape index: {}]   ;;  %s2661_s6 = inlined_call_operand.hbm [shape: f32[1,32], index: 6, kind: input, shape index: {}]   ;;  %s2662_s7 = inlined_call_operand.hbm [shape: f32[1,32], index: 7, kind: input, shape index: {}]   ;;  %s2663_s8 = inlined_call_operand.hbm [shape: bf16[2,9,32], index: 8, kind: output, shape index: {}]  }
   0x1   :  { %2690 = sst [smem:[#allocation33_spill]] %s2655_s0 }
   0x2   :  { %2691 = sst [smem:[#allocation34_spill]] %s2656_s1 }
   0x3   :  { %2692 = sst [smem:[#allocation35_spill]] %s2659_s4 }
   0x4   :  { %2693 = sst [smem:[#allocation36_spill]] %s2660_s5 }
   0x5   :  { %2694 = sst [smem:[#allocation37_spill]] %s2663_s8 }
   0x6   :  { %13 = vsyncpa [#allocation3], 0 }
   0x7   :  { %15 = vsyncpa [#allocation3 + $0x1], 0 }
   0x8   :  { %16 = vsyncpa [#allocation6], 0 }
   0x9   :  { %18 = vsyncpa [#allocation6 + $0x1], 0 }
   0xa   :  { %19 = vsyncpa [#allocation9], 0 }
   0xb   :  { %21 = vsyncpa [#allocation9 + $0x1], 0 }
   0xc   :  { %22 = vsyncpa [#allocation12], 0 }
   0xd   :  { %23 = vsyncpa [#allocation15], 0 }
   0xe   :  { %24 = vsyncpa [#allocation4], 0 }
   0xf   :  { %26 = vsyncpa [#allocation4 + $0x1], 0  ;;  %s2119_s27 = smov 0   ;;  %s2121_s28 = smov 0  }
  0x10   :  { %s2123_s29 = smov 0   ;;  %s2125_s30 = smov 0  }
  0x11   :  { %s2127_s9 = smov 0   ;;  %s2129_s10 = smov 0  }
  0x12 LB: > { %2695 = sst [smem:[#allocation24_spill]] %s2027_s27  ;;  %s2150_s11 = sadd.s32 4294967295, %s2047_s10   ;;  %s2047_s10 = sphi %s2129_s10, %s32_s10   ;;  %s2043_s9 = sphi %s2127_s9, %s2748_s9   ;;  %s2039_s30 = sphi %s2125_s30, %s2747_s30   ;;  %s2035_s29 = sphi %s2123_s29, %s2743_s29   ;;  %s2031_s28 = sphi %s2121_s28, %s2746_s28   ;;  %s2027_s27 = sphi %s2119_s27, %s2745_s27  }
  0x13   : > { %2696 = sst [smem:[#allocation25_spill]] %s2035_s29  ;;  %s1393_s12 = sadd.s32 4294967294, %s2047_s10  }
  0x14   : > { %2697 = sst [smem:[#allocation26_spill]] %s2039_s30  ;;  %p66_p0 = scmp.ne.s32.totalorder %s2031_s28, %s2027_s27 }
  0x15   : > { %2698 = sst [smem:[#allocation27_spill]] %s2150_s11  ;;  %p2664_p1 = scmp.eq.s32.totalorder %s2150_s11, 0 }
  0x16   : > { %p262_p3 = scmp.eq.s32.totalorder %s1393_s12, 1  ;;  %p1394_p5 = scmp.ge.s32.totalorder %s2047_s10, 1 }
  0x17   : > { %p2159_p4 = por %p2664_p1, %p66_p0  ;;  %p269_p7 = scmp.lt.s32.totalorder %s2047_s10, 3 }
  0x18   : > { %p2164_p6 = por %p262_p3, %p66_p0  ;;  %s2049_s16 = smov [#allocation10]  }
  0x19   : > { %s2699_s13 = scalar_select %p2159_p4, 1, 0 }
  0x1a   : > { %s2701_s14 = scalar_select %p2164_p6, 1, 0 }
  0x1b   : > { %2700 = sst [smem:[#allocation28_spill]] %s2699_s13  ;;  %p2169_p8 = pnand %p1394_p5, %p269_p7 }
  0x1c   : > { %2702 = sst [smem:[#allocation29_spill]] %s2701_s14  ;;  %s281_s17 = sshll.u32 %s2049_s16, 4  ;;  %s2173_s17 = int_to_ptr.vmem [resolvable:$true] %s281_s17 }
  0x1d   : > { %s2703_s15 = scalar_select %p2169_p8, 1, 0 }
  0x1e   : > { %p1550_p9 = pneg %p2169_p8  ;;  %s2050_s19 = smov [#allocation11]  }
  0x1f   : > { %s295_s20 = sshll.u32 %s2050_s19, 4  ;;  %s2705_s4 = sld [smem:[#allocation35_spill]]  ;;  %s2184_s20 = int_to_ptr.vmem [resolvable:$true] %s295_s20 }
  0x20   : > { %p2180_p11 = pnand %p1550_p9, %p2664_p1 }
  0x22   : > { %s2704_s18 = scalar_select %p2180_p11, 1, 0 }
  0x23   : > { %p2194_p13 = pneg %p2180_p11 }
  0x25   : > { %s1713_s23 = scalar_lea.hbm %s2705_s4, 256 }
  0x26   : > { %p1714_p12 = scmp.ne.s32.totalorder %s2705_s4, %s1713_s23  ;;  %p1720_p5 = scmp.lt.u32.totalorder %s1713_s23, %s2705_s4 }
  0x27   : > { %s2706_s26 = scalar_select %p2194_p13, 1, 0 }
  0x28   : > { %p1716_p0 = pnand %p2194_p13, %p1714_p12 }
  0x2a   : > { %p1717_p3 = pneg %p1716_p0 }
  0x2c   : > { %p1722_p7 = pnand %p1720_p5, %p1717_p3 }
  0x2e   : > { %1725 = shalt.err (!%p1722_p7)
}
  0x2f   : > { %s1726_s19 = scalar_lea.vmem %s2173_s17, 256  ;;  %p1734_p2 = scmp.lt.s32.totalorder %s2173_s17, %s2173_s17 }
  0x30   : > { %p1727_p9 = scmp.ne.s32.totalorder %s2173_s17, %s1726_s19  ;;  %p1735_p6 = scmp.lt.s32.totalorder %s1726_s19, %s1726_s19 }
  0x32   : > { %p1729_p10 = pnand %p1727_p9, %p2194_p13  ;;  %p1736_p12 = por %p1735_p6, %p1734_p2 }
  0x34   : > { %p1730_p1 = pneg %p1729_p10 }
  0x36   : > { %p1737_p0 = pnand %p1736_p12, %p1730_p1 }
  0x38   : > { %1740 = shalt.err (!%p1737_p0)
}
  0x39   : > { %s2668_s21 = smov 64   ;;  %s2670_s22 = smov 4  }
  0x3a   : > { %1553 = dma.hbm_to_vmem [thread:$0]  (!%p2180_p11), %s2705_s4, 256, %s2173_s17, [#allocation9], %s2668_s21, %s2668_s21, %s2670_s22  }
  0x3b   : > { %s2707_s5 = sld [smem:[#allocation36_spill]] }
  0x41   : > { %s1741_s16 = scalar_lea.hbm %s2707_s5, 16 }
  0x42   : > { %p1742_p1 = scmp.ne.s32.totalorder %s2707_s5, %s1741_s16  ;;  %p1748_p10 = scmp.lt.u32.totalorder %s1741_s16, %s2707_s5 }
  0x44   : > { %p1744_p2 = pnand %p1742_p1, %p2194_p13 }
  0x46   : > { %p1745_p6 = pneg %p1744_p2 }
  0x48   : > { %p1750_p3 = pnand %p1748_p10, %p1745_p6 }
  0x4a   : > { %1753 = shalt.err (!%p1750_p3)
}
  0x4b   : > { %s1754_s17 = scalar_lea.vmem %s2184_s20, 16  ;;  %s1761_s14 = scalar_lea.vmem %s2184_s20, 32 }
  0x4c   : > { %p1755_p5 = scmp.ne.s32.totalorder %s2184_s20, %s1754_s17  ;;  %p1762_p12 = scmp.lt.s32.totalorder %s2184_s20, %s2184_s20 }
  0x4d   : > { %p1763_p0 = scmp.lt.s32.totalorder %s1761_s14, %s1754_s17 }
  0x4e   : > { %p1757_p7 = pnand %p1755_p5, %p2194_p13 }
  0x4f   : > { %p1764_p1 = por %p1763_p0, %p1762_p12 }
  0x50   : > { %p1758_p9 = pneg %p1757_p7 }
  0x52   : > { %p1765_p2 = pnand %p1764_p1, %p1758_p9 }
  0x54   : > { %1768 = shalt.err (!%p1765_p2)
}
  0x55   : > { %1556 = dma.hbm_to_vmem [thread:$0]  (!%p2180_p11), %s2707_s5, 16, %s2184_s20, [#allocation12]  }
  0x56   : > { %s44_s23 = sadd.s32 1, %s2043_s9  ;;  %s53_s24 = sadd.s32 1, %s2035_s29 }
  0x57   : > { %p46_p6 = scmp.ge.s32.totalorder %s44_s23, 2  ;;  %p60_p10 = scmp.ne.s32.totalorder %s2035_s29, %s2031_s28 }
  0x58   : > { %p61_p3 = scmp.eq.s32.totalorder %s2047_s10, 0  ;;  %p1584_p5 = scmp.lt.s32.totalorder %s2047_s10, 2 }
  0x59   : > { %s2750_s23 = smov (%p46_p6, %s44_s23), 0  ;;  %p2709_p9 = scmp.eq.s32.totalorder %s2150_s11, 1 }
  0x5a   : > { %2708 = sst [smem:[#allocation30_spill]] %s2750_s23  ;;  %p62_p7 = por %p61_p3, %p60_p10 }
  0x5b   : > { %p2252_p12 = por %p2709_p9, %p60_p10  ;;  %s48_s12 = ssub.s32 %s2043_s9, %s2750_s23 }
  0x5c   : > { %s2259_s20 = sand.u32 1, %s2035_s29   ;;  %p51_p0 = scmp.eq.s32.totalorder %s48_s12, 0 }
  0x5d   : > { %s2710_s25 = scalar_select %p2252_p12, 1, 0 }
  0x5e   : > { %s2262_s16 = sshll.u32 %s2259_s20, 3  ;;  %s2265_s19 = sshll.u32 %s2043_s9, 7 }
  0x5f   : > { %2711 = sst [smem:[#allocation31_spill]] %s2710_s25  ;;  %p2267_p1 = pnand %p1584_p5, %p62_p7 }
  0x60   : > { %s2272_s14 = scalar_select %p51_p0, %s2035_s29, %s53_s24  }
  0x61   : > { %s2712_s17 = scalar_select %p2267_p1, 1, 0 }
  0x62   : > { %2713 = sst [smem:[#allocation32_spill]] %s2272_s14  ;;  %s2676_s8 = sand.u32 1, %s2047_s10  }
  0x63   : > { %s2714_s1 = sld [smem:[#allocation34_spill]]  ;;  %s355_s12 = scalar_lea.vmem [#allocation5], %s2262_s16 }
  0x64   : > { %s362_s4 = sshll.u32 %s355_s12, 4  ;;  %s2286_s5 = scalar_lea.sflag [#allocation6], %s2676_s8  ;;  %s2282_s4 = int_to_ptr.vmem [resolvable:$true] %s362_s4 }
  0x65   : > { %p2292_p6 = pneg %p2267_p1 }
  0x69   : > { %s2279_s22 = scalar_lea.hbm %s2714_s1, %s2265_s19  ;;  %s1774_s12 = scalar_lea.hbm %s2714_s1, 256 }
  0x6a   : > { %s1769_s23 = scalar_lea.hbm %s2279_s22, 128  ;;  %p1775_p5 = scmp.lt.u32.totalorder %s2279_s22, %s2714_s1 }
  0x6b   : > { %p1770_p2 = scmp.ne.s32.totalorder %s2279_s22, %s1769_s23  ;;  %p1776_p7 = scmp.lt.u32.totalorder %s1774_s12, %s1769_s23 }
  0x6c   : > { %p1778_p0 = scmp.lt.u32.totalorder %s1769_s23, %s2279_s22 }
  0x6d   : > { %p1772_p10 = pnand %p2292_p6, %p1770_p2  ;;  %p1777_p9 = por %p1776_p7, %p1775_p5 }
  0x6f   : > { %p1773_p3 = pneg %p1772_p10  ;;  %p1779_p12 = por %p1778_p0, %p1777_p9 }
  0x71   : > { %p1780_p4 = pnand %p1779_p12, %p1773_p3 }
  0x73   : > { %1783 = shalt.err (!%p1780_p4)
}
  0x74   : > { %s1784_s8 = scalar_lea.vmem %s2282_s4, 128  ;;  %s2053_s21 = smov [#allocation5]  }
  0x75   : > { %p1785_p2 = scmp.ne.s32.totalorder %s2282_s4, %s1784_s8  ;;  %s1789_s27 = sshll.u32 %s2053_s21, 4  ;;  %s1790_s27 = int_to_ptr.vmem [resolvable:$false] %s1789_s27 }
  0x76   : > { %s1791_s29 = scalar_lea.vmem %s1790_s27, 256  ;;  %p1792_p11 = scmp.lt.s32.totalorder %s2282_s4, %s1790_s27 }
  0x77   : > { %p1787_p10 = pnand %p1785_p2, %p2292_p6  ;;  %p1793_p13 = scmp.lt.s32.totalorder %s1791_s29, %s1784_s8 }
  0x79   : > { %p1788_p8 = pneg %p1787_p10  ;;  %p1794_p5 = por %p1793_p13, %p1792_p11 }
  0x7b   : > { %p1795_p7 = pnand %p1794_p5, %p1788_p8 }
  0x7d   : > { %1798 = shalt.err (!%p1795_p7)
}
  0x7e   : > { %s2716_s23 = smov 4   ;;  %s2717_s14 = smov 64  }
  0x7f   : > { %1569 = dma.hbm_to_vmem [thread:$0]  (!%p2267_p1), %s2279_s22, 128, %s2282_s4, %s2286_s5, %s2717_s14, %s2717_s14, %s2716_s23  }
  0x80   : > { %s2054_s12 = smov [#allocation13]   ;;  %s2055_s21 = smov [#allocation14]  }
  0x81   : > { %s306_s1 = sshll.u32 %s2054_s12, 4  ;;  %s317_s25 = sshll.u32 %s2055_s21, 4  ;;  %s307_s1 = int_to_ptr.vmem [resolvable:$true] %s306_s1  ;;  %s2319_s25 = int_to_ptr.vmem [resolvable:$true] %s317_s25 }
  0x82   : > { %s1799_s29 = scalar_lea.hbm %s2661_s6, 16  ;;  %p2718_p8 = scmp.ne.s32.totalorder %s2706_s26, 0 }
  0x83   : > { %p1800_p4 = scmp.ne.s32.totalorder %s2661_s6, %s1799_s29  ;;  %p1806_p12 = scmp.lt.u32.totalorder %s1799_s29, %s2661_s6 }
  0x85   : > { %p1802_p11 = pnand %p1800_p4, %p2718_p8 }
  0x87   : > { %p1803_p13 = pneg %p1802_p11 }
  0x89   : > { %p1808_p3 = pnand %p1806_p12, %p1803_p13 }
  0x8b   : > { %1811 = shalt.err (!%p1808_p3)
}
  0x8c   : > { %s1812_s22 = scalar_lea.vmem %s307_s1, 16  ;;  %s1819_s12 = scalar_lea.vmem %s307_s1, 32 }
  0x8d   : > { %p1813_p9 = scmp.ne.s32.totalorder %s307_s1, %s1812_s22  ;;  %p1820_p10 = scmp.lt.s32.totalorder %s307_s1, %s307_s1 }
  0x8e   : > { %p1821_p5 = scmp.lt.s32.totalorder %s1819_s12, %s1812_s22 }
  0x8f   : > { %p1815_p0 = pnand %p1813_p9, %p2718_p8 }
  0x90   : > { %p1822_p7 = por %p1821_p5, %p1820_p10 }
  0x91   : > { %p1816_p2 = pneg %p1815_p0 }
  0x93   : > { %p1823_p1 = pnand %p1822_p7, %p1816_p2 }
  0x95   : > { %1826 = shalt.err (!%p1823_p1)
}
  0x96   : > { %p2719_p4 = scmp.ne.s32.totalorder %s2704_s18, 0  ;;  %s1827_s8 = scalar_lea.hbm %s2662_s7, 16 }
  0x97   : > { %p1828_p11 = scmp.ne.s32.totalorder %s2662_s7, %s1827_s8  ;;  %p1834_p1 = scmp.lt.u32.totalorder %s1827_s8, %s2662_s7 }
  0x98   : > { %1559 = dma.hbm_to_vmem [thread:$0]  (!%p2719_p4), %s2661_s6, 16, %s307_s1, [#allocation12]  }
  0x99   : > { %p1830_p13 = pnand %p1828_p11, %p2718_p8 }
  0x9b   : > { %p1831_p12 = pneg %p1830_p13 }
  0x9d   : > { %p1836_p3 = pnand %p1834_p1, %p1831_p12 }
  0x9f   : > { %1839 = shalt.err (!%p1836_p3)
}
  0xa0   : > { %s1840_s1 = scalar_lea.vmem %s2319_s25, 16  ;;  %s1847_s12 = scalar_lea.vmem %s2319_s25, 32 }
  0xa1   : > { %p1841_p9 = scmp.ne.s32.totalorder %s2319_s25, %s1840_s1  ;;  %p1848_p10 = scmp.lt.s32.totalorder %s2319_s25, %s2319_s25 }
  0xa2   : > { %p1849_p5 = scmp.lt.s32.totalorder %s1847_s12, %s1840_s1 }
  0xa3   : > { %p1843_p0 = pnand %p1841_p9, %p2718_p8 }
  0xa4   : > { %p1850_p7 = por %p1849_p5, %p1848_p10 }
  0xa5   : > { %p1844_p2 = pneg %p1843_p0 }
  0xa7   : > { %p1851_p11 = pnand %p1850_p7, %p1844_p2 }
  0xa9   : > { %1854 = shalt.err (!%p1851_p11)
}
  0xaa   : > { %1562 = dma.hbm_to_vmem [thread:$0]  (!%p2719_p4), %s2662_s7, 16, %s2319_s25, [#allocation15]  }
  0xab   : > { %s2720_s0 = sld [smem:[#allocation33_spill]]  ;;  %s332_s8 = scalar_lea.vmem [#allocation2], %s2262_s16 }
  0xac   : > { %s341_s18 = sshll.u32 %s332_s8, 4  ;;  %s329_s27 = scalar_lea.sflag [#allocation3], %s2259_s20  ;;  %s2370_s18 = int_to_ptr.vmem [resolvable:$true] %s341_s18 }
  0xb1   : > { %s2367_s21 = scalar_lea.hbm %s2720_s0, %s2265_s19  ;;  %s1860_s22 = scalar_lea.hbm %s2720_s0, 256 }
  0xb2   : > { %s1855_s29 = scalar_lea.hbm %s2367_s21, 128  ;;  %p1861_p4 = scmp.lt.u32.totalorder %s2367_s21, %s2720_s0 }
  0xb3   : > { %p1856_p8 = scmp.ne.s32.totalorder %s2367_s21, %s1855_s29  ;;  %p1862_p1 = scmp.lt.u32.totalorder %s1860_s22, %s1855_s29 }
  0xb4   : > { %p1864_p9 = scmp.lt.u32.totalorder %s1855_s29, %s2367_s21 }
  0xb5   : > { %p1858_p13 = pnand %p1856_p8, %p2292_p6  ;;  %p1863_p3 = por %p1862_p1, %p1861_p4 }
  0xb7   : > { %p1859_p12 = pneg %p1858_p13  ;;  %p1865_p0 = por %p1864_p9, %p1863_p3 }
  0xb9   : > { %p1866_p2 = pnand %p1865_p0, %p1859_p12 }
  0xbb   : > { %1869 = shalt.err (!%p1866_p2)
}
  0xbc   : > { %s1870_s30 = scalar_lea.vmem %s2370_s18, 128  ;;  %s2056_s11 = smov [#allocation2]  }
  0xbd   : > { %p1871_p10 = scmp.ne.s32.totalorder %s2370_s18, %s1870_s30  ;;  %s1875_s26 = sshll.u32 %s2056_s11, 4  ;;  %s1876_s26 = int_to_ptr.vmem [resolvable:$false] %s1875_s26 }
  0xbe   : > { %s1877_s13 = scalar_lea.vmem %s1876_s26, 256  ;;  %p1878_p11 = scmp.lt.s32.totalorder %s2370_s18, %s1876_s26 }
  0xbf   : > { %p1873_p5 = pnand %p1871_p10, %p2292_p6  ;;  %p1879_p8 = scmp.lt.s32.totalorder %s1877_s13, %s1870_s30 }
  0xc1   : > { %p1874_p7 = pneg %p1873_p5  ;;  %p1880_p13 = por %p1879_p8, %p1878_p11 }
  0xc3   : > { %p1881_p4 = pnand %p1880_p13, %p1874_p7 }
  0xc5   : > { %1884 = shalt.err (!%p1881_p4)
}
  0xc6   : > { %p2721_p12 = scmp.ne.s32.totalorder %s2712_s17, 0  ;;  %s1406_s8 = sshll.u32 %s2043_s9, 4 }
  0xc7   : > { %s375_s29 = scalar_lea.vmem [#allocation7], %s2259_s20  ;;  %s380_s1 = scalar_lea.hbm %s2657_s2, %s1406_s8 }
  0xc8   : > { %1566 = dma.hbm_to_vmem [thread:$0]  (!%p2721_p12), %s2367_s21, 128, %s2370_s18, %s329_s27, %s2717_s14, %s2717_s14, %s2716_s23  }
  0xc9   : > { %s382_s25 = sshll.u32 %s375_s29, 4  ;;  %s1885_s12 = scalar_lea.hbm %s380_s1, 16  ;;  %s383_s25 = int_to_ptr.vmem [resolvable:$true] %s382_s25 }
  0xca   : > { %p1886_p1 = scmp.ne.s32.totalorder %s380_s1, %s1885_s12  ;;  %s1890_s26 = scalar_lea.hbm %s2657_s2, 32 }
  0xcb   : > { %p1891_p0 = scmp.lt.u32.totalorder %s380_s1, %s2657_s2  ;;  %p1892_p2 = scmp.lt.u32.totalorder %s1890_s26, %s1885_s12 }
  0xcc   : > { %p1888_p3 = pnand %p1886_p1, %p2292_p6  ;;  %p1894_p5 = scmp.lt.u32.totalorder %s1885_s12, %s380_s1 }
  0xcd   : > { %p1893_p10 = por %p1892_p2, %p1891_p0 }
  0xce   : > { %p1889_p9 = pneg %p1888_p3 }
  0xcf   : > { %p1895_p7 = por %p1894_p5, %p1893_p10 }
  0xd1   : > { %p1896_p11 = pnand %p1895_p7, %p1889_p9 }
  0xd3   : > { %1899 = shalt.err (!%p1896_p11)
}
  0xd4   : > { %s1900_s20 = scalar_lea.vmem %s383_s25, 16  ;;  %s2057_s21 = smov [#allocation7]  }
  0xd5   : > { %p1901_p8 = scmp.ne.s32.totalorder %s383_s25, %s1900_s20  ;;  %s1905_s18 = sshll.u32 %s2057_s21, 4  ;;  %s1906_s18 = int_to_ptr.vmem [resolvable:$false] %s1905_s18 }
  0xd6   : > { %s1907_s27 = scalar_lea.vmem %s1906_s18, 32  ;;  %p1908_p1 = scmp.lt.s32.totalorder %s383_s25, %s1906_s18 }
  0xd7   : > { %p1903_p13 = pnand %p1901_p8, %p2292_p6  ;;  %p1909_p3 = scmp.lt.s32.totalorder %s1907_s27, %s1900_s20 }
  0xd9   : > { %p1904_p4 = pneg %p1903_p13  ;;  %p1910_p12 = por %p1909_p3, %p1908_p1 }
  0xdb   : > { %p1911_p0 = pnand %p1910_p12, %p1904_p4 }
  0xdd   : > { %1914 = shalt.err (!%p1911_p0)
}
  0xde   : > { %p2722_p2 = scmp.ne.s32.totalorder %s2712_s17, 0  ;;  %s2421_s29 = scalar_lea.hbm %s2658_s3, %s2265_s19 }
  0xdf   : > { %s393_s4 = scalar_lea.vmem [#allocation8], %s2262_s16  ;;  %s2723_s12 = sand.u32 1, %s2047_s10  }
  0xe0   : > { %1572 = dma.hbm_to_vmem [thread:$0]  (!%p2722_p2), %s380_s1, 16, %s383_s25, %s2286_s5  }
  0xe1   : > { %s402_s22 = sshll.u32 %s393_s4, 4  ;;  %s2428_s30 = scalar_lea.sflag [#allocation9], %s2723_s12  ;;  %s2424_s22 = int_to_ptr.vmem [resolvable:$true] %s402_s22 }
  0xe2   : > { %s1915_s11 = scalar_lea.hbm %s2421_s29, 128  ;;  %s1920_s19 = scalar_lea.hbm %s2658_s3, 256 }
  0xe3   : > { %p1916_p12 = scmp.ne.s32.totalorder %s2421_s29, %s1915_s11  ;;  %p1921_p5 = scmp.lt.u32.totalorder %s2421_s29, %s2658_s3 }
  0xe4   : > { %p1922_p7 = scmp.lt.u32.totalorder %s1920_s19, %s1915_s11  ;;  %p1924_p8 = scmp.lt.u32.totalorder %s1915_s11, %s2421_s29 }
  0xe5   : > { %p1918_p9 = pnand %p1916_p12, %p2292_p6 }
  0xe6   : > { %p1923_p11 = por %p1922_p7, %p1921_p5 }
  0xe7   : > { %p1919_p10 = pneg %p1918_p9 }
  0xe8   : > { %p1925_p13 = por %p1924_p8, %p1923_p11 }
  0xea   : > { %p1926_p4 = pnand %p1925_p13, %p1919_p10 }
  0xec   : > { %1929 = shalt.err (!%p1926_p4)
}
  0xed   : > { %s1930_s16 = scalar_lea.vmem %s2424_s22, 128  ;;  %s2058_s13 = smov [#allocation8]  }
  0xee   : > { %p1931_p1 = scmp.ne.s32.totalorder %s2424_s22, %s1930_s16  ;;  %s1935_s20 = sshll.u32 %s2058_s13, 4  ;;  %s1936_s20 = int_to_ptr.vmem [resolvable:$false] %s1935_s20 }
  0xef   : > { %s1937_s21 = scalar_lea.vmem %s1936_s20, 256  ;;  %p1938_p12 = scmp.lt.s32.totalorder %s2424_s22, %s1936_s20 }
  0xf0   : > { %p1933_p3 = pnand %p1931_p1, %p2292_p6  ;;  %p1939_p9 = scmp.lt.s32.totalorder %s1937_s21, %s1930_s16 }
  0xf2   : > { %p1934_p0 = pneg %p1933_p3  ;;  %p1940_p5 = por %p1939_p9, %p1938_p12 }
  0xf4   : > { %p1941_p7 = pnand %p1940_p5, %p1934_p0 }
  0xf6   : > { %1944 = shalt.err (!%p1941_p7)
}
  0xf7   : > { %1575 = dma.hbm_to_vmem [thread:$0]  (!%p2722_p2), %s2421_s29, 128, %s2424_s22, %s2428_s30, %s2717_s14, %s2717_s14, %s2716_s23  }
  0xf8   : > { %p2724_p6 = scmp.ne.s32.totalorder %s2703_s15, 0 }
  0xf9   : > { %s2725_s24 = sld [smem:[#allocation28_spill]] (!%p2724_p6)  ;;  %s2458_s18 = sand.u32 (!%p2724_p6), 1, %s2031_s28  }
  0xfa   : > { %414 = sbr.rel (%p2724_p6) target bundleno = 1957 (0x7a5), region = 52  ;;  %s2461_s27 = sshll.u32 (!%p2724_p6), %s2458_s18, 3 }
  0xfb   : > { %s417_s17 = scalar_lea.sflag (!%p2724_p6), [#allocation3], %s2458_s18  ;;  %s420_s0 = scalar_lea.vmem (!%p2724_p6), [#allocation2], %s2461_s27 }
  0xff   : > { %p2726_p10 = scmp.ne.s32.totalorder (!%p2724_p6), %s2725_s24, 0 }
 0x101   : > { %1998 = dma.done.wait (%p2726_p10), %s417_s17, 128  }
 0x102   : > { %2000 = vsyncadd (%p2726_p10), %s417_s17, 4294967168  ;;  %s2727_s23 = sld [smem:[#allocation27_spill]]  ;;  %s429_s8 = scalar_lea.vmem [#allocation5], %s2461_s27 }
 0x108   : > { %s425_s15 = sand.u32 1, %s2727_s23  }
 0x109   : > { %s426_s14 = scalar_lea.sflag [#allocation6], %s425_s15 }
 0x10a   : > { %2002 = dma.done.wait (%p2726_p10), %s426_s14, 144  }
 0x10b   : > { %2004 = vsyncadd (%p2726_p10), %s426_s14, 4294967152  ;;  %s437_s29 = scalar_lea.vmem [#allocation7], %s2458_s18  ;;  %s443_s4 = scalar_lea.sflag [#allocation9], %s425_s15 }
 0x10c   : > { %s446_s22 = scalar_lea.vmem [#allocation8], %s2461_s27 }
 0x10d   : > { %2006 = dma.done.wait (%p2726_p10), %s443_s4, 128  }
 0x10e   : > { %2008 = vsyncadd (%p2726_p10), %s443_s4, 4294967168  ;;  %p2728_p2 = scmp.eq.s32.totalorder %s2727_s23, 0 }
 0x110   : > { %2010 = dma.done.wait (%p2728_p2), [#allocation9], 256   ;;  %p2729_p11 = pmov %p2728_p2 }
 0x111   : > { %p2730_p8 = pmov %p2728_p2 }
 0x112   : > { %2012 = vsyncadd (%p2729_p11), [#allocation9], 4294967040 }
 0x113   : > { %2014 = dma.done.wait (%p2730_p8), [#allocation12], 32   ;;  %p2731_p13 = pmov %p2728_p2 }
 0x114   : > { %p2732_p4 = pmov %p2728_p2 }
 0x115   : > { %2016 = vsyncadd (%p2731_p13), [#allocation12], 4294967264 }
 0x116   : > { %2018 = dma.done.wait (%p2732_p4), [#allocation15], 16   ;;  %p2733_p1 = pmov %p2728_p2 }
 0x117   : > { %v2059_v0 = vmov 0.0   ;;  %vm2060_vm0 = vmmov 0   ;;  %vm534_vm1 = vcmask 64512   ;;  %v2499_v1 = vld [vmem:[%s429_s8] sm:$0xff]   ;;  %v1674_v3 = vld [vmem:[%s420_s0] sm:$0x1f]  }
 0x118   : > { %2020 = vsyncadd (%p2733_p1), [#allocation15], 4294967280  ;;  %1468 = vmatprep.subr.bf16.mxu0 %v2059_v0  ;;  %1470 = vmatprep.mubr.msk.bf16.mxu0 %vm2060_vm0, %v2059_v0  ;;  %v539_v2 = vsel %vm534_vm1, %v2499_v1, 0  ;;  %s2061_s12 = smov 96   ;;  %s2062_s30 = smov 120   ;;  %vm582_vm2 = vcmask 130048  }
 0x119   : > { %1474 = vmatprep.subr.bf16.mxu1 %v2059_v0  ;;  %1476 = vmatprep.mubr.msk.bf16.mxu1 %vm2060_vm0, %v2059_v0  ;;  %s2063_s11 = smov 112   ;;  %s2064_s5 = smov 104   ;;  %v2513_v4 = vld [vmem:[%s437_s29] ss:$0 sm:$0xff]  ;;  %vm586_vm3 = vcmask 122880   ;;  %vm1045_vm4 = vcmask 195584  }
 0x11a   : > { %1469 = vmatpush3.bf16.xpose.msra.mxu0 %v539_v2  ;;  %603 = vrot.lane.b32.xlu1 %v2499_v1, %s2061_s12  ;;  %s2065_s25 = smov 88   ;;  %s2066_s19 = smov 72   ;;  %vm1072_vm5 = vcmask 261120   ;;  %vm1128_vm6 = vcmask 253952   ;;  %vm1180_vm7 = vsmask.f32 256 }
 0x11b   : > { %1486 = vmatprep.subr.bf16.mxu0 %v2059_v0  ;;  %s2067_s1 = smov 80   ;;  %s2068_s26 = smov 8   ;;  %vm1181_vm8 = vmand %vm1128_vm6, %vm1180_vm7  ;;  %vm1177_vm9 = vcmask 257024  }
 0x11c   : > { %s2069_s16 = smov 16   ;;  %s2070_s13 = smov 24  }
 0x11d   : > { %s2734_s20 = sld [smem:[#allocation26_spill]]  ;;  %s508_s21 = scalar_lea.vmem [#allocation16], %s2461_s27 }
 0x11e   : > { %656 = vrot.lane.b32.xlu1 %v2499_v1, %s2062_s30  ;;  %s2735_s24 = sld [smem:[#allocation31_spill]]  ;;  %s1201_s0 = sshll.u32 %s508_s21, 4  ;;  %s2606_s0 = int_to_ptr.vmem [resolvable:$true] %s1201_s0 }
 0x11f   : > { %s2736_s14 = sld [smem:[#allocation37_spill]]  ;;  %s1186_s27 = scalar_lea.sflag [#allocation4], %s2458_s18 }
 0x120   : > { %s1945_s29 = scalar_lea.vmem %s2606_s0, 128  ;;  %s2071_s4 = smov [#allocation16]  }
 0x121   : > { %1471 = vmatmul.mubr.msk.bf16.vlgmr.msra.gmra.mrb[0].mxu0 %vm534_vm1, %v1674_v3  ;;  %p1946_p3 = scmp.ne.s32.totalorder %s2606_s0, %s1945_s29 }
 0x122   : > { %1488 = vmatprep.mubr.msk.bf16.mxu0 %vm2060_vm0, %v2059_v0  ;;  %777 = vrot.lane.b32.xlu1 %v2499_v1, %s2063_s11 }
 0x123   : > { %s1448_s17 = sshll.u32 %s2734_s20, 7 }
 0x124   : > { %p2737_p0 = scmp.ne.s32.totalorder %s2735_s24, 0 }
 0x125   : > { %s2604_s8 = scalar_lea.hbm %s2736_s14, %s1448_s17 }
 0x126   : > { %775 = vrot.lane.b32.xlu1 %v1674_v3, %s2063_s11  ;;  %p1947_p12 = pnand %p1946_p3, %p2737_p0 }
 0x128   : > { %p1948_p9 = pneg %p1947_p12 }
 0x12a   : > { %898 = vrot.lane.b32.xlu1 %v2499_v1, %s2064_s5 }
 0x12e   : > { %896 = vrot.lane.b32.xlu1 %v1674_v3, %s2064_s5 }
 0x132   : > { %724 = vrot.lane.b32.xlu1 %v2499_v1, %s2065_s25 }
 0x18c   : > { %v604_v13 = vpop.permute.xlu1 %603 }
 0x18d   : > { %1475 = vmatpush3.bf16.msra.mxu1 %v604_v13 }
 0x18e   : > { %1480 = vmatprep.subr.bf16.mxu1 %v2059_v0 }
 0x190   : > { %v657_v20 = vpop.permute.xlu1 %656 }
 0x191   : > { %v662_v23 = vsel %vm534_vm1, %v657_v20, 0 }
 0x194   : > { %v778_v25 = vpop.permute.xlu1 %777 }
 0x195   : > { %v783_v28 = vsel %vm534_vm1, %v778_v25, 0 }
 0x198   : > { %v776_v27 = vpop.permute.xlu1 %775 }
 0x19c   : > { %v899_v29 = vpop.permute.xlu1 %898 }
 0x19d   : > { %v904_v30 = vsel %vm534_vm1, %v899_v29, 0 }
 0x1a0   : > { %v897_v31 = vpop.permute.xlu1 %896 }
 0x1a4   : > { %v725_v32 = vpop.permute.xlu1 %724 }
 0x1a5   : > { %1487 = vmatpush3.bf16.msra.mxu0 %v725_v32 }
 0x1a6   : > { %1498 = vmatprep.subr.bf16.mxu0 %v2059_v0 }
 0x1f4   : > { %v575_v5 = vpop.f32.mrb[0].mxu0 }
 0x1f5   : > { %v576_v6 = vadd.f32 %v2513_v4, %v575_v5  ;;  %v1472_v7 = vpop.f32.mrb[1].mxu0 }
 0x1f6   : > { %v578_v8 = vpop.f32.mrb[2].mxu0 }
 0x1f7   : > { %v579_v9 = vadd.f32 %v2513_v4, %v578_v8  ;;  %v1473_v10 = vpop.f32.mrb[3].mxu0  ;;  %v583_v11 = vsel %vm582_vm2, %v576_v6, -inf }
 0x1f8   : > { %584 = vmax.xlane.f32.xlu0 %v583_v11 }
 0x1f9   : > { %v587_v12 = vsel %vm586_vm3, %v579_v9, -inf }
 0x1fc   : > { %588 = vmax.xlane.f32.xlu0 %v587_v12 }
 0x212   : > { %654 = vrot.lane.b32.xlu0 %v1674_v3, %s2062_s30 }
 0x285   : > { %v585_v14 = vpop.xlane.xlu0 %584 }
 0x286   : > { %v590_v15 = vsub.f32 %v576_v6, %v585_v14 }
 0x288   : > { %v592_v16 = vmul.f32 1.442695, %v590_v15 }
 0x289   : > { %v589_v17 = vpop.xlane.xlu0 %588 }
 0x28a   : > { %v591_v18 = vsub.f32 %v579_v9, %v589_v17  ;;  %1677 = vpow2.f32 %v592_v16 }
 0x28c   : > { %v594_v19 = vmul.f32 1.442695, %v591_v18 }
 0x28d   : > { %v655_v26 = vpop.permute.xlu0 %654 }
 0x28e   : > { %1679 = vpow2.f32 %v594_v19 }
 0x294   : > { %v2521_v21 = vpop.eup %1677 }
 0x298   : > { %v2523_v22 = vpop.eup %1679 }
 0x299   : > { %v602_v24 = vpack.c.bf16 %v2523_v22, %v2521_v21 }
 0x29b   : > { %1477 = vmatmul.mubr.msk.bf16.vlgmr.msra.gmra.mrb[0].mxu1 %vm582_vm2, %v602_v24 }
 0x29c   : > { %1481 = vmatpush3.bf16.xpose.msra.mxu1 %v662_v23  ;;  %1482 = vmatprep.mubr.msk.bf16.mxu1 %vm2060_vm0, %v2059_v0 }
 0x29d   : > { %1492 = vmatprep.subr.bf16.mxu1 %v2059_v0 }
 0x2a3   : > { %1483 = vmatmul.mubr.msk.bf16.vlgmr.msra.gmra.mrb[4].mxu1 %vm534_vm1, %v655_v26 }
 0x2a4   : > { %1493 = vmatpush3.bf16.xpose.msra.mxu1 %v783_v28  ;;  %1494 = vmatprep.mubr.msk.bf16.mxu1 %vm2060_vm0, %v2059_v0 }
 0x2a5   : > { %1504 = vmatprep.subr.bf16.mxu1 %v2059_v0 }
 0x2ab   : > { %1495 = vmatmul.mubr.msk.bf16.vlgmr.msra.gmra.mrb[8].mxu1 %vm534_vm1, %v776_v27 }
 0x2ac   : > { %1505 = vmatpush3.bf16.xpose.msra.mxu1 %v904_v30  ;;  %1506 = vmatprep.mubr.msk.bf16.mxu1 %vm2060_vm0, %v2059_v0 }
 0x2ad   : > { %1516 = vmatprep.subr.bf16.mxu1 %v2059_v0 }
 0x2b3   : > { %1507 = vmatmul.mubr.msk.bf16.vlgmr.msra.gmra.mrb[12].mxu1 %vm534_vm1, %v897_v31 }
 0x2b4   : > { %1520 = vmatprep.mubr.msk.bf16.mxu1 %vm2060_vm0, %v2059_v0 }
 0x36e   : > { %v2546_v33 = vpop.f32.mrb[0].mxu1 }
 0x36f   : > { %v1478_v34 = vpop.f32.mrb[1].mxu1 }
 0x370   : > { %v2548_v35 = vpop.f32.mrb[2].mxu1 }
 0x371   : > { %v1479_v36 = vpop.f32.mrb[3].mxu1 }
 0x376   : > { %v698_v37 = vpop.f32.mrb[4].mxu1 }
 0x377   : > { %v699_v38 = vadd.f32 %v2513_v4, %v698_v37  ;;  %v1484_v39 = vpop.f32.mrb[5].mxu1  ;;  %v596_v37 = vsel %vm582_vm2, %v2521_v21, 0.0 }
 0x378   : > { %v701_v40 = vpop.f32.mrb[6].mxu1 }
 0x379   : > { %v702_v41 = vadd.f32 %v2513_v4, %v701_v40  ;;  %v1485_v42 = vpop.f32.mrb[7].mxu1  ;;  %v705_v43 = vsel %vm582_vm2, %v699_v38, -inf }
 0x37a   : > { %706 = vmax.xlane.f32.xlu1 %v705_v43 }
 0x37b   : > { %v708_v44 = vsel %vm586_vm3, %v702_v41, -inf }
 0x37c   : > { %709 = vmax.xlane.f32.xlu0 %v708_v44 }
 0x37e   : > { %v819_v45 = vpop.f32.mrb[8].mxu1 }
 0x37f   : > { %v820_v46 = vadd.f32 %v2513_v4, %v819_v45  ;;  %v1496_v47 = vpop.f32.mrb[9].mxu1 }
 0x380   : > { %v822_v48 = vpop.f32.mrb[10].mxu1 }
 0x381   : > { %v823_v49 = vadd.f32 %v2513_v4, %v822_v48  ;;  %v1497_v50 = vpop.f32.mrb[11].mxu1  ;;  %v826_v51 = vsel %vm582_vm2, %v820_v46, -inf }
 0x382   : > { %827 = vmax.xlane.f32.xlu1 %v826_v51  ;;  %v1675_v51 = vld [vmem:[#allocation10] sm:$0xff]  }
 0x383   : > { %v829_v52 = vsel %vm586_vm3, %v823_v49, -inf  ;;  %1517 = vmatpush3.bf16.msra.mxu1 %v1675_v51 }
 0x384   : > { %830 = vmax.xlane.f32.xlu0 %v829_v52  ;;  %1518 = vmatprep.subr.bf16.mxu1 %v2059_v0 }
 0x386   : > { %v940_v53 = vpop.f32.mrb[12].mxu1 }
 0x387   : > { %v941_v54 = vadd.f32 %v2513_v4, %v940_v53  ;;  %v1508_v55 = vpop.f32.mrb[13].mxu1 }
 0x388   : > { %v943_v56 = vpop.f32.mrb[14].mxu1 }
 0x389   : > { %v944_v57 = vadd.f32 %v2513_v4, %v943_v56  ;;  %v1509_v58 = vpop.f32.mrb[15].mxu1  ;;  %v947_v59 = vsel %vm582_vm2, %v941_v54, -inf }
 0x38a   : > { %948 = vmax.xlane.f32.xlu1 %v947_v59  ;;  %v1676_v58 = vld [vmem:[#allocation10 + $0x8] sm:$0xff]  }
 0x38b   : > { %v950_v60 = vsel %vm586_vm3, %v944_v57, -inf  ;;  %1519 = vmatpush3.bf16.msra.mxu1 %v1676_v58 }
 0x38c   : > { %951 = vmax.xlane.f32.xlu0 %v950_v60 }
 0x39b   : > { %966 = vrot.lane.b32.xlu1 %v2499_v1, %s2066_s19 }
 0x3a2   : > { %845 = vrot.lane.b32.xlu0 %v2499_v1, %s2067_s1 }
 0x407   : > { %v707_v61 = vpop.xlane.xlu1 %706 }
 0x408   : > { %v711_v62 = vsub.f32 %v699_v38, %v707_v61  ;;  %v599_v38 = vsel %vm586_vm3, %v2523_v22, 0.0 }
 0x409   : > { %v710_v63 = vpop.xlane.xlu0 %709 }
 0x40a   : > { %v713_v2 = vmul.f32 1.442695, %v711_v62  ;;  %v712_v3 = vsub.f32 %v702_v41, %v710_v63 }
 0x40c   : > { %1681 = vpow2.f32 %v713_v2  ;;  %v715_v4 = vmul.f32 1.442695, %v712_v3 }
 0x40e   : > { %1683 = vpow2.f32 %v715_v4 }
 0x40f   : > { %v828_v5 = vpop.xlane.xlu1 %827 }
 0x410   : > { %v832_v6 = vsub.f32 %v820_v46, %v828_v5 }
 0x411   : > { %v831_v7 = vpop.xlane.xlu0 %830 }
 0x412   : > { %v834_v8 = vmul.f32 1.442695, %v832_v6  ;;  %v833_v9 = vsub.f32 %v823_v49, %v831_v7 }
 0x414   : > { %1685 = vpow2.f32 %v834_v8  ;;  %v836_v10 = vmul.f32 1.442695, %v833_v9 }
 0x416   : > { %v1682_v11 = vpop.eup %1681  ;;  %1687 = vpow2.f32 %v836_v10 }
 0x417   : > { %v949_v12 = vpop.xlane.xlu1 %948  ;;  %v717_v1 = vsel %vm582_vm2, %v1682_v11, 0.0 }
 0x418   : > { %v1684_v13 = vpop.eup %1683  ;;  %v953_v14 = vsub.f32 %v941_v54, %v949_v12  ;;  %718 = vadd.xlane.f32.xlu1 %v717_v1 }
 0x419   : > { %v952_v15 = vpop.xlane.xlu0 %951  ;;  %v720_v16 = vsel %vm586_vm3, %v1684_v13, 0.0  ;;  %v723_v17 = vpack.c.bf16 %v1684_v13, %v1682_v11 }
 0x41a   : > { %v955_v18 = vmul.f32 1.442695, %v953_v14  ;;  %v954_v19 = vsub.f32 %v944_v57, %v952_v15  ;;  %721 = vadd.xlane.f32.xlu0 %v720_v16 }
 0x41b   : > { %1489 = vmatmul.mubr.msk.bf16.vlgmr.msra.gmra.mrb[4].mxu0 %vm582_vm2, %v723_v17  ;;  %v967_v29 = vpop.permute.xlu1 %966 }
 0x41c   : > { %1689 = vpow2.f32 %v955_v18  ;;  %v957_v20 = vmul.f32 1.442695, %v954_v19  ;;  %1500 = vmatprep.mubr.msk.bf16.mxu0 %vm2060_vm0, %v2059_v0 }
 0x41d   : > { %v846_v23 = vpop.permute.xlu0 %845 }
 0x41e   : > { %v1686_v24 = vpop.eup %1685  ;;  %1691 = vpow2.f32 %v957_v20  ;;  %1499 = vmatpush3.bf16.msra.mxu0 %v846_v23 }
 0x41f   : > { %v838_v25 = vsel %vm582_vm2, %v1686_v24, 0.0  ;;  %1510 = vmatprep.subr.bf16.mxu0 %v2059_v0 }
 0x420   : > { %v1688_v26 = vpop.eup %1687  ;;  %839 = vadd.xlane.f32.xlu0 %v838_v25 }
 0x421   : > { %v841_v27 = vsel %vm586_vm3, %v1688_v26, 0.0  ;;  %v844_v28 = vpack.c.bf16 %v1688_v26, %v1686_v24 }
 0x422   : > { %842 = vadd.xlane.f32.xlu1 %v841_v27 }
 0x423   : > { %1501 = vmatmul.mubr.msk.bf16.vlgmr.msra.gmra.mrb[8].mxu0 %vm582_vm2, %v844_v28 }
 0x424   : > { %1511 = vmatpush3.bf16.msra.mxu0 %v967_v29  ;;  %1512 = vmatprep.mubr.msk.bf16.mxu0 %vm2060_vm0, %v2059_v0 }
 0x426   : > { %v1690_v30 = vpop.eup %1689 }
 0x427   : > { %v959_v31 = vsel %vm582_vm2, %v1690_v30, 0.0 }
 0x428   : > { %v1692_v32 = vpop.eup %1691  ;;  %960 = vadd.xlane.f32.xlu0 %v959_v31 }
 0x429   : > { %v962_v34 = vsel %vm586_vm3, %v1692_v32, 0.0  ;;  %v965_v36 = vpack.c.bf16 %v1692_v32, %v1690_v30  ;;  %v1118_v32 = vld [vmem:[%s446_s22 + $0x4] sm:$0x1] }
 0x42a   : > { %963 = vadd.xlane.f32.xlu1 %v962_v34 }
 0x42b   : > { %1513 = vmatmul.mubr.msk.bf16.vlgmr.msra.gmra.mrb[12].mxu0 %vm582_vm2, %v965_v36 }
 0x42c   : > { %597 = vadd.xlane.f32.xlu0 %v596_v37 }
 0x42e   : > { %600 = vadd.xlane.f32.xlu1 %v599_v38 }
 0x4a5   : > { %v719_v39 = vpop.xlane.xlu1 %718 }
 0x4a6   : > { %1693 = vrcp.f32 %v719_v39  ;;  %v1120_v39 = vunpack.c.l.bf16 %v1118_v32 }
 0x4a7   : > { %v722_v40 = vpop.xlane.xlu0 %721 }
 0x4a8   : > { %1695 = vrcp.f32 %v722_v40 }
 0x4ad   : > { %v840_v41 = vpop.xlane.xlu0 %839 }
 0x4ae   : > { %1697 = vrcp.f32 %v840_v41 }
 0x4af   : > { %v843_v42 = vpop.xlane.xlu1 %842 }
 0x4b0   : > { %1699 = vrcp.f32 %v843_v42  ;;  %v1694_v44 = vpop.eup %1693 }
 0x4b2   : > { %v1696_v46 = vpop.eup %1695 }
 0x4b5   : > { %v961_v50 = vpop.xlane.xlu0 %960 }
 0x4b6   : > { %1701 = vrcp.f32 %v961_v50 }
 0x4b7   : > { %v964_v22 = vpop.xlane.xlu1 %963 }
 0x4b8   : > { %1703 = vrcp.f32 %v964_v22  ;;  %v1698_v54 = vpop.eup %1697 }
 0x4b9   : > { %v598_v9 = vpop.xlane.xlu0 %597 }
 0x4ba   : > { %v1700_v56 = vpop.eup %1699  ;;  %1705 = vrcp.f32 %v598_v9 }
 0x4bb   : > { %v601_v10 = vpop.xlane.xlu1 %600 }
 0x4bc   : > { %1707 = vrcp.f32 %v601_v10 }
 0x4c0   : > { %v1702_v2 = vpop.eup %1701 }
 0x4c2   : > { %v1704_v4 = vpop.eup %1703 }
 0x4c4   : > { %v1706_v12 = vpop.eup %1705 }
 0x4c5   : > { %v652_v18 = vmul.f32 %v1706_v12, %v2546_v33  ;;  %v1117_v33 = vld [vmem:[%s446_s22] sm:$0xf]  ;;  %s1949_s22 = sshll.u32 %s2071_s4, 4  ;;  %s1950_s22 = int_to_ptr.vmem [resolvable:$false] %s1949_s22 }
 0x4c6   : > { %v1708_v13 = vpop.eup %1707  ;;  %v1119_v34 = vunpack.c.l.bf16 %v1117_v33  ;;  %s1951_s12 = scalar_lea.vmem %s1950_s22, 256  ;;  %p1952_p5 = scmp.lt.s32.totalorder %s2606_s0, %s1950_s22 }
 0x4c7   : > { %v653_v19 = vmul.f32 %v1708_v13, %v2548_v35  ;;  %v1430_v35 = vld [vmem:[#allocation11] ss:$0 sm:$0xff]  ;;  %p1953_p7 = scmp.lt.s32.totalorder %s1951_s12, %s1945_s29 }
 0x4c9   : > { %p1954_p6 = por %p1953_p7, %p1952_p5 }
 0x4cb   : > { %p1955_p10 = pnand %p1954_p6, %p1948_p9 }
 0x4ee   : > { %v764_v43 = vpop.f32.mrb[4].mxu0 }
 0x4ef   : > { %v1490_v45 = vpop.f32.mrb[5].mxu0  ;;  %v773_v48 = vmul.f32 %v1694_v44, %v764_v43 }
 0x4f0   : > { %v767_v47 = vpop.f32.mrb[6].mxu0 }
 0x4f1   : > { %v774_v21 = vmul.f32 %v1696_v46, %v767_v47  ;;  %v1491_v49 = vpop.f32.mrb[7].mxu0 }
 0x4f3   : > { %v1658_v52 = vpack.i.bf16 %v774_v21, %v773_v48 }
 0x4f5   : > { %1659 = vrot.lane.b32.xlu0 %v1658_v52, %s2068_s26 }
 0x4f6   : > { %v885_v53 = vpop.f32.mrb[8].mxu0 }
 0x4f7   : > { %v1502_v55 = vpop.f32.mrb[9].mxu0  ;;  %v894_v59 = vmul.f32 %v1698_v54, %v885_v53 }
 0x4f8   : > { %v888_v57 = vpop.f32.mrb[10].mxu0 }
 0x4f9   : > { %v895_v60 = vmul.f32 %v1700_v56, %v888_v57  ;;  %v1503_v61 = vpop.f32.mrb[11].mxu0 }
 0x4fb   : > { %v1663_v62 = vpack.i.bf16 %v895_v60, %v894_v59 }
 0x4fd   : > { %1664 = vrot.lane.b32.xlu1 %v1663_v62, %s2069_s16  ;;  %v1434_v62 = vld [vmem:[#allocation13] ss:$0 sm:$0xff] }
 0x4fe   : > { %v1006_v63 = vpop.f32.mrb[12].mxu0 }
 0x4ff   : > { %v1514_v3 = vpop.f32.mrb[13].mxu0  ;;  %v1015_v0 = vmul.f32 %v1702_v2, %v1006_v63  ;;  %v1435_v2 = vld [vmem:[#allocation14] ss:$0 sm:$0xff] }
 0x500   : > { %v1009_v5 = vpop.f32.mrb[14].mxu0 }
 0x501   : > { %v1016_v6 = vmul.f32 %v1704_v4, %v1009_v5  ;;  %v1515_v7 = vpop.f32.mrb[15].mxu0 }
 0x503   : > { %v1668_v8 = vpack.i.bf16 %v1016_v6, %v1015_v0  ;;  %v1182_v6 = vld [vmem:[%s508_s21 + $0x4] sm:$0x1] }
 0x505   : > { %1669 = vrot.lane.b32.xlu1 %v1668_v8, %s2070_s13 }
 0x567   : > { %v1660_v11 = vpop.permute.xlu0 %1659 }
 0x568   : > { %v1662_v14 = vunpack.i.h.bf16 %v1660_v11  ;;  %v1661_v15 = vunpack.i.l.bf16 %v1660_v11 }
 0x56a   : > { %v1042_v23 = vsel %vm534_vm1, %v653_v19, %v1662_v14  ;;  %v1041_v24 = vsel %vm534_vm1, %v652_v18, %v1661_v15 }
 0x56f   : > { %v1665_v1 = vpop.permute.xlu1 %1664 }
 0x570   : > { %v1667_v16 = vunpack.i.h.bf16 %v1665_v1  ;;  %v1666_v17 = vunpack.i.l.bf16 %v1665_v1 }
 0x572   : > { %v1044_v27 = vsel %vm582_vm2, %v1042_v23, %v1667_v16  ;;  %v1043_v28 = vsel %vm582_vm2, %v1041_v24, %v1666_v17 }
 0x577   : > { %v1670_v20 = vpop.permute.xlu1 %1669 }
 0x578   : > { %v1672_v25 = vunpack.i.h.bf16 %v1670_v20  ;;  %v1671_v26 = vunpack.i.l.bf16 %v1670_v20 }
 0x57a   : > { %v1047_v29 = vsel %vm1045_vm4, %v1044_v27, %v1672_v25  ;;  %v1046_v30 = vsel %vm1045_vm4, %v1043_v28, %v1671_v26 }
 0x57b   : > { %v1048_v31 = vpack.c.bf16 %v1047_v29, %v1046_v30 }
 0x57d   : > { %1521 = vmatmul.mubr.msk.bf16.vlgmr.msra.gmra.mrb[16].mxu1 %vm1072_vm5, %v1048_v31 }
 0x650   : > { %v1110_v36 = vpop.f32.mrb[16].mxu1 }
 0x651   : > { %v1111_v37 = vadd.f32 %v1430_v35, %v1110_v36  ;;  %v1522_v38 = vpop.f32.mrb[17].mxu1 }
 0x652   : > { %v1113_v40 = vpop.f32.mrb[18].mxu1 }
 0x653   : > { %v1114_v41 = vadd.f32 %v1430_v35, %v1113_v40  ;;  %v1523_v42 = vpop.f32.mrb[19].mxu1  ;;  %v1121_v43 = vadd.f32 %v1119_v34, %v1111_v37 }
 0x655   : > { %v1125_v44 = vsel %vm1072_vm5, %v1121_v43, 0.0  ;;  %v1122_v45 = vadd.f32 %v1120_v39, %v1114_v41 }
 0x656   : > { %1126 = vadd.xlane.f32.xlu1 %v1125_v44 }
 0x657   : > { %v1129_v46 = vsel %vm1128_vm6, %v1122_v45, 0.0 }
 0x658   : > { %1130 = vadd.xlane.f32.xlu0 %v1129_v46 }
 0x6e3   : > { %v1127_v47 = vpop.xlane.xlu1 %1126 }
 0x6e4   : > { %v1133_v48 = vmul.f32 0.03125, %v1127_v47 }
 0x6e5   : > { %v1131_v21 = vpop.xlane.xlu0 %1130 }
 0x6e6   : > { %v1134_v49 = vmul.f32 0.03125, %v1131_v21  ;;  %v1135_v50 = vsub.f32 %v1121_v43, %v1133_v48 }
 0x6e8   : > { %v1136_v51 = vsub.f32 %v1122_v45, %v1134_v49  ;;  %v1137_v53 = vmul.f32 %v1135_v50, %v1135_v50 }
 0x6ea   : > { %v1138_v22 = vmul.f32 %v1136_v51, %v1136_v51  ;;  %v1139_v54 = vsel %vm1072_vm5, %v1137_v53, 0.0 }
 0x6ec   : > { %v1142_v52 = vsel %vm1128_vm6, %v1138_v22, 0.0 }
 0x6ed   : > { %1143 = vadd.xlane.f32.xlu0 %v1142_v52 }
 0x6f1   : > { %1140 = vadd.xlane.f32.xlu0 %v1139_v54 }
 0x77a   : > { %v1144_v55 = vpop.xlane.xlu0 %1143 }
 0x77b   : > { %v1146_v56 = vmul.f32 0.03125, %v1144_v55 }
 0x77d   : > { %v1148_v57 = vadd.f32 1e-05, %v1146_v56 }
 0x77e   : > { %v1141_v58 = vpop.xlane.xlu0 %1140 }
 0x77f   : > { %1709 = vrsqrt.f32 %v1148_v57  ;;  %v1145_v59 = vmul.f32 0.03125, %v1141_v58 }
 0x781   : > { %v1147_v60 = vadd.f32 1e-05, %v1145_v59 }
 0x783   : > { %1711 = vrsqrt.f32 %v1147_v60 }
 0x789   : > { %v1710_v61 = vpop.eup %1709 }
 0x78a   : > { %v1152_v63 = vmul.f32 %v1710_v61, %v1136_v51 }
 0x78c   : > { %v1160_v3 = vmul.f32 %v1434_v62, %v1152_v63 }
 0x78d   : > { %v1712_v4 = vpop.eup %1711 }
 0x78e   : > { %v1168_v5 = vadd.f32 %v1435_v2, %v1160_v3  ;;  %v1151_v0 = vmul.f32 %v1712_v4, %v1135_v50 }
 0x790   : > { %v1447_v7 = vpack.c.bf16 %v1168_v5, %v1168_v5  ;;  %v1159_v8 = vmul.f32 %v1434_v62, %v1151_v0 }
 0x792   : > { %v1167_v9 = vadd.f32 %v1435_v2, %v1159_v8  ;;  %v1183_v10 = vsel %vm1181_vm8, %v1447_v7, %v1182_v6 }
 0x793   : > { %1184 = vst [vmem:[%s508_s21 + $0x4] sm:$0x1] %v1183_v10 }
 0x794   : > { %v1446_v11 = vpack.c.bf16 %v1167_v9, %v1167_v9 }
 0x796   : > { %1178 = vst.msk [vmem:[%s508_s21] sm:$0xf] %vm1177_vm9, %v1446_v11 }
 0x797   : > { %1958 = shalt.err (!%p1955_p10)
}
 0x798   : > { %s1959_s30 = scalar_lea.hbm %s2604_s8, 128  ;;  %s1963_s25 = scalar_lea.hbm %s2736_s14, 256 }
 0x799   : > { %p1960_p2 = scmp.ne.s32.totalorder %s2604_s8, %s1959_s30  ;;  %p1964_p13 = scmp.lt.u32.totalorder %s2604_s8, %s2736_s14 }
 0x79a   : > { %p1965_p4 = scmp.lt.u32.totalorder %s1963_s25, %s1959_s30  ;;  %p1967_p3 = scmp.lt.u32.totalorder %s1959_s30, %s2604_s8 }
 0x79b   : > { %p1961_p11 = pnand %p1960_p2, %p2737_p0 }
 0x79c   : > { %p1966_p1 = por %p1965_p4, %p1964_p13 }
 0x79d   : > { %p1962_p8 = pneg %p1961_p11 }
 0x79e   : > { %p1968_p12 = por %p1967_p3, %p1966_p1 }
 0x7a0   : > { %p1969_p9 = pnand %p1968_p12, %p1962_p8 }
 0x7a2   : > { %1972 = shalt.err (!%p1969_p9)
}
 0x7a3   : > { %s2072_s26 = smov 64   ;;  %s2073_s16 = smov 4  }
 0x7a4   : > { %1548 = dma.vmem_to_hbm [thread:$0]  (%p2737_p0), %s2606_s0, 128, %s2604_s8, %s1186_s27, %s2072_s26, %s2072_s26, %s2073_s16  }
 0x7a5 PF: > { %s2738_s13 = sld [smem:[#allocation24_spill]]  ;;  %s2739_s20 = sld [smem:[#allocation29_spill]] }
 0x7a6   : > { %p2741_p7 = scmp.ge.s32.totalorder %s2047_s10, 2 }
 0x7ab   : > { %s1216_s21 = sand.u32 1, %s2738_s13   ;;  %p2740_p5 = scmp.ne.s32.totalorder %s2739_s20, 0 }
 0x7ac   : > { %s1217_s17 = scalar_lea.sflag [#allocation4], %s1216_s21 }
 0x7ad   : > { %p1577_p6 = pnand %p2741_p7, %p2740_p5 }
 0x7af   : > { %2022 = dma.done.wait (!%p1577_p6), %s1217_s17, 128  }
 0x7b0   : > { %2024 = vsyncadd (!%p1577_p6), %s1217_s17, 4294967168  ;;  %s32_s10 = sadd.s32 1, %s2047_s10   ;;  %s2742_s23 = sld [smem:[#allocation25_spill]] }
 0x7b1   : > { %p29_p10 = scmp.ge.s32.totalorder %s32_s10, 4   ;;  %s2743_s29 = sld [smem:[#allocation32_spill]] }
 0x7b2   : > { %s2744_s18 = sld [smem:[#allocation30_spill]]  ;;  %s2745_s27 = smov %s2031_s28 }
 0x7b3   : > { %s2747_s30 = smov %s2043_s9  ;;  %31 = sbr.rel (!%p29_p10) target bundleno = 18 (0x12), region = 150 }
 0x7b6   : > { %s2746_s28 = smov %s2742_s23 }
 0x7b8   : > { %s2748_s9 = smov %s2744_s18 }
 0x7ba   :  { %1222 = vsyncpa [#allocation3], 1 }
 0x7bb   :  { %1224 = vsyncpa [#allocation3 + $0x1], 1 }
 0x7bc   :  { %1225 = vsyncpa [#allocation6], 1 }
 0x7bd   :  { %1227 = vsyncpa [#allocation6 + $0x1], 1 }
 0x7be   :  { %1228 = vsyncpa [#allocation9], 1 }
 0x7bf   :  { %1230 = vsyncpa [#allocation9 + $0x1], 1 }
 0x7c0   :  { %1231 = vsyncpa [#allocation12], 1 }
 0x7c1   :  { %1232 = vsyncpa [#allocation15], 1 }
 0x7c2   :  { %1233 = vsyncpa [#allocation4], 1 }
 0x7c3   :  { %1235 = vsyncpa [#allocation4 + $0x1], 1 }

// kernel: transformer_forward.26
= control target key start
LH: loop header
LB: loop body
LE: loop exit
PB: predicated region body
PF: predicated region fallthrough
CT: control target
= control target key end

     0   :  { %s2695_s0 = inlined_call_operand.hbm [shape: bf16[2,9,32], index: 0, kind: input, shape index: {}]   ;;  %s2696_s1 = inlined_call_operand.hbm [shape: bf16[2,9,64], index: 1, kind: input, shape index: {}]   ;;  %s2697_s2 = inlined_call_operand.hbm [shape: f32[2,1,9], index: 2, kind: input, shape index: {}]   ;;  %s2698_s3 = inlined_call_operand.hbm [shape: bf16[2,9,32], index: 3, kind: input, shape index: {}]   ;;  %s2699_s4 = inlined_call_operand.hbm [shape: bf16[32,32], index: 4, kind: input, shape index: {}]   ;;  %s2700_s5 = inlined_call_operand.hbm [shape: f32[1,32], index: 5, kind: input, shape index: {}]   ;;  %s2701_s6 = inlined_call_operand.hbm [shape: f32[1,32], index: 6, kind: input, shape index: {}]   ;;  %s2702_s7 = inlined_call_operand.hbm [shape: f32[1,32], index: 7, kind: input, shape index: {}]   ;;  %s2703_s8 = inlined_call_operand.hbm [shape: bf16[2,9,32], index: 8, kind: output, shape index: {}]  }
   0x1   :  { %2730 = sst [smem:[#allocation33_spill]] %s2695_s0 }
   0x2   :  { %2731 = sst [smem:[#allocation34_spill]] %s2696_s1 }
   0x3   :  { %2732 = sst [smem:[#allocation35_spill]] %s2699_s4 }
   0x4   :  { %2733 = sst [smem:[#allocation36_spill]] %s2700_s5 }
   0x5   :  { %2734 = sst [smem:[#allocation37_spill]] %s2703_s8 }
   0x6   :  { %13 = vsyncpa [#allocation3], 0 }
   0x7   :  { %15 = vsyncpa [#allocation3 + $0x1], 0 }
   0x8   :  { %16 = vsyncpa [#allocation6], 0 }
   0x9   :  { %18 = vsyncpa [#allocation6 + $0x1], 0 }
   0xa   :  { %19 = vsyncpa [#allocation9], 0 }
   0xb   :  { %21 = vsyncpa [#allocation9 + $0x1], 0 }
   0xc   :  { %22 = vsyncpa [#allocation12], 0 }
   0xd   :  { %23 = vsyncpa [#allocation15], 0 }
   0xe   :  { %24 = vsyncpa [#allocation4], 0 }
   0xf   :  { %26 = vsyncpa [#allocation4 + $0x1], 0  ;;  %s2149_s27 = smov 0   ;;  %s2151_s28 = smov 0  }
  0x10   :  { %s2153_s29 = smov 0   ;;  %s2155_s30 = smov 0  }
  0x11   :  { %s2157_s9 = smov 0   ;;  %s2159_s10 = smov 0  }
  0x12 LB: > { %2735 = sst [smem:[#allocation24_spill]] %s2056_s27  ;;  %s2180_s11 = sadd.s32 4294967295, %s2076_s10   ;;  %s2076_s10 = sphi %s2159_s10, %s32_s10   ;;  %s2072_s9 = sphi %s2157_s9, %s2788_s9   ;;  %s2068_s30 = sphi %s2155_s30, %s2787_s30   ;;  %s2064_s29 = sphi %s2153_s29, %s2783_s29   ;;  %s2060_s28 = sphi %s2151_s28, %s2786_s28   ;;  %s2056_s27 = sphi %s2149_s27, %s2785_s27  }
  0x13   : > { %2736 = sst [smem:[#allocation25_spill]] %s2064_s29  ;;  %s1421_s12 = sadd.s32 4294967294, %s2076_s10  }
  0x14   : > { %2737 = sst [smem:[#allocation26_spill]] %s2068_s30  ;;  %p66_p0 = scmp.ne.s32.totalorder %s2060_s28, %s2056_s27 }
  0x15   : > { %2738 = sst [smem:[#allocation27_spill]] %s2180_s11  ;;  %p2704_p1 = scmp.eq.s32.totalorder %s2180_s11, 0 }
  0x16   : > { %p262_p3 = scmp.eq.s32.totalorder %s1421_s12, 1  ;;  %p1422_p5 = scmp.ge.s32.totalorder %s2076_s10, 1 }
  0x17   : > { %p2189_p4 = por %p2704_p1, %p66_p0  ;;  %p269_p7 = scmp.lt.s32.totalorder %s2076_s10, 3 }
  0x18   : > { %p2194_p6 = por %p262_p3, %p66_p0  ;;  %s2078_s16 = smov [#allocation10]  }
  0x19   : > { %s2739_s13 = scalar_select %p2189_p4, 1, 0 }
  0x1a   : > { %s2741_s14 = scalar_select %p2194_p6, 1, 0 }
  0x1b   : > { %2740 = sst [smem:[#allocation28_spill]] %s2739_s13  ;;  %p2199_p8 = pnand %p1422_p5, %p269_p7 }
  0x1c   : > { %2742 = sst [smem:[#allocation29_spill]] %s2741_s14  ;;  %s281_s17 = sshll.u32 %s2078_s16, 4  ;;  %s2203_s17 = int_to_ptr.vmem [resolvable:$true] %s281_s17 }
  0x1d   : > { %s2743_s15 = scalar_select %p2199_p8, 1, 0 }
  0x1e   : > { %p1578_p9 = pneg %p2199_p8  ;;  %s2079_s19 = smov [#allocation11]  }
  0x1f   : > { %s295_s20 = sshll.u32 %s2079_s19, 4  ;;  %s2745_s4 = sld [smem:[#allocation35_spill]]  ;;  %s2214_s20 = int_to_ptr.vmem [resolvable:$true] %s295_s20 }
  0x20   : > { %p2210_p11 = pnand %p1578_p9, %p2704_p1 }
  0x22   : > { %s2744_s18 = scalar_select %p2210_p11, 1, 0 }
  0x23   : > { %p2224_p13 = pneg %p2210_p11 }
  0x25   : > { %s1742_s23 = scalar_lea.hbm %s2745_s4, 256 }
  0x26   : > { %p1743_p12 = scmp.ne.s32.totalorder %s2745_s4, %s1742_s23  ;;  %p1749_p5 = scmp.lt.u32.totalorder %s1742_s23, %s2745_s4 }
  0x27   : > { %s2746_s26 = scalar_select %p2224_p13, 1, 0 }
  0x28   : > { %p1745_p0 = pnand %p2224_p13, %p1743_p12 }
  0x2a   : > { %p1746_p3 = pneg %p1745_p0 }
  0x2c   : > { %p1751_p7 = pnand %p1749_p5, %p1746_p3 }
  0x2e   : > { %1754 = shalt.err (!%p1751_p7)
}
  0x2f   : > { %s1755_s19 = scalar_lea.vmem %s2203_s17, 256  ;;  %p1763_p2 = scmp.lt.s32.totalorder %s2203_s17, %s2203_s17 }
  0x30   : > { %p1756_p9 = scmp.ne.s32.totalorder %s2203_s17, %s1755_s19  ;;  %p1764_p6 = scmp.lt.s32.totalorder %s1755_s19, %s1755_s19 }
  0x32   : > { %p1758_p10 = pnand %p1756_p9, %p2224_p13  ;;  %p1765_p12 = por %p1764_p6, %p1763_p2 }
  0x34   : > { %p1759_p1 = pneg %p1758_p10 }
  0x36   : > { %p1766_p0 = pnand %p1765_p12, %p1759_p1 }
  0x38   : > { %1769 = shalt.err (!%p1766_p0)
}
  0x39   : > { %s2708_s21 = smov 64   ;;  %s2710_s22 = smov 4  }
  0x3a   : > { %1581 = dma.hbm_to_vmem [thread:$0]  (!%p2210_p11), %s2745_s4, 256, %s2203_s17, [#allocation9], %s2708_s21, %s2708_s21, %s2710_s22  }
  0x3b   : > { %s2747_s5 = sld [smem:[#allocation36_spill]] }
  0x41   : > { %s1770_s16 = scalar_lea.hbm %s2747_s5, 16 }
  0x42   : > { %p1771_p1 = scmp.ne.s32.totalorder %s2747_s5, %s1770_s16  ;;  %p1777_p10 = scmp.lt.u32.totalorder %s1770_s16, %s2747_s5 }
  0x44   : > { %p1773_p2 = pnand %p1771_p1, %p2224_p13 }
  0x46   : > { %p1774_p6 = pneg %p1773_p2 }
  0x48   : > { %p1779_p3 = pnand %p1777_p10, %p1774_p6 }
  0x4a   : > { %1782 = shalt.err (!%p1779_p3)
}
  0x4b   : > { %s1783_s17 = scalar_lea.vmem %s2214_s20, 16  ;;  %s1790_s14 = scalar_lea.vmem %s2214_s20, 32 }
  0x4c   : > { %p1784_p5 = scmp.ne.s32.totalorder %s2214_s20, %s1783_s17  ;;  %p1791_p12 = scmp.lt.s32.totalorder %s2214_s20, %s2214_s20 }
  0x4d   : > { %p1792_p0 = scmp.lt.s32.totalorder %s1790_s14, %s1783_s17 }
  0x4e   : > { %p1786_p7 = pnand %p1784_p5, %p2224_p13 }
  0x4f   : > { %p1793_p1 = por %p1792_p0, %p1791_p12 }
  0x50   : > { %p1787_p9 = pneg %p1786_p7 }
  0x52   : > { %p1794_p2 = pnand %p1793_p1, %p1787_p9 }
  0x54   : > { %1797 = shalt.err (!%p1794_p2)
}
  0x55   : > { %1584 = dma.hbm_to_vmem [thread:$0]  (!%p2210_p11), %s2747_s5, 16, %s2214_s20, [#allocation12]  }
  0x56   : > { %s44_s23 = sadd.s32 1, %s2072_s9  ;;  %s53_s24 = sadd.s32 1, %s2064_s29 }
  0x57   : > { %p46_p6 = scmp.ge.s32.totalorder %s44_s23, 2  ;;  %p60_p10 = scmp.ne.s32.totalorder %s2064_s29, %s2060_s28 }
  0x58   : > { %p61_p3 = scmp.eq.s32.totalorder %s2076_s10, 0  ;;  %p1612_p5 = scmp.lt.s32.totalorder %s2076_s10, 2 }
  0x59   : > { %s2790_s23 = smov (%p46_p6, %s44_s23), 0  ;;  %p2749_p9 = scmp.eq.s32.totalorder %s2180_s11, 1 }
  0x5a   : > { %2748 = sst [smem:[#allocation30_spill]] %s2790_s23  ;;  %p62_p7 = por %p61_p3, %p60_p10 }
  0x5b   : > { %p2282_p12 = por %p2749_p9, %p60_p10  ;;  %s48_s12 = ssub.s32 %s2072_s9, %s2790_s23 }
  0x5c   : > { %s2289_s20 = sand.u32 1, %s2064_s29   ;;  %p51_p0 = scmp.eq.s32.totalorder %s48_s12, 0 }
  0x5d   : > { %s2750_s25 = scalar_select %p2282_p12, 1, 0 }
  0x5e   : > { %s2292_s16 = sshll.u32 %s2289_s20, 3  ;;  %s2295_s19 = sshll.u32 %s2072_s9, 7 }
  0x5f   : > { %2751 = sst [smem:[#allocation31_spill]] %s2750_s25  ;;  %p2297_p1 = pnand %p1612_p5, %p62_p7 }
  0x60   : > { %s2302_s14 = scalar_select %p51_p0, %s2064_s29, %s53_s24  }
  0x61   : > { %s2752_s17 = scalar_select %p2297_p1, 1, 0 }
  0x62   : > { %2753 = sst [smem:[#allocation32_spill]] %s2302_s14  ;;  %s2716_s8 = sand.u32 1, %s2076_s10  }
  0x63   : > { %s2754_s1 = sld [smem:[#allocation34_spill]]  ;;  %s355_s12 = scalar_lea.vmem [#allocation5], %s2292_s16 }
  0x64   : > { %s362_s4 = sshll.u32 %s355_s12, 4  ;;  %s2316_s5 = scalar_lea.sflag [#allocation6], %s2716_s8  ;;  %s2312_s4 = int_to_ptr.vmem [resolvable:$true] %s362_s4 }
  0x65   : > { %p2322_p6 = pneg %p2297_p1 }
  0x69   : > { %s2309_s22 = scalar_lea.hbm %s2754_s1, %s2295_s19  ;;  %s1803_s12 = scalar_lea.hbm %s2754_s1, 256 }
  0x6a   : > { %s1798_s23 = scalar_lea.hbm %s2309_s22, 128  ;;  %p1804_p5 = scmp.lt.u32.totalorder %s2309_s22, %s2754_s1 }
  0x6b   : > { %p1799_p2 = scmp.ne.s32.totalorder %s2309_s22, %s1798_s23  ;;  %p1805_p7 = scmp.lt.u32.totalorder %s1803_s12, %s1798_s23 }
  0x6c   : > { %p1807_p0 = scmp.lt.u32.totalorder %s1798_s23, %s2309_s22 }
  0x6d   : > { %p1801_p10 = pnand %p2322_p6, %p1799_p2  ;;  %p1806_p9 = por %p1805_p7, %p1804_p5 }
  0x6f   : > { %p1802_p3 = pneg %p1801_p10  ;;  %p1808_p12 = por %p1807_p0, %p1806_p9 }
  0x71   : > { %p1809_p4 = pnand %p1808_p12, %p1802_p3 }
  0x73   : > { %1812 = shalt.err (!%p1809_p4)
}
  0x74   : > { %s1813_s8 = scalar_lea.vmem %s2312_s4, 128  ;;  %s2082_s21 = smov [#allocation5]  }
  0x75   : > { %p1814_p2 = scmp.ne.s32.totalorder %s2312_s4, %s1813_s8  ;;  %s1818_s27 = sshll.u32 %s2082_s21, 4  ;;  %s1819_s27 = int_to_ptr.vmem [resolvable:$false] %s1818_s27 }
  0x76   : > { %s1820_s29 = scalar_lea.vmem %s1819_s27, 256  ;;  %p1821_p11 = scmp.lt.s32.totalorder %s2312_s4, %s1819_s27 }
  0x77   : > { %p1816_p10 = pnand %p1814_p2, %p2322_p6  ;;  %p1822_p13 = scmp.lt.s32.totalorder %s1820_s29, %s1813_s8 }
  0x79   : > { %p1817_p8 = pneg %p1816_p10  ;;  %p1823_p5 = por %p1822_p13, %p1821_p11 }
  0x7b   : > { %p1824_p7 = pnand %p1823_p5, %p1817_p8 }
  0x7d   : > { %1827 = shalt.err (!%p1824_p7)
}
  0x7e   : > { %s2756_s23 = smov 4   ;;  %s2757_s14 = smov 64  }
  0x7f   : > { %1597 = dma.hbm_to_vmem [thread:$0]  (!%p2297_p1), %s2309_s22, 128, %s2312_s4, %s2316_s5, %s2757_s14, %s2757_s14, %s2756_s23  }
  0x80   : > { %s2083_s12 = smov [#allocation13]   ;;  %s2084_s21 = smov [#allocation14]  }
  0x81   : > { %s306_s1 = sshll.u32 %s2083_s12, 4  ;;  %s317_s25 = sshll.u32 %s2084_s21, 4  ;;  %s307_s1 = int_to_ptr.vmem [resolvable:$true] %s306_s1  ;;  %s2349_s25 = int_to_ptr.vmem [resolvable:$true] %s317_s25 }
  0x82   : > { %s1828_s29 = scalar_lea.hbm %s2701_s6, 16  ;;  %p2758_p8 = scmp.ne.s32.totalorder %s2746_s26, 0 }
  0x83   : > { %p1829_p4 = scmp.ne.s32.totalorder %s2701_s6, %s1828_s29  ;;  %p1835_p12 = scmp.lt.u32.totalorder %s1828_s29, %s2701_s6 }
  0x85   : > { %p1831_p11 = pnand %p1829_p4, %p2758_p8 }
  0x87   : > { %p1832_p13 = pneg %p1831_p11 }
  0x89   : > { %p1837_p3 = pnand %p1835_p12, %p1832_p13 }
  0x8b   : > { %1840 = shalt.err (!%p1837_p3)
}
  0x8c   : > { %s1841_s22 = scalar_lea.vmem %s307_s1, 16  ;;  %s1848_s12 = scalar_lea.vmem %s307_s1, 32 }
  0x8d   : > { %p1842_p9 = scmp.ne.s32.totalorder %s307_s1, %s1841_s22  ;;  %p1849_p10 = scmp.lt.s32.totalorder %s307_s1, %s307_s1 }
  0x8e   : > { %p1850_p5 = scmp.lt.s32.totalorder %s1848_s12, %s1841_s22 }
  0x8f   : > { %p1844_p0 = pnand %p1842_p9, %p2758_p8 }
  0x90   : > { %p1851_p7 = por %p1850_p5, %p1849_p10 }
  0x91   : > { %p1845_p2 = pneg %p1844_p0 }
  0x93   : > { %p1852_p1 = pnand %p1851_p7, %p1845_p2 }
  0x95   : > { %1855 = shalt.err (!%p1852_p1)
}
  0x96   : > { %p2759_p4 = scmp.ne.s32.totalorder %s2744_s18, 0  ;;  %s1856_s8 = scalar_lea.hbm %s2702_s7, 16 }
  0x97   : > { %p1857_p11 = scmp.ne.s32.totalorder %s2702_s7, %s1856_s8  ;;  %p1863_p1 = scmp.lt.u32.totalorder %s1856_s8, %s2702_s7 }
  0x98   : > { %1587 = dma.hbm_to_vmem [thread:$0]  (!%p2759_p4), %s2701_s6, 16, %s307_s1, [#allocation12]  }
  0x99   : > { %p1859_p13 = pnand %p1857_p11, %p2758_p8 }
  0x9b   : > { %p1860_p12 = pneg %p1859_p13 }
  0x9d   : > { %p1865_p3 = pnand %p1863_p1, %p1860_p12 }
  0x9f   : > { %1868 = shalt.err (!%p1865_p3)
}
  0xa0   : > { %s1869_s1 = scalar_lea.vmem %s2349_s25, 16  ;;  %s1876_s12 = scalar_lea.vmem %s2349_s25, 32 }
  0xa1   : > { %p1870_p9 = scmp.ne.s32.totalorder %s2349_s25, %s1869_s1  ;;  %p1877_p10 = scmp.lt.s32.totalorder %s2349_s25, %s2349_s25 }
  0xa2   : > { %p1878_p5 = scmp.lt.s32.totalorder %s1876_s12, %s1869_s1 }
  0xa3   : > { %p1872_p0 = pnand %p1870_p9, %p2758_p8 }
  0xa4   : > { %p1879_p7 = por %p1878_p5, %p1877_p10 }
  0xa5   : > { %p1873_p2 = pneg %p1872_p0 }
  0xa7   : > { %p1880_p11 = pnand %p1879_p7, %p1873_p2 }
  0xa9   : > { %1883 = shalt.err (!%p1880_p11)
}
  0xaa   : > { %1590 = dma.hbm_to_vmem [thread:$0]  (!%p2759_p4), %s2702_s7, 16, %s2349_s25, [#allocation15]  }
  0xab   : > { %s2760_s0 = sld [smem:[#allocation33_spill]]  ;;  %s332_s8 = scalar_lea.vmem [#allocation2], %s2292_s16 }
  0xac   : > { %s341_s18 = sshll.u32 %s332_s8, 4  ;;  %s329_s27 = scalar_lea.sflag [#allocation3], %s2289_s20  ;;  %s2400_s18 = int_to_ptr.vmem [resolvable:$true] %s341_s18 }
  0xb1   : > { %s2397_s21 = scalar_lea.hbm %s2760_s0, %s2295_s19  ;;  %s1889_s22 = scalar_lea.hbm %s2760_s0, 256 }
  0xb2   : > { %s1884_s29 = scalar_lea.hbm %s2397_s21, 128  ;;  %p1890_p4 = scmp.lt.u32.totalorder %s2397_s21, %s2760_s0 }
  0xb3   : > { %p1885_p8 = scmp.ne.s32.totalorder %s2397_s21, %s1884_s29  ;;  %p1891_p1 = scmp.lt.u32.totalorder %s1889_s22, %s1884_s29 }
  0xb4   : > { %p1893_p9 = scmp.lt.u32.totalorder %s1884_s29, %s2397_s21 }
  0xb5   : > { %p1887_p13 = pnand %p1885_p8, %p2322_p6  ;;  %p1892_p3 = por %p1891_p1, %p1890_p4 }
  0xb7   : > { %p1888_p12 = pneg %p1887_p13  ;;  %p1894_p0 = por %p1893_p9, %p1892_p3 }
  0xb9   : > { %p1895_p2 = pnand %p1894_p0, %p1888_p12 }
  0xbb   : > { %1898 = shalt.err (!%p1895_p2)
}
  0xbc   : > { %s1899_s30 = scalar_lea.vmem %s2400_s18, 128  ;;  %s2085_s11 = smov [#allocation2]  }
  0xbd   : > { %p1900_p10 = scmp.ne.s32.totalorder %s2400_s18, %s1899_s30  ;;  %s1904_s26 = sshll.u32 %s2085_s11, 4  ;;  %s1905_s26 = int_to_ptr.vmem [resolvable:$false] %s1904_s26 }
  0xbe   : > { %s1906_s13 = scalar_lea.vmem %s1905_s26, 256  ;;  %p1907_p11 = scmp.lt.s32.totalorder %s2400_s18, %s1905_s26 }
  0xbf   : > { %p1902_p5 = pnand %p1900_p10, %p2322_p6  ;;  %p1908_p8 = scmp.lt.s32.totalorder %s1906_s13, %s1899_s30 }
  0xc1   : > { %p1903_p7 = pneg %p1902_p5  ;;  %p1909_p13 = por %p1908_p8, %p1907_p11 }
  0xc3   : > { %p1910_p4 = pnand %p1909_p13, %p1903_p7 }
  0xc5   : > { %1913 = shalt.err (!%p1910_p4)
}
  0xc6   : > { %p2761_p12 = scmp.ne.s32.totalorder %s2752_s17, 0  ;;  %s1434_s8 = sshll.u32 %s2072_s9, 4 }
  0xc7   : > { %s375_s29 = scalar_lea.vmem [#allocation7], %s2289_s20  ;;  %s380_s1 = scalar_lea.hbm %s2697_s2, %s1434_s8 }
  0xc8   : > { %1594 = dma.hbm_to_vmem [thread:$0]  (!%p2761_p12), %s2397_s21, 128, %s2400_s18, %s329_s27, %s2757_s14, %s2757_s14, %s2756_s23  }
  0xc9   : > { %s382_s25 = sshll.u32 %s375_s29, 4  ;;  %s1914_s12 = scalar_lea.hbm %s380_s1, 16  ;;  %s383_s25 = int_to_ptr.vmem [resolvable:$true] %s382_s25 }
  0xca   : > { %p1915_p1 = scmp.ne.s32.totalorder %s380_s1, %s1914_s12  ;;  %s1919_s26 = scalar_lea.hbm %s2697_s2, 32 }
  0xcb   : > { %p1920_p0 = scmp.lt.u32.totalorder %s380_s1, %s2697_s2  ;;  %p1921_p2 = scmp.lt.u32.totalorder %s1919_s26, %s1914_s12 }
  0xcc   : > { %p1917_p3 = pnand %p1915_p1, %p2322_p6  ;;  %p1923_p5 = scmp.lt.u32.totalorder %s1914_s12, %s380_s1 }
  0xcd   : > { %p1922_p10 = por %p1921_p2, %p1920_p0 }
  0xce   : > { %p1918_p9 = pneg %p1917_p3 }
  0xcf   : > { %p1924_p7 = por %p1923_p5, %p1922_p10 }
  0xd1   : > { %p1925_p11 = pnand %p1924_p7, %p1918_p9 }
  0xd3   : > { %1928 = shalt.err (!%p1925_p11)
}
  0xd4   : > { %s1929_s20 = scalar_lea.vmem %s383_s25, 16  ;;  %s2086_s21 = smov [#allocation7]  }
  0xd5   : > { %p1930_p8 = scmp.ne.s32.totalorder %s383_s25, %s1929_s20  ;;  %s1934_s18 = sshll.u32 %s2086_s21, 4  ;;  %s1935_s18 = int_to_ptr.vmem [resolvable:$false] %s1934_s18 }
  0xd6   : > { %s1936_s27 = scalar_lea.vmem %s1935_s18, 32  ;;  %p1937_p1 = scmp.lt.s32.totalorder %s383_s25, %s1935_s18 }
  0xd7   : > { %p1932_p13 = pnand %p1930_p8, %p2322_p6  ;;  %p1938_p3 = scmp.lt.s32.totalorder %s1936_s27, %s1929_s20 }
  0xd9   : > { %p1933_p4 = pneg %p1932_p13  ;;  %p1939_p12 = por %p1938_p3, %p1937_p1 }
  0xdb   : > { %p1940_p0 = pnand %p1939_p12, %p1933_p4 }
  0xdd   : > { %1943 = shalt.err (!%p1940_p0)
}
  0xde   : > { %p2762_p2 = scmp.ne.s32.totalorder %s2752_s17, 0  ;;  %s2451_s29 = scalar_lea.hbm %s2698_s3, %s2295_s19 }
  0xdf   : > { %s393_s4 = scalar_lea.vmem [#allocation8], %s2292_s16  ;;  %s2763_s12 = sand.u32 1, %s2076_s10  }
  0xe0   : > { %1600 = dma.hbm_to_vmem [thread:$0]  (!%p2762_p2), %s380_s1, 16, %s383_s25, %s2316_s5  }
  0xe1   : > { %s402_s22 = sshll.u32 %s393_s4, 4  ;;  %s2458_s30 = scalar_lea.sflag [#allocation9], %s2763_s12  ;;  %s2454_s22 = int_to_ptr.vmem [resolvable:$true] %s402_s22 }
  0xe2   : > { %s1944_s11 = scalar_lea.hbm %s2451_s29, 128  ;;  %s1949_s19 = scalar_lea.hbm %s2698_s3, 256 }
  0xe3   : > { %p1945_p12 = scmp.ne.s32.totalorder %s2451_s29, %s1944_s11  ;;  %p1950_p5 = scmp.lt.u32.totalorder %s2451_s29, %s2698_s3 }
  0xe4   : > { %p1951_p7 = scmp.lt.u32.totalorder %s1949_s19, %s1944_s11  ;;  %p1953_p8 = scmp.lt.u32.totalorder %s1944_s11, %s2451_s29 }
  0xe5   : > { %p1947_p9 = pnand %p1945_p12, %p2322_p6 }
  0xe6   : > { %p1952_p11 = por %p1951_p7, %p1950_p5 }
  0xe7   : > { %p1948_p10 = pneg %p1947_p9 }
  0xe8   : > { %p1954_p13 = por %p1953_p8, %p1952_p11 }
  0xea   : > { %p1955_p4 = pnand %p1954_p13, %p1948_p10 }
  0xec   : > { %1958 = shalt.err (!%p1955_p4)
}
  0xed   : > { %s1959_s16 = scalar_lea.vmem %s2454_s22, 128  ;;  %s2087_s13 = smov [#allocation8]  }
  0xee   : > { %p1960_p1 = scmp.ne.s32.totalorder %s2454_s22, %s1959_s16  ;;  %s1964_s20 = sshll.u32 %s2087_s13, 4  ;;  %s1965_s20 = int_to_ptr.vmem [resolvable:$false] %s1964_s20 }
  0xef   : > { %s1966_s21 = scalar_lea.vmem %s1965_s20, 256  ;;  %p1967_p12 = scmp.lt.s32.totalorder %s2454_s22, %s1965_s20 }
  0xf0   : > { %p1962_p3 = pnand %p1960_p1, %p2322_p6  ;;  %p1968_p9 = scmp.lt.s32.totalorder %s1966_s21, %s1959_s16 }
  0xf2   : > { %p1963_p0 = pneg %p1962_p3  ;;  %p1969_p5 = por %p1968_p9, %p1967_p12 }
  0xf4   : > { %p1970_p7 = pnand %p1969_p5, %p1963_p0 }
  0xf6   : > { %1973 = shalt.err (!%p1970_p7)
}
  0xf7   : > { %1603 = dma.hbm_to_vmem [thread:$0]  (!%p2762_p2), %s2451_s29, 128, %s2454_s22, %s2458_s30, %s2757_s14, %s2757_s14, %s2756_s23  }
  0xf8   : > { %p2764_p6 = scmp.ne.s32.totalorder %s2743_s15, 0 }
  0xf9   : > { %s2765_s24 = sld [smem:[#allocation28_spill]] (!%p2764_p6)  ;;  %s2488_s18 = sand.u32 (!%p2764_p6), 1, %s2060_s28  }
  0xfa   : > { %414 = sbr.rel (%p2764_p6) target bundleno = 1957 (0x7a5), region = 52  ;;  %s2491_s27 = sshll.u32 (!%p2764_p6), %s2488_s18, 3 }
  0xfb   : > { %s417_s17 = scalar_lea.sflag (!%p2764_p6), [#allocation3], %s2488_s18  ;;  %s420_s0 = scalar_lea.vmem (!%p2764_p6), [#allocation2], %s2491_s27 }
  0xff   : > { %p2766_p10 = scmp.ne.s32.totalorder (!%p2764_p6), %s2765_s24, 0 }
 0x101   : > { %2027 = dma.done.wait (%p2766_p10), %s417_s17, 128  }
 0x102   : > { %2029 = vsyncadd (%p2766_p10), %s417_s17, 4294967168  ;;  %s2767_s23 = sld [smem:[#allocation27_spill]]  ;;  %s429_s8 = scalar_lea.vmem [#allocation5], %s2491_s27 }
 0x108   : > { %s425_s15 = sand.u32 1, %s2767_s23  }
 0x109   : > { %s426_s14 = scalar_lea.sflag [#allocation6], %s425_s15 }
 0x10a   : > { %2031 = dma.done.wait (%p2766_p10), %s426_s14, 144  }
 0x10b   : > { %2033 = vsyncadd (%p2766_p10), %s426_s14, 4294967152  ;;  %s437_s29 = scalar_lea.vmem [#allocation7], %s2488_s18  ;;  %s443_s4 = scalar_lea.sflag [#allocation9], %s425_s15 }
 0x10c   : > { %s446_s22 = scalar_lea.vmem [#allocation8], %s2491_s27 }
 0x10d   : > { %2035 = dma.done.wait (%p2766_p10), %s443_s4, 128  }
 0x10e   : > { %2037 = vsyncadd (%p2766_p10), %s443_s4, 4294967168  ;;  %p2768_p2 = scmp.eq.s32.totalorder %s2767_s23, 0 }
 0x110   : > { %2039 = dma.done.wait (%p2768_p2), [#allocation9], 256   ;;  %p2769_p11 = pmov %p2768_p2 }
 0x111   : > { %p2770_p8 = pmov %p2768_p2 }
 0x112   : > { %2041 = vsyncadd (%p2769_p11), [#allocation9], 4294967040 }
 0x113   : > { %2043 = dma.done.wait (%p2770_p8), [#allocation12], 32   ;;  %p2771_p13 = pmov %p2768_p2 }
 0x114   : > { %p2772_p4 = pmov %p2768_p2 }
 0x115   : > { %2045 = vsyncadd (%p2771_p13), [#allocation12], 4294967264 }
 0x116   : > { %2047 = dma.done.wait (%p2772_p4), [#allocation15], 16   ;;  %p2773_p1 = pmov %p2768_p2 }
 0x117   : > { %v2088_v0 = vmov 0.0   ;;  %vm2089_vm0 = vmmov 0   ;;  %vm549_vm1 = vcmask 64512   ;;  %v2529_v1 = vld [vmem:[%s429_s8] sm:$0x1f]   ;;  %s2090_s12 = smov 96   ;;  %v519_v4 = vlaneseq }
 0x118   : > { %2049 = vsyncadd (%p2773_p1), [#allocation15], 4294967280  ;;  %1496 = vmatprep.subr.bf16.mxu0 %v2088_v0  ;;  %1498 = vmatprep.mubr.msk.bf16.mxu0 %vm2089_vm0, %v2088_v0  ;;  %v554_v2 = vsel %vm549_vm1, %v2529_v1, 0  ;;  %v1703_v3 = vld [vmem:[%s420_s0] sm:$0x1f]   ;;  %s2091_s30 = smov 120  }
 0x119   : > { %1502 = vmatprep.subr.bf16.mxu1 %v2088_v0  ;;  %1504 = vmatprep.mubr.msk.bf16.mxu1 %vm2089_vm0, %v2088_v0  ;;  %s2092_s11 = smov 112   ;;  %s2093_s5 = smov 104   ;;  %v520_v5 = vshrl.u32 %v519_v4, 7  ;;  %v526_v6 = vand.u32 127, %v519_v4  ;;  %v1447_v8 = vld [vmem:[%s437_s29] ss:$0 sm:$0xff] }
 0x11a   : > { %1497 = vmatpush3.bf16.xpose.msra.mxu0 %v554_v2  ;;  %618 = vrot.lane.b32.xlu1 %v2529_v1, %s2090_s12  ;;  %vm597_vm4 = vcmask 72704   ;;  %vm601_vm5 = vcmask 65536   ;;  %vm623_vm6 = vcmask 1043456   ;;  %vm624_vm7 = vcmask 1044480   ;;  %s2095_s25 = smov 88   ;;  %s2096_s19 = smov 72  }
 0x11b   : > { %1514 = vmatprep.subr.bf16.mxu0 %v2088_v0  ;;  %v521_v7 = vadd.s32 8, %v520_v5  ;;  %vm527_vm2 = vcmp.gt.s32.totalorder %v526_v6, %v520_v5  ;;  %v2094_v22 = vmov 65535   ;;  %s2097_s1 = smov 80   ;;  %s2098_s26 = smov 8   ;;  %vm1070_vm8 = vcmask 130048  }
 0x11c   : > { %v529_v9 = vsel %vm527_vm2, -1e+09, %v2088_v0  ;;  %v625_v23 = vsel %vm623_vm6, 4294967295, %v2094_v22  ;;  %s2099_s16 = smov 16   ;;  %s2100_s13 = smov 24   ;;  %vm1073_vm9 = vcmask 195584  }
 0x11d   : > { %vm528_vm3 = vcmp.gt.s32.totalorder %v526_v6, %v521_v7  ;;  %v2546_v11 = vadd.f32 %v1447_v8, %v529_v9  ;;  %v2554_v24 = vsel %vm624_vm7, %v625_v23, 0  ;;  %vm1100_vm10 = vcmask 261120   ;;  %s2774_s20 = sld [smem:[#allocation26_spill]]  ;;  %s508_s21 = scalar_lea.vmem [#allocation16], %s2491_s27 }
 0x11e   : > { %677 = vrot.lane.b32.xlu1 %v2529_v1, %s2091_s30  ;;  %v530_v10 = vsel %vm528_vm3, -1e+09, %v2088_v0  ;;  %vm1156_vm11 = vcmask 253952   ;;  %vm1208_vm12 = vsmask.f32 256  ;;  %s2775_s24 = sld [smem:[#allocation31_spill]] }
 0x11f   : > { %v2548_v12 = vadd.f32 %v1447_v8, %v530_v10  ;;  %vm1209_vm13 = vmand %vm1156_vm11, %vm1208_vm12  ;;  %s1229_s0 = sshll.u32 %s508_s21, 4  ;;  %vm1205_vm14 = vcmask 257024   ;;  %s2776_s14 = sld [smem:[#allocation37_spill]]  ;;  %s2646_s0 = int_to_ptr.vmem [resolvable:$true] %s1229_s0 }
 0x120   : > { %s1214_s27 = scalar_lea.sflag [#allocation4], %s2488_s18  ;;  %s1974_s29 = scalar_lea.vmem %s2646_s0, 128 }
 0x121   : > { %1499 = vmatmul.mubr.msk.bf16.vlgmr.msra.gmra.mrb[0].mxu0 %vm549_vm1, %v1703_v3  ;;  %p1975_p3 = scmp.ne.s32.totalorder %s2646_s0, %s1974_s29  ;;  %s2101_s4 = smov [#allocation16]  }
 0x122   : > { %1516 = vmatprep.mubr.msk.bf16.mxu0 %vm2089_vm0, %v2088_v0  ;;  %800 = vrot.lane.b32.xlu1 %v2529_v1, %s2092_s11 }
 0x123   : > { %s1476_s17 = sshll.u32 %s2774_s20, 7 }
 0x124   : > { %p2777_p0 = scmp.ne.s32.totalorder %s2775_s24, 0 }
 0x125   : > { %s2644_s8 = scalar_lea.hbm %s2776_s14, %s1476_s17 }
 0x126   : > { %798 = vrot.lane.b32.xlu1 %v1703_v3, %s2092_s11  ;;  %p1976_p12 = pnand %p1975_p3, %p2777_p0 }
 0x128   : > { %p1977_p9 = pneg %p1976_p12 }
 0x12a   : > { %923 = vrot.lane.b32.xlu1 %v2529_v1, %s2093_s5 }
 0x12e   : > { %921 = vrot.lane.b32.xlu1 %v1703_v3, %s2093_s5 }
 0x132   : > { %745 = vrot.lane.b32.xlu1 %v2529_v1, %s2095_s25 }
 0x18c   : > { %v619_v21 = vpop.permute.xlu1 %618 }
 0x18d   : > { %v628_v25 = vand.u32 %v2554_v24, %v619_v21 }
 0x18f   : > { %1503 = vmatpush3.bf16.msra.mxu1 %v628_v25 }
 0x190   : > { %1508 = vmatprep.subr.bf16.mxu1 %v2088_v0  ;;  %v678_v32 = vpop.permute.xlu1 %677 }
 0x191   : > { %v683_v35 = vsel %vm549_vm1, %v678_v32, 0 }
 0x194   : > { %v801_v37 = vpop.permute.xlu1 %800 }
 0x195   : > { %v806_v40 = vsel %vm549_vm1, %v801_v37, 0 }
 0x198   : > { %v799_v39 = vpop.permute.xlu1 %798 }
 0x19c   : > { %v924_v41 = vpop.permute.xlu1 %923 }
 0x19d   : > { %v929_v42 = vsel %vm549_vm1, %v924_v41, 0 }
 0x1a0   : > { %v922_v43 = vpop.permute.xlu1 %921 }
 0x1a4   : > { %v746_v44 = vpop.permute.xlu1 %745 }
 0x1a5   : > { %v751_v45 = vand.u32 %v746_v44, %v2554_v24 }
 0x1a7   : > { %1515 = vmatpush3.bf16.msra.mxu0 %v751_v45 }
 0x1a8   : > { %1526 = vmatprep.subr.bf16.mxu0 %v2088_v0 }
 0x1f4   : > { %v590_v13 = vpop.f32.mrb[0].mxu0 }
 0x1f5   : > { %v591_v14 = vadd.f32 %v590_v13, %v2546_v11  ;;  %v1500_v15 = vpop.f32.mrb[1].mxu0 }
 0x1f6   : > { %v593_v16 = vpop.f32.mrb[2].mxu0 }
 0x1f7   : > { %v594_v17 = vadd.f32 %v593_v16, %v2548_v12  ;;  %v1501_v18 = vpop.f32.mrb[3].mxu0  ;;  %v598_v19 = vsel %vm597_vm4, %v591_v14, -inf }
 0x1f8   : > { %599 = vmax.xlane.f32.xlu0 %v598_v19 }
 0x1f9   : > { %v602_v20 = vsel %vm601_vm5, %v594_v17, -inf }
 0x1fc   : > { %603 = vmax.xlane.f32.xlu0 %v602_v20 }
 0x212   : > { %675 = vrot.lane.b32.xlu0 %v1703_v3, %s2091_s30 }
 0x285   : > { %v600_v26 = vpop.xlane.xlu0 %599 }
 0x286   : > { %v605_v27 = vsub.f32 %v591_v14, %v600_v26 }
 0x288   : > { %v607_v28 = vmul.f32 1.442695, %v605_v27 }
 0x289   : > { %v604_v29 = vpop.xlane.xlu0 %603 }
 0x28a   : > { %v606_v30 = vsub.f32 %v594_v17, %v604_v29  ;;  %1706 = vpow2.f32 %v607_v28 }
 0x28c   : > { %v609_v31 = vmul.f32 1.442695, %v606_v30 }
 0x28d   : > { %v676_v38 = vpop.permute.xlu0 %675 }
 0x28e   : > { %1708 = vpow2.f32 %v609_v31 }
 0x294   : > { %v2560_v33 = vpop.eup %1706 }
 0x298   : > { %v2562_v34 = vpop.eup %1708 }
 0x299   : > { %v617_v36 = vpack.c.bf16 %v2562_v34, %v2560_v33 }
 0x29b   : > { %1505 = vmatmul.mubr.msk.bf16.vlgmr.msra.gmra.mrb[0].mxu1 %vm597_vm4, %v617_v36 }
 0x29c   : > { %1509 = vmatpush3.bf16.xpose.msra.mxu1 %v683_v35  ;;  %1510 = vmatprep.mubr.msk.bf16.mxu1 %vm2089_vm0, %v2088_v0 }
 0x29d   : > { %1520 = vmatprep.subr.bf16.mxu1 %v2088_v0 }
 0x2a3   : > { %1511 = vmatmul.mubr.msk.bf16.vlgmr.msra.gmra.mrb[4].mxu1 %vm549_vm1, %v676_v38 }
 0x2a4   : > { %1521 = vmatpush3.bf16.xpose.msra.mxu1 %v806_v40  ;;  %1522 = vmatprep.mubr.msk.bf16.mxu1 %vm2089_vm0, %v2088_v0 }
 0x2a5   : > { %1532 = vmatprep.subr.bf16.mxu1 %v2088_v0 }
 0x2ab   : > { %1523 = vmatmul.mubr.msk.bf16.vlgmr.msra.gmra.mrb[8].mxu1 %vm549_vm1, %v799_v39 }
 0x2ac   : > { %1533 = vmatpush3.bf16.xpose.msra.mxu1 %v929_v42  ;;  %1534 = vmatprep.mubr.msk.bf16.mxu1 %vm2089_vm0, %v2088_v0 }
 0x2ad   : > { %1544 = vmatprep.subr.bf16.mxu1 %v2088_v0 }
 0x2b3   : > { %1535 = vmatmul.mubr.msk.bf16.vlgmr.msra.gmra.mrb[12].mxu1 %vm549_vm1, %v922_v43 }
 0x2b4   : > { %1548 = vmatprep.mubr.msk.bf16.mxu1 %vm2089_vm0, %v2088_v0 }
 0x36e   : > { %v2586_v46 = vpop.f32.mrb[0].mxu1 }
 0x36f   : > { %v1506_v47 = vpop.f32.mrb[1].mxu1 }
 0x370   : > { %v2588_v48 = vpop.f32.mrb[2].mxu1 }
 0x371   : > { %v1507_v49 = vpop.f32.mrb[3].mxu1 }
 0x376   : > { %v719_v50 = vpop.f32.mrb[4].mxu1 }
 0x377   : > { %v720_v51 = vadd.f32 %v719_v50, %v2546_v11  ;;  %v1512_v52 = vpop.f32.mrb[5].mxu1 }
 0x378   : > { %v722_v53 = vpop.f32.mrb[6].mxu1  ;;  %v611_v52 = vsel %vm597_vm4, %v2560_v33, 0.0 }
 0x379   : > { %v723_v54 = vadd.f32 %v722_v53, %v2548_v12  ;;  %v1513_v55 = vpop.f32.mrb[7].mxu1  ;;  %v726_v56 = vsel %vm597_vm4, %v720_v51, -inf  ;;  %v614_v53 = vsel %vm601_vm5, %v2562_v34, 0.0 }
 0x37a   : > { %727 = vmax.xlane.f32.xlu1 %v726_v56 }
 0x37b   : > { %v729_v57 = vsel %vm601_vm5, %v723_v54, -inf }
 0x37c   : > { %730 = vmax.xlane.f32.xlu0 %v729_v57 }
 0x37e   : > { %v842_v58 = vpop.f32.mrb[8].mxu1 }
 0x37f   : > { %v843_v59 = vadd.f32 %v842_v58, %v2546_v11  ;;  %v1524_v60 = vpop.f32.mrb[9].mxu1 }
 0x380   : > { %v845_v61 = vpop.f32.mrb[10].mxu1 }
 0x381   : > { %v846_v62 = vadd.f32 %v845_v61, %v2548_v12  ;;  %v1525_v63 = vpop.f32.mrb[11].mxu1  ;;  %v849_v2 = vsel %vm597_vm4, %v843_v59, -inf }
 0x382   : > { %850 = vmax.xlane.f32.xlu1 %v849_v2 }
 0x383   : > { %v852_v3 = vsel %vm601_vm5, %v846_v62, -inf }
 0x384   : > { %853 = vmax.xlane.f32.xlu0 %v852_v3 }
 0x386   : > { %v965_v4 = vpop.f32.mrb[12].mxu1 }
 0x387   : > { %v966_v5 = vadd.f32 %v965_v4, %v2546_v11  ;;  %v1536_v6 = vpop.f32.mrb[13].mxu1  ;;  %v1704_v4 = vld [vmem:[#allocation10] sm:$0xff]  }
 0x388   : > { %v968_v7 = vpop.f32.mrb[14].mxu1  ;;  %1545 = vmatpush3.bf16.msra.mxu1 %v1704_v4 }
 0x389   : > { %v969_v8 = vadd.f32 %v968_v7, %v2548_v12  ;;  %v1537_v9 = vpop.f32.mrb[15].mxu1  ;;  %v972_v10 = vsel %vm597_vm4, %v966_v5, -inf  ;;  %1546 = vmatprep.subr.bf16.mxu1 %v2088_v0 }
 0x38a   : > { %973 = vmax.xlane.f32.xlu1 %v972_v10 }
 0x38b   : > { %v975_v13 = vsel %vm601_vm5, %v969_v8, -inf }
 0x38c   : > { %976 = vmax.xlane.f32.xlu0 %v975_v13  ;;  %v1705_v13 = vld [vmem:[#allocation10 + $0x8] sm:$0xff]  }
 0x38d   : > { %1547 = vmatpush3.bf16.msra.mxu1 %v1705_v13 }
 0x39b   : > { %991 = vrot.lane.b32.xlu1 %v2529_v1, %s2096_s19 }
 0x3a2   : > { %868 = vrot.lane.b32.xlu0 %v2529_v1, %s2097_s1 }
 0x407   : > { %v728_v14 = vpop.xlane.xlu1 %727 }
 0x408   : > { %v732_v15 = vsub.f32 %v720_v51, %v728_v14 }
 0x409   : > { %v731_v11 = vpop.xlane.xlu0 %730 }
 0x40a   : > { %v734_v16 = vmul.f32 1.442695, %v732_v15  ;;  %v733_v17 = vsub.f32 %v723_v54, %v731_v11 }
 0x40c   : > { %1710 = vpow2.f32 %v734_v16  ;;  %v736_v12 = vmul.f32 1.442695, %v733_v17 }
 0x40e   : > { %1712 = vpow2.f32 %v736_v12 }
 0x40f   : > { %v851_v18 = vpop.xlane.xlu1 %850 }
 0x410   : > { %v855_v19 = vsub.f32 %v843_v59, %v851_v18 }
 0x411   : > { %v854_v20 = vpop.xlane.xlu0 %853 }
 0x412   : > { %v857_v21 = vmul.f32 1.442695, %v855_v19  ;;  %v856_v22 = vsub.f32 %v846_v62, %v854_v20 }
 0x414   : > { %1714 = vpow2.f32 %v857_v21  ;;  %v859_v23 = vmul.f32 1.442695, %v856_v22 }
 0x416   : > { %v1711_v25 = vpop.eup %1710  ;;  %1716 = vpow2.f32 %v859_v23 }
 0x417   : > { %v974_v26 = vpop.xlane.xlu1 %973  ;;  %v738_v1 = vsel %vm597_vm4, %v1711_v25, 0.0 }
 0x418   : > { %v1713_v27 = vpop.eup %1712  ;;  %v978_v28 = vsub.f32 %v966_v5, %v974_v26  ;;  %739 = vadd.xlane.f32.xlu1 %v738_v1 }
 0x419   : > { %v977_v29 = vpop.xlane.xlu0 %976  ;;  %v741_v30 = vsel %vm601_vm5, %v1713_v27, 0.0  ;;  %v744_v31 = vpack.c.bf16 %v1713_v27, %v1711_v25 }
 0x41a   : > { %v980_v32 = vmul.f32 1.442695, %v978_v28  ;;  %v979_v35 = vsub.f32 %v969_v8, %v977_v29  ;;  %742 = vadd.xlane.f32.xlu0 %v741_v30 }
 0x41b   : > { %1517 = vmatmul.mubr.msk.bf16.vlgmr.msra.gmra.mrb[4].mxu0 %vm597_vm4, %v744_v31  ;;  %v992_v38 = vpop.permute.xlu1 %991 }
 0x41c   : > { %1718 = vpow2.f32 %v980_v32  ;;  %v982_v36 = vmul.f32 1.442695, %v979_v35  ;;  %1528 = vmatprep.mubr.msk.bf16.mxu0 %vm2089_vm0, %v2088_v0  ;;  %v997_v43 = vand.u32 %v992_v38, %v2554_v24 }
 0x41d   : > { %v869_v37 = vpop.permute.xlu0 %868 }
 0x41e   : > { %v1715_v39 = vpop.eup %1714  ;;  %1720 = vpow2.f32 %v982_v36  ;;  %v874_v40 = vand.u32 %v869_v37, %v2554_v24 }
 0x41f   : > { %v861_v41 = vsel %vm597_vm4, %v1715_v39, 0.0 }
 0x420   : > { %v1717_v42 = vpop.eup %1716  ;;  %862 = vadd.xlane.f32.xlu0 %v861_v41  ;;  %1527 = vmatpush3.bf16.msra.mxu0 %v874_v40 }
 0x421   : > { %v864_v44 = vsel %vm601_vm5, %v1717_v42, 0.0  ;;  %v867_v45 = vpack.c.bf16 %v1717_v42, %v1715_v39  ;;  %1538 = vmatprep.subr.bf16.mxu0 %v2088_v0 }
 0x422   : > { %865 = vadd.xlane.f32.xlu1 %v864_v44 }
 0x423   : > { %1529 = vmatmul.mubr.msk.bf16.vlgmr.msra.gmra.mrb[8].mxu0 %vm597_vm4, %v867_v45 }
 0x424   : > { %1539 = vmatpush3.bf16.msra.mxu0 %v997_v43  ;;  %1540 = vmatprep.mubr.msk.bf16.mxu0 %vm2089_vm0, %v2088_v0 }
 0x426   : > { %v1719_v47 = vpop.eup %1718 }
 0x427   : > { %v984_v49 = vsel %vm597_vm4, %v1719_v47, 0.0 }
 0x428   : > { %v1721_v50 = vpop.eup %1720  ;;  %985 = vadd.xlane.f32.xlu0 %v984_v49 }
 0x429   : > { %v987_v51 = vsel %vm601_vm5, %v1721_v50, 0.0  ;;  %v990_v24 = vpack.c.bf16 %v1721_v50, %v1719_v47  ;;  %v1146_v50 = vld [vmem:[%s446_s22 + $0x4] sm:$0x1] }
 0x42a   : > { %988 = vadd.xlane.f32.xlu1 %v987_v51 }
 0x42b   : > { %1541 = vmatmul.mubr.msk.bf16.vlgmr.msra.gmra.mrb[12].mxu0 %vm597_vm4, %v990_v24 }
 0x42c   : > { %612 = vadd.xlane.f32.xlu0 %v611_v52 }
 0x42e   : > { %615 = vadd.xlane.f32.xlu1 %v614_v53 }
 0x4a5   : > { %v740_v54 = vpop.xlane.xlu1 %739 }
 0x4a6   : > { %1722 = vrcp.f32 %v740_v54  ;;  %v1148_v54 = vunpack.c.l.bf16 %v1146_v50 }
 0x4a7   : > { %v743_v55 = vpop.xlane.xlu0 %742 }
 0x4a8   : > { %1724 = vrcp.f32 %v743_v55 }
 0x4ad   : > { %v863_v56 = vpop.xlane.xlu0 %862 }
 0x4ae   : > { %1726 = vrcp.f32 %v863_v56 }
 0x4af   : > { %v866_v57 = vpop.xlane.xlu1 %865 }
 0x4b0   : > { %1728 = vrcp.f32 %v866_v57  ;;  %v1723_v59 = vpop.eup %1722 }
 0x4b2   : > { %v1725_v61 = vpop.eup %1724 }
 0x4b5   : > { %v986_v3 = vpop.xlane.xlu0 %985 }
 0x4b6   : > { %1730 = vrcp.f32 %v986_v3 }
 0x4b7   : > { %v989_v34 = vpop.xlane.xlu1 %988 }
 0x4b8   : > { %1732 = vrcp.f32 %v989_v34  ;;  %v1727_v7 = vpop.eup %1726 }
 0x4b9   : > { %v613_v25 = vpop.xlane.xlu0 %612 }
 0x4ba   : > { %v1729_v9 = vpop.eup %1728  ;;  %1734 = vrcp.f32 %v613_v25 }
 0x4bb   : > { %v616_v26 = vpop.xlane.xlu1 %615 }
 0x4bc   : > { %1736 = vrcp.f32 %v616_v26 }
 0x4c0   : > { %v1731_v12 = vpop.eup %1730 }
 0x4c2   : > { %v1733_v19 = vpop.eup %1732 }
 0x4c4   : > { %v1735_v27 = vpop.eup %1734 }
 0x4c5   : > { %v673_v36 = vmul.f32 %v1735_v27, %v2586_v46  ;;  %v1145_v46 = vld [vmem:[%s446_s22] sm:$0xf]  ;;  %s1978_s22 = sshll.u32 %s2101_s4, 4  ;;  %s1979_s22 = int_to_ptr.vmem [resolvable:$false] %s1978_s22 }
 0x4c6   : > { %v1737_v29 = vpop.eup %1736  ;;  %v1147_v51 = vunpack.c.l.bf16 %v1145_v46  ;;  %s1980_s12 = scalar_lea.vmem %s1979_s22, 256  ;;  %p1981_p5 = scmp.lt.s32.totalorder %s2646_s0, %s1979_s22 }
 0x4c7   : > { %v674_v37 = vmul.f32 %v1737_v29, %v2588_v48  ;;  %v1458_v48 = vld [vmem:[#allocation11] ss:$0 sm:$0xff]  ;;  %p1982_p7 = scmp.lt.s32.totalorder %s1980_s12, %s1974_s29 }
 0x4c9   : > { %p1983_p6 = por %p1982_p7, %p1981_p5 }
 0x4cb   : > { %p1984_p10 = pnand %p1983_p6, %p1977_p9 }
 0x4ee   : > { %v787_v58 = vpop.f32.mrb[4].mxu0 }
 0x4ef   : > { %v1518_v60 = vpop.f32.mrb[5].mxu0  ;;  %v796_v63 = vmul.f32 %v1723_v59, %v787_v58 }
 0x4f0   : > { %v790_v62 = vpop.f32.mrb[6].mxu0 }
 0x4f1   : > { %v797_v33 = vmul.f32 %v1725_v61, %v790_v62  ;;  %v1519_v2 = vpop.f32.mrb[7].mxu0 }
 0x4f3   : > { %v1687_v5 = vpack.i.bf16 %v797_v33, %v796_v63 }
 0x4f5   : > { %1688 = vrot.lane.b32.xlu0 %v1687_v5, %s2098_s26 }
 0x4f6   : > { %v910_v6 = vpop.f32.mrb[8].mxu0 }
 0x4f7   : > { %v1530_v8 = vpop.f32.mrb[9].mxu0  ;;  %v919_v14 = vmul.f32 %v1727_v7, %v910_v6 }
 0x4f8   : > { %v913_v10 = vpop.f32.mrb[10].mxu0 }
 0x4f9   : > { %v920_v15 = vmul.f32 %v1729_v9, %v913_v10  ;;  %v1531_v11 = vpop.f32.mrb[11].mxu0 }
 0x4fb   : > { %v1692_v16 = vpack.i.bf16 %v920_v15, %v919_v14 }
 0x4fd   : > { %1693 = vrot.lane.b32.xlu1 %v1692_v16, %s2099_s16  ;;  %v1462_v16 = vld [vmem:[#allocation13] ss:$0 sm:$0xff] }
 0x4fe   : > { %v1033_v17 = vpop.f32.mrb[12].mxu0 }
 0x4ff   : > { %v1542_v18 = vpop.f32.mrb[13].mxu0  ;;  %v1042_v0 = vmul.f32 %v1731_v12, %v1033_v17  ;;  %v1463_v12 = vld [vmem:[#allocation14] ss:$0 sm:$0xff] }
 0x500   : > { %v1036_v20 = vpop.f32.mrb[14].mxu0 }
 0x501   : > { %v1043_v21 = vmul.f32 %v1733_v19, %v1036_v20  ;;  %v1543_v22 = vpop.f32.mrb[15].mxu0 }
 0x503   : > { %v1697_v23 = vpack.i.bf16 %v1043_v21, %v1042_v0  ;;  %v1210_v21 = vld [vmem:[%s508_s21 + $0x4] sm:$0x1] }
 0x505   : > { %1698 = vrot.lane.b32.xlu1 %v1697_v23, %s2100_s13 }
 0x567   : > { %v1689_v1 = vpop.permute.xlu0 %1688 }
 0x568   : > { %v1691_v30 = vunpack.i.h.bf16 %v1689_v1  ;;  %v1690_v31 = vunpack.i.l.bf16 %v1689_v1 }
 0x56a   : > { %v1069_v39 = vsel %vm549_vm1, %v674_v37, %v1691_v30  ;;  %v1068_v40 = vsel %vm549_vm1, %v673_v36, %v1690_v31 }
 0x56f   : > { %v1694_v28 = vpop.permute.xlu1 %1693 }
 0x570   : > { %v1696_v32 = vunpack.i.h.bf16 %v1694_v28  ;;  %v1695_v35 = vunpack.i.l.bf16 %v1694_v28 }
 0x572   : > { %v1072_v43 = vsel %vm1070_vm8, %v1069_v39, %v1696_v32  ;;  %v1071_v44 = vsel %vm1070_vm8, %v1068_v40, %v1695_v35 }
 0x577   : > { %v1699_v38 = vpop.permute.xlu1 %1698 }
 0x578   : > { %v1701_v41 = vunpack.i.h.bf16 %v1699_v38  ;;  %v1700_v42 = vunpack.i.l.bf16 %v1699_v38 }
 0x57a   : > { %v1075_v45 = vsel %vm1073_vm9, %v1072_v43, %v1701_v41  ;;  %v1074_v47 = vsel %vm1073_vm9, %v1071_v44, %v1700_v42 }
 0x57b   : > { %v1076_v49 = vpack.c.bf16 %v1075_v45, %v1074_v47 }
 0x57d   : > { %1549 = vmatmul.mubr.msk.bf16.vlgmr.msra.gmra.mrb[16].mxu1 %vm1100_vm10, %v1076_v49 }
 0x650   : > { %v1138_v24 = vpop.f32.mrb[16].mxu1 }
 0x651   : > { %v1139_v52 = vadd.f32 %v1458_v48, %v1138_v24  ;;  %v1550_v53 = vpop.f32.mrb[17].mxu1 }
 0x652   : > { %v1141_v55 = vpop.f32.mrb[18].mxu1 }
 0x653   : > { %v1142_v56 = vadd.f32 %v1458_v48, %v1141_v55  ;;  %v1551_v57 = vpop.f32.mrb[19].mxu1  ;;  %v1149_v58 = vadd.f32 %v1147_v51, %v1139_v52 }
 0x655   : > { %v1153_v59 = vsel %vm1100_vm10, %v1149_v58, 0.0  ;;  %v1150_v60 = vadd.f32 %v1148_v54, %v1142_v56 }
 0x656   : > { %1154 = vadd.xlane.f32.xlu1 %v1153_v59 }
 0x657   : > { %v1157_v61 = vsel %vm1156_vm11, %v1150_v60, 0.0 }
 0x658   : > { %1158 = vadd.xlane.f32.xlu0 %v1157_v61 }
 0x6e3   : > { %v1155_v62 = vpop.xlane.xlu1 %1154 }
 0x6e4   : > { %v1161_v63 = vmul.f32 0.03125, %v1155_v62 }
 0x6e5   : > { %v1159_v33 = vpop.xlane.xlu0 %1158 }
 0x6e6   : > { %v1162_v2 = vmul.f32 0.03125, %v1159_v33  ;;  %v1163_v3 = vsub.f32 %v1149_v58, %v1161_v63 }
 0x6e8   : > { %v1164_v4 = vsub.f32 %v1150_v60, %v1162_v2  ;;  %v1165_v6 = vmul.f32 %v1163_v3, %v1163_v3 }
 0x6ea   : > { %v1166_v34 = vmul.f32 %v1164_v4, %v1164_v4  ;;  %v1167_v7 = vsel %vm1100_vm10, %v1165_v6, 0.0 }
 0x6ec   : > { %v1170_v5 = vsel %vm1156_vm11, %v1166_v34, 0.0 }
 0x6ed   : > { %1171 = vadd.xlane.f32.xlu0 %v1170_v5 }
 0x6f1   : > { %1168 = vadd.xlane.f32.xlu0 %v1167_v7 }
 0x77a   : > { %v1172_v8 = vpop.xlane.xlu0 %1171 }
 0x77b   : > { %v1174_v9 = vmul.f32 0.03125, %v1172_v8 }
 0x77d   : > { %v1176_v10 = vadd.f32 1e-05, %v1174_v9 }
 0x77e   : > { %v1169_v13 = vpop.xlane.xlu0 %1168 }
 0x77f   : > { %1738 = vrsqrt.f32 %v1176_v10  ;;  %v1173_v14 = vmul.f32 0.03125, %v1169_v13 }
 0x781   : > { %v1175_v15 = vadd.f32 1e-05, %v1173_v14 }
 0x783   : > { %1740 = vrsqrt.f32 %v1175_v15 }
 0x789   : > { %v1739_v11 = vpop.eup %1738 }
 0x78a   : > { %v1180_v17 = vmul.f32 %v1739_v11, %v1164_v4 }
 0x78c   : > { %v1188_v18 = vmul.f32 %v1462_v16, %v1180_v17 }
 0x78d   : > { %v1741_v19 = vpop.eup %1740 }
 0x78e   : > { %v1196_v20 = vadd.f32 %v1463_v12, %v1188_v18  ;;  %v1179_v0 = vmul.f32 %v1741_v19, %v1163_v3 }
 0x790   : > { %v1475_v22 = vpack.c.bf16 %v1196_v20, %v1196_v20  ;;  %v1187_v23 = vmul.f32 %v1462_v16, %v1179_v0 }
 0x792   : > { %v1195_v25 = vadd.f32 %v1463_v12, %v1187_v23  ;;  %v1211_v26 = vsel %vm1209_vm13, %v1475_v22, %v1210_v21 }
 0x793   : > { %1212 = vst [vmem:[%s508_s21 + $0x4] sm:$0x1] %v1211_v26 }
 0x794   : > { %v1474_v1 = vpack.c.bf16 %v1195_v25, %v1195_v25 }
 0x796   : > { %1206 = vst.msk [vmem:[%s508_s21] sm:$0xf] %vm1205_vm14, %v1474_v1 }
 0x797   : > { %1987 = shalt.err (!%p1984_p10)
}
 0x798   : > { %s1988_s30 = scalar_lea.hbm %s2644_s8, 128  ;;  %s1992_s25 = scalar_lea.hbm %s2776_s14, 256 }
 0x799   : > { %p1989_p2 = scmp.ne.s32.totalorder %s2644_s8, %s1988_s30  ;;  %p1993_p13 = scmp.lt.u32.totalorder %s2644_s8, %s2776_s14 }
 0x79a   : > { %p1994_p4 = scmp.lt.u32.totalorder %s1992_s25, %s1988_s30  ;;  %p1996_p3 = scmp.lt.u32.totalorder %s1988_s30, %s2644_s8 }
 0x79b   : > { %p1990_p11 = pnand %p1989_p2, %p2777_p0 }
 0x79c   : > { %p1995_p1 = por %p1994_p4, %p1993_p13 }
 0x79d   : > { %p1991_p8 = pneg %p1990_p11 }
 0x79e   : > { %p1997_p12 = por %p1996_p3, %p1995_p1 }
 0x7a0   : > { %p1998_p9 = pnand %p1997_p12, %p1991_p8 }
 0x7a2   : > { %2001 = shalt.err (!%p1998_p9)
}
 0x7a3   : > { %s2102_s26 = smov 64   ;;  %s2103_s16 = smov 4  }
 0x7a4   : > { %1576 = dma.vmem_to_hbm [thread:$0]  (%p2777_p0), %s2646_s0, 128, %s2644_s8, %s1214_s27, %s2102_s26, %s2102_s26, %s2103_s16  }
 0x7a5 PF: > { %s2778_s13 = sld [smem:[#allocation24_spill]]  ;;  %s2779_s20 = sld [smem:[#allocation29_spill]] }
 0x7a6   : > { %p2781_p7 = scmp.ge.s32.totalorder %s2076_s10, 2 }
 0x7ab   : > { %s1244_s21 = sand.u32 1, %s2778_s13   ;;  %p2780_p5 = scmp.ne.s32.totalorder %s2779_s20, 0 }
 0x7ac   : > { %s1245_s17 = scalar_lea.sflag [#allocation4], %s1244_s21 }
 0x7ad   : > { %p1605_p6 = pnand %p2781_p7, %p2780_p5 }
 0x7af   : > { %2051 = dma.done.wait (!%p1605_p6), %s1245_s17, 128  }
 0x7b0   : > { %2053 = vsyncadd (!%p1605_p6), %s1245_s17, 4294967168  ;;  %s32_s10 = sadd.s32 1, %s2076_s10   ;;  %s2782_s23 = sld [smem:[#allocation25_spill]] }
 0x7b1   : > { %p29_p10 = scmp.ge.s32.totalorder %s32_s10, 4   ;;  %s2783_s29 = sld [smem:[#allocation32_spill]] }
 0x7b2   : > { %s2784_s18 = sld [smem:[#allocation30_spill]]  ;;  %s2785_s27 = smov %s2060_s28 }
 0x7b3   : > { %s2787_s30 = smov %s2072_s9  ;;  %31 = sbr.rel (!%p29_p10) target bundleno = 18 (0x12), region = 150 }
 0x7b6   : > { %s2786_s28 = smov %s2782_s23 }
 0x7b8   : > { %s2788_s9 = smov %s2784_s18 }
 0x7ba   :  { %1250 = vsyncpa [#allocation3], 1 }
 0x7bb   :  { %1252 = vsyncpa [#allocation3 + $0x1], 1 }
 0x7bc   :  { %1253 = vsyncpa [#allocation6], 1 }
 0x7bd   :  { %1255 = vsyncpa [#allocation6 + $0x1], 1 }
 0x7be   :  { %1256 = vsyncpa [#allocation9], 1 }
 0x7bf   :  { %1258 = vsyncpa [#allocation9 + $0x1], 1 }
 0x7c0   :  { %1259 = vsyncpa [#allocation12], 1 }
 0x7c1   :  { %1260 = vsyncpa [#allocation15], 1 }
 0x7c2   :  { %1261 = vsyncpa [#allocation4], 1 }
 0x7c3   :  { %1263 = vsyncpa [#allocation4 + $0x1], 1 }

// kernel: transformer_forward.30
= control target key start
LH: loop header
LB: loop body
LE: loop exit
PB: predicated region body
PF: predicated region fallthrough
CT: control target
= control target key end

     0   :  { %s1632_s0 = inlined_call_operand.hbm [shape: bf16[18,32], index: 0, kind: input, shape index: {}]   ;;  %s1633_s1 = inlined_call_operand.hbm [shape: bf16[32,64], index: 1, kind: input, shape index: {}]   ;;  %s1634_s2 = inlined_call_operand.hbm [shape: f32[1,64], index: 2, kind: input, shape index: {}]   ;;  %s1635_s3 = inlined_call_operand.hbm [shape: bf16[64,32], index: 3, kind: input, shape index: {}]   ;;  %s1636_s4 = inlined_call_operand.hbm [shape: f32[1,32], index: 4, kind: input, shape index: {}]   ;;  %s1637_s5 = inlined_call_operand.hbm [shape: f32[1,32], index: 5, kind: input, shape index: {}]   ;;  %s1638_s6 = inlined_call_operand.hbm [shape: f32[1,32], index: 6, kind: input, shape index: {}]   ;;  %s1639_s7 = inlined_call_operand.hbm [shape: bf16[18,32], index: 7, kind: output, shape index: {}]  }
   0x1   :  { %1648 = sst [smem:[#allocation24_spill]] %s1633_s1 }
   0x2   :  { %1649 = sst [smem:[#allocation25_spill]] %s1639_s7 }
   0x3   :  { %12 = vsyncpa [#allocation3], 0 }
   0x4   :  { %14 = vsyncpa [#allocation3 + $0x1], 0 }
   0x5   :  { %15 = vsyncpa [#allocation6], 0 }
   0x6   :  { %16 = vsyncpa [#allocation9], 0 }
   0x7   :  { %17 = vsyncpa [#allocation12], 0 }
   0x8   :  { %18 = vsyncpa [#allocation4], 0 }
   0x9   :  { %20 = vsyncpa [#allocation4 + $0x1], 0  ;;  %s1298_s24 = smov 0   ;;  %s1300_s25 = smov 0  }
   0xa   :  { %s1302_s26 = smov 0   ;;  %s1304_s27 = smov 0  }
   0xb LB: > { %1650 = sst [smem:[#allocation20_spill]] %s1228_s24  ;;  %s1319_s28 = sadd.s32 4294967295, %s1240_s27   ;;  %s1240_s27 = sphi %s1304_s27, %s1676_s27   ;;  %s1236_s26 = sphi %s1302_s26, %s1680_s26   ;;  %s1232_s25 = sphi %s1300_s25, %s1679_s25   ;;  %s1228_s24 = sphi %s1298_s24, %s1678_s24  }
   0xc   : > { %s765_s29 = sadd.s32 4294967294, %s1240_s27   ;;  %s1323_s30 = sadd.s32 1, %s1240_s27  }
   0xd   : > { %1651 = sst [smem:[#allocation21_spill]] %s1323_s30  ;;  %s33_s8 = sadd.s32 1, %s1236_s26 }
   0xe   : > { %s30_s9 = ssub.s32 %s1240_s27, %s1323_s30  ;;  %p40_p0 = scmp.ne.s32.totalorder %s1236_s26, %s1232_s25 }
   0xf   : > { %p31_p1 = scmp.eq.s32.totalorder %s30_s9, 0  ;;  %p41_p2 = scmp.eq.s32.totalorder %s1240_s27, 0 }
  0x10   : > { %p46_p3 = scmp.ne.s32.totalorder %s1232_s25, %s1228_s24  ;;  %p1640_p4 = scmp.eq.s32.totalorder %s1319_s28, 0 }
  0x11   : > { %s1335_s10 = scalar_select %p31_p1, %s1236_s26, %s33_s8  }
  0x12   : > { %p1337_p5 = por %p41_p2, %p40_p0  ;;  %p1343_p6 = por %p1640_p4, %p46_p3 }
  0x13   : > { %1652 = sst [smem:[#allocation22_spill]] %s1335_s10  ;;  %p196_p7 = scmp.eq.s32.totalorder %s1319_s28, 1 }
  0x14   : > { %s1653_s11 = scalar_select %p1337_p5, 1, 0 }
  0x15   : > { %s1654_s12 = scalar_select %p1343_p6, 1, 0 }
  0x16   : > { %p202_p8 = scmp.eq.s32.totalorder %s765_s29, 1  ;;  %p766_p9 = scmp.ge.s32.totalorder %s1240_s27, 1 }
  0x17   : > { %p209_p10 = scmp.lt.s32.totalorder %s1240_s27, 3  ;;  %p1350_p11 = por %p196_p7, %p40_p0 }
  0x18   : > { %p1354_p12 = por %p202_p8, %p46_p3  ;;  %s1242_s16 = smov [#allocation5]  }
  0x19   : > { %s1655_s13 = scalar_select %p1350_p11, 1, 0 }
  0x1a   : > { %s1656_s14 = scalar_select %p1354_p12, 1, 0 }
  0x1b   : > { %p1358_p13 = pnand %p766_p9, %p209_p10  ;;  %s221_s17 = sshll.u32 %s1242_s16, 4  ;;  %s222_s17 = int_to_ptr.vmem [resolvable:$true] %s221_s17 }
  0x1c   : > { %1657 = sst [smem:[#allocation23_spill]] %s1656_s14  ;;  %s1243_s19 = smov [#allocation8]  }
  0x1d   : > { %s1658_s15 = scalar_select %p1358_p13, 1, 0 }
  0x1e   : > { %p872_p1 = pneg %p1358_p13  ;;  %s245_s20 = sshll.u32 %s1243_s19, 4  ;;  %s1370_s20 = int_to_ptr.vmem [resolvable:$true] %s245_s20 }
  0x1f   : > { %s1660_s1 = sld [smem:[#allocation24_spill]] }
  0x20   : > { %p1366_p2 = pnand %p872_p1, %p1640_p4 }
  0x22   : > { %p1380_p3 = pneg %p1366_p2 }
  0x25   : > { %s966_s23 = scalar_lea.hbm %s1660_s1, 256 }
  0x26   : > { %p967_p0 = scmp.ne.s32.totalorder %s1660_s1, %s966_s23  ;;  %p973_p9 = scmp.lt.u32.totalorder %s966_s23, %s1660_s1 }
  0x28   : > { %p969_p7 = pnand %p1380_p3, %p967_p0 }
  0x2a   : > { %p970_p8 = pneg %p969_p7 }
  0x2c   : > { %p975_p10 = pnand %p973_p9, %p970_p8 }
  0x2e   : > { %978 = shalt.err (!%p975_p10)
}
  0x2f   : > { %s979_s21 = scalar_lea.vmem %s222_s17, 256  ;;  %p987_p11 = scmp.lt.s32.totalorder %s222_s17, %s222_s17 }
  0x30   : > { %p980_p1 = scmp.ne.s32.totalorder %s222_s17, %s979_s21  ;;  %p988_p6 = scmp.lt.s32.totalorder %s979_s21, %s979_s21 }
  0x32   : > { %p982_p4 = pnand %p980_p1, %p1380_p3  ;;  %p989_p13 = por %p988_p6, %p987_p11 }
  0x34   : > { %p983_p12 = pneg %p982_p4 }
  0x36   : > { %p990_p5 = pnand %p989_p13, %p983_p12 }
  0x38   : > { %993 = shalt.err (!%p990_p5)
}
  0x39   : > { %s1244_s22 = smov 64   ;;  %s1245_s29 = smov 4  }
  0x3a   : > { %875 = dma.hbm_to_vmem [thread:$0]  (!%p1366_p2), %s1660_s1, 256, %s222_s17, [#allocation6], %s1244_s22, %s1244_s22, %s1245_s29  }
  0x3b   : > { %s994_s10 = scalar_lea.hbm %s1635_s3, 512 }
  0x3c   : > { %p995_p4 = scmp.ne.s32.totalorder %s1635_s3, %s994_s10  ;;  %p1001_p11 = scmp.lt.u32.totalorder %s994_s10, %s1635_s3 }
  0x3e   : > { %p997_p6 = pnand %p995_p4, %p1380_p3 }
  0x40   : > { %p998_p5 = pneg %p997_p6 }
  0x42   : > { %p1003_p12 = pnand %p1001_p11, %p998_p5 }
  0x44   : > { %1006 = shalt.err (!%p1003_p12)
}
  0x45   : > { %s1007_s17 = scalar_lea.vmem %s1370_s20, 512  ;;  %p1015_p8 = scmp.lt.s32.totalorder %s1370_s20, %s1370_s20 }
  0x46   : > { %p1008_p13 = scmp.ne.s32.totalorder %s1370_s20, %s1007_s17  ;;  %p1016_p9 = scmp.lt.s32.totalorder %s1007_s17, %s1007_s17 }
  0x48   : > { %p1010_p0 = pnand %p1008_p13, %p1380_p3  ;;  %p1017_p10 = por %p1016_p9, %p1015_p8 }
  0x4a   : > { %p1011_p7 = pneg %p1010_p0 }
  0x4c   : > { %p1018_p1 = pnand %p1017_p10, %p1011_p7 }
  0x4e   : > { %1021 = shalt.err (!%p1018_p1)
}
  0x4f   : > { %881 = dma.hbm_to_vmem [thread:$0]  (!%p1366_p2), %s1635_s3, 512, %s1370_s20, [#allocation9], %s1244_s22, %s1244_s22, %s1245_s29  }
  0x50   : > { %s1246_s10 = smov [#allocation11]   ;;  %s1247_s8 = smov [#allocation7]  }
  0x51   : > { %s270_s14 = sshll.u32 %s1246_s10, 4  ;;  %s235_s23 = sshll.u32 %s1247_s8, 4  ;;  %s271_s14 = int_to_ptr.vmem [resolvable:$true] %s270_s14  ;;  %s236_s23 = int_to_ptr.vmem [resolvable:$true] %s235_s23 }
  0x52   : > { %s1022_s21 = scalar_lea.hbm %s1637_s5, 16 }
  0x53   : > { %p1023_p4 = scmp.ne.s32.totalorder %s1637_s5, %s1022_s21  ;;  %p1029_p11 = scmp.lt.u32.totalorder %s1022_s21, %s1637_s5 }
  0x55   : > { %p1025_p6 = pnand %p1023_p4, %p1380_p3 }
  0x57   : > { %p1026_p5 = pneg %p1025_p6 }
  0x59   : > { %p1031_p12 = pnand %p1029_p11, %p1026_p5 }
  0x5b   : > { %1034 = shalt.err (!%p1031_p12)
}
  0x5c   : > { %s1035_s20 = scalar_lea.vmem %s271_s14, 16  ;;  %s1042_s22 = scalar_lea.vmem %s271_s14, 32 }
  0x5d   : > { %p1036_p13 = scmp.ne.s32.totalorder %s271_s14, %s1035_s20  ;;  %p1043_p8 = scmp.lt.s32.totalorder %s271_s14, %s271_s14 }
  0x5e   : > { %p1044_p9 = scmp.lt.s32.totalorder %s1042_s22, %s1035_s20 }
  0x5f   : > { %p1038_p0 = pnand %p1036_p13, %p1380_p3 }
  0x60   : > { %p1045_p10 = por %p1044_p9, %p1043_p8 }
  0x61   : > { %p1039_p7 = pneg %p1038_p0 }
  0x63   : > { %p1046_p1 = pnand %p1045_p10, %p1039_p7 }
  0x65   : > { %1049 = shalt.err (!%p1046_p1)
}
  0x66   : > { %887 = dma.hbm_to_vmem [thread:$0]  (!%p1366_p2), %s1637_s5, 16, %s271_s14, [#allocation12]  }
  0x67   : > { %s1050_s10 = scalar_lea.hbm %s1634_s2, 16 }
  0x68   : > { %p1051_p4 = scmp.ne.s32.totalorder %s1634_s2, %s1050_s10  ;;  %p1057_p11 = scmp.lt.u32.totalorder %s1050_s10, %s1634_s2 }
  0x6a   : > { %p1053_p6 = pnand %p1051_p4, %p1380_p3 }
  0x6c   : > { %p1054_p5 = pneg %p1053_p6 }
  0x6e   : > { %p1059_p12 = pnand %p1057_p11, %p1054_p5 }
  0x70   : > { %1062 = shalt.err (!%p1059_p12)
}
  0x71   : > { %s1063_s17 = scalar_lea.vmem %s236_s23, 16  ;;  %s1070_s14 = scalar_lea.vmem %s236_s23, 32 }
  0x72   : > { %p1064_p13 = scmp.ne.s32.totalorder %s236_s23, %s1063_s17  ;;  %p1071_p8 = scmp.lt.s32.totalorder %s236_s23, %s236_s23 }
  0x73   : > { %p1072_p9 = scmp.lt.s32.totalorder %s1070_s14, %s1063_s17 }
  0x74   : > { %p1066_p0 = pnand %p1064_p13, %p1380_p3 }
  0x75   : > { %p1073_p10 = por %p1072_p9, %p1071_p8 }
  0x76   : > { %p1067_p7 = pneg %p1066_p0 }
  0x78   : > { %p1074_p1 = pnand %p1073_p10, %p1067_p7 }
  0x7a   : > { %1077 = shalt.err (!%p1074_p1)
}
  0x7b   : > { %878 = dma.hbm_to_vmem [thread:$0]  (!%p1366_p2), %s1634_s2, 16, %s236_s23, [#allocation6]  }
  0x7c   : > { %s1248_s22 = smov [#allocation10]   ;;  %s1249_s29 = smov [#allocation13]  }
  0x7d   : > { %s259_s1 = sshll.u32 %s1248_s22, 4  ;;  %s281_s7 = sshll.u32 %s1249_s29, 4  ;;  %s260_s1 = int_to_ptr.vmem [resolvable:$true] %s259_s1  ;;  %s282_s7 = int_to_ptr.vmem [resolvable:$true] %s281_s7 }
  0x7e   : > { %s1078_s8 = scalar_lea.hbm %s1636_s4, 16 }
  0x7f   : > { %p1079_p4 = scmp.ne.s32.totalorder %s1636_s4, %s1078_s8  ;;  %p1085_p11 = scmp.lt.u32.totalorder %s1078_s8, %s1636_s4 }
  0x81   : > { %p1081_p6 = pnand %p1079_p4, %p1380_p3 }
  0x83   : > { %p1082_p5 = pneg %p1081_p6 }
  0x85   : > { %p1087_p12 = pnand %p1085_p11, %p1082_p5 }
  0x87   : > { %1090 = shalt.err (!%p1087_p12)
}
  0x88   : > { %s1091_s23 = scalar_lea.vmem %s260_s1, 16  ;;  %s1098_s14 = scalar_lea.vmem %s260_s1, 32 }
  0x89   : > { %p1092_p13 = scmp.ne.s32.totalorder %s260_s1, %s1091_s23  ;;  %p1099_p8 = scmp.lt.s32.totalorder %s260_s1, %s260_s1 }
  0x8a   : > { %p1100_p9 = scmp.lt.s32.totalorder %s1098_s14, %s1091_s23 }
  0x8b   : > { %p1094_p0 = pnand %p1092_p13, %p1380_p3 }
  0x8c   : > { %p1101_p10 = por %p1100_p9, %p1099_p8 }
  0x8d   : > { %p1095_p7 = pneg %p1094_p0 }
  0x8f   : > { %p1102_p1 = pnand %p1101_p10, %p1095_p7 }
  0x91   : > { %1105 = shalt.err (!%p1102_p1)
}
  0x92   : > { %884 = dma.hbm_to_vmem [thread:$0]  (!%p1366_p2), %s1636_s4, 16, %s260_s1, [#allocation9]  }
  0x93   : > { %s1106_s30 = scalar_lea.hbm %s1638_s6, 16 }
  0x94   : > { %p1107_p4 = scmp.ne.s32.totalorder %s1638_s6, %s1106_s30  ;;  %p1113_p11 = scmp.lt.u32.totalorder %s1106_s30, %s1638_s6 }
  0x96   : > { %p1109_p6 = pnand %p1107_p4, %p1380_p3 }
  0x98   : > { %p1110_p5 = pneg %p1109_p6 }
  0x9a   : > { %p1115_p12 = pnand %p1113_p11, %p1110_p5 }
  0x9c   : > { %1118 = shalt.err (!%p1115_p12)
}
  0x9d   : > { %s1119_s21 = scalar_lea.vmem %s282_s7, 16  ;;  %s1126_s1 = scalar_lea.vmem %s282_s7, 32 }
  0x9e   : > { %p1120_p13 = scmp.ne.s32.totalorder %s282_s7, %s1119_s21  ;;  %p1127_p8 = scmp.lt.s32.totalorder %s282_s7, %s282_s7 }
  0x9f   : > { %p1128_p9 = scmp.lt.s32.totalorder %s1126_s1, %s1119_s21 }
  0xa0   : > { %p1122_p0 = pnand %p1120_p13, %p1380_p3 }
  0xa1   : > { %p1129_p10 = por %p1128_p9, %p1127_p8 }
  0xa2   : > { %p1123_p7 = pneg %p1122_p0 }
  0xa4   : > { %p1130_p1 = pnand %p1129_p10, %p1123_p7 }
  0xa6   : > { %1133 = shalt.err (!%p1130_p1)
}
  0xa7   : > { %890 = dma.hbm_to_vmem [thread:$0]  (!%p1366_p2), %s1638_s6, 16, %s282_s7, [#allocation12]  }
  0xa8   : > { %p773_p4 = scmp.ge.s32.totalorder %s1240_s27, 2 }
  0xa9   : > { %p1662_p3 = scmp.ne.s32.totalorder (!%p773_p4), %s1653_s11, 0 }
  0xaa   : > { %288 = sbr.rel (%p773_p4) target bundleno = 212 (0xd4), region = 40 }
  0xb1   : > { %291 = sbr.rel (!%p1662_p3) target bundleno = 212 (0xd4), region = 44  ;;  %s292_s9 = sand.u32 (%p1662_p3), 1, %s1236_s26  }
  0xb2   : > { %s775_s14 = sshll.u32 (%p1662_p3), %s1240_s27, 1  ;;  %s774_s24 = sshll.u32 (%p1662_p3), %s292_s9, 3 }
  0xb3   : > { %s298_s20 = ssub.s32 (%p1662_p3), 3, %s775_s14  ;;  %s1501_s22 = scalar_lea.sflag (%p1662_p3), [#allocation3], %s292_s9 }
  0xb4   : > { %p299_p6 = scmp.lt.s32.totalorder (%p1662_p3), %s298_s20, 2  ;;  %s296_s29 = scalar_lea.vmem (%p1662_p3), [#allocation2], %s774_s24 }
  0xb8   : > { %s1682_s20 = smov (!%p299_p6, %s298_s20), 2 }
  0xb9   : > { %s1498_s18 = sshll.u32 %s1682_s20, 6 }
  0xba   : > { %s303_s7 = ssub.s32 128, %s1498_s18 }
  0xbb   : > { %304 = vsyncadd %s1501_s22, %s303_s7  ;;  %p777_p2 = scmp.ne.s32.totalorder %s1498_s18, 0  ;;  %s814_s11 = sshll.u32 %s1240_s27, 7 }
  0xbc   : > { %s1509_s8 = scalar_lea.hbm %s1632_s0, %s814_s11  ;;  %s309_s16 = sshll.u32 %s296_s29, 4  ;;  %s1511_s16 = int_to_ptr.vmem [resolvable:$true] %s309_s16 }
  0xbd   : > { %s1134_s19 = scalar_lea.hbm %s1509_s8, %s1498_s18  ;;  %s1138_s17 = scalar_lea.hbm %s1632_s0, 192 }
  0xbe   : > { %p1135_p5 = scmp.ne.s32.totalorder %s1509_s8, %s1134_s19  ;;  %p1139_p13 = scmp.lt.u32.totalorder %s1509_s8, %s1632_s0 }
  0xbf   : > { %p1140_p0 = scmp.lt.u32.totalorder %s1138_s17, %s1134_s19  ;;  %p1142_p8 = scmp.lt.u32.totalorder %s1134_s19, %s1509_s8 }
  0xc0   : > { %p1136_p11 = pnand %p1135_p5, %p777_p2 }
  0xc1   : > { %p1141_p7 = por %p1140_p0, %p1139_p13 }
  0xc2   : > { %p1137_p12 = pneg %p1136_p11 }
  0xc3   : > { %p1143_p9 = por %p1142_p8, %p1141_p7 }
  0xc5   : > { %p1144_p10 = pnand %p1143_p9, %p1137_p12 }
  0xc7   : > { %1147 = shalt.err (!%p1144_p10)
}
  0xc8   : > { %s1148_s14 = scalar_lea.vmem %s1511_s16, %s1498_s18  ;;  %s1250_s24 = smov [#allocation2]  }
  0xc9   : > { %p1149_p1 = scmp.ne.s32.totalorder %s1511_s16, %s1148_s14  ;;  %s1152_s20 = sshll.u32 %s1250_s24, 4  ;;  %s1153_s20 = int_to_ptr.vmem [resolvable:$false] %s1152_s20 }
  0xca   : > { %s1154_s7 = scalar_lea.vmem %s1153_s20, 256  ;;  %p1155_p5 = scmp.lt.s32.totalorder %s1511_s16, %s1153_s20 }
  0xcb   : > { %p1150_p3 = pnand %p1149_p1, %p777_p2  ;;  %p1156_p11 = scmp.lt.s32.totalorder %s1154_s7, %s1148_s14 }
  0xcd   : > { %p1151_p6 = pneg %p1150_p3  ;;  %p1157_p13 = por %p1156_p11, %p1155_p5 }
  0xcf   : > { %p1158_p0 = pnand %p1157_p13, %p1151_p6 }
  0xd1   : > { %1161 = shalt.err (!%p1158_p0)
}
  0xd2   : > { %s1251_s29 = smov 64   ;;  %s1252_s11 = smov 4  }
  0xd3   : > { %315 = dma.hbm_to_vmem [thread:$0]  (%p777_p2), %s1509_s8, %s1498_s18, %s1511_s16, %s1501_s22, %s1251_s29, %s1251_s29, %s1252_s11  }
  0xd4 PF: > { %p1663_p12 = scmp.ne.s32.totalorder %s1658_s15, 0 }
  0xd5   : > { %s1541_s30 = sand.u32 (!%p1663_p12), 1, %s1232_s25   ;;  %p1664_p7 = scmp.ne.s32.totalorder (!%p1663_p12), %s1654_s12, 0 }
  0xd6   : > { %321 = sbr.rel (%p1663_p12) target bundleno = 1026 (0x402), region = 48  ;;  %s782_s10 = sshll.u32 (!%p1663_p12), %s1541_s30, 3 }
  0xd7   : > { %s324_s19 = scalar_lea.sflag (!%p1663_p12), [#allocation3], %s1541_s30  ;;  %s327_s21 = scalar_lea.vmem (!%p1663_p12), [#allocation2], %s782_s10 }
  0xdd   : > { %1207 = dma.done.wait (%p1664_p7), %s324_s19, 128  }
  0xde   : > { %1209 = vsyncadd (%p1664_p7), %s324_s19, 4294967168  ;;  %p1665_p2 = scmp.eq.s32.totalorder %s1319_s28, 0 }
  0xe0   : > { %1211 = dma.done.wait (%p1665_p2), [#allocation6], 272   ;;  %p1666_p8 = pmov %p1665_p2 }
  0xe1   : > { %p1667_p9 = pmov %p1665_p2 }
  0xe2   : > { %1213 = vsyncadd (%p1666_p8), [#allocation6], 4294967024 }
  0xe3   : > { %1215 = dma.done.wait (%p1667_p9), [#allocation9], 528   ;;  %p1668_p10 = pmov %p1665_p2 }
  0xe4   : > { %p1669_p1 = pmov %p1665_p2 }
  0xe5   : > { %1217 = vsyncadd (%p1668_p10), [#allocation9], 4294966768 }
  0xe6   : > { %1219 = dma.done.wait (%p1669_p1), [#allocation12], 32   ;;  %p1670_p3 = pmov %p1669_p1 }
  0xe7   : > { %v1253_v0 = vmov 0.0   ;;  %vm1254_vm0 = vmmov 0   ;;  %v954_v1 = vld [vmem:[#allocation5] sm:$0xff]   ;;  %v955_v2 = vld [vmem:[#allocation5 + $0x8] sm:$0xff]   ;;  %v393_v3 = vld [vmem:[%s327_s21] sm:$0xff]   ;;  %vm423_vm1 = vcmask 261120  }
  0xe8   : > { %1221 = vsyncadd (%p1670_p3), [#allocation12], 4294967264  ;;  %826 = vmatprep.subr.bf16.mxu0 %v1253_v0  ;;  %830 = vmatprep.mubr.msk.bf16.mxu0 %vm1254_vm0, %v1253_v0  ;;  %v957_v4 = vld [vmem:[#allocation8] sm:$0xff]   ;;  %v958_v5 = vld [vmem:[#allocation8 + $0x8] sm:$0xff]   ;;  %vm510_vm2 = vcmask 523264   ;;  %v555_v19 = vunpack.c.l.bf16 %v393_v3  ;;  %v556_v23 = vunpack.c.h.bf16 %v393_v3  ;;  %vm612_vm3 = vcmask 257024  }
  0xe9   : > { %834 = vmatprep.subr.bf16.mxu1 %v1253_v0  ;;  %842 = vmatprep.mubr.msk.bf16.mxu1 %vm1254_vm0, %v1253_v0  ;;  %v959_v6 = vld [vmem:[#allocation8 + $0x10] sm:$0xff]   ;;  %v960_v7 = vld [vmem:[#allocation8 + $0x18] sm:$0xff]   ;;  %v795_v18 = vld [vmem:[#allocation10] ss:$0 sm:$0xff]  ;;  %s381_s12 = scalar_lea.vmem [#allocation14], %s782_s10  ;;  %s616_s15 = scalar_lea.sflag [#allocation4], %s1541_s30 }
  0xea   : > { %827 = vmatpush3.bf16.msra.mxu0 %v954_v1  ;;  %835 = vmatpush3.bf16.msra.mxu1 %v957_v4  ;;  %v790_v8 = vld [vmem:[#allocation7] ss:$0 sm:$0xff]  ;;  %v801_v48 = vld [vmem:[#allocation11] ss:$0 sm:$0xff]  ;;  %v802_v50 = vld [vmem:[#allocation13] ss:$0 sm:$0xff] }
  0xeb   : > { %828 = vmatprep.subr.bf16.mxu0 %v1253_v0  ;;  %836 = vmatprep.subr.bf16.mxu1 %v1253_v0  ;;  %p1671_p6 = scmp.ne.s32.totalorder %s1655_s13, 0 }
  0xec   : > { %s806_s18 = sshll.u32 (%p1671_p6), %s1319_s28, 1 }
  0xed   : > { %s624_s22 = ssub.s32 (%p1671_p6), 3, %s806_s18 }
  0xee   : > { %829 = vmatpush3.bf16.msra.mxu0 %v955_v2  ;;  %837 = vmatpush3.bf16.msra.mxu1 %v958_v5  ;;  %p625_p5 = scmp.lt.s32.totalorder (%p1671_p6), %s624_s22, 2 }
  0xef   : > { %838 = vmatprep.subr.bf16.mxu1 %v1253_v0 }
  0xf1   : > { %831 = vmatmul.mubr.msk.bf16.vlgmr.msra.gmra.mrb[0].mxu0 %vm423_vm1, %v393_v3 }
  0xf2   : > { %839 = vmatpush3.bf16.msra.mxu1 %v959_v6 }
  0xf3   : > { %840 = vmatprep.subr.bf16.mxu1 %v1253_v0 }
  0xf6   : > { %841 = vmatpush3.bf16.msra.mxu1 %v960_v7 }
 0x1c4   : > { %v461_v9 = vpop.f32.mrb[0].mxu0 }
 0x1c5   : > { %v462_v10 = vadd.f32 %v790_v8, %v461_v9  ;;  %v832_v11 = vpop.f32.mrb[1].mxu0 }
 0x1c6   : > { %v464_v12 = vpop.f32.mrb[2].mxu0 }
 0x1c7   : > { %v465_v13 = vadd.f32 %v790_v8, %v464_v12  ;;  %v833_v14 = vpop.f32.mrb[3].mxu0  ;;  %v468_v15 = vmax.f32 %v462_v10, 0.0 }
 0x1c9   : > { %v469_v16 = vmax.f32 %v465_v13, 0.0 }
 0x1cb   : > { %v470_v17 = vpack.c.bf16 %v469_v16, %v468_v15 }
 0x1cd   : > { %843 = vmatmul.mubr.msk.bf16.vlgmr.msra.gmra.mrb[0].mxu1 %vm510_vm2, %v470_v17 }
 0x2a0   : > { %v548_v20 = vpop.f32.mrb[0].mxu1 }
 0x2a1   : > { %v549_v21 = vadd.f32 %v795_v18, %v548_v20  ;;  %v844_v22 = vpop.f32.mrb[1].mxu1 }
 0x2a2   : > { %v551_v24 = vpop.f32.mrb[2].mxu1 }
 0x2a3   : > { %v552_v25 = vadd.f32 %v795_v18, %v551_v24  ;;  %v845_v26 = vpop.f32.mrb[3].mxu1  ;;  %v557_v27 = vadd.f32 %v555_v19, %v549_v21 }
 0x2a5   : > { %v561_v28 = vsel %vm423_vm1, %v557_v27, 0.0  ;;  %v558_v29 = vadd.f32 %v556_v23, %v552_v25 }
 0x2a6   : > { %562 = vadd.xlane.f32.xlu0 %v561_v28 }
 0x2a7   : > { %v564_v30 = vsel %vm423_vm1, %v558_v29, 0.0 }
 0x2aa   : > { %565 = vadd.xlane.f32.xlu0 %v564_v30 }
 0x333   : > { %v563_v31 = vpop.xlane.xlu0 %562 }
 0x334   : > { %v568_v32 = vmul.f32 0.03125, %v563_v31 }
 0x336   : > { %v570_v33 = vsub.f32 %v557_v27, %v568_v32 }
 0x337   : > { %v566_v34 = vpop.xlane.xlu0 %565 }
 0x338   : > { %v569_v35 = vmul.f32 0.03125, %v566_v34  ;;  %v572_v36 = vmul.f32 %v570_v33, %v570_v33 }
 0x33a   : > { %v571_v37 = vsub.f32 %v558_v29, %v569_v35  ;;  %v574_v38 = vsel %vm423_vm1, %v572_v36, 0.0 }
 0x33b   : > { %575 = vadd.xlane.f32.xlu1 %v574_v38 }
 0x33c   : > { %v573_v39 = vmul.f32 %v571_v37, %v571_v37 }
 0x33e   : > { %v577_v40 = vsel %vm423_vm1, %v573_v39, 0.0 }
 0x33f   : > { %578 = vadd.xlane.f32.xlu1 %v577_v40 }
 0x3c8   : > { %v576_v41 = vpop.xlane.xlu1 %575 }
 0x3c9   : > { %v580_v42 = vmul.f32 0.03125, %v576_v41 }
 0x3cb   : > { %v582_v43 = vadd.f32 1e-05, %v580_v42 }
 0x3cc   : > { %v579_v44 = vpop.xlane.xlu1 %578 }
 0x3cd   : > { %962 = vrsqrt.f32 %v582_v43  ;;  %v581_v45 = vmul.f32 0.03125, %v579_v44 }
 0x3cf   : > { %v583_v46 = vadd.f32 1e-05, %v581_v45 }
 0x3d1   : > { %964 = vrsqrt.f32 %v583_v46 }
 0x3d7   : > { %v963_v47 = vpop.eup %962 }
 0x3d8   : > { %v586_v49 = vmul.f32 %v963_v47, %v570_v33 }
 0x3da   : > { %v594_v51 = vmul.f32 %v801_v48, %v586_v49 }
 0x3db   : > { %v965_v52 = vpop.eup %964 }
 0x3dc   : > { %v602_v53 = vadd.f32 %v802_v50, %v594_v51  ;;  %v587_v54 = vmul.f32 %v965_v52, %v571_v37 }
 0x3de   : > { %v815_v55 = vpack.c.bf16 %v602_v53, %v602_v53  ;;  %v595_v56 = vmul.f32 %v801_v48, %v587_v54  ;;  %622 = sbr.rel (!%p1671_p6) target bundleno = 1026 (0x402), region = 80 }
 0x3e0   : > { %613 = vst.msk [vmem:[%s381_s12] sm:$0xf] %vm612_vm3, %v815_v55  ;;  %v603_v57 = vadd.f32 %v802_v50, %v595_v56 }
 0x3e2   : > { %v816_v58 = vpack.c.bf16 %v603_v57, %v603_v57 }
 0x3e4   : > { %614 = vst.msk [vmem:[%s381_s12 + $0x4] sm:$0xf] %vm612_vm3, %v816_v58 }
 0x3e5   : > { %s1684_s22 = smov (!%p625_p5, %s624_s22), 2 }
 0x3e6   : > { %s1574_s8 = sshll.u32 %s1684_s22, 6 }
 0x3e7   : > { %s629_s16 = ssub.s32 128, %s1574_s8 }
 0x3e8   : > { %630 = vsyncadd %s616_s15, %s629_s16  ;;  %p808_p11 = scmp.ne.s32.totalorder %s1574_s8, 0  ;;  %s817_s1 = sshll.u32 %s1319_s28, 7 }
 0x3e9   : > { %s1672_s23 = sld [smem:[#allocation25_spill]]  ;;  %s635_s14 = sshll.u32 %s381_s12, 4  ;;  %s1586_s14 = int_to_ptr.vmem [resolvable:$true] %s635_s14 }
 0x3ea   : > { %s1162_s24 = scalar_lea.vmem %s1586_s14, %s1574_s8  ;;  %s1255_s20 = smov [#allocation14]  }
 0x3eb   : > { %p1163_p13 = scmp.ne.s32.totalorder %s1586_s14, %s1162_s24  ;;  %s1166_s7 = sshll.u32 %s1255_s20, 4  ;;  %s1167_s7 = int_to_ptr.vmem [resolvable:$false] %s1166_s7 }
 0x3ec   : > { %s1168_s28 = scalar_lea.vmem %s1167_s7, 256  ;;  %p1169_p7 = scmp.lt.s32.totalorder %s1586_s14, %s1167_s7 }
 0x3ed   : > { %p1164_p0 = pnand %p1163_p13, %p808_p11  ;;  %p1170_p2 = scmp.lt.s32.totalorder %s1168_s28, %s1162_s24 }
 0x3ef   : > { %s1584_s9 = scalar_lea.hbm %s1672_s23, %s817_s1  ;;  %p1165_p12 = pneg %p1164_p0 }
 0x3f0   : > { %p1171_p8 = por %p1170_p2, %p1169_p7 }
 0x3f2   : > { %p1172_p9 = pnand %p1171_p8, %p1165_p12 }
 0x3f4   : > { %1175 = shalt.err (!%p1172_p9)
}
 0x3f5   : > { %s1176_s29 = scalar_lea.hbm %s1584_s9, %s1574_s8  ;;  %s1180_s19 = scalar_lea.hbm %s1672_s23, 192 }
 0x3f6   : > { %p1177_p10 = scmp.ne.s32.totalorder %s1584_s9, %s1176_s29  ;;  %p1181_p6 = scmp.lt.u32.totalorder %s1584_s9, %s1672_s23 }
 0x3f7   : > { %p1182_p5 = scmp.lt.u32.totalorder %s1180_s19, %s1176_s29  ;;  %p1184_p0 = scmp.lt.u32.totalorder %s1176_s29, %s1584_s9 }
 0x3f8   : > { %p1178_p1 = pnand %p1177_p10, %p808_p11 }
 0x3f9   : > { %p1183_p13 = por %p1182_p5, %p1181_p6 }
 0x3fa   : > { %p1179_p3 = pneg %p1178_p1 }
 0x3fb   : > { %p1185_p12 = por %p1184_p0, %p1183_p13 }
 0x3fd   : > { %p1186_p7 = pnand %p1185_p12, %p1179_p3 }
 0x3ff   : > { %1189 = shalt.err (!%p1186_p7)
}
 0x400   : > { %s1256_s18 = smov 64   ;;  %s1257_s22 = smov 4  }
 0x401   : > { %641 = dma.vmem_to_hbm [thread:$0]  (%p808_p11), %s1586_s14, %s1574_s8, %s1584_s9, %s616_s15, %s1256_s18, %s1256_s18, %s1257_s22  }
 0x402 PF: > { %s1673_s16 = sld [smem:[#allocation20_spill]]  ;;  %s1674_s1 = sld [smem:[#allocation23_spill]] }
 0x408   : > { %s650_s13 = sand.u32 1, %s1673_s16   ;;  %p1675_p2 = scmp.ne.s32.totalorder %s1674_s1, 0 }
 0x409   : > { %s651_s17 = scalar_lea.sflag [#allocation4], %s650_s13 }
 0x40a   : > { %p892_p8 = pnand %p773_p4, %p1675_p2 }
 0x40c   : > { %1223 = dma.done.wait (!%p892_p8), %s651_s17, 128  }
 0x40d   : > { %1225 = vsyncadd (!%p892_p8), %s651_s17, 4294967168  ;;  %s1676_s27 = sld [smem:[#allocation21_spill]]  ;;  %s1677_s20 = sld [smem:[#allocation22_spill]] }
 0x40e   : > { %s1678_s24 = smov %s1232_s25  ;;  %s1679_s25 = smov %s1236_s26 }
 0x413   : > { %p23_p9 = scmp.ge.s32.totalorder %s1676_s27, 4   ;;  %s1680_s26 = smov %s1677_s20 }
 0x415   :  { %25 = sbr.rel (!%p23_p9) target bundleno = 11 (0xb), region = 117 }
 0x41c   :  { %656 = vsyncpa [#allocation3], 1 }
 0x41d   :  { %658 = vsyncpa [#allocation3 + $0x1], 1 }
 0x41e   :  { %659 = vsyncpa [#allocation6], 1 }
 0x41f   :  { %660 = vsyncpa [#allocation9], 1 }
 0x420   :  { %661 = vsyncpa [#allocation12], 1 }
 0x421   :  { %662 = vsyncpa [#allocation4], 1 }
 0x422   :  { %664 = vsyncpa [#allocation4 + $0x1], 1 }

// kernel: transformer_forward.37
= control target key start
LH: loop header
LB: loop body
LE: loop exit
PB: predicated region body
PF: predicated region fallthrough
CT: control target
= control target key end

     0   :  { %s1261_s0 = inlined_call_operand.hbm [shape: bf16[18,32], index: 0, kind: input, shape index: {}]   ;;  %s1262_s1 = inlined_call_operand.hbm [shape: f32[1,32], index: 1, kind: input, shape index: {}]   ;;  %s1263_s2 = inlined_call_operand.hbm [shape: f32[1,32], index: 2, kind: input, shape index: {}]   ;;  %s1264_s3 = inlined_call_operand.hbm [shape: bf16[32,128], index: 3, kind: input, shape index: {}]   ;;  %s1265_s4 = inlined_call_operand.hbm [shape: f32[1,128], index: 4, kind: input, shape index: {}]   ;;  %s1266_s5 = inlined_call_operand.hbm [shape: f32[18,128], index: 5, kind: output, shape index: {}]  }
   0x1   :  { %1274 = sst [smem:[#allocation20_spill]] %s1262_s1 }
   0x2   :  { %10 = vsyncpa [#allocation3], 0 }
   0x3   :  { %12 = vsyncpa [#allocation3 + $0x1], 0 }
   0x4   :  { %13 = vsyncpa [#allocation6], 0 }
   0x5   :  { %14 = vsyncpa [#allocation9], 0 }
   0x6   :  { %15 = vsyncpa [#allocation4], 0 }
   0x7   :  { %17 = vsyncpa [#allocation4 + $0x1], 0  ;;  %s970_s18 = smov 0   ;;  %s972_s19 = smov 0  }
   0x8   :  { %s974_s20 = smov 0   ;;  %s976_s21 = smov 0  }
   0x9 LB: > { %1275 = sst [smem:[#allocation16_spill]] %s912_s18  ;;  %s991_s22 = sadd.s32 4294967295, %s924_s21   ;;  %s924_s21 = sphi %s976_s21, %s1298_s21   ;;  %s920_s20 = sphi %s974_s20, %s1302_s20   ;;  %s916_s19 = sphi %s972_s19, %s1301_s19   ;;  %s912_s18 = sphi %s970_s18, %s1300_s18  }
   0xa   : > { %s563_s23 = sadd.s32 4294967294, %s924_s21   ;;  %s995_s24 = sadd.s32 1, %s924_s21  }
   0xb   : > { %1276 = sst [smem:[#allocation17_spill]] %s995_s24  ;;  %s30_s25 = sadd.s32 1, %s920_s20 }
   0xc   : > { %s27_s26 = ssub.s32 %s924_s21, %s995_s24  ;;  %p37_p0 = scmp.ne.s32.totalorder %s920_s20, %s916_s19 }
   0xd   : > { %p28_p1 = scmp.eq.s32.totalorder %s27_s26, 0  ;;  %p38_p2 = scmp.eq.s32.totalorder %s924_s21, 0 }
   0xe   : > { %p43_p3 = scmp.ne.s32.totalorder %s916_s19, %s912_s18  ;;  %p1267_p4 = scmp.eq.s32.totalorder %s991_s22, 0 }
   0xf   : > { %s1007_s27 = scalar_select %p28_p1, %s920_s20, %s30_s25  }
  0x10   : > { %p1009_p5 = por %p38_p2, %p37_p0  ;;  %p1015_p6 = por %p1267_p4, %p43_p3 }
  0x11   : > { %1277 = sst [smem:[#allocation18_spill]] %s1007_s27  ;;  %p151_p7 = scmp.eq.s32.totalorder %s991_s22, 1 }
  0x12   : > { %s1278_s28 = scalar_select %p1009_p5, 1, 0 }
  0x13   : > { %s1279_s29 = scalar_select %p1015_p6, 1, 0 }
  0x14   : > { %p157_p8 = scmp.eq.s32.totalorder %s563_s23, 1  ;;  %p564_p9 = scmp.ge.s32.totalorder %s924_s21, 1 }
  0x15   : > { %p164_p10 = scmp.lt.s32.totalorder %s924_s21, 3  ;;  %p1022_p11 = por %p151_p7, %p37_p0 }
  0x16   : > { %p1026_p12 = por %p157_p8, %p43_p3  ;;  %s926_s8 = smov [#allocation5]  }
  0x17   : > { %s1280_s30 = scalar_select %p1022_p11, 1, 0 }
  0x18   : > { %s1281_s6 = scalar_select %p1026_p12, 1, 0 }
  0x19   : > { %p1030_p13 = pnand %p564_p9, %p164_p10  ;;  %s177_s9 = sshll.u32 %s926_s8, 4  ;;  %s178_s9 = int_to_ptr.vmem [resolvable:$true] %s177_s9 }
  0x1a   : > { %1282 = sst [smem:[#allocation19_spill]] %s1281_s6  ;;  %s927_s10 = smov [#allocation8]  }
  0x1b   : > { %s1283_s7 = scalar_select %p1030_p13, 1, 0 }
  0x1c   : > { %p634_p1 = pneg %p1030_p13  ;;  %s198_s11 = sshll.u32 %s927_s10, 4  ;;  %s1042_s11 = int_to_ptr.vmem [resolvable:$true] %s198_s11 }
  0x1d   : > { %s1285_s1 = sld [smem:[#allocation20_spill]] }
  0x1e   : > { %p1038_p0 = pnand %p634_p1, %p1267_p4 }
  0x20   : > { %p1052_p3 = pneg %p1038_p0 }
  0x23   : > { %s710_s15 = scalar_lea.hbm %s1285_s1, 16 }
  0x24   : > { %p711_p2 = scmp.ne.s32.totalorder %s1285_s1, %s710_s15  ;;  %p717_p9 = scmp.lt.u32.totalorder %s710_s15, %s1285_s1 }
  0x26   : > { %p713_p7 = pnand %p1052_p3, %p711_p2 }
  0x28   : > { %p714_p8 = pneg %p713_p7 }
  0x2a   : > { %p719_p10 = pnand %p717_p9, %p714_p8 }
  0x2c   : > { %722 = shalt.err (!%p719_p10)
}
  0x2d   : > { %s723_s8 = scalar_lea.vmem %s178_s9, 16  ;;  %s730_s10 = scalar_lea.vmem %s178_s9, 32 }
  0x2e   : > { %p724_p1 = scmp.ne.s32.totalorder %s178_s9, %s723_s8  ;;  %p731_p11 = scmp.lt.s32.totalorder %s178_s9, %s178_s9 }
  0x2f   : > { %p732_p6 = scmp.lt.s32.totalorder %s730_s10, %s723_s8 }
  0x30   : > { %p726_p4 = pnand %p724_p1, %p1052_p3 }
  0x31   : > { %p733_p13 = por %p732_p6, %p731_p11 }
  0x32   : > { %p727_p12 = pneg %p726_p4 }
  0x34   : > { %p734_p5 = pnand %p733_p13, %p727_p12 }
  0x36   : > { %737 = shalt.err (!%p734_p5)
}
  0x37   : > { %637 = dma.hbm_to_vmem [thread:$0]  (!%p1038_p0), %s1285_s1, 16, %s178_s9, [#allocation6]  }
  0x38   : > { %s738_s17 = scalar_lea.hbm %s1264_s3, 256 }
  0x39   : > { %p739_p4 = scmp.ne.s32.totalorder %s1264_s3, %s738_s17  ;;  %p745_p5 = scmp.lt.u32.totalorder %s738_s17, %s1264_s3 }
  0x3b   : > { %p741_p2 = pnand %p739_p4, %p1052_p3 }
  0x3d   : > { %p742_p6 = pneg %p741_p2 }
  0x3f   : > { %p747_p11 = pnand %p745_p5, %p742_p6 }
  0x41   : > { %750 = shalt.err (!%p747_p11)
}
  0x42   : > { %s751_s9 = scalar_lea.vmem %s1042_s11, 256  ;;  %p759_p8 = scmp.lt.s32.totalorder %s1042_s11, %s1042_s11 }
  0x43   : > { %p752_p12 = scmp.ne.s32.totalorder %s1042_s11, %s751_s9  ;;  %p760_p9 = scmp.lt.s32.totalorder %s751_s9, %s751_s9 }
  0x45   : > { %p754_p13 = pnand %p752_p12, %p1052_p3  ;;  %p761_p10 = por %p760_p9, %p759_p8 }
  0x47   : > { %p755_p7 = pneg %p754_p13 }
  0x49   : > { %p762_p1 = pnand %p761_p10, %p755_p7 }
  0x4b   : > { %765 = shalt.err (!%p762_p1)
}
  0x4c   : > { %s928_s13 = smov 64   ;;  %s929_s14 = smov 4  }
  0x4d   : > { %643 = dma.hbm_to_vmem [thread:$0]  (!%p1038_p0), %s1264_s3, 256, %s1042_s11, [#allocation9], %s928_s13, %s928_s13, %s929_s14  }
  0x4e   : > { %s930_s17 = smov [#allocation7]   ;;  %s931_s26 = smov [#allocation10]  }
  0x4f   : > { %s188_s25 = sshll.u32 %s930_s17, 4  ;;  %s212_s8 = sshll.u32 %s931_s26, 4  ;;  %s189_s25 = int_to_ptr.vmem [resolvable:$true] %s188_s25  ;;  %s213_s8 = int_to_ptr.vmem [resolvable:$true] %s212_s8 }
  0x50   : > { %s766_s1 = scalar_lea.hbm %s1263_s2, 16 }
  0x51   : > { %p767_p4 = scmp.ne.s32.totalorder %s1263_s2, %s766_s1  ;;  %p773_p5 = scmp.lt.u32.totalorder %s766_s1, %s1263_s2 }
  0x53   : > { %p769_p2 = pnand %p767_p4, %p1052_p3 }
  0x55   : > { %p770_p6 = pneg %p769_p2 }
  0x57   : > { %p775_p11 = pnand %p773_p5, %p770_p6 }
  0x59   : > { %778 = shalt.err (!%p775_p11)
}
  0x5a   : > { %s779_s11 = scalar_lea.vmem %s189_s25, 16  ;;  %s786_s13 = scalar_lea.vmem %s189_s25, 32 }
  0x5b   : > { %p780_p12 = scmp.ne.s32.totalorder %s189_s25, %s779_s11  ;;  %p787_p8 = scmp.lt.s32.totalorder %s189_s25, %s189_s25 }
  0x5c   : > { %p788_p9 = scmp.lt.s32.totalorder %s786_s13, %s779_s11 }
  0x5d   : > { %p782_p13 = pnand %p780_p12, %p1052_p3 }
  0x5e   : > { %p789_p10 = por %p788_p9, %p787_p8 }
  0x5f   : > { %p783_p7 = pneg %p782_p13 }
  0x61   : > { %p790_p1 = pnand %p789_p10, %p783_p7 }
  0x63   : > { %793 = shalt.err (!%p790_p1)
}
  0x64   : > { %640 = dma.hbm_to_vmem [thread:$0]  (!%p1038_p0), %s1263_s2, 16, %s189_s25, [#allocation6]  }
  0x65   : > { %s794_s6 = scalar_lea.hbm %s1265_s4, 16 }
  0x66   : > { %p795_p4 = scmp.ne.s32.totalorder %s1265_s4, %s794_s6  ;;  %p801_p5 = scmp.lt.u32.totalorder %s794_s6, %s1265_s4 }
  0x68   : > { %p797_p2 = pnand %p795_p4, %p1052_p3 }
  0x6a   : > { %p798_p6 = pneg %p797_p2 }
  0x6c   : > { %p803_p11 = pnand %p801_p5, %p798_p6 }
  0x6e   : > { %806 = shalt.err (!%p803_p11)
}
  0x6f   : > { %s807_s26 = scalar_lea.vmem %s213_s8, 16  ;;  %s814_s25 = scalar_lea.vmem %s213_s8, 32 }
  0x70   : > { %p808_p12 = scmp.ne.s32.totalorder %s213_s8, %s807_s26  ;;  %p815_p8 = scmp.lt.s32.totalorder %s213_s8, %s213_s8 }
  0x71   : > { %p816_p9 = scmp.lt.s32.totalorder %s814_s25, %s807_s26 }
  0x72   : > { %p810_p13 = pnand %p808_p12, %p1052_p3 }
  0x73   : > { %p817_p10 = por %p816_p9, %p815_p8 }
  0x74   : > { %p811_p7 = pneg %p810_p13 }
  0x76   : > { %p818_p1 = pnand %p817_p10, %p811_p7 }
  0x78   : > { %821 = shalt.err (!%p818_p1)
}
  0x79   : > { %646 = dma.hbm_to_vmem [thread:$0]  (!%p1038_p0), %s1265_s4, 16, %s213_s8, [#allocation9]  }
  0x7a   : > { %p569_p4 = scmp.ge.s32.totalorder %s924_s21, 2 }
  0x7b   : > { %p1287_p3 = scmp.ne.s32.totalorder (!%p569_p4), %s1278_s28, 0 }
  0x7c   : > { %219 = sbr.rel (%p569_p4) target bundleno = 166 (0xa6), region = 32 }
  0x83   : > { %222 = sbr.rel (!%p1287_p3) target bundleno = 166 (0xa6), region = 36  ;;  %s223_s23 = sand.u32 (%p1287_p3), 1, %s920_s20  }
  0x84   : > { %s571_s11 = sshll.u32 (%p1287_p3), %s924_s21, 1  ;;  %s570_s13 = sshll.u32 (%p1287_p3), %s223_s23, 3 }
  0x85   : > { %s229_s24 = ssub.s32 (%p1287_p3), 3, %s571_s11  ;;  %s1137_s27 = scalar_lea.sflag (%p1287_p3), [#allocation3], %s223_s23 }
  0x86   : > { %p230_p2 = scmp.lt.s32.totalorder (%p1287_p3), %s229_s24, 2  ;;  %s227_s1 = scalar_lea.vmem (%p1287_p3), [#allocation2], %s570_s13 }
  0x8a   : > { %s1304_s24 = smov (!%p230_p2, %s229_s24), 2 }
  0x8b   : > { %s1134_s12 = sshll.u32 %s1304_s24, 6 }
  0x8c   : > { %s234_s8 = ssub.s32 128, %s1134_s12 }
  0x8d   : > { %235 = vsyncadd %s1137_s27, %s234_s8  ;;  %p573_p0 = scmp.ne.s32.totalorder %s1134_s12, 0  ;;  %s599_s28 = sshll.u32 %s924_s21, 7 }
  0x8e   : > { %s1145_s14 = scalar_lea.hbm %s1261_s0, %s599_s28  ;;  %s240_s15 = sshll.u32 %s227_s1, 4  ;;  %s1147_s15 = int_to_ptr.vmem [resolvable:$true] %s240_s15 }
  0x8f   : > { %s822_s16 = scalar_lea.hbm %s1145_s14, %s1134_s12  ;;  %s826_s25 = scalar_lea.hbm %s1261_s0, 192 }
  0x90   : > { %p823_p6 = scmp.ne.s32.totalorder %s1145_s14, %s822_s16  ;;  %p827_p12 = scmp.lt.u32.totalorder %s1145_s14, %s1261_s0 }
  0x91   : > { %p828_p13 = scmp.lt.u32.totalorder %s826_s25, %s822_s16  ;;  %p830_p8 = scmp.lt.u32.totalorder %s822_s16, %s1145_s14 }
  0x92   : > { %p824_p5 = pnand %p823_p6, %p573_p0 }
  0x93   : > { %p829_p7 = por %p828_p13, %p827_p12 }
  0x94   : > { %p825_p11 = pneg %p824_p5 }
  0x95   : > { %p831_p9 = por %p830_p8, %p829_p7 }
  0x97   : > { %p832_p10 = pnand %p831_p9, %p825_p11 }
  0x99   : > { %835 = shalt.err (!%p832_p10)
}
  0x9a   : > { %s836_s23 = scalar_lea.vmem %s1147_s15, %s1134_s12  ;;  %s932_s11 = smov [#allocation2]  }
  0x9b   : > { %p837_p1 = scmp.ne.s32.totalorder %s1147_s15, %s836_s23  ;;  %s840_s13 = sshll.u32 %s932_s11, 4  ;;  %s841_s13 = int_to_ptr.vmem [resolvable:$false] %s840_s13 }
  0x9c   : > { %s842_s24 = scalar_lea.vmem %s841_s13, 256  ;;  %p843_p6 = scmp.lt.s32.totalorder %s1147_s15, %s841_s13 }
  0x9d   : > { %p838_p3 = pnand %p837_p1, %p573_p0  ;;  %p844_p5 = scmp.lt.s32.totalorder %s842_s24, %s836_s23 }
  0x9f   : > { %p839_p2 = pneg %p838_p3  ;;  %p845_p12 = por %p844_p5, %p843_p6 }
  0xa1   : > { %p846_p13 = pnand %p845_p12, %p839_p2 }
  0xa3   : > { %849 = shalt.err (!%p846_p13)
}
  0xa4   : > { %s933_s8 = smov 64   ;;  %s934_s1 = smov 4  }
  0xa5   : > { %246 = dma.hbm_to_vmem [thread:$0]  (%p573_p0), %s1145_s14, %s1134_s12, %s1147_s15, %s1137_s27, %s933_s8, %s933_s8, %s934_s1  }
  0xa6 PF: > { %p1288_p11 = scmp.ne.s32.totalorder %s1283_s7, 0 }
  0xa7   : > { %s1177_s28 = sand.u32 (!%p1288_p11), 1, %s916_s19   ;;  %p1289_p7 = scmp.ne.s32.totalorder (!%p1288_p11), %s1279_s29, 0 }
  0xa8   : > { %252 = sbr.rel (%p1288_p11) target bundleno = 749 (0x2ed), region = 40  ;;  %s578_s18 = sshll.u32 (!%p1288_p11), %s1177_s28, 3 }
  0xa9   : > { %s255_s6 = scalar_lea.sflag (!%p1288_p11), [#allocation3], %s1177_s28  ;;  %s258_s16 = scalar_lea.vmem (!%p1288_p11), [#allocation2], %s578_s18 }
  0xaf   : > { %895 = dma.done.wait (%p1289_p7), %s255_s6, 128  }
  0xb0   : > { %897 = vsyncadd (%p1289_p7), %s255_s6, 4294967168  ;;  %p1290_p0 = scmp.eq.s32.totalorder %s991_s22, 0 }
  0xb2   : > { %899 = dma.done.wait (%p1290_p0), [#allocation6], 32   ;;  %p1291_p8 = pmov %p1290_p0 }
  0xb3   : > { %p1292_p9 = pmov %p1290_p0 }
  0xb4   : > { %901 = vsyncadd (%p1291_p8), [#allocation6], 4294967264 }
  0xb5   : > { %903 = dma.done.wait (%p1292_p9), [#allocation9], 272   ;;  %p1293_p10 = pmov %p1290_p0 }
  0xb6   : > { %v602_v0 = vld [vmem:[%s258_s16] sm:$0xff]   ;;  %vm318_vm0 = vcmask 261120   ;;  %v704_v15 = vld [vmem:[#allocation8] sm:$0xff]   ;;  %v935_v16 = vmov 0.0   ;;  %vm936_vm1 = vmmov 0   ;;  %s583_s29 = sshll.u32 %s1177_s28, 4 }
  0xb7   : > { %905 = vsyncadd (%p1293_p10), [#allocation9], 4294967024  ;;  %v603_v1 = vunpack.c.l.bf16 %v602_v0  ;;  %v604_v2 = vunpack.c.h.bf16 %v602_v0  ;;  %608 = vmatprep.subr.bf16.mxu0 %v935_v16  ;;  %v705_v17 = vld [vmem:[#allocation8 + $0x8] sm:$0xff]   ;;  %612 = vmatprep.mubr.msk.bf16.mxu0 %vm936_vm1, %v935_v16  ;;  %v584_v26 = vld [vmem:[#allocation5] ss:$0 sm:$0xff]  ;;  %s300_s7 = scalar_lea.vmem [#allocation11], %s583_s29 }
  0xb8   : > { %609 = vmatpush3.bf16.msra.mxu0 %v704_v15  ;;  %v585_v30 = vld [vmem:[#allocation7] ss:$0 sm:$0xff]  ;;  %v586_v35 = vld [vmem:[#allocation10] ss:$0 sm:$0xff]  ;;  %s433_s12 = scalar_lea.sflag [#allocation4], %s1177_s28  ;;  %p1294_p1 = scmp.ne.s32.totalorder %s1280_s30, 0 }
  0xb9   : > { %v319_v3 = vsel %vm318_vm0, %v603_v1, 0.0  ;;  %v322_v4 = vsel %vm318_vm0, %v604_v2, 0.0  ;;  %610 = vmatprep.subr.bf16.mxu0 %v935_v16  ;;  %s591_s27 = sshll.u32 (%p1294_p1), %s991_s22, 1 }
  0xba   : > { %320 = vadd.xlane.f32.xlu0 %v319_v3  ;;  %s441_s14 = ssub.s32 (%p1294_p1), 3, %s591_s27 }
  0xbb   : > { %p442_p3 = scmp.lt.s32.totalorder (%p1294_p1), %s441_s14, 2 }
  0xbc   : > { %611 = vmatpush3.bf16.msra.mxu0 %v705_v17 }
  0xbe   : > { %323 = vadd.xlane.f32.xlu0 %v322_v4 }
 0x147   : > { %v321_v5 = vpop.xlane.xlu0 %320 }
 0x148   : > { %v326_v6 = vmul.f32 0.03125, %v321_v5 }
 0x14a   : > { %v328_v7 = vsub.f32 %v603_v1, %v326_v6 }
 0x14b   : > { %v324_v8 = vpop.xlane.xlu0 %323 }
 0x14c   : > { %v327_v9 = vmul.f32 0.03125, %v324_v8  ;;  %v330_v10 = vmul.f32 %v328_v7, %v328_v7 }
 0x14e   : > { %v329_v11 = vsub.f32 %v604_v2, %v327_v9  ;;  %v332_v12 = vsel %vm318_vm0, %v330_v10, 0.0 }
 0x14f   : > { %333 = vadd.xlane.f32.xlu1 %v332_v12 }
 0x150   : > { %v331_v13 = vmul.f32 %v329_v11, %v329_v11 }
 0x152   : > { %v335_v14 = vsel %vm318_vm0, %v331_v13, 0.0 }
 0x153   : > { %336 = vadd.xlane.f32.xlu1 %v335_v14 }
 0x1dc   : > { %v334_v18 = vpop.xlane.xlu1 %333 }
 0x1dd   : > { %v338_v19 = vmul.f32 0.03125, %v334_v18 }
 0x1df   : > { %v340_v20 = vadd.f32 1e-05, %v338_v19 }
 0x1e0   : > { %v337_v21 = vpop.xlane.xlu1 %336 }
 0x1e1   : > { %706 = vrsqrt.f32 %v340_v20  ;;  %v339_v22 = vmul.f32 0.03125, %v337_v21 }
 0x1e3   : > { %v341_v23 = vadd.f32 1e-05, %v339_v22 }
 0x1e5   : > { %708 = vrsqrt.f32 %v341_v23 }
 0x1eb   : > { %v707_v24 = vpop.eup %706 }
 0x1ec   : > { %v344_v25 = vmul.f32 %v707_v24, %v328_v7 }
 0x1ee   : > { %v352_v29 = vmul.f32 %v584_v26, %v344_v25 }
 0x1ef   : > { %v709_v27 = vpop.eup %708 }
 0x1f0   : > { %v345_v28 = vmul.f32 %v709_v27, %v329_v11  ;;  %v360_v32 = vadd.f32 %v585_v30, %v352_v29 }
 0x1f2   : > { %v353_v31 = vmul.f32 %v584_v26, %v345_v28 }
 0x1f4   : > { %v361_v33 = vadd.f32 %v585_v30, %v353_v31 }
 0x1f6   : > { %v362_v34 = vpack.c.bf16 %v361_v33, %v360_v32 }
 0x1f8   : > { %613 = vmatmul.mubr.msk.bf16.vlgmr.msra.gmra.mrb[0].mxu0 %vm318_vm0, %v362_v34 }
 0x2ca   : > { %439 = sbr.rel (!%p1294_p1) target bundleno = 749 (0x2ed), region = 64 }
 0x2cb   : > { %v423_v36 = vpop.f32.mrb[0].mxu0 }
 0x2cc   : > { %v424_v37 = vadd.f32 %v586_v35, %v423_v36  ;;  %v614_v38 = vpop.f32.mrb[1].mxu0 }
 0x2cd   : > { %v426_v39 = vpop.f32.mrb[2].mxu0 }
 0x2ce   : > { %430 = vst [vmem:[%s300_s7] sm:$0xff] %v424_v37  ;;  %v427_v40 = vadd.f32 %v586_v35, %v426_v39  ;;  %v615_v41 = vpop.f32.mrb[3].mxu0 }
 0x2d0   : > { %431 = vst [vmem:[%s300_s7 + $0x8] sm:$0xff] %v427_v40 }
 0x2d1   : > { %s1306_s14 = smov (!%p442_p3, %s441_s14), 2 }
 0x2d2   : > { %s1203_s15 = sshll.u32 %s1306_s14, 7 }
 0x2d3   : > { %s446_s17 = ssub.s32 256, %s1203_s15 }
 0x2d4   : > { %447 = vsyncadd %s433_s12, %s446_s17  ;;  %p593_p2 = scmp.ne.s32.totalorder %s1203_s15, 0  ;;  %s600_s26 = sshll.u32 %s991_s22, 8 }
 0x2d5   : > { %s1213_s10 = scalar_lea.hbm %s1266_s5, %s600_s26  ;;  %s452_s9 = sshll.u32 %s300_s7, 4  ;;  %s1215_s9 = int_to_ptr.vmem [resolvable:$true] %s452_s9 }
 0x2d6   : > { %s850_s23 = scalar_lea.vmem %s1215_s9, %s1203_s15  ;;  %s937_s11 = smov [#allocation11]  }
 0x2d7   : > { %p851_p6 = scmp.ne.s32.totalorder %s1215_s9, %s850_s23  ;;  %s854_s13 = sshll.u32 %s937_s11, 4  ;;  %s855_s13 = int_to_ptr.vmem [resolvable:$false] %s854_s13 }
 0x2d8   : > { %s856_s22 = scalar_lea.vmem %s855_s13, 512  ;;  %p857_p13 = scmp.lt.s32.totalorder %s1215_s9, %s855_s13 }
 0x2d9   : > { %p852_p5 = pnand %p851_p6, %p593_p2  ;;  %p858_p11 = scmp.lt.s32.totalorder %s856_s22, %s850_s23 }
 0x2db   : > { %p853_p12 = pneg %p852_p5  ;;  %p859_p7 = por %p858_p11, %p857_p13 }
 0x2dd   : > { %p860_p0 = pnand %p859_p7, %p853_p12 }
 0x2df   : > { %863 = shalt.err (!%p860_p0)
}
 0x2e0   : > { %s864_s24 = scalar_lea.hbm %s1213_s10, %s1203_s15  ;;  %s868_s18 = scalar_lea.hbm %s1266_s5, 384 }
 0x2e1   : > { %p865_p8 = scmp.ne.s32.totalorder %s1213_s10, %s864_s24  ;;  %p869_p1 = scmp.lt.u32.totalorder %s1213_s10, %s1266_s5 }
 0x2e2   : > { %p870_p3 = scmp.lt.u32.totalorder %s868_s18, %s864_s24  ;;  %p872_p5 = scmp.lt.u32.totalorder %s864_s24, %s1213_s10 }
 0x2e3   : > { %p866_p9 = pnand %p865_p8, %p593_p2 }
 0x2e4   : > { %p871_p6 = por %p870_p3, %p869_p1 }
 0x2e5   : > { %p867_p10 = pneg %p866_p9 }
 0x2e6   : > { %p873_p12 = por %p872_p5, %p871_p6 }
 0x2e8   : > { %p874_p13 = pnand %p873_p12, %p867_p10 }
 0x2ea   : > { %877 = shalt.err (!%p874_p13)
}
 0x2eb   : > { %s938_s29 = smov 128   ;;  %s939_s7 = smov 8  }
 0x2ec   : > { %458 = dma.vmem_to_hbm [thread:$0]  (%p593_p2), %s1215_s9, %s1203_s15, %s1213_s10, %s433_s12, %s938_s29, %s938_s29, %s939_s7  }
 0x2ed PF: > { %s1295_s27 = sld [smem:[#allocation16_spill]]  ;;  %s1296_s14 = sld [smem:[#allocation19_spill]] }
 0x2f3   : > { %s467_s17 = sand.u32 1, %s1295_s27   ;;  %p1297_p11 = scmp.ne.s32.totalorder %s1296_s14, 0 }
 0x2f4   : > { %s468_s26 = scalar_lea.sflag [#allocation4], %s467_s17 }
 0x2f5   : > { %p648_p7 = pnand %p569_p4, %p1297_p11 }
 0x2f7   : > { %907 = dma.done.wait (!%p648_p7), %s468_s26, 256  }
 0x2f8   : > { %909 = vsyncadd (!%p648_p7), %s468_s26, 4294967040  ;;  %s1298_s21 = sld [smem:[#allocation17_spill]]  ;;  %s1299_s30 = sld [smem:[#allocation18_spill]] }
 0x2f9   : > { %s1300_s18 = smov %s916_s19  ;;  %s1301_s19 = smov %s920_s20 }
 0x2fe   : > { %p20_p0 = scmp.ge.s32.totalorder %s1298_s21, 4   ;;  %s1302_s20 = smov %s1299_s30 }
 0x300   :  { %22 = sbr.rel (!%p20_p0) target bundleno = 9 (0x9), region = 101 }
 0x307   :  { %473 = vsyncpa [#allocation3], 1 }
 0x308   :  { %475 = vsyncpa [#allocation3 + $0x1], 1 }
 0x309   :  { %476 = vsyncpa [#allocation6], 1 }
 0x30a   :  { %477 = vsyncpa [#allocation9], 1 }
 0x30b   :  { %478 = vsyncpa [#allocation4], 1 }
 0x30c   :  { %480 = vsyncpa [#allocation4 + $0x1], 1 }

</bundles_post_ra>
